<compile_context>
chip_gen: v6e
topology: v6e:2x2x1
jax: 0.10.0
libtpu: 0.0.40
codegen_flags: <defaults>
</compile_context>

<pallas_src>
import functools

import jax
import jax.numpy as jnp
from jax import lax
from jax.experimental import pallas as pl
from jax.experimental.pallas import tpu as pltpu

# Static per-layer conv config: (cin, cout, g).  g = horizontal pixel-group
# size of the grouped im2col, chosen so g*cout >= 256 and g divides W.
CONV_CFG = [
    (3, 8, 32),
    (8, 16, 16),
    (16, 32, 8),
    (32, 64, 4),
    (64, 128, 2),
    (128, 256, 2),
]
NUM_ATTRIBUTES = 40
LANE = 128
VMEM_LIMIT = 48 * 1024 * 1024


def _round_up(x, m):
    return (x + m - 1) // m * m


# --------------------------------------------------------------------------
# Pallas kernels
# --------------------------------------------------------------------------

def _conv_bias_relu_pool_kernel(lhs_ref, w_ref, b_ref, o_ref, *,
                                wg, n_half, rp, n_steps):
    """Fused 3x3 conv (grouped matmul) + bias + ReLU + 2x2/2 max pool.

    lhs_ref: (Mt, Kp)        bf16  grouped im2col rows, row = (conv_row, w_group)
    w_ref:   (Kp, Np)        bf16  grouped weights, cols = [even pixels | odd pixels]
    b_ref:   (1, n_half)     f32   bias tiled over the g/2 pooled pixels of a group
    o_ref:   (Mt//2, n_half) bf16  pooled rows, row = (pooled_row, w_group)
    """
    ms = 2 * rp * wg  # LHS rows per inner step = rp conv-row pairs

    def body(i, carry):
        base = pl.multiple_of(i * ms, ms)
        y = jnp.dot(lhs_ref[pl.ds(base, ms), :], w_ref[...],
                    preferred_element_type=jnp.float32)          # (ms, Np) f32
        # Horizontal pool: even-pixel column block vs. odd-pixel column block
        # (both 128-aligned lane halves).  Bias/ReLU commute with max.
        cp = jnp.maximum(y[:, :n_half], y[:, n_half:])           # (ms, n_half)
        obase = pl.multiple_of(i * rp * wg, wg)
        for k in range(rp):                                      # static unroll
            top = cp[(2 * k) * wg:(2 * k + 1) * wg, :]           # conv row 2k
            bot = cp[(2 * k + 1) * wg:(2 * k + 2) * wg, :]       # conv row 2k+1
            out = jnp.maximum(jnp.maximum(top, bot) + b_ref[...], 0.0)
            o_ref[pl.ds(obase + k * wg, wg), :] = out.astype(o_ref.dtype)
        return carry

    lax.fori_loop(0, n_steps, body, 0)


def _fc_kernel(x_ref, w_ref, b_ref, o_ref, acc_ref, *, activation):
    """out = act(x @ w + b); grid = (K tiles,) is a reduction axis."""
    k = pl.program_id(0)

    @pl.when(k == 0)
    def _():
        acc_ref[...] = jnp.zeros_like(acc_ref)

    acc_ref[...] += jnp.dot(x_ref[...], w_ref[...],
                            preferred_element_type=jnp.float32)

    @pl.when(k == pl.num_programs(0) - 1)
    def _():
        r = acc_ref[...] + b_ref[...]
        if activation == "relu":
            r = jnp.maximum(r, 0.0)
        elif activation == "sigmoid":
            r = jax.nn.sigmoid(r)
        o_ref[...] = r.astype(o_ref.dtype)


# --------------------------------------------------------------------------
# Wrappers (pallas_call plumbing)
# --------------------------------------------------------------------------

def _im2col_grouped(x, g, kpad):
    """x: (B, H, W, C) -> (B*H*(W//g), kpad).  Feature order (dh, j, ci) with
    j in [0, g+2); zero padded from 3*(g+2)*C up to kpad (multiple of 128)."""
    B, H, W, C = x.shape
    wg = W // g
    xp = jnp.pad(x, ((0, 0), (1, 1), (1, 1), (0, 0)))
    slabs = []
    for dh in range(3):
        xr = xp[:, dh:dh + H, :, :]                              # (B, H, W+2, C)
        main = xr[:, :, :W, :].reshape(B, H, wg, g, C)           # cols wg*g + (0..g-1)
        e1 = xr[:, :, g:W + 1:g, :].reshape(B, H, wg, 1, C)      # col  wg*g + g
        e2 = xr[:, :, g + 1:W + 2:g, :].reshape(B, H, wg, 1, C)  # col  wg*g + g + 1
        slabs.append(jnp.concatenate([main, e1, e2], axis=3))    # (B, H, wg, g+2, C)
    feats = jnp.stack(slabs, axis=3).reshape(B, H, wg, 3 * (g + 2) * C)
    kp = feats.shape[-1]
    if kpad > kp:
        feats = jnp.concatenate(
            [feats, jnp.zeros((B, H, wg, kpad - kp), feats.dtype)], axis=-1)
    return feats.reshape(B * H * wg, kpad)


def conv3x3_relu_maxpool(x, w2, bias_row, g, cout):
    """x: (B, H, W, Cin) bf16 NHWC -> (B, H//2, W//2, cout) bf16.
    Conv2d(3x3, pad=1) + bias + ReLU + MaxPool2d(2, 2), fused in one kernel."""
    B, H, W, _ = x.shape
    wg = W // g
    assert H % 2 == 0 and W % g == 0 and wg % 8 == 0
    kpad = w2.shape[0]
    npp = w2.shape[1]                      # g * cout
    n_half = npp // 2
    assert npp == g * cout and n_half % LANE == 0
    ho, wo = H // 2, W // 2

    cols = _im2col_grouped(x, g, kpad)     # (B*H*wg, kpad) bf16

    # Block sizing: ~4096 LHS rows per grid block, covering whole conv rows.
    nb = max(1, (H * wg) // 4096)
    assert H % nb == 0
    rb = H // nb                           # conv rows per grid block
    rp = 4                                 # conv-row pairs per inner step
    while rb % (2 * rp) != 0:
        rp //= 2
    mt = rb * wg
    n_steps = mt // (2 * rp * wg)

    kernel = functools.partial(_conv_bias_relu_pool_kernel,
                               wg=wg, n_half=n_half, rp=rp, n_steps=n_steps)
    out = pl.pallas_call(
        kernel,
        out_shape=jax.ShapeDtypeStruct((B * ho * wg, n_half), jnp.bfloat16),
        grid_spec=pltpu.PrefetchScalarGridSpec(
            num_scalar_prefetch=0,
            grid=(B, nb),
            in_specs=[
                pl.BlockSpec((mt, kpad), lambda b, i: (b * nb + i, 0)),
                pl.BlockSpec((kpad, npp), lambda b, i: (0, 0)),
                pl.BlockSpec((1, n_half), lambda b, i: (0, 0)),
            ],
            out_specs=pl.BlockSpec((mt // 2, n_half),
                                   lambda b, i: (b * nb + i, 0)),
        ),
        compiler_params=pltpu.CompilerParams(
            dimension_semantics=("parallel", "parallel"),
            vmem_limit_bytes=VMEM_LIMIT),
    )(cols, w2, bias_row)

    # rows ordered (b, pooled_row, w_group); cols ordered (pooled_pixel, cout)
    return out.reshape(B, ho, wo, cout)


def linear(x, w, b, activation="none", out_dtype=jnp.bfloat16, tk_max=4096):
    """act(x @ w + b).  x: (M, K) bf16, w: (K, N) bf16, b: (N,) f32."""
    M, K = x.shape
    K2, N = w.shape
    assert K == K2 and b.shape == (N,)
    tk = K if K <= tk_max else tk_max
    assert K % tk == 0
    nk = K // tk
    kernel = functools.partial(_fc_kernel, activation=activation)
    return pl.pallas_call(
        kernel,
        out_shape=jax.ShapeDtypeStruct((M, N), out_dtype),
        grid_spec=pltpu.PrefetchScalarGridSpec(
            num_scalar_prefetch=0,
            grid=(nk,),
            in_specs=[
                pl.BlockSpec((M, tk), lambda k: (0, k)),
                pl.BlockSpec((tk, N), lambda k: (k, 0)),
                pl.BlockSpec((1, N), lambda k: (0, 0)),
            ],
            out_specs=pl.BlockSpec((M, N), lambda k: (0, 0)),
            scratch_shapes=[pltpu.VMEM((M, N), jnp.float32)],
        ),
        compiler_params=pltpu.CompilerParams(
            dimension_semantics=("arbitrary",),
            vmem_limit_bytes=VMEM_LIMIT),
    )(x, w, b.reshape(1, N))


# --------------------------------------------------------------------------
# Parameters & forward pass
# --------------------------------------------------------------------------

def _build_grouped_conv_weight(w, g, kpad):
    """w: (3, 3, cin, cout) -> (kpad, g*cout) bf16.  Output columns ordered
    [even pixels p=0,2,... (cout each) | odd pixels p=1,3,...]; rows ordered
    (dh, j, ci) with zero rows for features outside a pixel's 3x3 patch and
    for the zero padding up to kpad."""
    _, _, cin, cout = w.shape
    w2 = jnp.zeros((3, g + 2, cin, g, cout), jnp.float32)
    for p in range(g):
        w2 = w2.at[:, p:p + 3, :, p, :].set(w)
    order = list(range(0, g, 2)) + list(range(1, g, 2))
    w2 = w2[:, :, :, order, :].reshape(3 * (g + 2) * cin, g * cout)
    kp = w2.shape[0]
    if kpad > kp:
        w2 = jnp.pad(w2, ((0, kpad - kp), (0, 0)))
    return w2.astype(jnp.bfloat16)


def init_params(key, num_attributes):
    """Deterministic synthetic parameters (PyTorch-like uniform fan-in init).
    Conv weights are pre-packed into the grouped-matmul layout (bf16)."""
    params = {"conv": [], "lin": []}
    for (cin, cout, g) in CONV_CFG:
        key, k1, k2 = jax.random.split(key, 3)
        bound = 1.0 / float(9 * cin) ** 0.5
        w = jax.random.uniform(k1, (3, 3, cin, cout), jnp.float32, -bound, bound)
        b = jax.random.uniform(k2, (cout,), jnp.float32, -bound, bound)
        kpad = _round_up(3 * (g + 2) * cin, LANE)
        params["conv"].append({
            "w2": _build_grouped_conv_weight(w, g, kpad),
            "bias_row": jnp.tile(b, g // 2).reshape(1, (g // 2) * cout),
        })
    lin_dims = [(256 * 8 * 8, 256), (256, 64), (64, num_attributes)]
    for fin, fout in lin_dims:
        key, k1, k2 = jax.random.split(key, 3)
        bound = 1.0 / float(fin) ** 0.5
        w = jax.random.uniform(k1, (fin, fout), jnp.float32, -bound, bound)
        b = jax.random.uniform(k2, (fout,), jnp.float32, -bound, bound)
        params["lin"].append({"w": w.astype(jnp.bfloat16), "b": b})
    return params


def attributes_network_forward(params, x_nchw):
    """Forward pass.  x_nchw: (B, 3, 512, 512) f32 -> (B, num_attributes) f32."""
    x = jnp.transpose(x_nchw, (0, 2, 3, 1)).astype(jnp.bfloat16)   # NCHW -> NHWC
    for (_, cout, g), layer in zip(CONV_CFG, params["conv"]):
        x = conv3x3_relu_maxpool(x, layer["w2"], layer["bias_row"], g, cout)
    B = x.shape[0]
    # Match PyTorch `x.view(B, -1)` on an NCHW tensor: flatten in (C, H, W) order.
    x = jnp.transpose(x, (0, 3, 1, 2)).reshape(B, -1)
    # Dropout(p=0.2) is identity in eval mode.
    x = linear(x, params["lin"][0]["w"], params["lin"][0]["b"], "relu")
    x = linear(x, params["lin"][1]["w"], params["lin"][1]["b"], "relu")
    x = linear(x, params["lin"][2]["w"], params["lin"][2]["b"],
               "sigmoid", out_dtype=jnp.float32)
    return x


# --------------------------------------------------------------------------
# Demo
# --------------------------------------------------------------------------

if __name__ == "__main__":
    key = jax.random.PRNGKey(0)
    kparam, kx = jax.random.split(key)
    params = init_params(kparam, NUM_ATTRIBUTES)

    # Spatial size 512 is dictated by the hard-coded Linear(256*8*8, ...):
    # six 2x2 max-pools reduce 512 -> 8.  Batch=2, 3-channel RGB input.
    x = jax.random.normal(kx, (2, 3, 512, 512), dtype=jnp.float32)

    fwd = jax.jit(attributes_network_forward)
    out = jax.block_until_ready(fwd(params, x))

    assert out.shape == (2, NUM_ATTRIBUTES), out.shape
    assert bool(jnp.all(jnp.isfinite(out)))
    assert bool(jnp.all((out >= 0.0) & (out <= 1.0)))   # sigmoid range
    print("KERNEL_OK")
</pallas_src>

<mosaic_0001>
module attributes {stable_mosaic.version = 11 : i64} {
  func.func @_conv_bias_relu_pool_kernel(%arg0: i32, %arg1: i32, %arg2: memref<4096x384xbf16, #tpu.memory_space<vmem>>, %arg3: memref<384x256xbf16, #tpu.memory_space<vmem>>, %arg4: memref<1x128xf32, #tpu.memory_space<vmem>>, %arg5: memref<2048x128xbf16, #tpu.memory_space<vmem>>) attributes {dimension_semantics = [#tpu.dimension_semantics<parallel>, #tpu.dimension_semantics<parallel>], iteration_bounds = array<i64: 2, 2>, scalar_prefetch = 0 : i64, scratch_operands = 0 : i64, tpu.core_type = #tpu.core_type<tc>, window_params = [{transform_indices = @transform_0, window_bounds = array<i64: 4096, 384>}, {pipeline_mode = #tpu.pipeline_mode<synchronous>, transform_indices = @transform_1, window_bounds = array<i64: 384, 256>}, {pipeline_mode = #tpu.pipeline_mode<synchronous>, transform_indices = @transform_2, window_bounds = array<i64: 1, 128>}, {transform_indices = @transform_3, window_bounds = array<i64: 2048, 128>}]} {
    %c0_i32 = arith.constant 0 : i32
    %c32_i32 = arith.constant 32 : i32
    %0 = arith.addi %c0_i32, %c32_i32 : i32
    %c1_i32 = arith.constant 1 : i32
    scf.for %arg6 = %c0_i32 to %0 step %c1_i32  : i32 {
      %c128_i32 = arith.constant 128 : i32
      %1 = arith.muli %arg6, %c128_i32 : i32
      %2 = tpu.assume_multiple %1, 128 : i32
      %3 = arith.index_cast %2 : i32 to index
      %c0 = arith.constant 0 : index
      %4 = vector.load %arg2[%3, %c0] : memref<4096x384xbf16, #tpu.memory_space<vmem>>, vector<128x384xbf16>
      %c0_1 = arith.constant 0 : index
      %c0_2 = arith.constant 0 : index
      %5 = vector.load %arg3[%c0_1, %c0_2] : memref<384x256xbf16, #tpu.memory_space<vmem>>, vector<384x256xbf16>
      %cst = arith.constant dense<0.000000e+00> : vector<128x256xf32>
      %6 = tpu.matmul %4, %5, %cst {dimension_numbers = #tpu.dot_dimension_numbers<[1], [0], [0], [1], [0, 0, 1, 1], [], []>} : vector<128x384xbf16>, vector<384x256xbf16>, vector<128x256xf32> -> vector<128x256xf32>
      %7 = vector.extract_strided_slice %6 {offsets = [0, 0], sizes = [128, 128], strides = [1, 1]} : vector<128x256xf32> to vector<128x128xf32>
      %8 = vector.extract_strided_slice %6 {offsets = [0, 128], sizes = [128, 128], strides = [1, 1]} : vector<128x256xf32> to vector<128x128xf32>
      %9 = arith.maximumf %7, %8 : vector<128x128xf32>
      %c4_i32 = arith.constant 4 : i32
      %10 = arith.muli %arg6, %c4_i32 : i32
      %c16_i32 = arith.constant 16 : i32
      %11 = arith.muli %10, %c16_i32 : i32
      %12 = tpu.assume_multiple %11, 16 : i32
      %13 = vector.extract_strided_slice %9 {offsets = [0, 0], sizes = [16, 128], strides = [1, 1]} : vector<128x128xf32> to vector<16x128xf32>
      %14 = vector.extract_strided_slice %9 {offsets = [16, 0], sizes = [16, 128], strides = [1, 1]} : vector<128x128xf32> to vector<16x128xf32>
      %15 = arith.maximumf %13, %14 : vector<16x128xf32>
      %c0_3 = arith.constant 0 : index
      %c0_4 = arith.constant 0 : index
      %16 = vector.load %arg4[%c0_3, %c0_4] : memref<1x128xf32, #tpu.memory_space<vmem>>, vector<1x128xf32>
      %17 = vector.broadcast %16 : vector<1x128xf32> to vector<16x128xf32>
      %18 = arith.addf %15, %17 : vector<16x128xf32>
      %cst_5 = arith.constant 0.000000e+00 : f32
      %19 = vector.broadcast %cst_5 : f32 to vector<16x128xf32>
      %20 = arith.maximumf %18, %19 : vector<16x128xf32>
      %21 = arith.truncf %20 : vector<16x128xf32> to vector<16x128xbf16>
      %c0_i32_6 = arith.constant 0 : i32
      %22 = arith.addi %12, %c0_i32_6 : i32
      %23 = arith.index_cast %22 : i32 to index
      %c0_7 = arith.constant 0 : index
      %24 = vector.load %arg5[%23, %c0_7] : memref<2048x128xbf16, #tpu.memory_space<vmem>>, vector<16x128xbf16>
      tpu.vector_store %arg5[%23, %c0_7], %21 {strides = array<i32>} : memref<2048x128xbf16, #tpu.memory_space<vmem>>, vector<16x128xbf16>,
      %25 = vector.extract_strided_slice %9 {offsets = [32, 0], sizes = [16, 128], strides = [1, 1]} : vector<128x128xf32> to vector<16x128xf32>
      %26 = vector.extract_strided_slice %9 {offsets = [48, 0], sizes = [16, 128], strides = [1, 1]} : vector<128x128xf32> to vector<16x128xf32>
      %27 = arith.maximumf %25, %26 : vector<16x128xf32>
      %c0_8 = arith.constant 0 : index
      %c0_9 = arith.constant 0 : index
      %28 = vector.load %arg4[%c0_8, %c0_9] : memref<1x128xf32, #tpu.memory_space<vmem>>, vector<1x128xf32>
      %29 = vector.broadcast %28 : vector<1x128xf32> to vector<16x128xf32>
      %30 = arith.addf %27, %29 : vector<16x128xf32>
      %cst_10 = arith.constant 0.000000e+00 : f32
      %31 = vector.broadcast %cst_10 : f32 to vector<16x128xf32>
      %32 = arith.maximumf %30, %31 : vector<16x128xf32>
      %33 = arith.truncf %32 : vector<16x128xf32> to vector<16x128xbf16>
      %c16_i32_11 = arith.constant 16 : i32
      %34 = arith.addi %12, %c16_i32_11 : i32
      %35 = arith.index_cast %34 : i32 to index
      %c0_12 = arith.constant 0 : index
      %36 = vector.load %arg5[%35, %c0_12] : memref<2048x128xbf16, #tpu.memory_space<vmem>>, vector<16x128xbf16>
      tpu.vector_store %arg5[%35, %c0_12], %33 {strides = array<i32>} : memref<2048x128xbf16, #tpu.memory_space<vmem>>, vector<16x128xbf16>,
      %37 = vector.extract_strided_slice %9 {offsets = [64, 0], sizes = [16, 128], strides = [1, 1]} : vector<128x128xf32> to vector<16x128xf32>
      %38 = vector.extract_strided_slice %9 {offsets = [80, 0], sizes = [16, 128], strides = [1, 1]} : vector<128x128xf32> to vector<16x128xf32>
      %39 = arith.maximumf %37, %38 : vector<16x128xf32>
      %c0_13 = arith.constant 0 : index
      %c0_14 = arith.constant 0 : index
      %40 = vector.load %arg4[%c0_13, %c0_14] : memref<1x128xf32, #tpu.memory_space<vmem>>, vector<1x128xf32>
      %41 = vector.broadcast %40 : vector<1x128xf32> to vector<16x128xf32>
      %42 = arith.addf %39, %41 : vector<16x128xf32>
      %cst_15 = arith.constant 0.000000e+00 : f32
      %43 = vector.broadcast %cst_15 : f32 to vector<16x128xf32>
      %44 = arith.maximumf %42, %43 : vector<16x128xf32>
      %45 = arith.truncf %44 : vector<16x128xf32> to vector<16x128xbf16>
      %c32_i32_16 = arith.constant 32 : i32
      %46 = arith.addi %12, %c32_i32_16 : i32
      %47 = arith.index_cast %46 : i32 to index
      %c0_17 = arith.constant 0 : index
      %48 = vector.load %arg5[%47, %c0_17] : memref<2048x128xbf16, #tpu.memory_space<vmem>>, vector<16x128xbf16>
      tpu.vector_store %arg5[%47, %c0_17], %45 {strides = array<i32>} : memref<2048x128xbf16, #tpu.memory_space<vmem>>, vector<16x128xbf16>,
      %49 = vector.extract_strided_slice %9 {offsets = [96, 0], sizes = [16, 128], strides = [1, 1]} : vector<128x128xf32> to vector<16x128xf32>
      %50 = vector.extract_strided_slice %9 {offsets = [112, 0], sizes = [16, 128], strides = [1, 1]} : vector<128x128xf32> to vector<16x128xf32>
      %51 = arith.maximumf %49, %50 : vector<16x128xf32>
      %c0_18 = arith.constant 0 : index
      %c0_19 = arith.constant 0 : index
      %52 = vector.load %arg4[%c0_18, %c0_19] : memref<1x128xf32, #tpu.memory_space<vmem>>, vector<1x128xf32>
      %53 = vector.broadcast %52 : vector<1x128xf32> to vector<16x128xf32>
      %54 = arith.addf %51, %53 : vector<16x128xf32>
      %cst_20 = arith.constant 0.000000e+00 : f32
      %55 = vector.broadcast %cst_20 : f32 to vector<16x128xf32>
      %56 = arith.maximumf %54, %55 : vector<16x128xf32>
      %57 = arith.truncf %56 : vector<16x128xf32> to vector<16x128xbf16>
      %c48_i32 = arith.constant 48 : i32
      %58 = arith.addi %12, %c48_i32 : i32
      %59 = arith.index_cast %58 : i32 to index
      %c0_21 = arith.constant 0 : index
      %60 = vector.load %arg5[%59, %c0_21] : memref<2048x128xbf16, #tpu.memory_space<vmem>>, vector<16x128xbf16>
      tpu.vector_store %arg5[%59, %c0_21], %57 {strides = array<i32>} : memref<2048x128xbf16, #tpu.memory_space<vmem>>, vector<16x128xbf16>,
    }
    %c32_i32_0 = arith.constant 32 : i32
    return
  }
  func.func @transform_0(%arg0: i32, %arg1: i32) -> (i32, i32) {
    %c2_i32 = arith.constant 2 : i32
    %0 = arith.muli %arg0, %c2_i32 : i32
    %1 = arith.addi %0, %arg1 : i32
    %c0_i32 = arith.constant 0 : i32
    %c0_i32_0 = arith.constant 0 : i32
    return %1, %c0_i32 : i32, i32
  }
  func.func @transform_1(%arg0: i32, %arg1: i32) -> (i32, i32) {
    %c0_i32 = arith.constant 0 : i32
    %c0_i32_0 = arith.constant 0 : i32
    %c0_i32_1 = arith.constant 0 : i32
    return %c0_i32, %c0_i32_0 : i32, i32
  }
  func.func @transform_2(%arg0: i32, %arg1: i32) -> (i32, i32) {
    %c0_i32 = arith.constant 0 : i32
    %c0_i32_0 = arith.constant 0 : i32
    %c0_i32_1 = arith.constant 0 : i32
    return %c0_i32, %c0_i32_0 : i32, i32
  }
  func.func @transform_3(%arg0: i32, %arg1: i32) -> (i32, i32) {
    %c2_i32 = arith.constant 2 : i32
    %0 = arith.muli %arg0, %c2_i32 : i32
    %1 = arith.addi %0, %arg1 : i32
    %c0_i32 = arith.constant 0 : i32
    %c0_i32_0 = arith.constant 0 : i32
    return %1, %c0_i32 : i32, i32
  }
}

module attributes {stable_mosaic.version = 11 : i64} {
  func.func @_conv_bias_relu_pool_kernel(%arg0: i32, %arg1: i32, %arg2: memref<4096x512xbf16, #tpu.memory_space<vmem>>, %arg3: memref<512x256xbf16, #tpu.memory_space<vmem>>, %arg4: memref<1x128xf32, #tpu.memory_space<vmem>>, %arg5: memref<2048x128xbf16, #tpu.memory_space<vmem>>) attributes {dimension_semantics = [#tpu.dimension_semantics<parallel>, #tpu.dimension_semantics<parallel>], iteration_bounds = array<i64: 2, 1>, scalar_prefetch = 0 : i64, scratch_operands = 0 : i64, tpu.core_type = #tpu.core_type<tc>, window_params = [{transform_indices = @transform_0, window_bounds = array<i64: 4096, 512>}, {pipeline_mode = #tpu.pipeline_mode<synchronous>, transform_indices = @transform_1, window_bounds = array<i64: 512, 256>}, {pipeline_mode = #tpu.pipeline_mode<synchronous>, transform_indices = @transform_2, window_bounds = array<i64: 1, 128>}, {transform_indices = @transform_3, window_bounds = array<i64: 2048, 128>}]} {
    %c0_i32 = arith.constant 0 : i32
    %c32_i32 = arith.constant 32 : i32
    %0 = arith.addi %c0_i32, %c32_i32 : i32
    %c1_i32 = arith.constant 1 : i32
    scf.for %arg6 = %c0_i32 to %0 step %c1_i32  : i32 {
      %c128_i32 = arith.constant 128 : i32
      %1 = arith.muli %arg6, %c128_i32 : i32
      %2 = tpu.assume_multiple %1, 128 : i32
      %3 = arith.index_cast %2 : i32 to index
      %c0 = arith.constant 0 : index
      %4 = vector.load %arg2[%3, %c0] : memref<4096x512xbf16, #tpu.memory_space<vmem>>, vector<128x512xbf16>
      %c0_1 = arith.constant 0 : index
      %c0_2 = arith.constant 0 : index
      %5 = vector.load %arg3[%c0_1, %c0_2] : memref<512x256xbf16, #tpu.memory_space<vmem>>, vector<512x256xbf16>
      %cst = arith.constant dense<0.000000e+00> : vector<128x256xf32>
      %6 = tpu.matmul %4, %5, %cst {dimension_numbers = #tpu.dot_dimension_numbers<[1], [0], [0], [1], [0, 0, 1, 1], [], []>} : vector<128x512xbf16>, vector<512x256xbf16>, vector<128x256xf32> -> vector<128x256xf32>
      %7 = vector.extract_strided_slice %6 {offsets = [0, 0], sizes = [128, 128], strides = [1, 1]} : vector<128x256xf32> to vector<128x128xf32>
      %8 = vector.extract_strided_slice %6 {offsets = [0, 128], sizes = [128, 128], strides = [1, 1]} : vector<128x256xf32> to vector<128x128xf32>
      %9 = arith.maximumf %7, %8 : vector<128x128xf32>
      %c4_i32 = arith.constant 4 : i32
      %10 = arith.muli %arg6, %c4_i32 : i32
      %c16_i32 = arith.constant 16 : i32
      %11 = arith.muli %10, %c16_i32 : i32
      %12 = tpu.assume_multiple %11, 16 : i32
      %13 = vector.extract_strided_slice %9 {offsets = [0, 0], sizes = [16, 128], strides = [1, 1]} : vector<128x128xf32> to vector<16x128xf32>
      %14 = vector.extract_strided_slice %9 {offsets = [16, 0], sizes = [16, 128], strides = [1, 1]} : vector<128x128xf32> to vector<16x128xf32>
      %15 = arith.maximumf %13, %14 : vector<16x128xf32>
      %c0_3 = arith.constant 0 : index
      %c0_4 = arith.constant 0 : index
      %16 = vector.load %arg4[%c0_3, %c0_4] : memref<1x128xf32, #tpu.memory_space<vmem>>, vector<1x128xf32>
      %17 = vector.broadcast %16 : vector<1x128xf32> to vector<16x128xf32>
      %18 = arith.addf %15, %17 : vector<16x128xf32>
      %cst_5 = arith.constant 0.000000e+00 : f32
      %19 = vector.broadcast %cst_5 : f32 to vector<16x128xf32>
      %20 = arith.maximumf %18, %19 : vector<16x128xf32>
      %21 = arith.truncf %20 : vector<16x128xf32> to vector<16x128xbf16>
      %c0_i32_6 = arith.constant 0 : i32
      %22 = arith.addi %12, %c0_i32_6 : i32
      %23 = arith.index_cast %22 : i32 to index
      %c0_7 = arith.constant 0 : index
      %24 = vector.load %arg5[%23, %c0_7] : memref<2048x128xbf16, #tpu.memory_space<vmem>>, vector<16x128xbf16>
      tpu.vector_store %arg5[%23, %c0_7], %21 {strides = array<i32>} : memref<2048x128xbf16, #tpu.memory_space<vmem>>, vector<16x128xbf16>,
      %25 = vector.extract_strided_slice %9 {offsets = [32, 0], sizes = [16, 128], strides = [1, 1]} : vector<128x128xf32> to vector<16x128xf32>
      %26 = vector.extract_strided_slice %9 {offsets = [48, 0], sizes = [16, 128], strides = [1, 1]} : vector<128x128xf32> to vector<16x128xf32>
      %27 = arith.maximumf %25, %26 : vector<16x128xf32>
      %c0_8 = arith.constant 0 : index
      %c0_9 = arith.constant 0 : index
      %28 = vector.load %arg4[%c0_8, %c0_9] : memref<1x128xf32, #tpu.memory_space<vmem>>, vector<1x128xf32>
      %29 = vector.broadcast %28 : vector<1x128xf32> to vector<16x128xf32>
      %30 = arith.addf %27, %29 : vector<16x128xf32>
      %cst_10 = arith.constant 0.000000e+00 : f32
      %31 = vector.broadcast %cst_10 : f32 to vector<16x128xf32>
      %32 = arith.maximumf %30, %31 : vector<16x128xf32>
      %33 = arith.truncf %32 : vector<16x128xf32> to vector<16x128xbf16>
      %c16_i32_11 = arith.constant 16 : i32
      %34 = arith.addi %12, %c16_i32_11 : i32
      %35 = arith.index_cast %34 : i32 to index
      %c0_12 = arith.constant 0 : index
      %36 = vector.load %arg5[%35, %c0_12] : memref<2048x128xbf16, #tpu.memory_space<vmem>>, vector<16x128xbf16>
      tpu.vector_store %arg5[%35, %c0_12], %33 {strides = array<i32>} : memref<2048x128xbf16, #tpu.memory_space<vmem>>, vector<16x128xbf16>,
      %37 = vector.extract_strided_slice %9 {offsets = [64, 0], sizes = [16, 128], strides = [1, 1]} : vector<128x128xf32> to vector<16x128xf32>
      %38 = vector.extract_strided_slice %9 {offsets = [80, 0], sizes = [16, 128], strides = [1, 1]} : vector<128x128xf32> to vector<16x128xf32>
      %39 = arith.maximumf %37, %38 : vector<16x128xf32>
      %c0_13 = arith.constant 0 : index
      %c0_14 = arith.constant 0 : index
      %40 = vector.load %arg4[%c0_13, %c0_14] : memref<1x128xf32, #tpu.memory_space<vmem>>, vector<1x128xf32>
      %41 = vector.broadcast %40 : vector<1x128xf32> to vector<16x128xf32>
      %42 = arith.addf %39, %41 : vector<16x128xf32>
      %cst_15 = arith.constant 0.000000e+00 : f32
      %43 = vector.broadcast %cst_15 : f32 to vector<16x128xf32>
      %44 = arith.maximumf %42, %43 : vector<16x128xf32>
      %45 = arith.truncf %44 : vector<16x128xf32> to vector<16x128xbf16>
      %c32_i32_16 = arith.constant 32 : i32
      %46 = arith.addi %12, %c32_i32_16 : i32
      %47 = arith.index_cast %46 : i32 to index
      %c0_17 = arith.constant 0 : index
      %48 = vector.load %arg5[%47, %c0_17] : memref<2048x128xbf16, #tpu.memory_space<vmem>>, vector<16x128xbf16>
      tpu.vector_store %arg5[%47, %c0_17], %45 {strides = array<i32>} : memref<2048x128xbf16, #tpu.memory_space<vmem>>, vector<16x128xbf16>,
      %49 = vector.extract_strided_slice %9 {offsets = [96, 0], sizes = [16, 128], strides = [1, 1]} : vector<128x128xf32> to vector<16x128xf32>
      %50 = vector.extract_strided_slice %9 {offsets = [112, 0], sizes = [16, 128], strides = [1, 1]} : vector<128x128xf32> to vector<16x128xf32>
      %51 = arith.maximumf %49, %50 : vector<16x128xf32>
      %c0_18 = arith.constant 0 : index
      %c0_19 = arith.constant 0 : index
      %52 = vector.load %arg4[%c0_18, %c0_19] : memref<1x128xf32, #tpu.memory_space<vmem>>, vector<1x128xf32>
      %53 = vector.broadcast %52 : vector<1x128xf32> to vector<16x128xf32>
      %54 = arith.addf %51, %53 : vector<16x128xf32>
      %cst_20 = arith.constant 0.000000e+00 : f32
      %55 = vector.broadcast %cst_20 : f32 to vector<16x128xf32>
      %56 = arith.maximumf %54, %55 : vector<16x128xf32>
      %57 = arith.truncf %56 : vector<16x128xf32> to vector<16x128xbf16>
      %c48_i32 = arith.constant 48 : i32
      %58 = arith.addi %12, %c48_i32 : i32
      %59 = arith.index_cast %58 : i32 to index
      %c0_21 = arith.constant 0 : index
      %60 = vector.load %arg5[%59, %c0_21] : memref<2048x128xbf16, #tpu.memory_space<vmem>>, vector<16x128xbf16>
      tpu.vector_store %arg5[%59, %c0_21], %57 {strides = array<i32>} : memref<2048x128xbf16, #tpu.memory_space<vmem>>, vector<16x128xbf16>,
    }
    %c32_i32_0 = arith.constant 32 : i32
    return
  }
  func.func @transform_0(%arg0: i32, %arg1: i32) -> (i32, i32) {
    %c1_i32 = arith.constant 1 : i32
    %0 = arith.muli %arg0, %c1_i32 : i32
    %1 = arith.addi %0, %arg1 : i32
    %c0_i32 = arith.constant 0 : i32
    %c0_i32_0 = arith.constant 0 : i32
    return %1, %c0_i32 : i32, i32
  }
  func.func @transform_1(%arg0: i32, %arg1: i32) -> (i32, i32) {
    %c0_i32 = arith.constant 0 : i32
    %c0_i32_0 = arith.constant 0 : i32
    %c0_i32_1 = arith.constant 0 : i32
    return %c0_i32, %c0_i32_0 : i32, i32
  }
  func.func @transform_2(%arg0: i32, %arg1: i32) -> (i32, i32) {
    %c0_i32 = arith.constant 0 : i32
    %c0_i32_0 = arith.constant 0 : i32
    %c0_i32_1 = arith.constant 0 : i32
    return %c0_i32, %c0_i32_0 : i32, i32
  }
  func.func @transform_3(%arg0: i32, %arg1: i32) -> (i32, i32) {
    %c1_i32 = arith.constant 1 : i32
    %0 = arith.muli %arg0, %c1_i32 : i32
    %1 = arith.addi %0, %arg1 : i32
    %c0_i32 = arith.constant 0 : i32
    %c0_i32_0 = arith.constant 0 : i32
    return %1, %c0_i32 : i32, i32
  }
}

module attributes {stable_mosaic.version = 11 : i64} {
  func.func @_conv_bias_relu_pool_kernel(%arg0: i32, %arg1: i32, %arg2: memref<2048x512xbf16, #tpu.memory_space<vmem>>, %arg3: memref<512x256xbf16, #tpu.memory_space<vmem>>, %arg4: memref<1x128xf32, #tpu.memory_space<vmem>>, %arg5: memref<1024x128xbf16, #tpu.memory_space<vmem>>) attributes {dimension_semantics = [#tpu.dimension_semantics<parallel>, #tpu.dimension_semantics<parallel>], iteration_bounds = array<i64: 2, 1>, scalar_prefetch = 0 : i64, scratch_operands = 0 : i64, tpu.core_type = #tpu.core_type<tc>, window_params = [{transform_indices = @transform_0, window_bounds = array<i64: 2048, 512>}, {pipeline_mode = #tpu.pipeline_mode<synchronous>, transform_indices = @transform_1, window_bounds = array<i64: 512, 256>}, {pipeline_mode = #tpu.pipeline_mode<synchronous>, transform_indices = @transform_2, window_bounds = array<i64: 1, 128>}, {transform_indices = @transform_3, window_bounds = array<i64: 1024, 128>}]} {
    %c0_i32 = arith.constant 0 : i32
    %c16_i32 = arith.constant 16 : i32
    %0 = arith.addi %c0_i32, %c16_i32 : i32
    %c1_i32 = arith.constant 1 : i32
    scf.for %arg6 = %c0_i32 to %0 step %c1_i32  : i32 {
      %c128_i32 = arith.constant 128 : i32
      %1 = arith.muli %arg6, %c128_i32 : i32
      %2 = tpu.assume_multiple %1, 128 : i32
      %3 = arith.index_cast %2 : i32 to index
      %c0 = arith.constant 0 : index
      %4 = vector.load %arg2[%3, %c0] : memref<2048x512xbf16, #tpu.memory_space<vmem>>, vector<128x512xbf16>
      %c0_1 = arith.constant 0 : index
      %c0_2 = arith.constant 0 : index
      %5 = vector.load %arg3[%c0_1, %c0_2] : memref<512x256xbf16, #tpu.memory_space<vmem>>, vector<512x256xbf16>
      %cst = arith.constant dense<0.000000e+00> : vector<128x256xf32>
      %6 = tpu.matmul %4, %5, %cst {dimension_numbers = #tpu.dot_dimension_numbers<[1], [0], [0], [1], [0, 0, 1, 1], [], []>} : vector<128x512xbf16>, vector<512x256xbf16>, vector<128x256xf32> -> vector<128x256xf32>
      %7 = vector.extract_strided_slice %6 {offsets = [0, 0], sizes = [128, 128], strides = [1, 1]} : vector<128x256xf32> to vector<128x128xf32>
      %8 = vector.extract_strided_slice %6 {offsets = [0, 128], sizes = [128, 128], strides = [1, 1]} : vector<128x256xf32> to vector<128x128xf32>
      %9 = arith.maximumf %7, %8 : vector<128x128xf32>
      %c4_i32 = arith.constant 4 : i32
      %10 = arith.muli %arg6, %c4_i32 : i32
      %c16_i32_3 = arith.constant 16 : i32
      %11 = arith.muli %10, %c16_i32_3 : i32
      %12 = tpu.assume_multiple %11, 16 : i32
      %13 = vector.extract_strided_slice %9 {offsets = [0, 0], sizes = [16, 128], strides = [1, 1]} : vector<128x128xf32> to vector<16x128xf32>
      %14 = vector.extract_strided_slice %9 {offsets = [16, 0], sizes = [16, 128], strides = [1, 1]} : vector<128x128xf32> to vector<16x128xf32>
      %15 = arith.maximumf %13, %14 : vector<16x128xf32>
      %c0_4 = arith.constant 0 : index
      %c0_5 = arith.constant 0 : index
      %16 = vector.load %arg4[%c0_4, %c0_5] : memref<1x128xf32, #tpu.memory_space<vmem>>, vector<1x128xf32>
      %17 = vector.broadcast %16 : vector<1x128xf32> to vector<16x128xf32>
      %18 = arith.addf %15, %17 : vector<16x128xf32>
      %cst_6 = arith.constant 0.000000e+00 : f32
      %19 = vector.broadcast %cst_6 : f32 to vector<16x128xf32>
      %20 = arith.maximumf %18, %19 : vector<16x128xf32>
      %21 = arith.truncf %20 : vector<16x128xf32> to vector<16x128xbf16>
      %c0_i32_7 = arith.constant 0 : i32
      %22 = arith.addi %12, %c0_i32_7 : i32
      %23 = arith.index_cast %22 : i32 to index
      %c0_8 = arith.constant 0 : index
      %24 = vector.load %arg5[%23, %c0_8] : memref<1024x128xbf16, #tpu.memory_space<vmem>>, vector<16x128xbf16>
      tpu.vector_store %arg5[%23, %c0_8], %21 {strides = array<i32>} : memref<1024x128xbf16, #tpu.memory_space<vmem>>, vector<16x128xbf16>,
      %25 = vector.extract_strided_slice %9 {offsets = [32, 0], sizes = [16, 128], strides = [1, 1]} : vector<128x128xf32> to vector<16x128xf32>
      %26 = vector.extract_strided_slice %9 {offsets = [48, 0], sizes = [16, 128], strides = [1, 1]} : vector<128x128xf32> to vector<16x128xf32>
      %27 = arith.maximumf %25, %26 : vector<16x128xf32>
      %c0_9 = arith.constant 0 : index
      %c0_10 = arith.constant 0 : index
      %28 = vector.load %arg4[%c0_9, %c0_10] : memref<1x128xf32, #tpu.memory_space<vmem>>, vector<1x128xf32>
      %29 = vector.broadcast %28 : vector<1x128xf32> to vector<16x128xf32>
      %30 = arith.addf %27, %29 : vector<16x128xf32>
      %cst_11 = arith.constant 0.000000e+00 : f32
      %31 = vector.broadcast %cst_11 : f32 to vector<16x128xf32>
      %32 = arith.maximumf %30, %31 : vector<16x128xf32>
      %33 = arith.truncf %32 : vector<16x128xf32> to vector<16x128xbf16>
      %c16_i32_12 = arith.constant 16 : i32
      %34 = arith.addi %12, %c16_i32_12 : i32
      %35 = arith.index_cast %34 : i32 to index
      %c0_13 = arith.constant 0 : index
      %36 = vector.load %arg5[%35, %c0_13] : memref<1024x128xbf16, #tpu.memory_space<vmem>>, vector<16x128xbf16>
      tpu.vector_store %arg5[%35, %c0_13], %33 {strides = array<i32>} : memref<1024x128xbf16, #tpu.memory_space<vmem>>, vector<16x128xbf16>,
      %37 = vector.extract_strided_slice %9 {offsets = [64, 0], sizes = [16, 128], strides = [1, 1]} : vector<128x128xf32> to vector<16x128xf32>
      %38 = vector.extract_strided_slice %9 {offsets = [80, 0], sizes = [16, 128], strides = [1, 1]} : vector<128x128xf32> to vector<16x128xf32>
      %39 = arith.maximumf %37, %38 : vector<16x128xf32>
      %c0_14 = arith.constant 0 : index
      %c0_15 = arith.constant 0 : index
      %40 = vector.load %arg4[%c0_14, %c0_15] : memref<1x128xf32, #tpu.memory_space<vmem>>, vector<1x128xf32>
      %41 = vector.broadcast %40 : vector<1x128xf32> to vector<16x128xf32>
      %42 = arith.addf %39, %41 : vector<16x128xf32>
      %cst_16 = arith.constant 0.000000e+00 : f32
      %43 = vector.broadcast %cst_16 : f32 to vector<16x128xf32>
      %44 = arith.maximumf %42, %43 : vector<16x128xf32>
      %45 = arith.truncf %44 : vector<16x128xf32> to vector<16x128xbf16>
      %c32_i32 = arith.constant 32 : i32
      %46 = arith.addi %12, %c32_i32 : i32
      %47 = arith.index_cast %46 : i32 to index
      %c0_17 = arith.constant 0 : index
      %48 = vector.load %arg5[%47, %c0_17] : memref<1024x128xbf16, #tpu.memory_space<vmem>>, vector<16x128xbf16>
      tpu.vector_store %arg5[%47, %c0_17], %45 {strides = array<i32>} : memref<1024x128xbf16, #tpu.memory_space<vmem>>, vector<16x128xbf16>,
      %49 = vector.extract_strided_slice %9 {offsets = [96, 0], sizes = [16, 128], strides = [1, 1]} : vector<128x128xf32> to vector<16x128xf32>
      %50 = vector.extract_strided_slice %9 {offsets = [112, 0], sizes = [16, 128], strides = [1, 1]} : vector<128x128xf32> to vector<16x128xf32>
      %51 = arith.maximumf %49, %50 : vector<16x128xf32>
      %c0_18 = arith.constant 0 : index
      %c0_19 = arith.constant 0 : index
      %52 = vector.load %arg4[%c0_18, %c0_19] : memref<1x128xf32, #tpu.memory_space<vmem>>, vector<1x128xf32>
      %53 = vector.broadcast %52 : vector<1x128xf32> to vector<16x128xf32>
      %54 = arith.addf %51, %53 : vector<16x128xf32>
      %cst_20 = arith.constant 0.000000e+00 : f32
      %55 = vector.broadcast %cst_20 : f32 to vector<16x128xf32>
      %56 = arith.maximumf %54, %55 : vector<16x128xf32>
      %57 = arith.truncf %56 : vector<16x128xf32> to vector<16x128xbf16>
      %c48_i32 = arith.constant 48 : i32
      %58 = arith.addi %12, %c48_i32 : i32
      %59 = arith.index_cast %58 : i32 to index
      %c0_21 = arith.constant 0 : index
      %60 = vector.load %arg5[%59, %c0_21] : memref<1024x128xbf16, #tpu.memory_space<vmem>>, vector<16x128xbf16>
      tpu.vector_store %arg5[%59, %c0_21], %57 {strides = array<i32>} : memref<1024x128xbf16, #tpu.memory_space<vmem>>, vector<16x128xbf16>,
    }
    %c16_i32_0 = arith.constant 16 : i32
    return
  }
  func.func @transform_0(%arg0: i32, %arg1: i32) -> (i32, i32) {
    %c1_i32 = arith.constant 1 : i32
    %0 = arith.muli %arg0, %c1_i32 : i32
    %1 = arith.addi %0, %arg1 : i32
    %c0_i32 = arith.constant 0 : i32
    %c0_i32_0 = arith.constant 0 : i32
    return %1, %c0_i32 : i32, i32
  }
  func.func @transform_1(%arg0: i32, %arg1: i32) -> (i32, i32) {
    %c0_i32 = arith.constant 0 : i32
    %c0_i32_0 = arith.constant 0 : i32
    %c0_i32_1 = arith.constant 0 : i32
    return %c0_i32, %c0_i32_0 : i32, i32
  }
  func.func @transform_2(%arg0: i32, %arg1: i32) -> (i32, i32) {
    %c0_i32 = arith.constant 0 : i32
    %c0_i32_0 = arith.constant 0 : i32
    %c0_i32_1 = arith.constant 0 : i32
    return %c0_i32, %c0_i32_0 : i32, i32
  }
  func.func @transform_3(%arg0: i32, %arg1: i32) -> (i32, i32) {
    %c1_i32 = arith.constant 1 : i32
    %0 = arith.muli %arg0, %c1_i32 : i32
    %1 = arith.addi %0, %arg1 : i32
    %c0_i32 = arith.constant 0 : i32
    %c0_i32_0 = arith.constant 0 : i32
    return %1, %c0_i32 : i32, i32
  }
}

module attributes {stable_mosaic.version = 11 : i64} {
  func.func @_conv_bias_relu_pool_kernel(%arg0: i32, %arg1: i32, %arg2: memref<1024x640xbf16, #tpu.memory_space<vmem>>, %arg3: memref<640x256xbf16, #tpu.memory_space<vmem>>, %arg4: memref<1x128xf32, #tpu.memory_space<vmem>>, %arg5: memref<512x128xbf16, #tpu.memory_space<vmem>>) attributes {dimension_semantics = [#tpu.dimension_semantics<parallel>, #tpu.dimension_semantics<parallel>], iteration_bounds = array<i64: 2, 1>, scalar_prefetch = 0 : i64, scratch_operands = 0 : i64, tpu.core_type = #tpu.core_type<tc>, window_params = [{transform_indices = @transform_0, window_bounds = array<i64: 1024, 640>}, {pipeline_mode = #tpu.pipeline_mode<synchronous>, transform_indices = @transform_1, window_bounds = array<i64: 640, 256>}, {pipeline_mode = #tpu.pipeline_mode<synchronous>, transform_indices = @transform_2, window_bounds = array<i64: 1, 128>}, {transform_indices = @transform_3, window_bounds = array<i64: 512, 128>}]} {
    %c0_i32 = arith.constant 0 : i32
    %c8_i32 = arith.constant 8 : i32
    %0 = arith.addi %c0_i32, %c8_i32 : i32
    %c1_i32 = arith.constant 1 : i32
    scf.for %arg6 = %c0_i32 to %0 step %c1_i32  : i32 {
      %c128_i32 = arith.constant 128 : i32
      %1 = arith.muli %arg6, %c128_i32 : i32
      %2 = tpu.assume_multiple %1, 128 : i32
      %3 = arith.index_cast %2 : i32 to index
      %c0 = arith.constant 0 : index
      %4 = vector.load %arg2[%3, %c0] : memref<1024x640xbf16, #tpu.memory_space<vmem>>, vector<128x640xbf16>
      %c0_1 = arith.constant 0 : index
      %c0_2 = arith.constant 0 : index
      %5 = vector.load %arg3[%c0_1, %c0_2] : memref<640x256xbf16, #tpu.memory_space<vmem>>, vector<640x256xbf16>
      %cst = arith.constant dense<0.000000e+00> : vector<128x256xf32>
      %6 = tpu.matmul %4, %5, %cst {dimension_numbers = #tpu.dot_dimension_numbers<[1], [0], [0], [1], [0, 0, 1, 1], [], []>} : vector<128x640xbf16>, vector<640x256xbf16>, vector<128x256xf32> -> vector<128x256xf32>
      %7 = vector.extract_strided_slice %6 {offsets = [0, 0], sizes = [128, 128], strides = [1, 1]} : vector<128x256xf32> to vector<128x128xf32>
      %8 = vector.extract_strided_slice %6 {offsets = [0, 128], sizes = [128, 128], strides = [1, 1]} : vector<128x256xf32> to vector<128x128xf32>
      %9 = arith.maximumf %7, %8 : vector<128x128xf32>
      %c4_i32 = arith.constant 4 : i32
      %10 = arith.muli %arg6, %c4_i32 : i32
      %c16_i32 = arith.constant 16 : i32
      %11 = arith.muli %10, %c16_i32 : i32
      %12 = tpu.assume_multiple %11, 16 : i32
      %13 = vector.extract_strided_slice %9 {offsets = [0, 0], sizes = [16, 128], strides = [1, 1]} : vector<128x128xf32> to vector<16x128xf32>
      %14 = vector.extract_strided_slice %9 {offsets = [16, 0], sizes = [16, 128], strides = [1, 1]} : vector<128x128xf32> to vector<16x128xf32>
      %15 = arith.maximumf %13, %14 : vector<16x128xf32>
      %c0_3 = arith.constant 0 : index
      %c0_4 = arith.constant 0 : index
      %16 = vector.load %arg4[%c0_3, %c0_4] : memref<1x128xf32, #tpu.memory_space<vmem>>, vector<1x128xf32>
      %17 = vector.broadcast %16 : vector<1x128xf32> to vector<16x128xf32>
      %18 = arith.addf %15, %17 : vector<16x128xf32>
      %cst_5 = arith.constant 0.000000e+00 : f32
      %19 = vector.broadcast %cst_5 : f32 to vector<16x128xf32>
      %20 = arith.maximumf %18, %19 : vector<16x128xf32>
      %21 = arith.truncf %20 : vector<16x128xf32> to vector<16x128xbf16>
      %c0_i32_6 = arith.constant 0 : i32
      %22 = arith.addi %12, %c0_i32_6 : i32
      %23 = arith.index_cast %22 : i32 to index
      %c0_7 = arith.constant 0 : index
      %24 = vector.load %arg5[%23, %c0_7] : memref<512x128xbf16, #tpu.memory_space<vmem>>, vector<16x128xbf16>
      tpu.vector_store %arg5[%23, %c0_7], %21 {strides = array<i32>} : memref<512x128xbf16, #tpu.memory_space<vmem>>, vector<16x128xbf16>,
      %25 = vector.extract_strided_slice %9 {offsets = [32, 0], sizes = [16, 128], strides = [1, 1]} : vector<128x128xf32> to vector<16x128xf32>
      %26 = vector.extract_strided_slice %9 {offsets = [48, 0], sizes = [16, 128], strides = [1, 1]} : vector<128x128xf32> to vector<16x128xf32>
      %27 = arith.maximumf %25, %26 : vector<16x128xf32>
      %c0_8 = arith.constant 0 : index
      %c0_9 = arith.constant 0 : index
      %28 = vector.load %arg4[%c0_8, %c0_9] : memref<1x128xf32, #tpu.memory_space<vmem>>, vector<1x128xf32>
      %29 = vector.broadcast %28 : vector<1x128xf32> to vector<16x128xf32>
      %30 = arith.addf %27, %29 : vector<16x128xf32>
      %cst_10 = arith.constant 0.000000e+00 : f32
      %31 = vector.broadcast %cst_10 : f32 to vector<16x128xf32>
      %32 = arith.maximumf %30, %31 : vector<16x128xf32>
      %33 = arith.truncf %32 : vector<16x128xf32> to vector<16x128xbf16>
      %c16_i32_11 = arith.constant 16 : i32
      %34 = arith.addi %12, %c16_i32_11 : i32
      %35 = arith.index_cast %34 : i32 to index
      %c0_12 = arith.constant 0 : index
      %36 = vector.load %arg5[%35, %c0_12] : memref<512x128xbf16, #tpu.memory_space<vmem>>, vector<16x128xbf16>
      tpu.vector_store %arg5[%35, %c0_12], %33 {strides = array<i32>} : memref<512x128xbf16, #tpu.memory_space<vmem>>, vector<16x128xbf16>,
      %37 = vector.extract_strided_slice %9 {offsets = [64, 0], sizes = [16, 128], strides = [1, 1]} : vector<128x128xf32> to vector<16x128xf32>
      %38 = vector.extract_strided_slice %9 {offsets = [80, 0], sizes = [16, 128], strides = [1, 1]} : vector<128x128xf32> to vector<16x128xf32>
      %39 = arith.maximumf %37, %38 : vector<16x128xf32>
      %c0_13 = arith.constant 0 : index
      %c0_14 = arith.constant 0 : index
      %40 = vector.load %arg4[%c0_13, %c0_14] : memref<1x128xf32, #tpu.memory_space<vmem>>, vector<1x128xf32>
      %41 = vector.broadcast %40 : vector<1x128xf32> to vector<16x128xf32>
      %42 = arith.addf %39, %41 : vector<16x128xf32>
      %cst_15 = arith.constant 0.000000e+00 : f32
      %43 = vector.broadcast %cst_15 : f32 to vector<16x128xf32>
      %44 = arith.maximumf %42, %43 : vector<16x128xf32>
      %45 = arith.truncf %44 : vector<16x128xf32> to vector<16x128xbf16>
      %c32_i32 = arith.constant 32 : i32
      %46 = arith.addi %12, %c32_i32 : i32
      %47 = arith.index_cast %46 : i32 to index
      %c0_16 = arith.constant 0 : index
      %48 = vector.load %arg5[%47, %c0_16] : memref<512x128xbf16, #tpu.memory_space<vmem>>, vector<16x128xbf16>
      tpu.vector_store %arg5[%47, %c0_16], %45 {strides = array<i32>} : memref<512x128xbf16, #tpu.memory_space<vmem>>, vector<16x128xbf16>,
      %49 = vector.extract_strided_slice %9 {offsets = [96, 0], sizes = [16, 128], strides = [1, 1]} : vector<128x128xf32> to vector<16x128xf32>
      %50 = vector.extract_strided_slice %9 {offsets = [112, 0], sizes = [16, 128], strides = [1, 1]} : vector<128x128xf32> to vector<16x128xf32>
      %51 = arith.maximumf %49, %50 : vector<16x128xf32>
      %c0_17 = arith.constant 0 : index
      %c0_18 = arith.constant 0 : index
      %52 = vector.load %arg4[%c0_17, %c0_18] : memref<1x128xf32, #tpu.memory_space<vmem>>, vector<1x128xf32>
      %53 = vector.broadcast %52 : vector<1x128xf32> to vector<16x128xf32>
      %54 = arith.addf %51, %53 : vector<16x128xf32>
      %cst_19 = arith.constant 0.000000e+00 : f32
      %55 = vector.broadcast %cst_19 : f32 to vector<16x128xf32>
      %56 = arith.maximumf %54, %55 : vector<16x128xf32>
      %57 = arith.truncf %56 : vector<16x128xf32> to vector<16x128xbf16>
      %c48_i32 = arith.constant 48 : i32
      %58 = arith.addi %12, %c48_i32 : i32
      %59 = arith.index_cast %58 : i32 to index
      %c0_20 = arith.constant 0 : index
      %60 = vector.load %arg5[%59, %c0_20] : memref<512x128xbf16, #tpu.memory_space<vmem>>, vector<16x128xbf16>
      tpu.vector_store %arg5[%59, %c0_20], %57 {strides = array<i32>} : memref<512x128xbf16, #tpu.memory_space<vmem>>, vector<16x128xbf16>,
    }
    %c8_i32_0 = arith.constant 8 : i32
    return
  }
  func.func @transform_0(%arg0: i32, %arg1: i32) -> (i32, i32) {
    %c1_i32 = arith.constant 1 : i32
    %0 = arith.muli %arg0, %c1_i32 : i32
    %1 = arith.addi %0, %arg1 : i32
    %c0_i32 = arith.constant 0 : i32
    %c0_i32_0 = arith.constant 0 : i32
    return %1, %c0_i32 : i32, i32
  }
  func.func @transform_1(%arg0: i32, %arg1: i32) -> (i32, i32) {
    %c0_i32 = arith.constant 0 : i32
    %c0_i32_0 = arith.constant 0 : i32
    %c0_i32_1 = arith.constant 0 : i32
    return %c0_i32, %c0_i32_0 : i32, i32
  }
  func.func @transform_2(%arg0: i32, %arg1: i32) -> (i32, i32) {
    %c0_i32 = arith.constant 0 : i32
    %c0_i32_0 = arith.constant 0 : i32
    %c0_i32_1 = arith.constant 0 : i32
    return %c0_i32, %c0_i32_0 : i32, i32
  }
  func.func @transform_3(%arg0: i32, %arg1: i32) -> (i32, i32) {
    %c1_i32 = arith.constant 1 : i32
    %0 = arith.muli %arg0, %c1_i32 : i32
    %1 = arith.addi %0, %arg1 : i32
    %c0_i32 = arith.constant 0 : i32
    %c0_i32_0 = arith.constant 0 : i32
    return %1, %c0_i32 : i32, i32
  }
}

module attributes {stable_mosaic.version = 11 : i64} {
  func.func @_conv_bias_relu_pool_kernel(%arg0: i32, %arg1: i32, %arg2: memref<512x768xbf16, #tpu.memory_space<vmem>>, %arg3: memref<768x256xbf16, #tpu.memory_space<vmem>>, %arg4: memref<1x128xf32, #tpu.memory_space<vmem>>, %arg5: memref<256x128xbf16, #tpu.memory_space<vmem>>) attributes {dimension_semantics = [#tpu.dimension_semantics<parallel>, #tpu.dimension_semantics<parallel>], iteration_bounds = array<i64: 2, 1>, scalar_prefetch = 0 : i64, scratch_operands = 0 : i64, tpu.core_type = #tpu.core_type<tc>, window_params = [{transform_indices = @transform_0, window_bounds = array<i64: 512, 768>}, {pipeline_mode = #tpu.pipeline_mode<synchronous>, transform_indices = @transform_1, window_bounds = array<i64: 768, 256>}, {pipeline_mode = #tpu.pipeline_mode<synchronous>, transform_indices = @transform_2, window_bounds = array<i64: 1, 128>}, {transform_indices = @transform_3, window_bounds = array<i64: 256, 128>}]} {
    %c0_i32 = arith.constant 0 : i32
    %c4_i32 = arith.constant 4 : i32
    %0 = arith.addi %c0_i32, %c4_i32 : i32
    %c1_i32 = arith.constant 1 : i32
    scf.for %arg6 = %c0_i32 to %0 step %c1_i32  : i32 {
      %c128_i32 = arith.constant 128 : i32
      %1 = arith.muli %arg6, %c128_i32 : i32
      %2 = tpu.assume_multiple %1, 128 : i32
      %3 = arith.index_cast %2 : i32 to index
      %c0 = arith.constant 0 : index
      %4 = vector.load %arg2[%3, %c0] : memref<512x768xbf16, #tpu.memory_space<vmem>>, vector<128x768xbf16>
      %c0_1 = arith.constant 0 : index
      %c0_2 = arith.constant 0 : index
      %5 = vector.load %arg3[%c0_1, %c0_2] : memref<768x256xbf16, #tpu.memory_space<vmem>>, vector<768x256xbf16>
      %cst = arith.constant dense<0.000000e+00> : vector<128x256xf32>
      %6 = tpu.matmul %4, %5, %cst {dimension_numbers = #tpu.dot_dimension_numbers<[1], [0], [0], [1], [0, 0, 1, 1], [], []>} : vector<128x768xbf16>, vector<768x256xbf16>, vector<128x256xf32> -> vector<128x256xf32>
      %7 = vector.extract_strided_slice %6 {offsets = [0, 0], sizes = [128, 128], strides = [1, 1]} : vector<128x256xf32> to vector<128x128xf32>
      %8 = vector.extract_strided_slice %6 {offsets = [0, 128], sizes = [128, 128], strides = [1, 1]} : vector<128x256xf32> to vector<128x128xf32>
      %9 = arith.maximumf %7, %8 : vector<128x128xf32>
      %c4_i32_3 = arith.constant 4 : i32
      %10 = arith.muli %arg6, %c4_i32_3 : i32
      %c16_i32 = arith.constant 16 : i32
      %11 = arith.muli %10, %c16_i32 : i32
      %12 = tpu.assume_multiple %11, 16 : i32
      %13 = vector.extract_strided_slice %9 {offsets = [0, 0], sizes = [16, 128], strides = [1, 1]} : vector<128x128xf32> to vector<16x128xf32>
      %14 = vector.extract_strided_slice %9 {offsets = [16, 0], sizes = [16, 128], strides = [1, 1]} : vector<128x128xf32> to vector<16x128xf32>
      %15 = arith.maximumf %13, %14 : vector<16x128xf32>
      %c0_4 = arith.constant 0 : index
      %c0_5 = arith.constant 0 : index
      %16 = vector.load %arg4[%c0_4, %c0_5] : memref<1x128xf32, #tpu.memory_space<vmem>>, vector<1x128xf32>
      %17 = vector.broadcast %16 : vector<1x128xf32> to vector<16x128xf32>
      %18 = arith.addf %15, %17 : vector<16x128xf32>
      %cst_6 = arith.constant 0.000000e+00 : f32
      %19 = vector.broadcast %cst_6 : f32 to vector<16x128xf32>
      %20 = arith.maximumf %18, %19 : vector<16x128xf32>
      %21 = arith.truncf %20 : vector<16x128xf32> to vector<16x128xbf16>
      %c0_i32_7 = arith.constant 0 : i32
      %22 = arith.addi %12, %c0_i32_7 : i32
      %23 = arith.index_cast %22 : i32 to index
      %c0_8 = arith.constant 0 : index
      %24 = vector.load %arg5[%23, %c0_8] : memref<256x128xbf16, #tpu.memory_space<vmem>>, vector<16x128xbf16>
      tpu.vector_store %arg5[%23, %c0_8], %21 {strides = array<i32>} : memref<256x128xbf16, #tpu.memory_space<vmem>>, vector<16x128xbf16>,
      %25 = vector.extract_strided_slice %9 {offsets = [32, 0], sizes = [16, 128], strides = [1, 1]} : vector<128x128xf32> to vector<16x128xf32>
      %26 = vector.extract_strided_slice %9 {offsets = [48, 0], sizes = [16, 128], strides = [1, 1]} : vector<128x128xf32> to vector<16x128xf32>
      %27 = arith.maximumf %25, %26 : vector<16x128xf32>
      %c0_9 = arith.constant 0 : index
      %c0_10 = arith.constant 0 : index
      %28 = vector.load %arg4[%c0_9, %c0_10] : memref<1x128xf32, #tpu.memory_space<vmem>>, vector<1x128xf32>
      %29 = vector.broadcast %28 : vector<1x128xf32> to vector<16x128xf32>
      %30 = arith.addf %27, %29 : vector<16x128xf32>
      %cst_11 = arith.constant 0.000000e+00 : f32
      %31 = vector.broadcast %cst_11 : f32 to vector<16x128xf32>
      %32 = arith.maximumf %30, %31 : vector<16x128xf32>
      %33 = arith.truncf %32 : vector<16x128xf32> to vector<16x128xbf16>
      %c16_i32_12 = arith.constant 16 : i32
      %34 = arith.addi %12, %c16_i32_12 : i32
      %35 = arith.index_cast %34 : i32 to index
      %c0_13 = arith.constant 0 : index
      %36 = vector.load %arg5[%35, %c0_13] : memref<256x128xbf16, #tpu.memory_space<vmem>>, vector<16x128xbf16>
      tpu.vector_store %arg5[%35, %c0_13], %33 {strides = array<i32>} : memref<256x128xbf16, #tpu.memory_space<vmem>>, vector<16x128xbf16>,
      %37 = vector.extract_strided_slice %9 {offsets = [64, 0], sizes = [16, 128], strides = [1, 1]} : vector<128x128xf32> to vector<16x128xf32>
      %38 = vector.extract_strided_slice %9 {offsets = [80, 0], sizes = [16, 128], strides = [1, 1]} : vector<128x128xf32> to vector<16x128xf32>
      %39 = arith.maximumf %37, %38 : vector<16x128xf32>
      %c0_14 = arith.constant 0 : index
      %c0_15 = arith.constant 0 : index
      %40 = vector.load %arg4[%c0_14, %c0_15] : memref<1x128xf32, #tpu.memory_space<vmem>>, vector<1x128xf32>
      %41 = vector.broadcast %40 : vector<1x128xf32> to vector<16x128xf32>
      %42 = arith.addf %39, %41 : vector<16x128xf32>
      %cst_16 = arith.constant 0.000000e+00 : f32
      %43 = vector.broadcast %cst_16 : f32 to vector<16x128xf32>
      %44 = arith.maximumf %42, %43 : vector<16x128xf32>
      %45 = arith.truncf %44 : vector<16x128xf32> to vector<16x128xbf16>
      %c32_i32 = arith.constant 32 : i32
      %46 = arith.addi %12, %c32_i32 : i32
      %47 = arith.index_cast %46 : i32 to index
      %c0_17 = arith.constant 0 : index
      %48 = vector.load %arg5[%47, %c0_17] : memref<256x128xbf16, #tpu.memory_space<vmem>>, vector<16x128xbf16>
      tpu.vector_store %arg5[%47, %c0_17], %45 {strides = array<i32>} : memref<256x128xbf16, #tpu.memory_space<vmem>>, vector<16x128xbf16>,
      %49 = vector.extract_strided_slice %9 {offsets = [96, 0], sizes = [16, 128], strides = [1, 1]} : vector<128x128xf32> to vector<16x128xf32>
      %50 = vector.extract_strided_slice %9 {offsets = [112, 0], sizes = [16, 128], strides = [1, 1]} : vector<128x128xf32> to vector<16x128xf32>
      %51 = arith.maximumf %49, %50 : vector<16x128xf32>
      %c0_18 = arith.constant 0 : index
      %c0_19 = arith.constant 0 : index
      %52 = vector.load %arg4[%c0_18, %c0_19] : memref<1x128xf32, #tpu.memory_space<vmem>>, vector<1x128xf32>
      %53 = vector.broadcast %52 : vector<1x128xf32> to vector<16x128xf32>
      %54 = arith.addf %51, %53 : vector<16x128xf32>
      %cst_20 = arith.constant 0.000000e+00 : f32
      %55 = vector.broadcast %cst_20 : f32 to vector<16x128xf32>
      %56 = arith.maximumf %54, %55 : vector<16x128xf32>
      %57 = arith.truncf %56 : vector<16x128xf32> to vector<16x128xbf16>
      %c48_i32 = arith.constant 48 : i32
      %58 = arith.addi %12, %c48_i32 : i32
      %59 = arith.index_cast %58 : i32 to index
      %c0_21 = arith.constant 0 : index
      %60 = vector.load %arg5[%59, %c0_21] : memref<256x128xbf16, #tpu.memory_space<vmem>>, vector<16x128xbf16>
      tpu.vector_store %arg5[%59, %c0_21], %57 {strides = array<i32>} : memref<256x128xbf16, #tpu.memory_space<vmem>>, vector<16x128xbf16>,
    }
    %c4_i32_0 = arith.constant 4 : i32
    return
  }
  func.func @transform_0(%arg0: i32, %arg1: i32) -> (i32, i32) {
    %c1_i32 = arith.constant 1 : i32
    %0 = arith.muli %arg0, %c1_i32 : i32
    %1 = arith.addi %0, %arg1 : i32
    %c0_i32 = arith.constant 0 : i32
    %c0_i32_0 = arith.constant 0 : i32
    return %1, %c0_i32 : i32, i32
  }
  func.func @transform_1(%arg0: i32, %arg1: i32) -> (i32, i32) {
    %c0_i32 = arith.constant 0 : i32
    %c0_i32_0 = arith.constant 0 : i32
    %c0_i32_1 = arith.constant 0 : i32
    return %c0_i32, %c0_i32_0 : i32, i32
  }
  func.func @transform_2(%arg0: i32, %arg1: i32) -> (i32, i32) {
    %c0_i32 = arith.constant 0 : i32
    %c0_i32_0 = arith.constant 0 : i32
    %c0_i32_1 = arith.constant 0 : i32
    return %c0_i32, %c0_i32_0 : i32, i32
  }
  func.func @transform_3(%arg0: i32, %arg1: i32) -> (i32, i32) {
    %c1_i32 = arith.constant 1 : i32
    %0 = arith.muli %arg0, %c1_i32 : i32
    %1 = arith.addi %0, %arg1 : i32
    %c0_i32 = arith.constant 0 : i32
    %c0_i32_0 = arith.constant 0 : i32
    return %1, %c0_i32 : i32, i32
  }
}

module attributes {stable_mosaic.version = 11 : i64} {
  func.func @_conv_bias_relu_pool_kernel(%arg0: i32, %arg1: i32, %arg2: memref<128x1536xbf16, #tpu.memory_space<vmem>>, %arg3: memref<1536x512xbf16, #tpu.memory_space<vmem>>, %arg4: memref<1x256xf32, #tpu.memory_space<vmem>>, %arg5: memref<64x256xbf16, #tpu.memory_space<vmem>>) attributes {dimension_semantics = [#tpu.dimension_semantics<parallel>, #tpu.dimension_semantics<parallel>], iteration_bounds = array<i64: 2, 1>, scalar_prefetch = 0 : i64, scratch_operands = 0 : i64, tpu.core_type = #tpu.core_type<tc>, window_params = [{transform_indices = @transform_0, window_bounds = array<i64: 128, 1536>}, {pipeline_mode = #tpu.pipeline_mode<synchronous>, transform_indices = @transform_1, window_bounds = array<i64: 1536, 512>}, {pipeline_mode = #tpu.pipeline_mode<synchronous>, transform_indices = @transform_2, window_bounds = array<i64: 1, 256>}, {transform_indices = @transform_3, window_bounds = array<i64: 64, 256>}]} {
    %c0_i32 = arith.constant 0 : i32
    %c2_i32 = arith.constant 2 : i32
    %0 = arith.addi %c0_i32, %c2_i32 : i32
    %c1_i32 = arith.constant 1 : i32
    scf.for %arg6 = %c0_i32 to %0 step %c1_i32  : i32 {
      %c64_i32 = arith.constant 64 : i32
      %1 = arith.muli %arg6, %c64_i32 : i32
      %2 = tpu.assume_multiple %1, 64 : i32
      %3 = arith.index_cast %2 : i32 to index
      %c0 = arith.constant 0 : index
      %4 = vector.load %arg2[%3, %c0] : memref<128x1536xbf16, #tpu.memory_space<vmem>>, vector<64x1536xbf16>
      %c0_1 = arith.constant 0 : index
      %c0_2 = arith.constant 0 : index
      %5 = vector.load %arg3[%c0_1, %c0_2] : memref<1536x512xbf16, #tpu.memory_space<vmem>>, vector<1536x512xbf16>
      %cst = arith.constant dense<0.000000e+00> : vector<64x512xf32>
      %6 = tpu.matmul %4, %5, %cst {dimension_numbers = #tpu.dot_dimension_numbers<[1], [0], [0], [1], [0, 0, 1, 1], [], []>} : vector<64x1536xbf16>, vector<1536x512xbf16>, vector<64x512xf32> -> vector<64x512xf32>
      %7 = vector.extract_strided_slice %6 {offsets = [0, 0], sizes = [64, 256], strides = [1, 1]} : vector<64x512xf32> to vector<64x256xf32>
      %8 = vector.extract_strided_slice %6 {offsets = [0, 256], sizes = [64, 256], strides = [1, 1]} : vector<64x512xf32> to vector<64x256xf32>
      %9 = arith.maximumf %7, %8 : vector<64x256xf32>
      %c4_i32 = arith.constant 4 : i32
      %10 = arith.muli %arg6, %c4_i32 : i32
      %c8_i32 = arith.constant 8 : i32
      %11 = arith.muli %10, %c8_i32 : i32
      %12 = tpu.assume_multiple %11, 8 : i32
      %13 = vector.extract_strided_slice %9 {offsets = [0, 0], sizes = [8, 256], strides = [1, 1]} : vector<64x256xf32> to vector<8x256xf32>
      %14 = vector.extract_strided_slice %9 {offsets = [8, 0], sizes = [8, 256], strides = [1, 1]} : vector<64x256xf32> to vector<8x256xf32>
      %15 = arith.maximumf %13, %14 : vector<8x256xf32>
      %c0_3 = arith.constant 0 : index
      %c0_4 = arith.constant 0 : index
      %16 = vector.load %arg4[%c0_3, %c0_4] : memref<1x256xf32, #tpu.memory_space<vmem>>, vector<1x256xf32>
      %17 = vector.broadcast %16 : vector<1x256xf32> to vector<8x256xf32>
      %18 = arith.addf %15, %17 : vector<8x256xf32>
      %cst_5 = arith.constant 0.000000e+00 : f32
      %19 = vector.broadcast %cst_5 : f32 to vector<8x256xf32>
      %20 = arith.maximumf %18, %19 : vector<8x256xf32>
      %21 = arith.truncf %20 : vector<8x256xf32> to vector<8x256xbf16>
      %c0_i32_6 = arith.constant 0 : i32
      %22 = arith.addi %12, %c0_i32_6 : i32
      %23 = arith.index_cast %22 : i32 to index
      %c0_7 = arith.constant 0 : index
      %24 = vector.load %arg5[%23, %c0_7] : memref<64x256xbf16, #tpu.memory_space<vmem>>, vector<8x256xbf16>
      tpu.vector_store %arg5[%23, %c0_7], %21 {strides = array<i32>} : memref<64x256xbf16, #tpu.memory_space<vmem>>, vector<8x256xbf16>,
      %25 = vector.extract_strided_slice %9 {offsets = [16, 0], sizes = [8, 256], strides = [1, 1]} : vector<64x256xf32> to vector<8x256xf32>
      %26 = vector.extract_strided_slice %9 {offsets = [24, 0], sizes = [8, 256], strides = [1, 1]} : vector<64x256xf32> to vector<8x256xf32>
      %27 = arith.maximumf %25, %26 : vector<8x256xf32>
      %c0_8 = arith.constant 0 : index
      %c0_9 = arith.constant 0 : index
      %28 = vector.load %arg4[%c0_8, %c0_9] : memref<1x256xf32, #tpu.memory_space<vmem>>, vector<1x256xf32>
      %29 = vector.broadcast %28 : vector<1x256xf32> to vector<8x256xf32>
      %30 = arith.addf %27, %29 : vector<8x256xf32>
      %cst_10 = arith.constant 0.000000e+00 : f32
      %31 = vector.broadcast %cst_10 : f32 to vector<8x256xf32>
      %32 = arith.maximumf %30, %31 : vector<8x256xf32>
      %33 = arith.truncf %32 : vector<8x256xf32> to vector<8x256xbf16>
      %c8_i32_11 = arith.constant 8 : i32
      %34 = arith.addi %12, %c8_i32_11 : i32
      %35 = arith.index_cast %34 : i32 to index
      %c0_12 = arith.constant 0 : index
      %36 = vector.load %arg5[%35, %c0_12] : memref<64x256xbf16, #tpu.memory_space<vmem>>, vector<8x256xbf16>
      tpu.vector_store %arg5[%35, %c0_12], %33 {strides = array<i32>} : memref<64x256xbf16, #tpu.memory_space<vmem>>, vector<8x256xbf16>,
      %37 = vector.extract_strided_slice %9 {offsets = [32, 0], sizes = [8, 256], strides = [1, 1]} : vector<64x256xf32> to vector<8x256xf32>
      %38 = vector.extract_strided_slice %9 {offsets = [40, 0], sizes = [8, 256], strides = [1, 1]} : vector<64x256xf32> to vector<8x256xf32>
      %39 = arith.maximumf %37, %38 : vector<8x256xf32>
      %c0_13 = arith.constant 0 : index
      %c0_14 = arith.constant 0 : index
      %40 = vector.load %arg4[%c0_13, %c0_14] : memref<1x256xf32, #tpu.memory_space<vmem>>, vector<1x256xf32>
      %41 = vector.broadcast %40 : vector<1x256xf32> to vector<8x256xf32>
      %42 = arith.addf %39, %41 : vector<8x256xf32>
      %cst_15 = arith.constant 0.000000e+00 : f32
      %43 = vector.broadcast %cst_15 : f32 to vector<8x256xf32>
      %44 = arith.maximumf %42, %43 : vector<8x256xf32>
      %45 = arith.truncf %44 : vector<8x256xf32> to vector<8x256xbf16>
      %c16_i32 = arith.constant 16 : i32
      %46 = arith.addi %12, %c16_i32 : i32
      %47 = arith.index_cast %46 : i32 to index
      %c0_16 = arith.constant 0 : index
      %48 = vector.load %arg5[%47, %c0_16] : memref<64x256xbf16, #tpu.memory_space<vmem>>, vector<8x256xbf16>
      tpu.vector_store %arg5[%47, %c0_16], %45 {strides = array<i32>} : memref<64x256xbf16, #tpu.memory_space<vmem>>, vector<8x256xbf16>,
      %49 = vector.extract_strided_slice %9 {offsets = [48, 0], sizes = [8, 256], strides = [1, 1]} : vector<64x256xf32> to vector<8x256xf32>
      %50 = vector.extract_strided_slice %9 {offsets = [56, 0], sizes = [8, 256], strides = [1, 1]} : vector<64x256xf32> to vector<8x256xf32>
      %51 = arith.maximumf %49, %50 : vector<8x256xf32>
      %c0_17 = arith.constant 0 : index
      %c0_18 = arith.constant 0 : index
      %52 = vector.load %arg4[%c0_17, %c0_18] : memref<1x256xf32, #tpu.memory_space<vmem>>, vector<1x256xf32>
      %53 = vector.broadcast %52 : vector<1x256xf32> to vector<8x256xf32>
      %54 = arith.addf %51, %53 : vector<8x256xf32>
      %cst_19 = arith.constant 0.000000e+00 : f32
      %55 = vector.broadcast %cst_19 : f32 to vector<8x256xf32>
      %56 = arith.maximumf %54, %55 : vector<8x256xf32>
      %57 = arith.truncf %56 : vector<8x256xf32> to vector<8x256xbf16>
      %c24_i32 = arith.constant 24 : i32
      %58 = arith.addi %12, %c24_i32 : i32
      %59 = arith.index_cast %58 : i32 to index
      %c0_20 = arith.constant 0 : index
      %60 = vector.load %arg5[%59, %c0_20] : memref<64x256xbf16, #tpu.memory_space<vmem>>, vector<8x256xbf16>
      tpu.vector_store %arg5[%59, %c0_20], %57 {strides = array<i32>} : memref<64x256xbf16, #tpu.memory_space<vmem>>, vector<8x256xbf16>,
    }
    %c2_i32_0 = arith.constant 2 : i32
    return
  }
  func.func @transform_0(%arg0: i32, %arg1: i32) -> (i32, i32) {
    %c1_i32 = arith.constant 1 : i32
    %0 = arith.muli %arg0, %c1_i32 : i32
    %1 = arith.addi %0, %arg1 : i32
    %c0_i32 = arith.constant 0 : i32
    %c0_i32_0 = arith.constant 0 : i32
    return %1, %c0_i32 : i32, i32
  }
  func.func @transform_1(%arg0: i32, %arg1: i32) -> (i32, i32) {
    %c0_i32 = arith.constant 0 : i32
    %c0_i32_0 = arith.constant 0 : i32
    %c0_i32_1 = arith.constant 0 : i32
    return %c0_i32, %c0_i32_0 : i32, i32
  }
  func.func @transform_2(%arg0: i32, %arg1: i32) -> (i32, i32) {
    %c0_i32 = arith.constant 0 : i32
    %c0_i32_0 = arith.constant 0 : i32
    %c0_i32_1 = arith.constant 0 : i32
    return %c0_i32, %c0_i32_0 : i32, i32
  }
  func.func @transform_3(%arg0: i32, %arg1: i32) -> (i32, i32) {
    %c1_i32 = arith.constant 1 : i32
    %0 = arith.muli %arg0, %c1_i32 : i32
    %1 = arith.addi %0, %arg1 : i32
    %c0_i32 = arith.constant 0 : i32
    %c0_i32_0 = arith.constant 0 : i32
    return %1, %c0_i32 : i32, i32
  }
}

module attributes {stable_mosaic.version = 11 : i64} {
  func.func @_fc_kernel(%arg0: i32, %arg1: memref<2x4096xbf16, #tpu.memory_space<vmem>>, %arg2: memref<4096x256xbf16, #tpu.memory_space<vmem>>, %arg3: memref<1x256xf32, #tpu.memory_space<vmem>>, %arg4: memref<2x256xbf16, #tpu.memory_space<vmem>>, %arg5: memref<2x256xf32, #tpu.memory_space<vmem>>) attributes {dimension_semantics = [#tpu.dimension_semantics<arbitrary>], iteration_bounds = array<i64: 4>, scalar_prefetch = 0 : i64, scratch_operands = 1 : i64, tpu.core_type = #tpu.core_type<tc>, window_params = [{transform_indices = @transform_0, window_bounds = array<i64: 2, 4096>}, {transform_indices = @transform_1, window_bounds = array<i64: 4096, 256>}, {pipeline_mode = #tpu.pipeline_mode<synchronous>, transform_indices = @transform_2, window_bounds = array<i64: 1, 256>}, {pipeline_mode = #tpu.pipeline_mode<synchronous>, transform_indices = @transform_3, window_bounds = array<i64: 2, 256>}]} {
    %c0_i32 = arith.constant 0 : i32
    %0 = arith.cmpi eq, %arg0, %c0_i32 : i32
    %1 = arith.extui %0 : i1 to i32
    %c0_i32_0 = arith.constant 0 : i32
    %2 = arith.cmpi ne, %1, %c0_i32_0 : i32
    scf.if %2 {
      %cst_9 = arith.constant 0.000000e+00 : f32
      %12 = vector.broadcast %cst_9 : f32 to vector<2x256xf32>
      %c0_10 = arith.constant 0 : index
      %c0_11 = arith.constant 0 : index
      %13 = vector.load %arg5[%c0_10, %c0_11] : memref<2x256xf32, #tpu.memory_space<vmem>>, vector<2x256xf32>
      tpu.vector_store %arg5[%c0_10, %c0_11], %12 {strides = array<i32>} : memref<2x256xf32, #tpu.memory_space<vmem>>, vector<2x256xf32>,
    } else {
    }
    %c0 = arith.constant 0 : index
    %c0_1 = arith.constant 0 : index
    %3 = vector.load %arg5[%c0, %c0_1] : memref<2x256xf32, #tpu.memory_space<vmem>>, vector<2x256xf32>
    %c0_2 = arith.constant 0 : index
    %c0_3 = arith.constant 0 : index
    %4 = vector.load %arg1[%c0_2, %c0_3] : memref<2x4096xbf16, #tpu.memory_space<vmem>>, vector<2x4096xbf16>
    %c0_4 = arith.constant 0 : index
    %c0_5 = arith.constant 0 : index
    %5 = vector.load %arg2[%c0_4, %c0_5] : memref<4096x256xbf16, #tpu.memory_space<vmem>>, vector<4096x256xbf16>
    %cst = arith.constant dense<0.000000e+00> : vector<2x256xf32>
    %6 = tpu.matmul %4, %5, %cst {dimension_numbers = #tpu.dot_dimension_numbers<[1], [0], [0], [1], [0, 0, 1, 1], [], []>} : vector<2x4096xbf16>, vector<4096x256xbf16>, vector<2x256xf32> -> vector<2x256xf32>
    %7 = arith.addf %3, %6 : vector<2x256xf32>
    %c0_6 = arith.constant 0 : index
    %c0_7 = arith.constant 0 : index
    %8 = vector.load %arg5[%c0_6, %c0_7] : memref<2x256xf32, #tpu.memory_space<vmem>>, vector<2x256xf32>
    tpu.vector_store %arg5[%c0_6, %c0_7], %7 {strides = array<i32>} : memref<2x256xf32, #tpu.memory_space<vmem>>, vector<2x256xf32>,
    %c3_i32 = arith.constant 3 : i32
    %9 = arith.cmpi eq, %arg0, %c3_i32 : i32
    %10 = arith.extui %9 : i1 to i32
    %c0_i32_8 = arith.constant 0 : i32
    %11 = arith.cmpi ne, %10, %c0_i32_8 : i32
    scf.if %11 {
      %c0_9 = arith.constant 0 : index
      %c0_10 = arith.constant 0 : index
      %12 = vector.load %arg5[%c0_9, %c0_10] : memref<2x256xf32, #tpu.memory_space<vmem>>, vector<2x256xf32>
      %c0_11 = arith.constant 0 : index
      %c0_12 = arith.constant 0 : index
      %13 = vector.load %arg3[%c0_11, %c0_12] : memref<1x256xf32, #tpu.memory_space<vmem>>, vector<1x256xf32>
      %14 = vector.broadcast %13 : vector<1x256xf32> to vector<2x256xf32>
      %15 = arith.addf %12, %14 : vector<2x256xf32>
      %cst_13 = arith.constant 0.000000e+00 : f32
      %16 = vector.broadcast %cst_13 : f32 to vector<2x256xf32>
      %17 = arith.maximumf %15, %16 : vector<2x256xf32>
      %18 = arith.truncf %17 : vector<2x256xf32> to vector<2x256xbf16>
      %c0_14 = arith.constant 0 : index
      %c0_15 = arith.constant 0 : index
      %19 = vector.load %arg4[%c0_14, %c0_15] : memref<2x256xbf16, #tpu.memory_space<vmem>>, vector<2x256xbf16>
      tpu.vector_store %arg4[%c0_14, %c0_15], %18 {strides = array<i32>} : memref<2x256xbf16, #tpu.memory_space<vmem>>, vector<2x256xbf16>,
    } else {
    }
    return
  }
  func.func @transform_0(%arg0: i32) -> (i32, i32) {
    %c0_i32 = arith.constant 0 : i32
    %c0_i32_0 = arith.constant 0 : i32
    return %c0_i32, %arg0 : i32, i32
  }
  func.func @transform_1(%arg0: i32) -> (i32, i32) {
    %c0_i32 = arith.constant 0 : i32
    %c0_i32_0 = arith.constant 0 : i32
    return %arg0, %c0_i32 : i32, i32
  }
  func.func @transform_2(%arg0: i32) -> (i32, i32) {
    %c0_i32 = arith.constant 0 : i32
    %c0_i32_0 = arith.constant 0 : i32
    %c0_i32_1 = arith.constant 0 : i32
    return %c0_i32, %c0_i32_0 : i32, i32
  }
  func.func @transform_3(%arg0: i32) -> (i32, i32) {
    %c0_i32 = arith.constant 0 : i32
    %c0_i32_0 = arith.constant 0 : i32
    %c0_i32_1 = arith.constant 0 : i32
    return %c0_i32, %c0_i32_0 : i32, i32
  }
}

module attributes {stable_mosaic.version = 11 : i64} {
  func.func @_fc_kernel(%arg0: i32, %arg1: memref<2x256xbf16, #tpu.memory_space<vmem>>, %arg2: memref<256x64xbf16, #tpu.memory_space<vmem>>, %arg3: memref<1x64xf32, #tpu.memory_space<vmem>>, %arg4: memref<2x64xbf16, #tpu.memory_space<vmem>>, %arg5: memref<2x64xf32, #tpu.memory_space<vmem>>) attributes {dimension_semantics = [#tpu.dimension_semantics<arbitrary>], iteration_bounds = array<i64: 1>, scalar_prefetch = 0 : i64, scratch_operands = 1 : i64, tpu.core_type = #tpu.core_type<tc>, window_params = [{transform_indices = @transform_0, window_bounds = array<i64: 2, 256>}, {transform_indices = @transform_1, window_bounds = array<i64: 256, 64>}, {pipeline_mode = #tpu.pipeline_mode<synchronous>, transform_indices = @transform_2, window_bounds = array<i64: 1, 64>}, {pipeline_mode = #tpu.pipeline_mode<synchronous>, transform_indices = @transform_3, window_bounds = array<i64: 2, 64>}]} {
    %c0_i32 = arith.constant 0 : i32
    %0 = arith.cmpi eq, %arg0, %c0_i32 : i32
    %1 = arith.extui %0 : i1 to i32
    %c0_i32_0 = arith.constant 0 : i32
    %2 = arith.cmpi ne, %1, %c0_i32_0 : i32
    scf.if %2 {
      %cst_10 = arith.constant 0.000000e+00 : f32
      %12 = vector.broadcast %cst_10 : f32 to vector<2x64xf32>
      %c0_11 = arith.constant 0 : index
      %c0_12 = arith.constant 0 : index
      %13 = vector.load %arg5[%c0_11, %c0_12] : memref<2x64xf32, #tpu.memory_space<vmem>>, vector<2x64xf32>
      tpu.vector_store %arg5[%c0_11, %c0_12], %12 {strides = array<i32>} : memref<2x64xf32, #tpu.memory_space<vmem>>, vector<2x64xf32>,
    } else {
    }
    %c0 = arith.constant 0 : index
    %c0_1 = arith.constant 0 : index
    %3 = vector.load %arg5[%c0, %c0_1] : memref<2x64xf32, #tpu.memory_space<vmem>>, vector<2x64xf32>
    %c0_2 = arith.constant 0 : index
    %c0_3 = arith.constant 0 : index
    %4 = vector.load %arg1[%c0_2, %c0_3] : memref<2x256xbf16, #tpu.memory_space<vmem>>, vector<2x256xbf16>
    %c0_4 = arith.constant 0 : index
    %c0_5 = arith.constant 0 : index
    %5 = vector.load %arg2[%c0_4, %c0_5] : memref<256x64xbf16, #tpu.memory_space<vmem>>, vector<256x64xbf16>
    %cst = arith.constant dense<0.000000e+00> : vector<2x64xf32>
    %6 = tpu.matmul %4, %5, %cst {dimension_numbers = #tpu.dot_dimension_numbers<[1], [0], [0], [1], [0, 0, 1, 1], [], []>} : vector<2x256xbf16>, vector<256x64xbf16>, vector<2x64xf32> -> vector<2x64xf32>
    %7 = arith.addf %3, %6 : vector<2x64xf32>
    %c0_6 = arith.constant 0 : index
    %c0_7 = arith.constant 0 : index
    %8 = vector.load %arg5[%c0_6, %c0_7] : memref<2x64xf32, #tpu.memory_space<vmem>>, vector<2x64xf32>
    tpu.vector_store %arg5[%c0_6, %c0_7], %7 {strides = array<i32>} : memref<2x64xf32, #tpu.memory_space<vmem>>, vector<2x64xf32>,
    %c0_i32_8 = arith.constant 0 : i32
    %9 = arith.cmpi eq, %arg0, %c0_i32_8 : i32
    %10 = arith.extui %9 : i1 to i32
    %c0_i32_9 = arith.constant 0 : i32
    %11 = arith.cmpi ne, %10, %c0_i32_9 : i32
    scf.if %11 {
      %c0_10 = arith.constant 0 : index
      %c0_11 = arith.constant 0 : index
      %12 = vector.load %arg5[%c0_10, %c0_11] : memref<2x64xf32, #tpu.memory_space<vmem>>, vector<2x64xf32>
      %c0_12 = arith.constant 0 : index
      %c0_13 = arith.constant 0 : index
      %13 = vector.load %arg3[%c0_12, %c0_13] : memref<1x64xf32, #tpu.memory_space<vmem>>, vector<1x64xf32>
      %14 = vector.broadcast %13 : vector<1x64xf32> to vector<2x64xf32>
      %15 = arith.addf %12, %14 : vector<2x64xf32>
      %cst_14 = arith.constant 0.000000e+00 : f32
      %16 = vector.broadcast %cst_14 : f32 to vector<2x64xf32>
      %17 = arith.maximumf %15, %16 : vector<2x64xf32>
      %18 = arith.truncf %17 : vector<2x64xf32> to vector<2x64xbf16>
      %c0_15 = arith.constant 0 : index
      %c0_16 = arith.constant 0 : index
      %19 = vector.load %arg4[%c0_15, %c0_16] : memref<2x64xbf16, #tpu.memory_space<vmem>>, vector<2x64xbf16>
      tpu.vector_store %arg4[%c0_15, %c0_16], %18 {strides = array<i32>} : memref<2x64xbf16, #tpu.memory_space<vmem>>, vector<2x64xbf16>,
    } else {
    }
    return
  }
  func.func @transform_0(%arg0: i32) -> (i32, i32) {
    %c0_i32 = arith.constant 0 : i32
    %c0_i32_0 = arith.constant 0 : i32
    return %c0_i32, %arg0 : i32, i32
  }
  func.func @transform_1(%arg0: i32) -> (i32, i32) {
    %c0_i32 = arith.constant 0 : i32
    %c0_i32_0 = arith.constant 0 : i32
    return %arg0, %c0_i32 : i32, i32
  }
  func.func @transform_2(%arg0: i32) -> (i32, i32) {
    %c0_i32 = arith.constant 0 : i32
    %c0_i32_0 = arith.constant 0 : i32
    %c0_i32_1 = arith.constant 0 : i32
    return %c0_i32, %c0_i32_0 : i32, i32
  }
  func.func @transform_3(%arg0: i32) -> (i32, i32) {
    %c0_i32 = arith.constant 0 : i32
    %c0_i32_0 = arith.constant 0 : i32
    %c0_i32_1 = arith.constant 0 : i32
    return %c0_i32, %c0_i32_0 : i32, i32
  }
}

module attributes {stable_mosaic.version = 11 : i64} {
  func.func @_fc_kernel(%arg0: i32, %arg1: memref<2x64xbf16, #tpu.memory_space<vmem>>, %arg2: memref<64x40xbf16, #tpu.memory_space<vmem>>, %arg3: memref<1x40xf32, #tpu.memory_space<vmem>>, %arg4: memref<2x40xf32, #tpu.memory_space<vmem>>, %arg5: memref<2x40xf32, #tpu.memory_space<vmem>>) attributes {dimension_semantics = [#tpu.dimension_semantics<arbitrary>], iteration_bounds = array<i64: 1>, scalar_prefetch = 0 : i64, scratch_operands = 1 : i64, tpu.core_type = #tpu.core_type<tc>, window_params = [{transform_indices = @transform_0, window_bounds = array<i64: 2, 64>}, {transform_indices = @transform_1, window_bounds = array<i64: 64, 40>}, {pipeline_mode = #tpu.pipeline_mode<synchronous>, transform_indices = @transform_2, window_bounds = array<i64: 1, 40>}, {pipeline_mode = #tpu.pipeline_mode<synchronous>, transform_indices = @transform_3, window_bounds = array<i64: 2, 40>}]} {
    %c0_i32 = arith.constant 0 : i32
    %0 = arith.cmpi eq, %arg0, %c0_i32 : i32
    %1 = arith.extui %0 : i1 to i32
    %c0_i32_0 = arith.constant 0 : i32
    %2 = arith.cmpi ne, %1, %c0_i32_0 : i32
    scf.if %2 {
      %cst_10 = arith.constant 0.000000e+00 : f32
      %12 = vector.broadcast %cst_10 : f32 to vector<2x40xf32>
      %c0_11 = arith.constant 0 : index
      %c0_12 = arith.constant 0 : index
      %13 = vector.load %arg5[%c0_11, %c0_12] : memref<2x40xf32, #tpu.memory_space<vmem>>, vector<2x40xf32>
      tpu.vector_store %arg5[%c0_11, %c0_12], %12 {strides = array<i32>} : memref<2x40xf32, #tpu.memory_space<vmem>>, vector<2x40xf32>,
    } else {
    }
    %c0 = arith.constant 0 : index
    %c0_1 = arith.constant 0 : index
    %3 = vector.load %arg5[%c0, %c0_1] : memref<2x40xf32, #tpu.memory_space<vmem>>, vector<2x40xf32>
    %c0_2 = arith.constant 0 : index
    %c0_3 = arith.constant 0 : index
    %4 = vector.load %arg1[%c0_2, %c0_3] : memref<2x64xbf16, #tpu.memory_space<vmem>>, vector<2x64xbf16>
    %c0_4 = arith.constant 0 : index
    %c0_5 = arith.constant 0 : index
    %5 = vector.load %arg2[%c0_4, %c0_5] : memref<64x40xbf16, #tpu.memory_space<vmem>>, vector<64x40xbf16>
    %cst = arith.constant dense<0.000000e+00> : vector<2x40xf32>
    %6 = tpu.matmul %4, %5, %cst {dimension_numbers = #tpu.dot_dimension_numbers<[1], [0], [0], [1], [0, 0, 1, 1], [], []>} : vector<2x64xbf16>, vector<64x40xbf16>, vector<2x40xf32> -> vector<2x40xf32>
    %7 = arith.addf %3, %6 : vector<2x40xf32>
    %c0_6 = arith.constant 0 : index
    %c0_7 = arith.constant 0 : index
    %8 = vector.load %arg5[%c0_6, %c0_7] : memref<2x40xf32, #tpu.memory_space<vmem>>, vector<2x40xf32>
    tpu.vector_store %arg5[%c0_6, %c0_7], %7 {strides = array<i32>} : memref<2x40xf32, #tpu.memory_space<vmem>>, vector<2x40xf32>,
    %c0_i32_8 = arith.constant 0 : i32
    %9 = arith.cmpi eq, %arg0, %c0_i32_8 : i32
    %10 = arith.extui %9 : i1 to i32
    %c0_i32_9 = arith.constant 0 : i32
    %11 = arith.cmpi ne, %10, %c0_i32_9 : i32
    scf.if %11 {
      %c0_10 = arith.constant 0 : index
      %c0_11 = arith.constant 0 : index
      %12 = vector.load %arg5[%c0_10, %c0_11] : memref<2x40xf32, #tpu.memory_space<vmem>>, vector<2x40xf32>
      %c0_12 = arith.constant 0 : index
      %c0_13 = arith.constant 0 : index
      %13 = vector.load %arg3[%c0_12, %c0_13] : memref<1x40xf32, #tpu.memory_space<vmem>>, vector<1x40xf32>
      %14 = vector.broadcast %13 : vector<1x40xf32> to vector<2x40xf32>
      %15 = arith.addf %12, %14 : vector<2x40xf32>
      %16 = arith.negf %15 : vector<2x40xf32>
      %17 = math.exp %16 : vector<2x40xf32>
      %cst_14 = arith.constant 1.000000e+00 : f32
      %18 = vector.broadcast %cst_14 : f32 to vector<2x40xf32>
      %19 = arith.addf %18, %17 : vector<2x40xf32>
      %20 = arith.divf %18, %19 : vector<2x40xf32>
      %c0_15 = arith.constant 0 : index
      %c0_16 = arith.constant 0 : index
      %21 = vector.load %arg4[%c0_15, %c0_16] : memref<2x40xf32, #tpu.memory_space<vmem>>, vector<2x40xf32>
      tpu.vector_store %arg4[%c0_15, %c0_16], %20 {strides = array<i32>} : memref<2x40xf32, #tpu.memory_space<vmem>>, vector<2x40xf32>,
    } else {
    }
    return
  }
  func.func @transform_0(%arg0: i32) -> (i32, i32) {
    %c0_i32 = arith.constant 0 : i32
    %c0_i32_0 = arith.constant 0 : i32
    return %c0_i32, %arg0 : i32, i32
  }
  func.func @transform_1(%arg0: i32) -> (i32, i32) {
    %c0_i32 = arith.constant 0 : i32
    %c0_i32_0 = arith.constant 0 : i32
    return %arg0, %c0_i32 : i32, i32
  }
  func.func @transform_2(%arg0: i32) -> (i32, i32) {
    %c0_i32 = arith.constant 0 : i32
    %c0_i32_0 = arith.constant 0 : i32
    %c0_i32_1 = arith.constant 0 : i32
    return %c0_i32, %c0_i32_0 : i32, i32
  }
  func.func @transform_3(%arg0: i32) -> (i32, i32) {
    %c0_i32 = arith.constant 0 : i32
    %c0_i32_0 = arith.constant 0 : i32
    %c0_i32_1 = arith.constant 0 : i32
    return %c0_i32, %c0_i32_0 : i32, i32
  }
}

</mosaic_0001>

<bundles_post_ra>
// kernel: attributes_network_forward.9
= control target key start
LH: loop header
LB: loop body
LE: loop exit
PB: predicated region body
PF: predicated region fallthrough
CT: control target
= control target key end

     0   :  { %s1477_s12 = smov 0   ;;  %s1479_s13 = smov 0   ;;  %s1756_s0 = inlined_call_operand.vmem [shape: bf16[16384,384], index: 0, kind: input, shape index: {}]   ;;  %s1757_s1 = inlined_call_operand.vmem [shape: bf16[384,256], index: 1, kind: input, shape index: {}]   ;;  %s1758_s2 = inlined_call_operand.vmem [shape: f32[1,128], index: 2, kind: input, shape index: {}]   ;;  %s1759_s3 = inlined_call_operand.vmem [shape: bf16[8192,128], index: 3, kind: output, shape index: {}]  }
   0x1   :  { %s1481_s14 = smov 0   ;;  %s1483_s15 = smov 0  }
   0x2   :  { %s1485_s16 = smov 0  }
   0x3 LB: > { %s22_s17 = sadd.s32 1, %s1442_s14  ;;  %s25_s18 = sadd.s32 1, %s1446_s15  ;;  %s1450_s16 = sphi %s1485_s16, %s13_s16   ;;  %s1446_s15 = sphi %s1483_s15, %s1763_s15   ;;  %s1442_s14 = sphi %s1481_s14, %s1762_s14   ;;  %s1438_s13 = sphi %s1479_s13, %s1761_s13   ;;  %s1434_s12 = sphi %s1477_s12, %s1760_s12  }
   0x4   : > { %p23_p0 = scmp.ge.s32.totalorder %s22_s17, 2  ;;  %p1125_p1 = scmp.ge.s32.totalorder %s1450_s16, 1 }
   0x5   : > { %p163_p2 = scmp.lt.s32.totalorder %s1450_s16, 5 }
   0x6   : > { %s1765_s17 = smov (%p23_p0, %s22_s17), 0  ;;  %s1767_s18 = smov (!%p23_p0, %s25_s18), %s1446_s15 }
   0x7   : > { %p164_p3 = pnand %p1125_p1, %p163_p2  ;;  %p27_p4 = scmp.ge.s32.totalorder %s1767_s18, 2 }
   0x8   : > { %s1126_s19 = sshll.u32 (!%p164_p3), %s1438_s13, 1  ;;  %s1517_s4 = smov (!%p164_p3), 0  }
   0x9   : > { %s1769_s18 = smov (%p27_p4, %s1767_s18), 0  ;;  %167 = sbr.rel (%p164_p3) target bundleno = 351 (0x15f), region = 32 }
   0xa   : > { %s193_s20 = sadd.s32 (!%p164_p3), %s1434_s12, %s1126_s19 }
   0xb   : > { %s1127_s21 = sshll.u32 (!%p164_p3), %s193_s20, 9  ;;  %s1130_s22 = sshll.u32 (!%p164_p3), %s193_s20, 8 }
   0xc   : > { %p195_p5 = scmp.lt.s32.totalorder (!%p164_p3), %s1127_s21, 2047  ;;  %p206_p6 = scmp.lt.s32.totalorder (!%p164_p3), %s1130_s22, 1023 }
   0xe   : > { %s1771_s21 = smov (!%p195_p5, %s1127_s21), 2047  ;;  %s1773_s22 = smov (!%p206_p6, %s1130_s22), 1023 }
   0xf   : > { %s1254_s23 = smul.u32 12, %s1771_s21  ;;  %s1131_s24 = sshll.u32 %s1773_s22, 2 }
  0x10   : > { %s1515_s30 = scalar_lea.vmem %s1759_s3, %s1131_s24 }
  0x11   : > { %s1510_s27 = scalar_lea.vmem %s1756_s0, %s1254_s23 }
  0x12 LB: >> { %v1304_v0 = vld [vmem:[%s1757_s1 + $0x74] ss:$8 sps:$4 sm:$0xff]   ;;  %v1306_v1 = vld [vmem:[%s1757_s1 + $0x70] ss:$8 sps:$4 sm:$0xff]   ;;  %v1456_v2 = vmov 0   ;;  %s1132_s5 = sshll.u32 %s1454_s4, 7  ;;  %s1454_s4 = sphi %s1517_s4, %s219_s4  }
  0x13   : >> { %819 = vmatprep.mubr.bf16.mxu1 %v1456_v2  ;;  %674 = vmatprep.subr.bf16.mxu0 %v1304_v0  ;;  %v1307_v3 = vld [vmem:[%s1757_s1 + $0x64] ss:$8 sps:$4 sm:$0xff]   ;;  %v1309_v4 = vld [vmem:[%s1757_s1 + $0x60] ss:$8 sps:$4 sm:$0xff]   ;;  %v1310_v5 = vld [vmem:[%s1757_s1 + $0x54] ss:$8 sps:$4 sm:$0xff]  }
  0x14   : >> { %675 = vmatpush1.bf16.msra.mxu0 %v1306_v1  ;;  %v1312_v6 = vld [vmem:[%s1757_s1 + $0x50] ss:$8 sps:$4 sm:$0xff]   ;;  %v1313_v7 = vld [vmem:[%s1757_s1 + $0x44] ss:$8 sps:$4 sm:$0xff]   ;;  %v1325_v8 = vld [vmem:[%s1757_s1 + $0x174] ss:$8 sps:$4 sm:$0xff]  }
  0x15   : >> { %676 = vmatprep.subr.bf16.mxu0 %v1307_v3  ;;  %v1327_v9 = vld [vmem:[%s1757_s1 + $0x170] ss:$8 sps:$4 sm:$0xff]   ;;  %v1315_v10 = vld [vmem:[%s1757_s1 + $0x40] ss:$8 sps:$4 sm:$0xff]   ;;  %v1316_v11 = vld [vmem:[%s1757_s1 + $0x34] ss:$8 sps:$4 sm:$0xff]   ;;  %787 = vmatprep.subr.bf16.mxu1 %v1325_v8 }
  0x16   : >> { %v1331_v12 = vld [vmem:[%s1757_s1 + $0x164] ss:$8 sps:$4 sm:$0xff]   ;;  %788 = vmatpush1.bf16.msra.mxu1 %v1327_v9  ;;  %v1333_v13 = vld [vmem:[%s1757_s1 + $0x160] ss:$8 sps:$4 sm:$0xff]   ;;  %v1318_v14 = vld [vmem:[%s1757_s1 + $0x30] ss:$8 sps:$4 sm:$0xff]  }
  0x17   : >> { %789 = vmatprep.subr.bf16.mxu1 %v1331_v12  ;;  %v1337_v15 = vld [vmem:[%s1757_s1 + $0x154] ss:$8 sps:$4 sm:$0xff]   ;;  %v1319_v16 = vld [vmem:[%s1757_s1 + $0x24] ss:$8 sps:$4 sm:$0xff]   ;;  %v1339_v17 = vld [vmem:[%s1757_s1 + $0x150] ss:$8 sps:$4 sm:$0xff]  }
  0x18   : >> { %677 = vmatpush1.bf16.msra.mxu0 %v1309_v4  ;;  %v1343_v18 = vld [vmem:[%s1757_s1 + $0x144] ss:$8 sps:$4 sm:$0xff]   ;;  %v1321_v19 = vld [vmem:[%s1757_s1 + $0x20] ss:$8 sps:$4 sm:$0xff]   ;;  %v1322_v20 = vld [vmem:[%s1757_s1 + $0x14] ss:$8 sps:$4 sm:$0xff]  }
  0x19   : >> { %678 = vmatprep.subr.bf16.mxu0 %v1310_v5  ;;  %v1345_v21 = vld [vmem:[%s1757_s1 + $0x140] ss:$8 sps:$4 sm:$0xff]   ;;  %v1349_v22 = vld [vmem:[%s1757_s1 + $0x134] ss:$8 sps:$4 sm:$0xff]   ;;  %s221_s12 = sshra.s32 %s1132_s5, 3 }
  0x1a   : >> { %790 = vmatpush1.bf16.msra.mxu1 %v1333_v13  ;;  %v1324_v23 = vld [vmem:[%s1757_s1 + $0x10] ss:$8 sps:$4 sm:$0xff]   ;;  %v1328_v24 = vld [vmem:[%s1757_s1 + $0x4] ss:$8 sps:$4 sm:$0xff]   ;;  %s1225_s24 = smul.u32 12, %s221_s12 }
  0x1b   : >> { %791 = vmatprep.subr.bf16.mxu1 %v1337_v15  ;;  %v1351_v25 = vld [vmem:[%s1757_s1 + $0x130] ss:$8 sps:$4 sm:$0xff]   ;;  %v1355_v26 = vld [vmem:[%s1757_s1 + $0x124] ss:$8 sps:$4 sm:$0xff]   ;;  %v1330_v27 = vld [vmem:[%s1757_s1] ss:$8 sps:$4 sm:$0xff]  }
  0x1c   : >> { %679 = vmatpush1.bf16.msra.mxu0 %v1312_v6  ;;  %v1334_v28 = vld [vmem:[%s1757_s1 + $0xf4] ss:$8 sps:$4 sm:$0xff]   ;;  %v1357_v29 = vld [vmem:[%s1757_s1 + $0x120] ss:$8 sps:$4 sm:$0xff]   ;;  %s1612_s9 = scalar_lea.vmem %s1510_s27, %s1225_s24  ;;  %v1336_v31 = vld [vmem:[%s1757_s1 + $0xf0] ss:$8 sps:$4 sm:$0xff]  }
  0x1d   : >> { %680 = vmatprep.subr.bf16.mxu0 %v1313_v7  ;;  %v1361_v30 = vld [vmem:[%s1757_s1 + $0x114] ss:$8 sps:$4 sm:$0xff]   ;;  %v1340_v32 = vld [vmem:[%s1757_s1 + $0xe4] ss:$8 sps:$4 sm:$0xff]   ;;  %v1363_v33 = vld [vmem:[%s1757_s1 + $0x110] ss:$8 sps:$4 sm:$0xff]  }
  0x1e   : >> { %792 = vmatpush1.bf16.msra.mxu1 %v1339_v17  ;;  %v1367_v34 = vld [vmem:[%s1757_s1 + $0x104] ss:$8 sps:$4 sm:$0xff]   ;;  %v1342_v36 = vld [vmem:[%s1757_s1 + $0xe0] ss:$8 sps:$4 sm:$0xff]   ;;  %v1346_v37 = vld [vmem:[%s1757_s1 + $0xd4] ss:$8 sps:$4 sm:$0xff]  }
  0x1f   : >> { %793 = vmatprep.subr.bf16.mxu1 %v1343_v18  ;;  %v1379_v35 = vld [vmem:[%s1612_s9 + $0x4] ss:$12 sps:$4 sm:$0xff]   ;;  %v1369_v38 = vld [vmem:[%s1757_s1 + $0x100] ss:$8 sps:$4 sm:$0xff]   ;;  %v1358_v43 = vld [vmem:[%s1757_s1 + $0xb4] ss:$8 sps:$4 sm:$0xff]  }
  0x20   : >> { %681 = vmatpush1.bf16.msra.mxu0 %v1315_v10  ;;  %706 = vmatprep.mubr.bf16.mxu0 %v1379_v35  ;;  %v1348_v39 = vld [vmem:[%s1757_s1 + $0xd0] ss:$8 sps:$4 sm:$0xff]   ;;  %v1352_v40 = vld [vmem:[%s1757_s1 + $0xc4] ss:$8 sps:$4 sm:$0xff]   ;;  %v1373_v41 = vld [vmem:[%s1612_s9 + $0x8] ss:$12 sps:$4 sm:$0xff]  }
  0x21   : >> { %682 = vmatprep.subr.bf16.mxu0 %v1316_v11  ;;  %v1354_v42 = vld [vmem:[%s1757_s1 + $0xc0] ss:$8 sps:$4 sm:$0xff]   ;;  %v1360_v44 = vld [vmem:[%s1757_s1 + $0xb0] ss:$8 sps:$4 sm:$0xff]   ;;  %v1364_v45 = vld [vmem:[%s1757_s1 + $0xa4] ss:$8 sps:$4 sm:$0xff]  }
  0x22   : >> { %794 = vmatpush1.bf16.msra.mxu1 %v1345_v21  ;;  %v1380_v46 = vld [vmem:[%s1612_s9 + $0x20] ss:$12 sps:$4 sm:$0xff]   ;;  %v1370_v48 = vld [vmem:[%s1757_s1 + $0x94] ss:$8 sps:$4 sm:$0xff]   ;;  %v1372_v49 = vld [vmem:[%s1757_s1 + $0x90] ss:$8 sps:$4 sm:$0xff]  }
  0x23   : >> { %795 = vmatprep.subr.bf16.mxu1 %v1349_v22  ;;  %v1366_v47 = vld [vmem:[%s1757_s1 + $0xa0] ss:$8 sps:$4 sm:$0xff]   ;;  %v1374_v50 = vld [vmem:[%s1757_s1 + $0x84] ss:$8 sps:$4 sm:$0xff]   ;;  %v1388_v55 = vld [vmem:[%s1612_s9 + $0x50] ss:$12 sps:$4 sm:$0xff]  }
  0x24   : >> { %683 = vmatpush1.bf16.msra.mxu0 %v1318_v14  ;;  %v1384_v51 = vld [vmem:[%s1612_s9 + $0x38] ss:$12 sps:$4 sm:$0xff]   ;;  %v1376_v52 = vld [vmem:[%s1757_s1 + $0x80] ss:$8 sps:$4 sm:$0xff]   ;;  %v1387_v59 = vld [vmem:[%s1612_s9 + $0x30] ss:$12 sps:$4 sm:$0xff]  }
  0x25   : >> { %684 = vmatprep.subr.bf16.mxu0 %v1319_v16  ;;  %v1377_v53 = vld [vmem:[%s1612_s9] ss:$12 sps:$4 sm:$0xff]   ;;  %v1381_v54 = vld [vmem:[%s1612_s9 + $0x1c] ss:$12 sps:$4 sm:$0xff]   ;;  %v1383_v56 = vld [vmem:[%s1612_s9 + $0x18] ss:$12 sps:$4 sm:$0xff]  }
  0x26   : >> { %796 = vmatpush1.bf16.msra.mxu1 %v1351_v25  ;;  %v1385_v57 = vld [vmem:[%s1612_s9 + $0x34] ss:$12 sps:$4 sm:$0xff]   ;;  %v1389_v60 = vld [vmem:[%s1612_s9 + $0x4c] ss:$12 sps:$4 sm:$0xff]   ;;  %v1393_v63 = vld [vmem:[%s1612_s9 + $0x64] ss:$12 sps:$4 sm:$0xff]  }
  0x27   : >> { %797 = vmatprep.subr.bf16.mxu1 %v1355_v26  ;;  %v1392_v58 = vld [vmem:[%s1612_s9 + $0x68] ss:$12 sps:$4 sm:$0xff]   ;;  %v1396_v61 = vld [vmem:[%s1612_s9 + $0x80] ss:$12 sps:$4 sm:$0xff]   ;;  %v1400_v0 = vld [vmem:[%s1612_s9 + $0x98] ss:$12 sps:$4 sm:$0xff]  }
  0x28   : >> { %685 = vmatpush1.bf16.msra.mxu0 %v1321_v19  ;;  %v1391_v62 = vld [vmem:[%s1612_s9 + $0x48] ss:$12 sps:$4 sm:$0xff]   ;;  %v1395_v1 = vld [vmem:[%s1612_s9 + $0x60] ss:$12 sps:$4 sm:$0xff]   ;;  %v1404_v4 = vld [vmem:[%s1612_s9 + $0xb0] ss:$12 sps:$4 sm:$0xff]  }
  0x29   : >> { %686 = vmatprep.subr.bf16.mxu0 %v1322_v20  ;;  %v1397_v3 = vld [vmem:[%s1612_s9 + $0x7c] ss:$12 sps:$4 sm:$0xff]   ;;  %v1399_v5 = vld [vmem:[%s1612_s9 + $0x78] ss:$12 sps:$4 sm:$0xff]   ;;  %v1401_v6 = vld [vmem:[%s1612_s9 + $0x94] ss:$12 sps:$4 sm:$0xff]  }
  0x2a   : >> { %798 = vmatpush1.bf16.msra.mxu1 %v1357_v29  ;;  %v1403_v7 = vld [vmem:[%s1612_s9 + $0x90] ss:$12 sps:$4 sm:$0xff]   ;;  %v1405_v8 = vld [vmem:[%s1612_s9 + $0xac] ss:$12 sps:$4 sm:$0xff]   ;;  %v1407_v9 = vld [vmem:[%s1612_s9 + $0xa8] ss:$12 sps:$4 sm:$0xff]  }
  0x2b   : >> { %799 = vmatprep.subr.bf16.mxu1 %v1361_v30  ;;  %s1709_s9 = sshll.u32 %s1454_s4, 6  ;;  %s219_s4 = sadd.s32 1, %s1454_s4  }
  0x2c   : >> { %687 = vmatpush1.bf16.msra.mxu0 %v1324_v23  ;;  %s938_s19 = sshra.s32 %s1709_s9, 3  ;;  %s958_s22 = sadd.s32 16, %s1709_s9 }
  0x2d   : >> { %688 = vmatprep.subr.bf16.mxu0 %v1328_v24  ;;  %s1210_s20 = sshll.u32 %s938_s19, 2  ;;  %s966_s23 = sshra.s32 %s958_s22, 3 }
  0x2e   : >> { %800 = vmatpush1.bf16.msra.mxu1 %v1363_v33  ;;  %s941_s21 = scalar_lea.vmem %s1515_s30, %s1210_s20  ;;  %s1214_s24 = sshll.u32 %s966_s23, 2 }
  0x2f   : >> { %801 = vmatprep.subr.bf16.mxu1 %v1367_v34  ;;  %s969_s25 = scalar_lea.vmem %s1515_s30, %s1214_s24  ;;  %s986_s26 = sadd.s32 32, %s1709_s9 }
  0x30   : >> { %689 = vmatpush1.bf16.msra.mxu0 %v1330_v27  ;;  %s994_s28 = sshra.s32 %s986_s26, 3  ;;  %s1014_s6 = sadd.s32 48, %s1709_s9 }
  0x31   : >> { %690 = vmatprep.subr.bf16.mxu0 %v1334_v28  ;;  %s1218_s29 = sshll.u32 %s994_s28, 2  ;;  %s1022_s7 = sshra.s32 %s1014_s6, 3 }
  0x32   : >> { %802 = vmatpush1.bf16.msra.mxu1 %v1369_v38  ;;  %s997_s5 = scalar_lea.vmem %s1515_s30, %s1218_s29  ;;  %s1222_s8 = sshll.u32 %s1022_s7, 2 }
  0x33   : >> { %s1025_s10 = scalar_lea.vmem %s1515_s30, %s1222_s8  ;;  %p216_p7 = scmp.ge.s32.totalorder %s219_s4, 32  }
  0x34   : >> { %691 = vmatpush2.bf16.msra.mxu0 %v1336_v31 }
  0x35   : >> { %692 = vmatprep.subr.bf16.mxu0 %v1340_v32  ;;  %820 = vmatmul.mubr.bf16.vlgmr.msra.gmra.mxu1 %v1373_v41 }
  0x36   : >> { %829 = vmatprep.mubr.bf16.mxu1 %v1456_v2 }
  0x38   : >> { %693 = vmatpush2.bf16.msra.mxu0 %v1342_v36 }
  0x39   : >> { %694 = vmatprep.subr.bf16.mxu0 %v1346_v37 }
  0x3c   : >> { %695 = vmatpush2.bf16.msra.mxu0 %v1348_v39 }
  0x3d   : >> { %696 = vmatprep.subr.bf16.mxu0 %v1352_v40  ;;  %830 = vmatmul.mubr.bf16.gmra.mxu1 %v1380_v46 }
  0x3e   : >> { %839 = vmatprep.mubr.bf16.mxu1 %v1456_v2 }
  0x40   : >> { %697 = vmatpush2.bf16.msra.mxu0 %v1354_v42 }
  0x41   : >> { %698 = vmatprep.subr.bf16.mxu0 %v1358_v43 }
  0x44   : >> { %699 = vmatpush2.bf16.msra.mxu0 %v1360_v44 }
  0x45   : >> { %700 = vmatprep.subr.bf16.mxu0 %v1364_v45  ;;  %840 = vmatmul.mubr.bf16.gmra.mxu1 %v1384_v51 }
  0x46   : >> { %849 = vmatprep.mubr.bf16.mxu1 %v1456_v2 }
  0x48   : >> { %701 = vmatpush2.bf16.msra.mxu0 %v1366_v47  ;;  %v1714_v47 = vld [vmem:[%s1758_s2] ss:$0 sm:$0xff] }
  0x49   : >> { %702 = vmatprep.subr.bf16.mxu0 %v1370_v48 }
  0x4c   : >> { %703 = vmatpush2.bf16.msra.mxu0 %v1372_v49 }
  0x4d   : >> { %704 = vmatprep.subr.bf16.mxu0 %v1374_v50  ;;  %850 = vmatmul.mubr.bf16.gmra.mxu1 %v1388_v55 }
  0x4e   : >> { %859 = vmatprep.mubr.bf16.mxu1 %v1456_v2 }
  0x50   : >> { %705 = vmatpush2.bf16.msra.mxu0 %v1376_v52 }
  0x53   : >> { %707 = vmatmul.mubr.bf16.vlgmr.msra.gmra.mxu0 %v1377_v53 }
  0x54   : >> { %716 = vmatprep.mubr.bf16.mxu0 %v1381_v54 }
  0x55   : >> { %860 = vmatmul.mubr.bf16.gmra.mxu1 %v1392_v58 }
  0x56   : >> { %869 = vmatprep.mubr.bf16.mxu1 %v1456_v2 }
  0x5b   : >> { %717 = vmatmul.mubr.bf16.gmra.mxu0 %v1383_v56 }
  0x5c   : >> { %726 = vmatprep.mubr.bf16.mxu0 %v1385_v57 }
  0x5d   : >> { %870 = vmatmul.mubr.bf16.gmra.mxu1 %v1396_v61 }
  0x5e   : >> { %879 = vmatprep.mubr.bf16.mxu1 %v1456_v2 }
  0x63   : >> { %727 = vmatmul.mubr.bf16.gmra.mxu0 %v1387_v59 }
  0x64   : >> { %736 = vmatprep.mubr.bf16.mxu0 %v1389_v60 }
  0x65   : >> { %880 = vmatmul.mubr.bf16.gmra.mxu1 %v1400_v0 }
  0x66   : >> { %889 = vmatprep.mubr.bf16.mxu1 %v1456_v2 }
  0x6b   : >> { %737 = vmatmul.mubr.bf16.gmra.mxu0 %v1391_v62 }
  0x6c   : >> { %746 = vmatprep.mubr.bf16.mxu0 %v1393_v63 }
  0x6d   : >> { %890 = vmatmul.mubr.bf16.gmra.mxu1 %v1404_v4 }
  0x73   : >> { %747 = vmatmul.mubr.bf16.gmra.mxu0 %v1395_v1 }
  0x74   : >> { %756 = vmatprep.mubr.bf16.mxu0 %v1397_v3 }
  0x7b   : >> { %757 = vmatmul.mubr.bf16.gmra.mxu0 %v1399_v5 }
  0x7c   : >> { %766 = vmatprep.mubr.bf16.mxu0 %v1401_v6 }
  0x83   : >> { %767 = vmatmul.mubr.bf16.gmra.mxu0 %v1403_v7 }
  0x84   : >> { %776 = vmatprep.mubr.bf16.mxu0 %v1405_v8 }
  0x8b   : >> { %777 = vmatmul.mubr.bf16.gmra.mxu0 %v1407_v9 }
  0xf5   : >> { %v821_v10 = vpop.f32.mrf.mxu1 }
  0xf7   : >> { %v823_v11 = vpop.f32.mrf.mxu1 }
  0xf9   : >> { %v825_v12 = vpop.f32.mrf.mxu1 }
  0xfb   : >> { %v827_v2 = vpop.f32.mrf.mxu1 }
  0xfd   : >> { %v831_v13 = vpop.f32.mrf.mxu1 }
  0xff   : >> { %v833_v14 = vpop.f32.mrf.mxu1 }
 0x101   : >> { %v835_v15 = vpop.f32.mrf.mxu1 }
 0x103   : >> { %v837_v16 = vpop.f32.mrf.mxu1 }
 0x105   : >> { %v841_v17 = vpop.f32.mrf.mxu1 }
 0x107   : >> { %v843_v18 = vpop.f32.mrf.mxu1 }
 0x109   : >> { %v845_v19 = vpop.f32.mrf.mxu1 }
 0x10b   : >> { %v847_v21 = vpop.f32.mrf.mxu1 }
 0x10d   : >> { %v851_v23 = vpop.f32.mrf.mxu1 }
 0x10f   : >> { %v853_v25 = vpop.f32.mrf.mxu1 }
 0x111   : >> { %v855_v27 = vpop.f32.mrf.mxu1 }
 0x113   : >> { %v708_v20 = vpop.f32.mrf.mxu0  ;;  %v857_v29 = vpop.f32.mrf.mxu1 }
 0x114   : >> { %v822_v33 = vadd.f32 %v821_v10, %v708_v20 }
 0x115   : >> { %v710_v22 = vpop.f32.mrf.mxu0  ;;  %v1702_v32 = vpop.f32.mrf.mxu1 }
 0x116   : >> { %v824_v30 = vadd.f32 %v823_v11, %v710_v22 }
 0x117   : >> { %v712_v24 = vpop.f32.mrf.mxu0  ;;  %v1704_v37 = vpop.f32.mrf.mxu1 }
 0x118   : >> { %v900_v38 = vmax.f32 %v822_v33, %v824_v30  ;;  %v826_v43 = vadd.f32 %v825_v12, %v712_v24 }
 0x119   : >> { %v714_v26 = vpop.f32.mrf.mxu0  ;;  %v1706_v42 = vpop.f32.mrf.mxu1 }
 0x11a   : >> { %v828_v39 = vadd.f32 %v827_v2, %v714_v26 }
 0x11b   : >> { %v718_v28 = vpop.f32.mrf.mxu0  ;;  %v1716_v49 = vpop.f32.mrf.mxu1 }
 0x11c   : >> { %v832_v34 = vadd.f32 %v831_v13, %v718_v28  ;;  %v901_v50 = vmax.f32 %v826_v43, %v828_v39 }
 0x11d   : >> { %v720_v31 = vpop.f32.mrf.mxu0  ;;  %v871_v53 = vpop.f32.mrf.mxu1 }
 0x11e   : >> { %v834_v35 = vadd.f32 %v833_v14, %v720_v31 }
 0x11f   : >> { %v722_v36 = vpop.f32.mrf.mxu0  ;;  %v873_v59 = vpop.f32.mrf.mxu1 }
 0x120   : >> { %v902_v40 = vmax.f32 %v832_v34, %v834_v35  ;;  %v836_v45 = vadd.f32 %v835_v15, %v722_v36 }
 0x121   : >> { %v724_v41 = vpop.f32.mrf.mxu0  ;;  %v875_v3 = vpop.f32.mrf.mxu1 }
 0x122   : >> { %v917_v44 = vmax.f32 %v900_v38, %v902_v40  ;;  %v838_v46 = vadd.f32 %v837_v16, %v724_v41 }
 0x123   : >> { %v728_v48 = vpop.f32.mrf.mxu0  ;;  %v877_v12 = vpop.f32.mrf.mxu1 }
 0x124   : >> { %v903_v51 = vmax.f32 %v836_v45, %v838_v46  ;;  %v926_v54 = vadd.f32 %v1714_v47, %v917_v44  ;;  %v842_v4 = vadd.f32 %v841_v17, %v728_v48 }
 0x125   : >> { %v730_v52 = vpop.f32.mrf.mxu0  ;;  %v881_v17 = vpop.f32.mrf.mxu1 }
 0x126   : >> { %v918_v55 = vmax.f32 %v901_v50, %v903_v51  ;;  %v928_v60 = vmax.f32 %v926_v54, 0.0  ;;  %v844_v0 = vadd.f32 %v843_v18, %v730_v52 }
 0x127   : >> { %v732_v56 = vpop.f32.mrf.mxu0 }
 0x128   : >> { %v927_v57 = vadd.f32 %v1714_v47, %v918_v55  ;;  %v904_v8 = vmax.f32 %v842_v4, %v844_v0  ;;  %v846_v2 = vadd.f32 %v845_v19, %v732_v56  ;;  %v883_v19 = vpop.f32.mrf.mxu1 }
 0x129   : >> { %v734_v58 = vpop.f32.mrf.mxu0 }
 0x12a   : >> { %v929_v61 = vmax.f32 %v927_v57, 0.0  ;;  %v848_v9 = vadd.f32 %v847_v21, %v734_v58  ;;  %v885_v34 = vpop.f32.mrf.mxu1 }
 0x12b   : >> { %v738_v62 = vpop.f32.mrf.mxu0 }
 0x12c   : >> { %v1237_v63 = vpack.c.bf16 %v929_v61, %v928_v60  ;;  %v852_v5 = vadd.f32 %v851_v23, %v738_v62  ;;  %v905_v18 = vmax.f32 %v846_v2, %v848_v9  ;;  %v887_v45 = vpop.f32.mrf.mxu1 }
 0x12d   : >> { %v740_v1 = vpop.f32.mrf.mxu0 }
 0x12e   : >> { %1238 = vst [vmem:[%s941_s21] sm:$0xff] %v1237_v63   ;;  %v854_v6 = vadd.f32 %v853_v25, %v740_v1 }
 0x12f   : >> { %v742_v7 = vpop.f32.mrf.mxu0 }
 0x130   : >> { %v906_v10 = vmax.f32 %v852_v5, %v854_v6  ;;  %v856_v14 = vadd.f32 %v855_v27, %v742_v7 }
 0x131   : >> { %v744_v11 = vpop.f32.mrf.mxu0 }
 0x132   : >> { %v944_v13 = vmax.f32 %v904_v8, %v906_v10  ;;  %v858_v15 = vadd.f32 %v857_v29, %v744_v11 }
 0x133   : >> { %v748_v16 = vpop.f32.mrf.mxu0 }
 0x134   : >> { %v907_v20 = vmax.f32 %v856_v14, %v858_v15  ;;  %v953_v23 = vadd.f32 %v1714_v47, %v944_v13  ;;  %v862_v35 = vadd.f32 %v1702_v32, %v748_v16 }
 0x135   : >> { %v750_v22 = vpop.f32.mrf.mxu0 }
 0x136   : >> { %v945_v24 = vmax.f32 %v905_v18, %v907_v20  ;;  %v955_v28 = vmax.f32 %v953_v23, 0.0  ;;  %v864_v31 = vadd.f32 %v1704_v37, %v750_v22 }
 0x137   : >> { %v752_v25 = vpop.f32.mrf.mxu0 }
 0x138   : >> { %v954_v21 = vadd.f32 %v1714_v47, %v945_v24  ;;  %v908_v40 = vmax.f32 %v862_v35, %v864_v31  ;;  %v866_v46 = vadd.f32 %v1706_v42, %v752_v25 }
 0x139   : >> { %v754_v26 = vpop.f32.mrf.mxu0 }
 0x13a   : >> { %v956_v27 = vmax.f32 %v954_v21, 0.0  ;;  %v868_v41 = vadd.f32 %v1716_v49, %v754_v26 }
 0x13b   : >> { %v758_v29 = vpop.f32.mrf.mxu0 }
 0x13c   : >> { %v1242_v30 = vpack.c.bf16 %v956_v27, %v955_v28  ;;  %v872_v36 = vadd.f32 %v871_v53, %v758_v29  ;;  %v909_v52 = vmax.f32 %v866_v46, %v868_v41  ;;  %v891_v53 = vpop.f32.mrf.mxu1 }
 0x13d   : >> { %v760_v33 = vpop.f32.mrf.mxu0 }
 0x13e   : >> { %1243 = vst [vmem:[%s969_s25] sm:$0xff] %v1242_v30   ;;  %v874_v38 = vadd.f32 %v873_v59, %v760_v33  ;;  %v893_v58 = vpop.f32.mrf.mxu1 }
 0x13f   : >> { %v762_v39 = vpop.f32.mrf.mxu0 }
 0x140   : >> { %v910_v43 = vmax.f32 %v872_v36, %v874_v38  ;;  %v876_v50 = vadd.f32 %v875_v3, %v762_v39  ;;  %v895_v0 = vpop.f32.mrf.mxu1 }
 0x141   : >> { %v764_v44 = vpop.f32.mrf.mxu0 }
 0x142   : >> { %v972_v48 = vmax.f32 %v908_v40, %v910_v43  ;;  %v878_v37 = vadd.f32 %v877_v12, %v764_v44  ;;  %v897_v10 = vpop.f32.mrf.mxu1 }
 0x143   : >> { %v768_v51 = vpop.f32.mrf.mxu0 }
 0x144   : >> { %v911_v54 = vmax.f32 %v876_v50, %v878_v37  ;;  %v981_v55 = vadd.f32 %v1714_v47, %v972_v48  ;;  %v882_v3 = vadd.f32 %v881_v17, %v768_v51 }
 0x145   : >> { %v770_v32 = vpop.f32.mrf.mxu0 }
 0x146   : >> { %v973_v56 = vmax.f32 %v909_v52, %v911_v54  ;;  %v983_v42 = vmax.f32 %v981_v55, 0.0  ;;  %v884_v63 = vadd.f32 %v883_v19, %v770_v32 }
 0x147   : >> { %v772_v49 = vpop.f32.mrf.mxu0 }
 0x148   : >> { %v982_v57 = vadd.f32 %v1714_v47, %v973_v56  ;;  %v912_v7 = vmax.f32 %v882_v3, %v884_v63  ;;  %v886_v12 = vadd.f32 %v885_v34, %v772_v49 }
 0x149   : >> { %v774_v59 = vpop.f32.mrf.mxu0 }
 0x14a   : >> { %v984_v60 = vmax.f32 %v982_v57, 0.0  ;;  %v888_v8 = vadd.f32 %v887_v45, %v774_v59 }
 0x14b   : >> { %v778_v61 = vpop.f32.mrf.mxu0 }
 0x14c   : >> { %v1247_v62 = vpack.c.bf16 %v984_v60, %v983_v42  ;;  %v892_v4 = vadd.f32 %v891_v53, %v778_v61  ;;  %v913_v15 = vmax.f32 %v886_v12, %v888_v8 }
 0x14d   : >> { %v780_v1 = vpop.f32.mrf.mxu0 }
 0x14e   : >> { %1248 = vst [vmem:[%s997_s5] sm:$0xff] %v1247_v62   ;;  %v894_v5 = vadd.f32 %v893_v58, %v780_v1 }
 0x14f   : >> { %v782_v6 = vpop.f32.mrf.mxu0 }
 0x150   : >> { %v914_v9 = vmax.f32 %v892_v4, %v894_v5  ;;  %v896_v13 = vadd.f32 %v895_v0, %v782_v6 }
 0x151   : >> { %v784_v11 = vpop.f32.mrf.mxu0 }
 0x152   : >> { %v1000_v2 = vmax.f32 %v912_v7, %v914_v9  ;;  %v898_v14 = vadd.f32 %v897_v10, %v784_v11 }
 0x154   : >> { %v915_v16 = vmax.f32 %v896_v13, %v898_v14  ;;  %v1009_v18 = vadd.f32 %v1714_v47, %v1000_v2 }
 0x156   : >> { %v1001_v20 = vmax.f32 %v913_v15, %v915_v16  ;;  %v1011_v17 = vmax.f32 %v1009_v18, 0.0 }
 0x158   : >> { %v1010_v22 = vadd.f32 %v1714_v47, %v1001_v20 }
 0x15a   : >> { %v1012_v23 = vmax.f32 %v1010_v22, 0.0  ;;  %218 = sbr.rel (!%p216_p7) target bundleno = 18 (0x12), region = 74 }
 0x15c   : >> { %v1252_v24 = vpack.c.bf16 %v1012_v23, %v1011_v17 }
 0x15e   : >> { %1253 = vst [vmem:[%s1025_s10] sm:$0xff] %v1252_v24  }
 0x15f PF: > { %s13_s16 = sadd.s32 1, %s1450_s16   ;;  %s1760_s12 = smov %s1442_s14 }
 0x160   : > { %p10_p8 = scmp.ge.s32.totalorder %s13_s16, 6   ;;  %s1761_s13 = smov %s1446_s15 }
 0x161   : > { %s1762_s14 = smov %s1765_s17  ;;  %s1763_s15 = smov %s1769_s18 }
 0x162   :  { %12 = sbr.rel (!%p10_p8) target bundleno = 3 (0x3), region = 85 }

// kernel: attributes_network_forward.10
= control target key start
LH: loop header
LB: loop body
LE: loop exit
PB: predicated region body
PF: predicated region fallthrough
CT: control target
= control target key end

     0   :  { %s1612_s12 = smov 0   ;;  %s1614_s13 = smov 0   ;;  %s1909_s0 = inlined_call_operand.vmem [shape: bf16[8192,512], index: 0, kind: input, shape index: {}]   ;;  %s1910_s1 = inlined_call_operand.vmem [shape: bf16[512,256], index: 1, kind: input, shape index: {}]   ;;  %s1911_s2 = inlined_call_operand.vmem [shape: f32[1,128], index: 2, kind: input, shape index: {}]   ;;  %s1912_s3 = inlined_call_operand.vmem [shape: bf16[4096,128], index: 3, kind: output, shape index: {}]  }
   0x1   :  { %s1616_s14 = smov 0  }
   0x2 LB: > { %s25_s15 = sadd.s32 1, %s1582_s13  ;;  %p1230_p0 = scmp.ge.s32.totalorder %s1586_s14, 1  ;;  %s1586_s14 = sphi %s1616_s14, %s13_s14   ;;  %s1582_s13 = sphi %s1614_s13, %s1914_s13   ;;  %s1578_s12 = sphi %s1612_s12, %s1913_s12  }
   0x3   : > { %p27_p1 = scmp.ge.s32.totalorder %s25_s15, 2  ;;  %p157_p2 = scmp.lt.s32.totalorder %s1586_s14, 3 }
   0x5   : > { %s1916_s15 = smov (%p27_p1, %s25_s15), 0  ;;  %p158_p3 = pnand %p1230_p0, %p157_p2 }
   0x6   : > { %s1231_s16 = sshll.u32 (!%p158_p3), %s1578_s12, 9  ;;  %s1234_s17 = sshll.u32 (!%p158_p3), %s1578_s12, 8 }
   0x7   : > { %161 = sbr.rel (%p158_p3) target bundleno = 349 (0x15d), region = 32  ;;  %p186_p4 = scmp.lt.s32.totalorder (!%p158_p3), %s1231_s16, 1023 }
   0x8   : > { %p195_p5 = scmp.lt.s32.totalorder (!%p158_p3), %s1234_s17, 511  ;;  %s1640_s26 = smov (!%p158_p3), 0  }
   0xc   : > { %s1918_s16 = smov (!%p186_p4, %s1231_s16), 1023  ;;  %s1920_s17 = smov (!%p195_p5, %s1234_s17), 511 }
   0xd   : > { %s1354_s18 = sshll.u32 %s1918_s16, 4  ;;  %s1235_s22 = sshll.u32 %s1920_s17, 2 }
   0xe   : > { %s1633_s21 = scalar_lea.vmem %s1909_s0, %s1354_s18  ;;  %s1638_s25 = scalar_lea.vmem %s1912_s3, %s1235_s22 }
   0xf LB: >> { %v1416_v0 = vld [vmem:[%s1910_s1 + $0x74] ss:$8 sps:$4 sm:$0xff]   ;;  %v1420_v2 = vld [vmem:[%s1910_s1 + $0x70] ss:$8 sps:$4 sm:$0xff]   ;;  %v1422_v4 = vld [vmem:[%s1910_s1 + $0x64] ss:$8 sps:$4 sm:$0xff]   ;;  %s1590_s26 = sphi %s1640_s26, %s206_s26  }
  0x10   : >> { %v1418_v1 = vld [vmem:[%s1910_s1 + $0x174] ss:$8 sps:$4 sm:$0xff]   ;;  %789 = vmatprep.subr.bf16.mxu0 %v1416_v0  ;;  %v1421_v3 = vld [vmem:[%s1910_s1 + $0x170] ss:$8 sps:$4 sm:$0xff]   ;;  %v1424_v5 = vld [vmem:[%s1910_s1 + $0x164] ss:$8 sps:$4 sm:$0xff]  }
  0x11   : >> { %902 = vmatprep.subr.bf16.mxu1 %v1418_v1  ;;  %790 = vmatpush1.bf16.msra.mxu0 %v1420_v2  ;;  %v1426_v6 = vld [vmem:[%s1910_s1 + $0x60] ss:$8 sps:$4 sm:$0xff]   ;;  %v1428_v8 = vld [vmem:[%s1910_s1 + $0x54] ss:$8 sps:$4 sm:$0xff]   ;;  %v1432_v10 = vld [vmem:[%s1910_s1 + $0x50] ss:$8 sps:$4 sm:$0xff]  }
  0x12   : >> { %903 = vmatpush1.bf16.msra.mxu1 %v1421_v3  ;;  %791 = vmatprep.subr.bf16.mxu0 %v1422_v4  ;;  %v1427_v7 = vld [vmem:[%s1910_s1 + $0x160] ss:$8 sps:$4 sm:$0xff]   ;;  %v1430_v9 = vld [vmem:[%s1910_s1 + $0x154] ss:$8 sps:$4 sm:$0xff]   ;;  %v1433_v11 = vld [vmem:[%s1910_s1 + $0x150] ss:$8 sps:$4 sm:$0xff]  }
  0x13   : >> { %904 = vmatprep.subr.bf16.mxu1 %v1424_v5  ;;  %v1434_v12 = vld [vmem:[%s1910_s1 + $0x44] ss:$8 sps:$4 sm:$0xff]   ;;  %v1438_v14 = vld [vmem:[%s1910_s1 + $0x40] ss:$8 sps:$4 sm:$0xff]   ;;  %v1440_v16 = vld [vmem:[%s1910_s1 + $0x34] ss:$8 sps:$4 sm:$0xff]  }
  0x14   : >> { %v1436_v13 = vld [vmem:[%s1910_s1 + $0x144] ss:$8 sps:$4 sm:$0xff]   ;;  %v1439_v15 = vld [vmem:[%s1910_s1 + $0x140] ss:$8 sps:$4 sm:$0xff]   ;;  %v1442_v17 = vld [vmem:[%s1910_s1 + $0x134] ss:$8 sps:$4 sm:$0xff]  }
  0x15   : >> { %792 = vmatpush1.bf16.msra.mxu0 %v1426_v6  ;;  %v1444_v18 = vld [vmem:[%s1910_s1 + $0x30] ss:$8 sps:$4 sm:$0xff]   ;;  %v1446_v20 = vld [vmem:[%s1910_s1 + $0x24] ss:$8 sps:$4 sm:$0xff]   ;;  %v1450_v22 = vld [vmem:[%s1910_s1 + $0x20] ss:$8 sps:$4 sm:$0xff]  }
  0x16   : >> { %905 = vmatpush1.bf16.msra.mxu1 %v1427_v7  ;;  %793 = vmatprep.subr.bf16.mxu0 %v1428_v8  ;;  %v1445_v19 = vld [vmem:[%s1910_s1 + $0x130] ss:$8 sps:$4 sm:$0xff]   ;;  %v1448_v21 = vld [vmem:[%s1910_s1 + $0x124] ss:$8 sps:$4 sm:$0xff]   ;;  %v1451_v23 = vld [vmem:[%s1910_s1 + $0x120] ss:$8 sps:$4 sm:$0xff]  }
  0x17   : >> { %906 = vmatprep.subr.bf16.mxu1 %v1430_v9  ;;  %v1452_v24 = vld [vmem:[%s1910_s1 + $0x14] ss:$8 sps:$4 sm:$0xff]   ;;  %v1456_v26 = vld [vmem:[%s1910_s1 + $0x10] ss:$8 sps:$4 sm:$0xff]   ;;  %v1458_v28 = vld [vmem:[%s1910_s1 + $0x4] ss:$8 sps:$4 sm:$0xff]  }
  0x18   : >> { %v1454_v25 = vld [vmem:[%s1910_s1 + $0x114] ss:$8 sps:$4 sm:$0xff]   ;;  %v1457_v27 = vld [vmem:[%s1910_s1 + $0x110] ss:$8 sps:$4 sm:$0xff]   ;;  %v1460_v29 = vld [vmem:[%s1910_s1 + $0x104] ss:$8 sps:$4 sm:$0xff]  }
  0x19   : >> { %794 = vmatpush1.bf16.msra.mxu0 %v1432_v10  ;;  %v1462_v30 = vld [vmem:[%s1910_s1] ss:$8 sps:$4 sm:$0xff]   ;;  %v1464_v32 = vld [vmem:[%s1910_s1 + $0xf4] ss:$8 sps:$4 sm:$0xff]   ;;  %v1468_v34 = vld [vmem:[%s1910_s1 + $0xf0] ss:$8 sps:$4 sm:$0xff]  }
  0x1a   : >> { %907 = vmatpush1.bf16.msra.mxu1 %v1433_v11  ;;  %795 = vmatprep.subr.bf16.mxu0 %v1434_v12  ;;  %v1463_v31 = vld [vmem:[%s1910_s1 + $0x100] ss:$8 sps:$4 sm:$0xff]   ;;  %v1466_v33 = vld [vmem:[%s1910_s1 + $0x1f4] ss:$8 sps:$4 sm:$0xff]   ;;  %v1469_v35 = vld [vmem:[%s1910_s1 + $0x1f0] ss:$8 sps:$4 sm:$0xff]  }
  0x1b   : >> { %908 = vmatprep.subr.bf16.mxu1 %v1436_v13  ;;  %s1236_s9 = sshll.u32 %s1590_s26, 7  ;;  %v1470_v36 = vld [vmem:[%s1910_s1 + $0xe4] ss:$8 sps:$4 sm:$0xff]   ;;  %v1474_v38 = vld [vmem:[%s1910_s1 + $0xe0] ss:$8 sps:$4 sm:$0xff]  }
  0x1c   : >> { %v1472_v37 = vld [vmem:[%s1910_s1 + $0x1e4] ss:$8 sps:$4 sm:$0xff]   ;;  %s208_s17 = sshra.s32 %s1236_s9, 3  ;;  %v1475_v39 = vld [vmem:[%s1910_s1 + $0x1e0] ss:$8 sps:$4 sm:$0xff]  }
  0x1d   : >> { %796 = vmatpush1.bf16.msra.mxu0 %v1438_v14  ;;  %v1476_v40 = vld [vmem:[%s1910_s1 + $0xd4] ss:$8 sps:$4 sm:$0xff]   ;;  %s1355_s29 = sshll.u32 %s208_s17, 4  ;;  %v1480_v42 = vld [vmem:[%s1910_s1 + $0xd0] ss:$8 sps:$4 sm:$0xff]  }
  0x1e   : >> { %909 = vmatpush1.bf16.msra.mxu1 %v1439_v15  ;;  %797 = vmatprep.subr.bf16.mxu0 %v1440_v16  ;;  %v1478_v41 = vld [vmem:[%s1910_s1 + $0x1d4] ss:$8 sps:$4 sm:$0xff]   ;;  %v1481_v43 = vld [vmem:[%s1910_s1 + $0x1d0] ss:$8 sps:$4 sm:$0xff]   ;;  %v1482_v44 = vld [vmem:[%s1910_s1 + $0xc4] ss:$8 sps:$4 sm:$0xff]   ;;  %s1782_s9 = scalar_lea.vmem %s1633_s21, %s1355_s29 }
  0x1f   : >> { %910 = vmatprep.subr.bf16.mxu1 %v1442_v17  ;;  %v1484_v45 = vld [vmem:[%s1910_s1 + $0x1c4] ss:$8 sps:$4 sm:$0xff]   ;;  %v1486_v46 = vld [vmem:[%s1910_s1 + $0xc0] ss:$8 sps:$4 sm:$0xff]   ;;  %v1488_v48 = vld [vmem:[%s1910_s1 + $0xb4] ss:$8 sps:$4 sm:$0xff]  }
  0x20   : >> { %v1487_v47 = vld [vmem:[%s1910_s1 + $0x1c0] ss:$8 sps:$4 sm:$0xff]   ;;  %v1514_v49 = vld [vmem:[%s1782_s9 + $0x4] ss:$16 sps:$4 sm:$0xff]   ;;  %v1517_v51 = vld [vmem:[%s1782_s9 + $0xc] ss:$16 sps:$4 sm:$0xff]  }
  0x21   : >> { %798 = vmatpush1.bf16.msra.mxu0 %v1444_v18  ;;  %v1490_v50 = vld [vmem:[%s1910_s1 + $0x1b4] ss:$8 sps:$4 sm:$0xff]   ;;  %821 = vmatprep.mubr.bf16.mxu0 %v1514_v49  ;;  %v1492_v52 = vld [vmem:[%s1910_s1 + $0xb0] ss:$8 sps:$4 sm:$0xff]   ;;  %v1494_v54 = vld [vmem:[%s1910_s1 + $0xa4] ss:$8 sps:$4 sm:$0xff]  }
  0x22   : >> { %911 = vmatpush1.bf16.msra.mxu1 %v1445_v19  ;;  %799 = vmatprep.subr.bf16.mxu0 %v1446_v20  ;;  %v1493_v53 = vld [vmem:[%s1910_s1 + $0x1b0] ss:$8 sps:$4 sm:$0xff]   ;;  %v1496_v55 = vld [vmem:[%s1910_s1 + $0x1a4] ss:$8 sps:$4 sm:$0xff]   ;;  %v1498_v56 = vld [vmem:[%s1910_s1 + $0xa0] ss:$8 sps:$4 sm:$0xff]  }
  0x23   : >> { %912 = vmatprep.subr.bf16.mxu1 %v1448_v21  ;;  %934 = vmatprep.mubr.bf16.mxu1 %v1517_v51  ;;  %v1499_v57 = vld [vmem:[%s1910_s1 + $0x1a0] ss:$8 sps:$4 sm:$0xff]   ;;  %v1500_v58 = vld [vmem:[%s1910_s1 + $0x94] ss:$8 sps:$4 sm:$0xff]   ;;  %v1504_v60 = vld [vmem:[%s1910_s1 + $0x90] ss:$8 sps:$4 sm:$0xff]  }
  0x24   : >> { %v1502_v59 = vld [vmem:[%s1910_s1 + $0x194] ss:$8 sps:$4 sm:$0xff]   ;;  %v1505_v61 = vld [vmem:[%s1910_s1 + $0x190] ss:$8 sps:$4 sm:$0xff]   ;;  %v1506_v62 = vld [vmem:[%s1910_s1 + $0x84] ss:$8 sps:$4 sm:$0xff]  }
  0x25   : >> { %800 = vmatpush1.bf16.msra.mxu0 %v1450_v22  ;;  %v1508_v63 = vld [vmem:[%s1910_s1 + $0x184] ss:$8 sps:$4 sm:$0xff]   ;;  %v1510_v0 = vld [vmem:[%s1910_s1 + $0x80] ss:$8 sps:$4 sm:$0xff]  }
  0x26   : >> { %913 = vmatpush1.bf16.msra.mxu1 %v1451_v23  ;;  %801 = vmatprep.subr.bf16.mxu0 %v1452_v24  ;;  %v1511_v1 = vld [vmem:[%s1910_s1 + $0x180] ss:$8 sps:$4 sm:$0xff]   ;;  %v1518_v4 = vld [vmem:[%s1782_s9 + $0x24] ss:$16 sps:$4 sm:$0xff]   ;;  %v1520_v5 = vld [vmem:[%s1782_s9 + $0x2c] ss:$16 sps:$4 sm:$0xff]  }
  0x27   : >> { %914 = vmatprep.subr.bf16.mxu1 %v1454_v25  ;;  %v1512_v2 = vld [vmem:[%s1782_s9] ss:$16 sps:$4 sm:$0xff]   ;;  %v1515_v3 = vld [vmem:[%s1782_s9 + $0x8] ss:$16 sps:$4 sm:$0xff]   ;;  %v1524_v8 = vld [vmem:[%s1782_s9 + $0x44] ss:$16 sps:$4 sm:$0xff]  }
  0x28   : >> { %v1522_v6 = vld [vmem:[%s1782_s9 + $0x20] ss:$16 sps:$4 sm:$0xff]   ;;  %v1523_v7 = vld [vmem:[%s1782_s9 + $0x28] ss:$16 sps:$4 sm:$0xff]   ;;  %v1526_v9 = vld [vmem:[%s1782_s9 + $0x4c] ss:$16 sps:$4 sm:$0xff]  }
  0x29   : >> { %802 = vmatpush1.bf16.msra.mxu0 %v1456_v26  ;;  %v1528_v10 = vld [vmem:[%s1782_s9 + $0x40] ss:$16 sps:$4 sm:$0xff]   ;;  %v1529_v11 = vld [vmem:[%s1782_s9 + $0x48] ss:$16 sps:$4 sm:$0xff]   ;;  %v1530_v12 = vld [vmem:[%s1782_s9 + $0x64] ss:$16 sps:$4 sm:$0xff]  }
  0x2a   : >> { %915 = vmatpush1.bf16.msra.mxu1 %v1457_v27  ;;  %803 = vmatprep.subr.bf16.mxu0 %v1458_v28  ;;  %v1532_v13 = vld [vmem:[%s1782_s9 + $0x6c] ss:$16 sps:$4 sm:$0xff]   ;;  %v1534_v14 = vld [vmem:[%s1782_s9 + $0x60] ss:$16 sps:$4 sm:$0xff]   ;;  %v1535_v15 = vld [vmem:[%s1782_s9 + $0x68] ss:$16 sps:$4 sm:$0xff]  }
  0x2b   : >> { %916 = vmatprep.subr.bf16.mxu1 %v1460_v29  ;;  %v1536_v16 = vld [vmem:[%s1782_s9 + $0x84] ss:$16 sps:$4 sm:$0xff]   ;;  %v1538_v17 = vld [vmem:[%s1782_s9 + $0x8c] ss:$16 sps:$4 sm:$0xff]   ;;  %v1540_v18 = vld [vmem:[%s1782_s9 + $0x80] ss:$16 sps:$4 sm:$0xff]  }
  0x2c   : >> { %v1541_v19 = vld [vmem:[%s1782_s9 + $0x88] ss:$16 sps:$4 sm:$0xff]   ;;  %v1542_v20 = vld [vmem:[%s1782_s9 + $0xa4] ss:$16 sps:$4 sm:$0xff]   ;;  %v1544_v21 = vld [vmem:[%s1782_s9 + $0xac] ss:$16 sps:$4 sm:$0xff]  }
  0x2d   : >> { %804 = vmatpush1.bf16.msra.mxu0 %v1462_v30  ;;  %v1546_v22 = vld [vmem:[%s1782_s9 + $0xa0] ss:$16 sps:$4 sm:$0xff]   ;;  %v1547_v23 = vld [vmem:[%s1782_s9 + $0xa8] ss:$16 sps:$4 sm:$0xff]   ;;  %v1548_v24 = vld [vmem:[%s1782_s9 + $0xc4] ss:$16 sps:$4 sm:$0xff]  }
  0x2e   : >> { %917 = vmatpush1.bf16.msra.mxu1 %v1463_v31  ;;  %805 = vmatprep.subr.bf16.mxu0 %v1464_v32  ;;  %v1550_v25 = vld [vmem:[%s1782_s9 + $0xcc] ss:$16 sps:$4 sm:$0xff]   ;;  %v1552_v26 = vld [vmem:[%s1782_s9 + $0xc0] ss:$16 sps:$4 sm:$0xff]   ;;  %v1553_v27 = vld [vmem:[%s1782_s9 + $0xc8] ss:$16 sps:$4 sm:$0xff]  }
  0x2f   : >> { %918 = vmatprep.subr.bf16.mxu1 %v1466_v33  ;;  %v1554_v28 = vld [vmem:[%s1782_s9 + $0xe4] ss:$16 sps:$4 sm:$0xff]   ;;  %v1556_v29 = vld [vmem:[%s1782_s9 + $0xec] ss:$16 sps:$4 sm:$0xff]   ;;  %v1558_v30 = vld [vmem:[%s1782_s9 + $0xe0] ss:$16 sps:$4 sm:$0xff]  }
  0x30   : >> { %v1559_v31 = vld [vmem:[%s1782_s9 + $0xe8] ss:$16 sps:$4 sm:$0xff]   ;;  %s1874_s9 = sshll.u32 %s1590_s26, 6  ;;  %s206_s26 = sadd.s32 1, %s1590_s26  }
  0x31   : >> { %806 = vmatpush2.bf16.msra.mxu0 %v1468_v34  ;;  %s1053_s10 = sshra.s32 %s1874_s9, 3  ;;  %s1073_s16 = sadd.s32 16, %s1874_s9 }
  0x32   : >> { %919 = vmatpush2.bf16.msra.mxu1 %v1469_v35  ;;  %807 = vmatprep.subr.bf16.mxu0 %v1470_v36  ;;  %s1339_s11 = sshll.u32 %s1053_s10, 2  ;;  %s1081_s17 = sshra.s32 %s1073_s16, 3 }
  0x33   : >> { %920 = vmatprep.subr.bf16.mxu1 %v1472_v37  ;;  %s1056_s12 = scalar_lea.vmem %s1638_s25, %s1339_s11  ;;  %s1343_s18 = sshll.u32 %s1081_s17, 2 }
  0x34   : >> { %s1084_s19 = scalar_lea.vmem %s1638_s25, %s1343_s18  ;;  %s1101_s20 = sadd.s32 32, %s1874_s9 }
  0x35   : >> { %808 = vmatpush2.bf16.msra.mxu0 %v1474_v38  ;;  %s1109_s22 = sshra.s32 %s1101_s20, 3  ;;  %s1129_s27 = sadd.s32 48, %s1874_s9 }
  0x36   : >> { %921 = vmatpush2.bf16.msra.mxu1 %v1475_v39  ;;  %809 = vmatprep.subr.bf16.mxu0 %v1476_v40  ;;  %s1347_s23 = sshll.u32 %s1109_s22, 2  ;;  %s1137_s28 = sshra.s32 %s1129_s27, 3 }
  0x37   : >> { %922 = vmatprep.subr.bf16.mxu1 %v1478_v41  ;;  %s1112_s24 = scalar_lea.vmem %s1638_s25, %s1347_s23  ;;  %s1351_s29 = sshll.u32 %s1137_s28, 2 }
  0x38   : >> { %s1140_s30 = scalar_lea.vmem %s1638_s25, %s1351_s29  ;;  %p203_p6 = scmp.ge.s32.totalorder %s206_s26, 32  }
  0x39   : >> { %810 = vmatpush2.bf16.msra.mxu0 %v1480_v42 }
  0x3a   : >> { %923 = vmatpush2.bf16.msra.mxu1 %v1481_v43  ;;  %811 = vmatprep.subr.bf16.mxu0 %v1482_v44 }
  0x3b   : >> { %924 = vmatprep.subr.bf16.mxu1 %v1484_v45 }
  0x3d   : >> { %812 = vmatpush2.bf16.msra.mxu0 %v1486_v46 }
  0x3e   : >> { %925 = vmatpush2.bf16.msra.mxu1 %v1487_v47  ;;  %813 = vmatprep.subr.bf16.mxu0 %v1488_v48 }
  0x3f   : >> { %926 = vmatprep.subr.bf16.mxu1 %v1490_v50 }
  0x41   : >> { %814 = vmatpush2.bf16.msra.mxu0 %v1492_v52 }
  0x42   : >> { %927 = vmatpush2.bf16.msra.mxu1 %v1493_v53  ;;  %815 = vmatprep.subr.bf16.mxu0 %v1494_v54 }
  0x43   : >> { %928 = vmatprep.subr.bf16.mxu1 %v1496_v55 }
  0x45   : >> { %816 = vmatpush2.bf16.msra.mxu0 %v1498_v56 }
  0x46   : >> { %929 = vmatpush2.bf16.msra.mxu1 %v1499_v57  ;;  %817 = vmatprep.subr.bf16.mxu0 %v1500_v58 }
  0x47   : >> { %930 = vmatprep.subr.bf16.mxu1 %v1502_v59  ;;  %v1879_v59 = vld [vmem:[%s1911_s2] ss:$0 sm:$0xff] }
  0x49   : >> { %818 = vmatpush2.bf16.msra.mxu0 %v1504_v60 }
  0x4a   : >> { %931 = vmatpush2.bf16.msra.mxu1 %v1505_v61  ;;  %819 = vmatprep.subr.bf16.mxu0 %v1506_v62 }
  0x4b   : >> { %932 = vmatprep.subr.bf16.mxu1 %v1508_v63 }
  0x4d   : >> { %820 = vmatpush2.bf16.msra.mxu0 %v1510_v0 }
  0x4e   : >> { %933 = vmatpush2.bf16.msra.mxu1 %v1511_v1 }
  0x50   : >> { %822 = vmatmul.mubr.bf16.vlgmr.msra.gmra.mxu0 %v1512_v2 }
  0x51   : >> { %935 = vmatmul.mubr.bf16.vlgmr.msra.gmra.mxu1 %v1515_v3  ;;  %831 = vmatprep.mubr.bf16.mxu0 %v1518_v4 }
  0x52   : >> { %944 = vmatprep.mubr.bf16.mxu1 %v1520_v5 }
  0x58   : >> { %832 = vmatmul.mubr.bf16.gmra.mxu0 %v1522_v6 }
  0x59   : >> { %945 = vmatmul.mubr.bf16.gmra.mxu1 %v1523_v7  ;;  %841 = vmatprep.mubr.bf16.mxu0 %v1524_v8 }
  0x5a   : >> { %954 = vmatprep.mubr.bf16.mxu1 %v1526_v9 }
  0x60   : >> { %842 = vmatmul.mubr.bf16.gmra.mxu0 %v1528_v10 }
  0x61   : >> { %955 = vmatmul.mubr.bf16.gmra.mxu1 %v1529_v11  ;;  %851 = vmatprep.mubr.bf16.mxu0 %v1530_v12 }
  0x62   : >> { %964 = vmatprep.mubr.bf16.mxu1 %v1532_v13 }
  0x68   : >> { %852 = vmatmul.mubr.bf16.gmra.mxu0 %v1534_v14 }
  0x69   : >> { %965 = vmatmul.mubr.bf16.gmra.mxu1 %v1535_v15  ;;  %861 = vmatprep.mubr.bf16.mxu0 %v1536_v16 }
  0x6a   : >> { %974 = vmatprep.mubr.bf16.mxu1 %v1538_v17 }
  0x70   : >> { %862 = vmatmul.mubr.bf16.gmra.mxu0 %v1540_v18 }
  0x71   : >> { %975 = vmatmul.mubr.bf16.gmra.mxu1 %v1541_v19  ;;  %871 = vmatprep.mubr.bf16.mxu0 %v1542_v20 }
  0x72   : >> { %984 = vmatprep.mubr.bf16.mxu1 %v1544_v21 }
  0x78   : >> { %872 = vmatmul.mubr.bf16.gmra.mxu0 %v1546_v22 }
  0x79   : >> { %985 = vmatmul.mubr.bf16.gmra.mxu1 %v1547_v23  ;;  %881 = vmatprep.mubr.bf16.mxu0 %v1548_v24 }
  0x7a   : >> { %994 = vmatprep.mubr.bf16.mxu1 %v1550_v25 }
  0x80   : >> { %882 = vmatmul.mubr.bf16.gmra.mxu0 %v1552_v26 }
  0x81   : >> { %995 = vmatmul.mubr.bf16.gmra.mxu1 %v1553_v27  ;;  %891 = vmatprep.mubr.bf16.mxu0 %v1554_v28 }
  0x82   : >> { %1004 = vmatprep.mubr.bf16.mxu1 %v1556_v29 }
  0x88   : >> { %892 = vmatmul.mubr.bf16.gmra.mxu0 %v1558_v30 }
  0x89   : >> { %1005 = vmatmul.mubr.bf16.gmra.mxu1 %v1559_v31 }
 0x110   : >> { %v823_v32 = vpop.f32.mrf.mxu0 }
 0x111   : >> { %v936_v33 = vpop.f32.mrf.mxu1 }
 0x112   : >> { %v825_v34 = vpop.f32.mrf.mxu0  ;;  %v937_v45 = vadd.f32 %v936_v33, %v823_v32 }
 0x113   : >> { %v938_v35 = vpop.f32.mrf.mxu1 }
 0x114   : >> { %v827_v36 = vpop.f32.mrf.mxu0  ;;  %v939_v42 = vadd.f32 %v938_v35, %v825_v34 }
 0x115   : >> { %v940_v37 = vpop.f32.mrf.mxu1 }
 0x116   : >> { %v829_v38 = vpop.f32.mrf.mxu0  ;;  %v1015_v50 = vmax.f32 %v937_v45, %v939_v42  ;;  %v941_v55 = vadd.f32 %v940_v37, %v827_v36 }
 0x117   : >> { %v942_v39 = vpop.f32.mrf.mxu1 }
 0x118   : >> { %v833_v40 = vpop.f32.mrf.mxu0  ;;  %v943_v51 = vadd.f32 %v942_v39, %v829_v38 }
 0x119   : >> { %v946_v41 = vpop.f32.mrf.mxu1 }
 0x11a   : >> { %v835_v43 = vpop.f32.mrf.mxu0  ;;  %v947_v46 = vadd.f32 %v946_v41, %v833_v40  ;;  %v1016_v62 = vmax.f32 %v941_v55, %v943_v51 }
 0x11b   : >> { %v948_v44 = vpop.f32.mrf.mxu1 }
 0x11c   : >> { %v949_v47 = vadd.f32 %v948_v44, %v835_v43  ;;  %v837_v48 = vpop.f32.mrf.mxu0 }
 0x11d   : >> { %v950_v49 = vpop.f32.mrf.mxu1 }
 0x11e   : >> { %v1017_v52 = vmax.f32 %v947_v46, %v949_v47  ;;  %v839_v53 = vpop.f32.mrf.mxu0  ;;  %v951_v57 = vadd.f32 %v950_v49, %v837_v48 }
 0x11f   : >> { %v952_v54 = vpop.f32.mrf.mxu1 }
 0x120   : >> { %v1032_v56 = vmax.f32 %v1015_v50, %v1017_v52  ;;  %v953_v58 = vadd.f32 %v952_v54, %v839_v53  ;;  %v843_v60 = vpop.f32.mrf.mxu0 }
 0x121   : >> { %v956_v61 = vpop.f32.mrf.mxu1 }
 0x122   : >> { %v1018_v63 = vmax.f32 %v951_v57, %v953_v58  ;;  %v845_v0 = vpop.f32.mrf.mxu0  ;;  %v1041_v2 = vadd.f32 %v1879_v59, %v1032_v56  ;;  %v957_v17 = vadd.f32 %v956_v61, %v843_v60 }
 0x123   : >> { %v958_v1 = vpop.f32.mrf.mxu1 }
 0x124   : >> { %v1033_v3 = vmax.f32 %v1016_v62, %v1018_v63  ;;  %v847_v4 = vpop.f32.mrf.mxu0  ;;  %v1043_v9 = vmax.f32 %v1041_v2, 0.0  ;;  %v959_v14 = vadd.f32 %v958_v1, %v845_v0 }
 0x125   : >> { %v960_v5 = vpop.f32.mrf.mxu1 }
 0x126   : >> { %v1042_v6 = vadd.f32 %v1879_v59, %v1033_v3  ;;  %v849_v7 = vpop.f32.mrf.mxu0  ;;  %v1019_v22 = vmax.f32 %v957_v17, %v959_v14  ;;  %v961_v27 = vadd.f32 %v960_v5, %v847_v4 }
 0x127   : >> { %v962_v8 = vpop.f32.mrf.mxu1 }
 0x128   : >> { %v1044_v10 = vmax.f32 %v1042_v6, 0.0  ;;  %v853_v11 = vpop.f32.mrf.mxu0  ;;  %v963_v23 = vadd.f32 %v962_v8, %v849_v7 }
 0x129   : >> { %v966_v12 = vpop.f32.mrf.mxu1 }
 0x12a   : >> { %v1367_v13 = vpack.c.bf16 %v1044_v10, %v1043_v9  ;;  %v855_v15 = vpop.f32.mrf.mxu0  ;;  %v967_v18 = vadd.f32 %v966_v12, %v853_v11  ;;  %v1020_v33 = vmax.f32 %v961_v27, %v963_v23 }
 0x12b   : >> { %v968_v16 = vpop.f32.mrf.mxu1 }
 0x12c   : >> { %1368 = vst [vmem:[%s1056_s12] sm:$0xff] %v1367_v13   ;;  %v969_v19 = vadd.f32 %v968_v16, %v855_v15  ;;  %v857_v20 = vpop.f32.mrf.mxu0 }
 0x12d   : >> { %v970_v21 = vpop.f32.mrf.mxu1 }
 0x12e   : >> { %v1021_v24 = vmax.f32 %v967_v18, %v969_v19  ;;  %v859_v25 = vpop.f32.mrf.mxu0  ;;  %v971_v29 = vadd.f32 %v970_v21, %v857_v20 }
 0x12f   : >> { %v972_v26 = vpop.f32.mrf.mxu1 }
 0x130   : >> { %v1059_v28 = vmax.f32 %v1019_v22, %v1021_v24  ;;  %v973_v30 = vadd.f32 %v972_v26, %v859_v25  ;;  %v863_v31 = vpop.f32.mrf.mxu0 }
 0x131   : >> { %v976_v32 = vpop.f32.mrf.mxu1 }
 0x132   : >> { %v1022_v34 = vmax.f32 %v971_v29, %v973_v30  ;;  %v865_v35 = vpop.f32.mrf.mxu0  ;;  %v1068_v37 = vadd.f32 %v1879_v59, %v1059_v28  ;;  %v977_v52 = vadd.f32 %v976_v32, %v863_v31 }
 0x133   : >> { %v978_v36 = vpop.f32.mrf.mxu1 }
 0x134   : >> { %v1060_v38 = vmax.f32 %v1020_v33, %v1022_v34  ;;  %v867_v39 = vpop.f32.mrf.mxu0  ;;  %v1070_v44 = vmax.f32 %v1068_v37, 0.0  ;;  %v979_v49 = vadd.f32 %v978_v36, %v865_v35 }
 0x135   : >> { %v980_v40 = vpop.f32.mrf.mxu1 }
 0x136   : >> { %v1069_v41 = vadd.f32 %v1879_v59, %v1060_v38  ;;  %v869_v42 = vpop.f32.mrf.mxu0  ;;  %v1023_v57 = vmax.f32 %v977_v52, %v979_v49  ;;  %v981_v63 = vadd.f32 %v980_v40, %v867_v39 }
 0x137   : >> { %v982_v43 = vpop.f32.mrf.mxu1 }
 0x138   : >> { %v1071_v45 = vmax.f32 %v1069_v41, 0.0  ;;  %v873_v46 = vpop.f32.mrf.mxu0  ;;  %v983_v58 = vadd.f32 %v982_v43, %v869_v42 }
 0x139   : >> { %v986_v47 = vpop.f32.mrf.mxu1 }
 0x13a   : >> { %v1372_v48 = vpack.c.bf16 %v1071_v45, %v1070_v44  ;;  %v875_v50 = vpop.f32.mrf.mxu0  ;;  %v987_v53 = vadd.f32 %v986_v47, %v873_v46  ;;  %v1024_v5 = vmax.f32 %v981_v63, %v983_v58 }
 0x13b   : >> { %v988_v51 = vpop.f32.mrf.mxu1 }
 0x13c   : >> { %1373 = vst [vmem:[%s1084_s19] sm:$0xff] %v1372_v48   ;;  %v989_v54 = vadd.f32 %v988_v51, %v875_v50  ;;  %v877_v55 = vpop.f32.mrf.mxu0 }
 0x13d   : >> { %v990_v56 = vpop.f32.mrf.mxu1 }
 0x13e   : >> { %v1025_v60 = vmax.f32 %v987_v53, %v989_v54  ;;  %v879_v61 = vpop.f32.mrf.mxu0  ;;  %v991_v1 = vadd.f32 %v990_v56, %v877_v55 }
 0x13f   : >> { %v992_v62 = vpop.f32.mrf.mxu1 }
 0x140   : >> { %v1087_v0 = vmax.f32 %v1023_v57, %v1025_v60  ;;  %v993_v2 = vadd.f32 %v992_v62, %v879_v61  ;;  %v883_v3 = vpop.f32.mrf.mxu0 }
 0x141   : >> { %v996_v4 = vpop.f32.mrf.mxu1 }
 0x142   : >> { %v1026_v6 = vmax.f32 %v991_v1, %v993_v2  ;;  %v885_v7 = vpop.f32.mrf.mxu0  ;;  %v1096_v9 = vadd.f32 %v1879_v59, %v1087_v0  ;;  %v997_v24 = vadd.f32 %v996_v4, %v883_v3 }
 0x143   : >> { %v998_v8 = vpop.f32.mrf.mxu1 }
 0x144   : >> { %v1088_v10 = vmax.f32 %v1024_v5, %v1026_v6  ;;  %v887_v11 = vpop.f32.mrf.mxu0  ;;  %v1098_v16 = vmax.f32 %v1096_v9, 0.0  ;;  %v999_v21 = vadd.f32 %v998_v8, %v885_v7 }
 0x145   : >> { %v1000_v12 = vpop.f32.mrf.mxu1 }
 0x146   : >> { %v1097_v13 = vadd.f32 %v1879_v59, %v1088_v10  ;;  %v889_v14 = vpop.f32.mrf.mxu0  ;;  %v1027_v29 = vmax.f32 %v997_v24, %v999_v21  ;;  %v1001_v34 = vadd.f32 %v1000_v12, %v887_v11 }
 0x147   : >> { %v1002_v15 = vpop.f32.mrf.mxu1 }
 0x148   : >> { %v1099_v17 = vmax.f32 %v1097_v13, 0.0  ;;  %v893_v18 = vpop.f32.mrf.mxu0  ;;  %v1003_v30 = vadd.f32 %v1002_v15, %v889_v14 }
 0x149   : >> { %v1006_v19 = vpop.f32.mrf.mxu1 }
 0x14a   : >> { %v1377_v20 = vpack.c.bf16 %v1099_v17, %v1098_v16  ;;  %v895_v22 = vpop.f32.mrf.mxu0  ;;  %v1007_v25 = vadd.f32 %v1006_v19, %v893_v18  ;;  %v1028_v38 = vmax.f32 %v1001_v34, %v1003_v30 }
 0x14b   : >> { %v1008_v23 = vpop.f32.mrf.mxu1 }
 0x14c   : >> { %1378 = vst [vmem:[%s1112_s24] sm:$0xff] %v1377_v20   ;;  %v1009_v26 = vadd.f32 %v1008_v23, %v895_v22  ;;  %v897_v27 = vpop.f32.mrf.mxu0 }
 0x14d   : >> { %v1010_v28 = vpop.f32.mrf.mxu1 }
 0x14e   : >> { %v1029_v31 = vmax.f32 %v1007_v25, %v1009_v26  ;;  %v899_v32 = vpop.f32.mrf.mxu0  ;;  %v1011_v36 = vadd.f32 %v1010_v28, %v897_v27 }
 0x14f   : >> { %v1012_v33 = vpop.f32.mrf.mxu1 }
 0x150   : >> { %v1115_v35 = vmax.f32 %v1027_v29, %v1029_v31  ;;  %v1013_v37 = vadd.f32 %v1012_v33, %v899_v32 }
 0x152   : >> { %v1030_v39 = vmax.f32 %v1011_v36, %v1013_v37  ;;  %v1124_v40 = vadd.f32 %v1879_v59, %v1115_v35 }
 0x154   : >> { %v1116_v41 = vmax.f32 %v1028_v38, %v1030_v39  ;;  %v1126_v43 = vmax.f32 %v1124_v40, 0.0 }
 0x156   : >> { %v1125_v42 = vadd.f32 %v1879_v59, %v1116_v41 }
 0x158   : >> { %v1127_v44 = vmax.f32 %v1125_v42, 0.0  ;;  %205 = sbr.rel (!%p203_p6) target bundleno = 15 (0xf), region = 74 }
 0x15a   : >> { %v1382_v45 = vpack.c.bf16 %v1127_v44, %v1126_v43 }
 0x15c   : >> { %1383 = vst [vmem:[%s1140_s30] sm:$0xff] %v1382_v45  }
 0x15d PF: > { %s13_s14 = sadd.s32 1, %s1586_s14   ;;  %s1913_s12 = smov %s1582_s13 }
 0x15e   : > { %p10_p7 = scmp.ge.s32.totalorder %s13_s14, 4   ;;  %s1914_s13 = smov %s1916_s15 }
 0x160   :  { %12 = sbr.rel (!%p10_p7) target bundleno = 2 (0x2), region = 85 }

// kernel: attributes_network_forward.11
= control target key start
LH: loop header
LB: loop body
LE: loop exit
PB: predicated region body
PF: predicated region fallthrough
CT: control target
= control target key end

     0   :  { %s1612_s12 = smov 0   ;;  %s1614_s13 = smov 0   ;;  %s1909_s0 = inlined_call_operand.vmem [shape: bf16[4096,512], index: 0, kind: input, shape index: {}]   ;;  %s1910_s1 = inlined_call_operand.vmem [shape: bf16[512,256], index: 1, kind: input, shape index: {}]   ;;  %s1911_s2 = inlined_call_operand.vmem [shape: f32[1,128], index: 2, kind: input, shape index: {}]   ;;  %s1912_s3 = inlined_call_operand.vmem [shape: bf16[2048,128], index: 3, kind: output, shape index: {}]  }
   0x1   :  { %s1616_s14 = smov 0  }
   0x2 LB: > { %s25_s15 = sadd.s32 1, %s1582_s13  ;;  %p1230_p0 = scmp.ge.s32.totalorder %s1586_s14, 1  ;;  %s1586_s14 = sphi %s1616_s14, %s13_s14   ;;  %s1582_s13 = sphi %s1614_s13, %s1914_s13   ;;  %s1578_s12 = sphi %s1612_s12, %s1913_s12  }
   0x3   : > { %p27_p1 = scmp.ge.s32.totalorder %s25_s15, 2  ;;  %p157_p2 = scmp.lt.s32.totalorder %s1586_s14, 3 }
   0x5   : > { %s1916_s15 = smov (%p27_p1, %s25_s15), 0  ;;  %p158_p3 = pnand %p1230_p0, %p157_p2 }
   0x6   : > { %s1231_s16 = sshll.u32 (!%p158_p3), %s1578_s12, 8  ;;  %s1234_s17 = sshll.u32 (!%p158_p3), %s1578_s12, 7 }
   0x7   : > { %161 = sbr.rel (%p158_p3) target bundleno = 349 (0x15d), region = 32  ;;  %p186_p4 = scmp.lt.s32.totalorder (!%p158_p3), %s1231_s16, 511 }
   0x8   : > { %p195_p5 = scmp.lt.s32.totalorder (!%p158_p3), %s1234_s17, 255  ;;  %s1640_s26 = smov (!%p158_p3), 0  }
   0xc   : > { %s1918_s16 = smov (!%p186_p4, %s1231_s16), 511  ;;  %s1920_s17 = smov (!%p195_p5, %s1234_s17), 255 }
   0xd   : > { %s1354_s18 = sshll.u32 %s1918_s16, 4  ;;  %s1235_s22 = sshll.u32 %s1920_s17, 2 }
   0xe   : > { %s1633_s21 = scalar_lea.vmem %s1909_s0, %s1354_s18  ;;  %s1638_s25 = scalar_lea.vmem %s1912_s3, %s1235_s22 }
   0xf LB: >> { %v1416_v0 = vld [vmem:[%s1910_s1 + $0x74] ss:$8 sps:$4 sm:$0xff]   ;;  %v1420_v2 = vld [vmem:[%s1910_s1 + $0x70] ss:$8 sps:$4 sm:$0xff]   ;;  %v1422_v4 = vld [vmem:[%s1910_s1 + $0x64] ss:$8 sps:$4 sm:$0xff]   ;;  %s1590_s26 = sphi %s1640_s26, %s206_s26  }
  0x10   : >> { %v1418_v1 = vld [vmem:[%s1910_s1 + $0x174] ss:$8 sps:$4 sm:$0xff]   ;;  %789 = vmatprep.subr.bf16.mxu0 %v1416_v0  ;;  %v1421_v3 = vld [vmem:[%s1910_s1 + $0x170] ss:$8 sps:$4 sm:$0xff]   ;;  %v1424_v5 = vld [vmem:[%s1910_s1 + $0x164] ss:$8 sps:$4 sm:$0xff]  }
  0x11   : >> { %902 = vmatprep.subr.bf16.mxu1 %v1418_v1  ;;  %790 = vmatpush1.bf16.msra.mxu0 %v1420_v2  ;;  %v1426_v6 = vld [vmem:[%s1910_s1 + $0x60] ss:$8 sps:$4 sm:$0xff]   ;;  %v1428_v8 = vld [vmem:[%s1910_s1 + $0x54] ss:$8 sps:$4 sm:$0xff]   ;;  %v1432_v10 = vld [vmem:[%s1910_s1 + $0x50] ss:$8 sps:$4 sm:$0xff]  }
  0x12   : >> { %903 = vmatpush1.bf16.msra.mxu1 %v1421_v3  ;;  %791 = vmatprep.subr.bf16.mxu0 %v1422_v4  ;;  %v1427_v7 = vld [vmem:[%s1910_s1 + $0x160] ss:$8 sps:$4 sm:$0xff]   ;;  %v1430_v9 = vld [vmem:[%s1910_s1 + $0x154] ss:$8 sps:$4 sm:$0xff]   ;;  %v1433_v11 = vld [vmem:[%s1910_s1 + $0x150] ss:$8 sps:$4 sm:$0xff]  }
  0x13   : >> { %904 = vmatprep.subr.bf16.mxu1 %v1424_v5  ;;  %v1434_v12 = vld [vmem:[%s1910_s1 + $0x44] ss:$8 sps:$4 sm:$0xff]   ;;  %v1438_v14 = vld [vmem:[%s1910_s1 + $0x40] ss:$8 sps:$4 sm:$0xff]   ;;  %v1440_v16 = vld [vmem:[%s1910_s1 + $0x34] ss:$8 sps:$4 sm:$0xff]  }
  0x14   : >> { %v1436_v13 = vld [vmem:[%s1910_s1 + $0x144] ss:$8 sps:$4 sm:$0xff]   ;;  %v1439_v15 = vld [vmem:[%s1910_s1 + $0x140] ss:$8 sps:$4 sm:$0xff]   ;;  %v1442_v17 = vld [vmem:[%s1910_s1 + $0x134] ss:$8 sps:$4 sm:$0xff]  }
  0x15   : >> { %792 = vmatpush1.bf16.msra.mxu0 %v1426_v6  ;;  %v1444_v18 = vld [vmem:[%s1910_s1 + $0x30] ss:$8 sps:$4 sm:$0xff]   ;;  %v1446_v20 = vld [vmem:[%s1910_s1 + $0x24] ss:$8 sps:$4 sm:$0xff]   ;;  %v1450_v22 = vld [vmem:[%s1910_s1 + $0x20] ss:$8 sps:$4 sm:$0xff]  }
  0x16   : >> { %905 = vmatpush1.bf16.msra.mxu1 %v1427_v7  ;;  %793 = vmatprep.subr.bf16.mxu0 %v1428_v8  ;;  %v1445_v19 = vld [vmem:[%s1910_s1 + $0x130] ss:$8 sps:$4 sm:$0xff]   ;;  %v1448_v21 = vld [vmem:[%s1910_s1 + $0x124] ss:$8 sps:$4 sm:$0xff]   ;;  %v1451_v23 = vld [vmem:[%s1910_s1 + $0x120] ss:$8 sps:$4 sm:$0xff]  }
  0x17   : >> { %906 = vmatprep.subr.bf16.mxu1 %v1430_v9  ;;  %v1452_v24 = vld [vmem:[%s1910_s1 + $0x14] ss:$8 sps:$4 sm:$0xff]   ;;  %v1456_v26 = vld [vmem:[%s1910_s1 + $0x10] ss:$8 sps:$4 sm:$0xff]   ;;  %v1458_v28 = vld [vmem:[%s1910_s1 + $0x4] ss:$8 sps:$4 sm:$0xff]  }
  0x18   : >> { %v1454_v25 = vld [vmem:[%s1910_s1 + $0x114] ss:$8 sps:$4 sm:$0xff]   ;;  %v1457_v27 = vld [vmem:[%s1910_s1 + $0x110] ss:$8 sps:$4 sm:$0xff]   ;;  %v1460_v29 = vld [vmem:[%s1910_s1 + $0x104] ss:$8 sps:$4 sm:$0xff]  }
  0x19   : >> { %794 = vmatpush1.bf16.msra.mxu0 %v1432_v10  ;;  %v1462_v30 = vld [vmem:[%s1910_s1] ss:$8 sps:$4 sm:$0xff]   ;;  %v1464_v32 = vld [vmem:[%s1910_s1 + $0xf4] ss:$8 sps:$4 sm:$0xff]   ;;  %v1468_v34 = vld [vmem:[%s1910_s1 + $0xf0] ss:$8 sps:$4 sm:$0xff]  }
  0x1a   : >> { %907 = vmatpush1.bf16.msra.mxu1 %v1433_v11  ;;  %795 = vmatprep.subr.bf16.mxu0 %v1434_v12  ;;  %v1463_v31 = vld [vmem:[%s1910_s1 + $0x100] ss:$8 sps:$4 sm:$0xff]   ;;  %v1466_v33 = vld [vmem:[%s1910_s1 + $0x1f4] ss:$8 sps:$4 sm:$0xff]   ;;  %v1469_v35 = vld [vmem:[%s1910_s1 + $0x1f0] ss:$8 sps:$4 sm:$0xff]  }
  0x1b   : >> { %908 = vmatprep.subr.bf16.mxu1 %v1436_v13  ;;  %s1236_s9 = sshll.u32 %s1590_s26, 7  ;;  %v1470_v36 = vld [vmem:[%s1910_s1 + $0xe4] ss:$8 sps:$4 sm:$0xff]   ;;  %v1474_v38 = vld [vmem:[%s1910_s1 + $0xe0] ss:$8 sps:$4 sm:$0xff]  }
  0x1c   : >> { %v1472_v37 = vld [vmem:[%s1910_s1 + $0x1e4] ss:$8 sps:$4 sm:$0xff]   ;;  %s208_s17 = sshra.s32 %s1236_s9, 3  ;;  %v1475_v39 = vld [vmem:[%s1910_s1 + $0x1e0] ss:$8 sps:$4 sm:$0xff]  }
  0x1d   : >> { %796 = vmatpush1.bf16.msra.mxu0 %v1438_v14  ;;  %v1476_v40 = vld [vmem:[%s1910_s1 + $0xd4] ss:$8 sps:$4 sm:$0xff]   ;;  %s1355_s29 = sshll.u32 %s208_s17, 4  ;;  %v1480_v42 = vld [vmem:[%s1910_s1 + $0xd0] ss:$8 sps:$4 sm:$0xff]  }
  0x1e   : >> { %909 = vmatpush1.bf16.msra.mxu1 %v1439_v15  ;;  %797 = vmatprep.subr.bf16.mxu0 %v1440_v16  ;;  %v1478_v41 = vld [vmem:[%s1910_s1 + $0x1d4] ss:$8 sps:$4 sm:$0xff]   ;;  %v1481_v43 = vld [vmem:[%s1910_s1 + $0x1d0] ss:$8 sps:$4 sm:$0xff]   ;;  %v1482_v44 = vld [vmem:[%s1910_s1 + $0xc4] ss:$8 sps:$4 sm:$0xff]   ;;  %s1782_s9 = scalar_lea.vmem %s1633_s21, %s1355_s29 }
  0x1f   : >> { %910 = vmatprep.subr.bf16.mxu1 %v1442_v17  ;;  %v1484_v45 = vld [vmem:[%s1910_s1 + $0x1c4] ss:$8 sps:$4 sm:$0xff]   ;;  %v1486_v46 = vld [vmem:[%s1910_s1 + $0xc0] ss:$8 sps:$4 sm:$0xff]   ;;  %v1488_v48 = vld [vmem:[%s1910_s1 + $0xb4] ss:$8 sps:$4 sm:$0xff]  }
  0x20   : >> { %v1487_v47 = vld [vmem:[%s1910_s1 + $0x1c0] ss:$8 sps:$4 sm:$0xff]   ;;  %v1514_v49 = vld [vmem:[%s1782_s9 + $0x4] ss:$16 sps:$4 sm:$0xff]   ;;  %v1517_v51 = vld [vmem:[%s1782_s9 + $0xc] ss:$16 sps:$4 sm:$0xff]  }
  0x21   : >> { %798 = vmatpush1.bf16.msra.mxu0 %v1444_v18  ;;  %v1490_v50 = vld [vmem:[%s1910_s1 + $0x1b4] ss:$8 sps:$4 sm:$0xff]   ;;  %821 = vmatprep.mubr.bf16.mxu0 %v1514_v49  ;;  %v1492_v52 = vld [vmem:[%s1910_s1 + $0xb0] ss:$8 sps:$4 sm:$0xff]   ;;  %v1494_v54 = vld [vmem:[%s1910_s1 + $0xa4] ss:$8 sps:$4 sm:$0xff]  }
  0x22   : >> { %911 = vmatpush1.bf16.msra.mxu1 %v1445_v19  ;;  %799 = vmatprep.subr.bf16.mxu0 %v1446_v20  ;;  %v1493_v53 = vld [vmem:[%s1910_s1 + $0x1b0] ss:$8 sps:$4 sm:$0xff]   ;;  %v1496_v55 = vld [vmem:[%s1910_s1 + $0x1a4] ss:$8 sps:$4 sm:$0xff]   ;;  %v1498_v56 = vld [vmem:[%s1910_s1 + $0xa0] ss:$8 sps:$4 sm:$0xff]  }
  0x23   : >> { %912 = vmatprep.subr.bf16.mxu1 %v1448_v21  ;;  %934 = vmatprep.mubr.bf16.mxu1 %v1517_v51  ;;  %v1499_v57 = vld [vmem:[%s1910_s1 + $0x1a0] ss:$8 sps:$4 sm:$0xff]   ;;  %v1500_v58 = vld [vmem:[%s1910_s1 + $0x94] ss:$8 sps:$4 sm:$0xff]   ;;  %v1504_v60 = vld [vmem:[%s1910_s1 + $0x90] ss:$8 sps:$4 sm:$0xff]  }
  0x24   : >> { %v1502_v59 = vld [vmem:[%s1910_s1 + $0x194] ss:$8 sps:$4 sm:$0xff]   ;;  %v1505_v61 = vld [vmem:[%s1910_s1 + $0x190] ss:$8 sps:$4 sm:$0xff]   ;;  %v1506_v62 = vld [vmem:[%s1910_s1 + $0x84] ss:$8 sps:$4 sm:$0xff]  }
  0x25   : >> { %800 = vmatpush1.bf16.msra.mxu0 %v1450_v22  ;;  %v1508_v63 = vld [vmem:[%s1910_s1 + $0x184] ss:$8 sps:$4 sm:$0xff]   ;;  %v1510_v0 = vld [vmem:[%s1910_s1 + $0x80] ss:$8 sps:$4 sm:$0xff]  }
  0x26   : >> { %913 = vmatpush1.bf16.msra.mxu1 %v1451_v23  ;;  %801 = vmatprep.subr.bf16.mxu0 %v1452_v24  ;;  %v1511_v1 = vld [vmem:[%s1910_s1 + $0x180] ss:$8 sps:$4 sm:$0xff]   ;;  %v1518_v4 = vld [vmem:[%s1782_s9 + $0x24] ss:$16 sps:$4 sm:$0xff]   ;;  %v1520_v5 = vld [vmem:[%s1782_s9 + $0x2c] ss:$16 sps:$4 sm:$0xff]  }
  0x27   : >> { %914 = vmatprep.subr.bf16.mxu1 %v1454_v25  ;;  %v1512_v2 = vld [vmem:[%s1782_s9] ss:$16 sps:$4 sm:$0xff]   ;;  %v1515_v3 = vld [vmem:[%s1782_s9 + $0x8] ss:$16 sps:$4 sm:$0xff]   ;;  %v1524_v8 = vld [vmem:[%s1782_s9 + $0x44] ss:$16 sps:$4 sm:$0xff]  }
  0x28   : >> { %v1522_v6 = vld [vmem:[%s1782_s9 + $0x20] ss:$16 sps:$4 sm:$0xff]   ;;  %v1523_v7 = vld [vmem:[%s1782_s9 + $0x28] ss:$16 sps:$4 sm:$0xff]   ;;  %v1526_v9 = vld [vmem:[%s1782_s9 + $0x4c] ss:$16 sps:$4 sm:$0xff]  }
  0x29   : >> { %802 = vmatpush1.bf16.msra.mxu0 %v1456_v26  ;;  %v1528_v10 = vld [vmem:[%s1782_s9 + $0x40] ss:$16 sps:$4 sm:$0xff]   ;;  %v1529_v11 = vld [vmem:[%s1782_s9 + $0x48] ss:$16 sps:$4 sm:$0xff]   ;;  %v1530_v12 = vld [vmem:[%s1782_s9 + $0x64] ss:$16 sps:$4 sm:$0xff]  }
  0x2a   : >> { %915 = vmatpush1.bf16.msra.mxu1 %v1457_v27  ;;  %803 = vmatprep.subr.bf16.mxu0 %v1458_v28  ;;  %v1532_v13 = vld [vmem:[%s1782_s9 + $0x6c] ss:$16 sps:$4 sm:$0xff]   ;;  %v1534_v14 = vld [vmem:[%s1782_s9 + $0x60] ss:$16 sps:$4 sm:$0xff]   ;;  %v1535_v15 = vld [vmem:[%s1782_s9 + $0x68] ss:$16 sps:$4 sm:$0xff]  }
  0x2b   : >> { %916 = vmatprep.subr.bf16.mxu1 %v1460_v29  ;;  %v1536_v16 = vld [vmem:[%s1782_s9 + $0x84] ss:$16 sps:$4 sm:$0xff]   ;;  %v1538_v17 = vld [vmem:[%s1782_s9 + $0x8c] ss:$16 sps:$4 sm:$0xff]   ;;  %v1540_v18 = vld [vmem:[%s1782_s9 + $0x80] ss:$16 sps:$4 sm:$0xff]  }
  0x2c   : >> { %v1541_v19 = vld [vmem:[%s1782_s9 + $0x88] ss:$16 sps:$4 sm:$0xff]   ;;  %v1542_v20 = vld [vmem:[%s1782_s9 + $0xa4] ss:$16 sps:$4 sm:$0xff]   ;;  %v1544_v21 = vld [vmem:[%s1782_s9 + $0xac] ss:$16 sps:$4 sm:$0xff]  }
  0x2d   : >> { %804 = vmatpush1.bf16.msra.mxu0 %v1462_v30  ;;  %v1546_v22 = vld [vmem:[%s1782_s9 + $0xa0] ss:$16 sps:$4 sm:$0xff]   ;;  %v1547_v23 = vld [vmem:[%s1782_s9 + $0xa8] ss:$16 sps:$4 sm:$0xff]   ;;  %v1548_v24 = vld [vmem:[%s1782_s9 + $0xc4] ss:$16 sps:$4 sm:$0xff]  }
  0x2e   : >> { %917 = vmatpush1.bf16.msra.mxu1 %v1463_v31  ;;  %805 = vmatprep.subr.bf16.mxu0 %v1464_v32  ;;  %v1550_v25 = vld [vmem:[%s1782_s9 + $0xcc] ss:$16 sps:$4 sm:$0xff]   ;;  %v1552_v26 = vld [vmem:[%s1782_s9 + $0xc0] ss:$16 sps:$4 sm:$0xff]   ;;  %v1553_v27 = vld [vmem:[%s1782_s9 + $0xc8] ss:$16 sps:$4 sm:$0xff]  }
  0x2f   : >> { %918 = vmatprep.subr.bf16.mxu1 %v1466_v33  ;;  %v1554_v28 = vld [vmem:[%s1782_s9 + $0xe4] ss:$16 sps:$4 sm:$0xff]   ;;  %v1556_v29 = vld [vmem:[%s1782_s9 + $0xec] ss:$16 sps:$4 sm:$0xff]   ;;  %v1558_v30 = vld [vmem:[%s1782_s9 + $0xe0] ss:$16 sps:$4 sm:$0xff]  }
  0x30   : >> { %v1559_v31 = vld [vmem:[%s1782_s9 + $0xe8] ss:$16 sps:$4 sm:$0xff]   ;;  %s1874_s9 = sshll.u32 %s1590_s26, 6  ;;  %s206_s26 = sadd.s32 1, %s1590_s26  }
  0x31   : >> { %806 = vmatpush2.bf16.msra.mxu0 %v1468_v34  ;;  %s1053_s10 = sshra.s32 %s1874_s9, 3  ;;  %s1073_s16 = sadd.s32 16, %s1874_s9 }
  0x32   : >> { %919 = vmatpush2.bf16.msra.mxu1 %v1469_v35  ;;  %807 = vmatprep.subr.bf16.mxu0 %v1470_v36  ;;  %s1339_s11 = sshll.u32 %s1053_s10, 2  ;;  %s1081_s17 = sshra.s32 %s1073_s16, 3 }
  0x33   : >> { %920 = vmatprep.subr.bf16.mxu1 %v1472_v37  ;;  %s1056_s12 = scalar_lea.vmem %s1638_s25, %s1339_s11  ;;  %s1343_s18 = sshll.u32 %s1081_s17, 2 }
  0x34   : >> { %s1084_s19 = scalar_lea.vmem %s1638_s25, %s1343_s18  ;;  %s1101_s20 = sadd.s32 32, %s1874_s9 }
  0x35   : >> { %808 = vmatpush2.bf16.msra.mxu0 %v1474_v38  ;;  %s1109_s22 = sshra.s32 %s1101_s20, 3  ;;  %s1129_s27 = sadd.s32 48, %s1874_s9 }
  0x36   : >> { %921 = vmatpush2.bf16.msra.mxu1 %v1475_v39  ;;  %809 = vmatprep.subr.bf16.mxu0 %v1476_v40  ;;  %s1347_s23 = sshll.u32 %s1109_s22, 2  ;;  %s1137_s28 = sshra.s32 %s1129_s27, 3 }
  0x37   : >> { %922 = vmatprep.subr.bf16.mxu1 %v1478_v41  ;;  %s1112_s24 = scalar_lea.vmem %s1638_s25, %s1347_s23  ;;  %s1351_s29 = sshll.u32 %s1137_s28, 2 }
  0x38   : >> { %s1140_s30 = scalar_lea.vmem %s1638_s25, %s1351_s29  ;;  %p203_p6 = scmp.ge.s32.totalorder %s206_s26, 16  }
  0x39   : >> { %810 = vmatpush2.bf16.msra.mxu0 %v1480_v42 }
  0x3a   : >> { %923 = vmatpush2.bf16.msra.mxu1 %v1481_v43  ;;  %811 = vmatprep.subr.bf16.mxu0 %v1482_v44 }
  0x3b   : >> { %924 = vmatprep.subr.bf16.mxu1 %v1484_v45 }
  0x3d   : >> { %812 = vmatpush2.bf16.msra.mxu0 %v1486_v46 }
  0x3e   : >> { %925 = vmatpush2.bf16.msra.mxu1 %v1487_v47  ;;  %813 = vmatprep.subr.bf16.mxu0 %v1488_v48 }
  0x3f   : >> { %926 = vmatprep.subr.bf16.mxu1 %v1490_v50 }
  0x41   : >> { %814 = vmatpush2.bf16.msra.mxu0 %v1492_v52 }
  0x42   : >> { %927 = vmatpush2.bf16.msra.mxu1 %v1493_v53  ;;  %815 = vmatprep.subr.bf16.mxu0 %v1494_v54 }
  0x43   : >> { %928 = vmatprep.subr.bf16.mxu1 %v1496_v55 }
  0x45   : >> { %816 = vmatpush2.bf16.msra.mxu0 %v1498_v56 }
  0x46   : >> { %929 = vmatpush2.bf16.msra.mxu1 %v1499_v57  ;;  %817 = vmatprep.subr.bf16.mxu0 %v1500_v58 }
  0x47   : >> { %930 = vmatprep.subr.bf16.mxu1 %v1502_v59  ;;  %v1879_v59 = vld [vmem:[%s1911_s2] ss:$0 sm:$0xff] }
  0x49   : >> { %818 = vmatpush2.bf16.msra.mxu0 %v1504_v60 }
  0x4a   : >> { %931 = vmatpush2.bf16.msra.mxu1 %v1505_v61  ;;  %819 = vmatprep.subr.bf16.mxu0 %v1506_v62 }
  0x4b   : >> { %932 = vmatprep.subr.bf16.mxu1 %v1508_v63 }
  0x4d   : >> { %820 = vmatpush2.bf16.msra.mxu0 %v1510_v0 }
  0x4e   : >> { %933 = vmatpush2.bf16.msra.mxu1 %v1511_v1 }
  0x50   : >> { %822 = vmatmul.mubr.bf16.vlgmr.msra.gmra.mxu0 %v1512_v2 }
  0x51   : >> { %935 = vmatmul.mubr.bf16.vlgmr.msra.gmra.mxu1 %v1515_v3  ;;  %831 = vmatprep.mubr.bf16.mxu0 %v1518_v4 }
  0x52   : >> { %944 = vmatprep.mubr.bf16.mxu1 %v1520_v5 }
  0x58   : >> { %832 = vmatmul.mubr.bf16.gmra.mxu0 %v1522_v6 }
  0x59   : >> { %945 = vmatmul.mubr.bf16.gmra.mxu1 %v1523_v7  ;;  %841 = vmatprep.mubr.bf16.mxu0 %v1524_v8 }
  0x5a   : >> { %954 = vmatprep.mubr.bf16.mxu1 %v1526_v9 }
  0x60   : >> { %842 = vmatmul.mubr.bf16.gmra.mxu0 %v1528_v10 }
  0x61   : >> { %955 = vmatmul.mubr.bf16.gmra.mxu1 %v1529_v11  ;;  %851 = vmatprep.mubr.bf16.mxu0 %v1530_v12 }
  0x62   : >> { %964 = vmatprep.mubr.bf16.mxu1 %v1532_v13 }
  0x68   : >> { %852 = vmatmul.mubr.bf16.gmra.mxu0 %v1534_v14 }
  0x69   : >> { %965 = vmatmul.mubr.bf16.gmra.mxu1 %v1535_v15  ;;  %861 = vmatprep.mubr.bf16.mxu0 %v1536_v16 }
  0x6a   : >> { %974 = vmatprep.mubr.bf16.mxu1 %v1538_v17 }
  0x70   : >> { %862 = vmatmul.mubr.bf16.gmra.mxu0 %v1540_v18 }
  0x71   : >> { %975 = vmatmul.mubr.bf16.gmra.mxu1 %v1541_v19  ;;  %871 = vmatprep.mubr.bf16.mxu0 %v1542_v20 }
  0x72   : >> { %984 = vmatprep.mubr.bf16.mxu1 %v1544_v21 }
  0x78   : >> { %872 = vmatmul.mubr.bf16.gmra.mxu0 %v1546_v22 }
  0x79   : >> { %985 = vmatmul.mubr.bf16.gmra.mxu1 %v1547_v23  ;;  %881 = vmatprep.mubr.bf16.mxu0 %v1548_v24 }
  0x7a   : >> { %994 = vmatprep.mubr.bf16.mxu1 %v1550_v25 }
  0x80   : >> { %882 = vmatmul.mubr.bf16.gmra.mxu0 %v1552_v26 }
  0x81   : >> { %995 = vmatmul.mubr.bf16.gmra.mxu1 %v1553_v27  ;;  %891 = vmatprep.mubr.bf16.mxu0 %v1554_v28 }
  0x82   : >> { %1004 = vmatprep.mubr.bf16.mxu1 %v1556_v29 }
  0x88   : >> { %892 = vmatmul.mubr.bf16.gmra.mxu0 %v1558_v30 }
  0x89   : >> { %1005 = vmatmul.mubr.bf16.gmra.mxu1 %v1559_v31 }
 0x110   : >> { %v823_v32 = vpop.f32.mrf.mxu0 }
 0x111   : >> { %v936_v33 = vpop.f32.mrf.mxu1 }
 0x112   : >> { %v825_v34 = vpop.f32.mrf.mxu0  ;;  %v937_v45 = vadd.f32 %v936_v33, %v823_v32 }
 0x113   : >> { %v938_v35 = vpop.f32.mrf.mxu1 }
 0x114   : >> { %v827_v36 = vpop.f32.mrf.mxu0  ;;  %v939_v42 = vadd.f32 %v938_v35, %v825_v34 }
 0x115   : >> { %v940_v37 = vpop.f32.mrf.mxu1 }
 0x116   : >> { %v829_v38 = vpop.f32.mrf.mxu0  ;;  %v1015_v50 = vmax.f32 %v937_v45, %v939_v42  ;;  %v941_v55 = vadd.f32 %v940_v37, %v827_v36 }
 0x117   : >> { %v942_v39 = vpop.f32.mrf.mxu1 }
 0x118   : >> { %v833_v40 = vpop.f32.mrf.mxu0  ;;  %v943_v51 = vadd.f32 %v942_v39, %v829_v38 }
 0x119   : >> { %v946_v41 = vpop.f32.mrf.mxu1 }
 0x11a   : >> { %v835_v43 = vpop.f32.mrf.mxu0  ;;  %v947_v46 = vadd.f32 %v946_v41, %v833_v40  ;;  %v1016_v62 = vmax.f32 %v941_v55, %v943_v51 }
 0x11b   : >> { %v948_v44 = vpop.f32.mrf.mxu1 }
 0x11c   : >> { %v949_v47 = vadd.f32 %v948_v44, %v835_v43  ;;  %v837_v48 = vpop.f32.mrf.mxu0 }
 0x11d   : >> { %v950_v49 = vpop.f32.mrf.mxu1 }
 0x11e   : >> { %v1017_v52 = vmax.f32 %v947_v46, %v949_v47  ;;  %v839_v53 = vpop.f32.mrf.mxu0  ;;  %v951_v57 = vadd.f32 %v950_v49, %v837_v48 }
 0x11f   : >> { %v952_v54 = vpop.f32.mrf.mxu1 }
 0x120   : >> { %v1032_v56 = vmax.f32 %v1015_v50, %v1017_v52  ;;  %v953_v58 = vadd.f32 %v952_v54, %v839_v53  ;;  %v843_v60 = vpop.f32.mrf.mxu0 }
 0x121   : >> { %v956_v61 = vpop.f32.mrf.mxu1 }
 0x122   : >> { %v1018_v63 = vmax.f32 %v951_v57, %v953_v58  ;;  %v845_v0 = vpop.f32.mrf.mxu0  ;;  %v1041_v2 = vadd.f32 %v1879_v59, %v1032_v56  ;;  %v957_v17 = vadd.f32 %v956_v61, %v843_v60 }
 0x123   : >> { %v958_v1 = vpop.f32.mrf.mxu1 }
 0x124   : >> { %v1033_v3 = vmax.f32 %v1016_v62, %v1018_v63  ;;  %v847_v4 = vpop.f32.mrf.mxu0  ;;  %v1043_v9 = vmax.f32 %v1041_v2, 0.0  ;;  %v959_v14 = vadd.f32 %v958_v1, %v845_v0 }
 0x125   : >> { %v960_v5 = vpop.f32.mrf.mxu1 }
 0x126   : >> { %v1042_v6 = vadd.f32 %v1879_v59, %v1033_v3  ;;  %v849_v7 = vpop.f32.mrf.mxu0  ;;  %v1019_v22 = vmax.f32 %v957_v17, %v959_v14  ;;  %v961_v27 = vadd.f32 %v960_v5, %v847_v4 }
 0x127   : >> { %v962_v8 = vpop.f32.mrf.mxu1 }
 0x128   : >> { %v1044_v10 = vmax.f32 %v1042_v6, 0.0  ;;  %v853_v11 = vpop.f32.mrf.mxu0  ;;  %v963_v23 = vadd.f32 %v962_v8, %v849_v7 }
 0x129   : >> { %v966_v12 = vpop.f32.mrf.mxu1 }
 0x12a   : >> { %v1367_v13 = vpack.c.bf16 %v1044_v10, %v1043_v9  ;;  %v855_v15 = vpop.f32.mrf.mxu0  ;;  %v967_v18 = vadd.f32 %v966_v12, %v853_v11  ;;  %v1020_v33 = vmax.f32 %v961_v27, %v963_v23 }
 0x12b   : >> { %v968_v16 = vpop.f32.mrf.mxu1 }
 0x12c   : >> { %1368 = vst [vmem:[%s1056_s12] sm:$0xff] %v1367_v13   ;;  %v969_v19 = vadd.f32 %v968_v16, %v855_v15  ;;  %v857_v20 = vpop.f32.mrf.mxu0 }
 0x12d   : >> { %v970_v21 = vpop.f32.mrf.mxu1 }
 0x12e   : >> { %v1021_v24 = vmax.f32 %v967_v18, %v969_v19  ;;  %v859_v25 = vpop.f32.mrf.mxu0  ;;  %v971_v29 = vadd.f32 %v970_v21, %v857_v20 }
 0x12f   : >> { %v972_v26 = vpop.f32.mrf.mxu1 }
 0x130   : >> { %v1059_v28 = vmax.f32 %v1019_v22, %v1021_v24  ;;  %v973_v30 = vadd.f32 %v972_v26, %v859_v25  ;;  %v863_v31 = vpop.f32.mrf.mxu0 }
 0x131   : >> { %v976_v32 = vpop.f32.mrf.mxu1 }
 0x132   : >> { %v1022_v34 = vmax.f32 %v971_v29, %v973_v30  ;;  %v865_v35 = vpop.f32.mrf.mxu0  ;;  %v1068_v37 = vadd.f32 %v1879_v59, %v1059_v28  ;;  %v977_v52 = vadd.f32 %v976_v32, %v863_v31 }
 0x133   : >> { %v978_v36 = vpop.f32.mrf.mxu1 }
 0x134   : >> { %v1060_v38 = vmax.f32 %v1020_v33, %v1022_v34  ;;  %v867_v39 = vpop.f32.mrf.mxu0  ;;  %v1070_v44 = vmax.f32 %v1068_v37, 0.0  ;;  %v979_v49 = vadd.f32 %v978_v36, %v865_v35 }
 0x135   : >> { %v980_v40 = vpop.f32.mrf.mxu1 }
 0x136   : >> { %v1069_v41 = vadd.f32 %v1879_v59, %v1060_v38  ;;  %v869_v42 = vpop.f32.mrf.mxu0  ;;  %v1023_v57 = vmax.f32 %v977_v52, %v979_v49  ;;  %v981_v63 = vadd.f32 %v980_v40, %v867_v39 }
 0x137   : >> { %v982_v43 = vpop.f32.mrf.mxu1 }
 0x138   : >> { %v1071_v45 = vmax.f32 %v1069_v41, 0.0  ;;  %v873_v46 = vpop.f32.mrf.mxu0  ;;  %v983_v58 = vadd.f32 %v982_v43, %v869_v42 }
 0x139   : >> { %v986_v47 = vpop.f32.mrf.mxu1 }
 0x13a   : >> { %v1372_v48 = vpack.c.bf16 %v1071_v45, %v1070_v44  ;;  %v875_v50 = vpop.f32.mrf.mxu0  ;;  %v987_v53 = vadd.f32 %v986_v47, %v873_v46  ;;  %v1024_v5 = vmax.f32 %v981_v63, %v983_v58 }
 0x13b   : >> { %v988_v51 = vpop.f32.mrf.mxu1 }
 0x13c   : >> { %1373 = vst [vmem:[%s1084_s19] sm:$0xff] %v1372_v48   ;;  %v989_v54 = vadd.f32 %v988_v51, %v875_v50  ;;  %v877_v55 = vpop.f32.mrf.mxu0 }
 0x13d   : >> { %v990_v56 = vpop.f32.mrf.mxu1 }
 0x13e   : >> { %v1025_v60 = vmax.f32 %v987_v53, %v989_v54  ;;  %v879_v61 = vpop.f32.mrf.mxu0  ;;  %v991_v1 = vadd.f32 %v990_v56, %v877_v55 }
 0x13f   : >> { %v992_v62 = vpop.f32.mrf.mxu1 }
 0x140   : >> { %v1087_v0 = vmax.f32 %v1023_v57, %v1025_v60  ;;  %v993_v2 = vadd.f32 %v992_v62, %v879_v61  ;;  %v883_v3 = vpop.f32.mrf.mxu0 }
 0x141   : >> { %v996_v4 = vpop.f32.mrf.mxu1 }
 0x142   : >> { %v1026_v6 = vmax.f32 %v991_v1, %v993_v2  ;;  %v885_v7 = vpop.f32.mrf.mxu0  ;;  %v1096_v9 = vadd.f32 %v1879_v59, %v1087_v0  ;;  %v997_v24 = vadd.f32 %v996_v4, %v883_v3 }
 0x143   : >> { %v998_v8 = vpop.f32.mrf.mxu1 }
 0x144   : >> { %v1088_v10 = vmax.f32 %v1024_v5, %v1026_v6  ;;  %v887_v11 = vpop.f32.mrf.mxu0  ;;  %v1098_v16 = vmax.f32 %v1096_v9, 0.0  ;;  %v999_v21 = vadd.f32 %v998_v8, %v885_v7 }
 0x145   : >> { %v1000_v12 = vpop.f32.mrf.mxu1 }
 0x146   : >> { %v1097_v13 = vadd.f32 %v1879_v59, %v1088_v10  ;;  %v889_v14 = vpop.f32.mrf.mxu0  ;;  %v1027_v29 = vmax.f32 %v997_v24, %v999_v21  ;;  %v1001_v34 = vadd.f32 %v1000_v12, %v887_v11 }
 0x147   : >> { %v1002_v15 = vpop.f32.mrf.mxu1 }
 0x148   : >> { %v1099_v17 = vmax.f32 %v1097_v13, 0.0  ;;  %v893_v18 = vpop.f32.mrf.mxu0  ;;  %v1003_v30 = vadd.f32 %v1002_v15, %v889_v14 }
 0x149   : >> { %v1006_v19 = vpop.f32.mrf.mxu1 }
 0x14a   : >> { %v1377_v20 = vpack.c.bf16 %v1099_v17, %v1098_v16  ;;  %v895_v22 = vpop.f32.mrf.mxu0  ;;  %v1007_v25 = vadd.f32 %v1006_v19, %v893_v18  ;;  %v1028_v38 = vmax.f32 %v1001_v34, %v1003_v30 }
 0x14b   : >> { %v1008_v23 = vpop.f32.mrf.mxu1 }
 0x14c   : >> { %1378 = vst [vmem:[%s1112_s24] sm:$0xff] %v1377_v20   ;;  %v1009_v26 = vadd.f32 %v1008_v23, %v895_v22  ;;  %v897_v27 = vpop.f32.mrf.mxu0 }
 0x14d   : >> { %v1010_v28 = vpop.f32.mrf.mxu1 }
 0x14e   : >> { %v1029_v31 = vmax.f32 %v1007_v25, %v1009_v26  ;;  %v899_v32 = vpop.f32.mrf.mxu0  ;;  %v1011_v36 = vadd.f32 %v1010_v28, %v897_v27 }
 0x14f   : >> { %v1012_v33 = vpop.f32.mrf.mxu1 }
 0x150   : >> { %v1115_v35 = vmax.f32 %v1027_v29, %v1029_v31  ;;  %v1013_v37 = vadd.f32 %v1012_v33, %v899_v32 }
 0x152   : >> { %v1030_v39 = vmax.f32 %v1011_v36, %v1013_v37  ;;  %v1124_v40 = vadd.f32 %v1879_v59, %v1115_v35 }
 0x154   : >> { %v1116_v41 = vmax.f32 %v1028_v38, %v1030_v39  ;;  %v1126_v43 = vmax.f32 %v1124_v40, 0.0 }
 0x156   : >> { %v1125_v42 = vadd.f32 %v1879_v59, %v1116_v41 }
 0x158   : >> { %v1127_v44 = vmax.f32 %v1125_v42, 0.0  ;;  %205 = sbr.rel (!%p203_p6) target bundleno = 15 (0xf), region = 74 }
 0x15a   : >> { %v1382_v45 = vpack.c.bf16 %v1127_v44, %v1126_v43 }
 0x15c   : >> { %1383 = vst [vmem:[%s1140_s30] sm:$0xff] %v1382_v45  }
 0x15d PF: > { %s13_s14 = sadd.s32 1, %s1586_s14   ;;  %s1913_s12 = smov %s1582_s13 }
 0x15e   : > { %p10_p7 = scmp.ge.s32.totalorder %s13_s14, 4   ;;  %s1914_s13 = smov %s1916_s15 }
 0x160   :  { %12 = sbr.rel (!%p10_p7) target bundleno = 2 (0x2), region = 85 }

// kernel: attributes_network_forward.12
= control target key start
LH: loop header
LB: loop body
LE: loop exit
PB: predicated region body
PF: predicated region fallthrough
CT: control target
= control target key end

     0   :  { %s1958_s12 = smov 0   ;;  %s1960_s13 = smov 0   ;;  %s2485_s0 = inlined_call_operand.vmem [shape: bf16[2048,640], index: 0, kind: input, shape index: {}]   ;;  %s2486_s1 = inlined_call_operand.vmem [shape: bf16[640,256], index: 1, kind: input, shape index: {}]   ;;  %s2487_s2 = inlined_call_operand.vmem [shape: f32[1,128], index: 2, kind: input, shape index: {}]   ;;  %s2488_s3 = inlined_call_operand.vmem [shape: bf16[1024,128], index: 3, kind: output, shape index: {}]  }
   0x1   :  { %s1962_s14 = smov 0  }
   0x2 LB: > { %s25_s15 = sadd.s32 1, %s1927_s13  ;;  %p1504_p0 = scmp.ge.s32.totalorder %s1931_s14, 1  ;;  %s1931_s14 = sphi %s1962_s14, %s13_s14   ;;  %s1927_s13 = sphi %s1960_s13, %s2504_s13   ;;  %s1923_s12 = sphi %s1958_s12, %s2503_s12  }
   0x3   : > { %p27_p1 = scmp.ge.s32.totalorder %s25_s15, 2  ;;  %p157_p2 = scmp.lt.s32.totalorder %s1931_s14, 3 }
   0x5   : > { %s2506_s15 = smov (%p27_p1, %s25_s15), 0  ;;  %p158_p3 = pnand %p1504_p0, %p157_p2 }
   0x6   : > { %s1505_s16 = sshll.u32 (!%p158_p3), %s1923_s12, 7  ;;  %s1507_s17 = sshll.u32 (!%p158_p3), %s1923_s12, 6 }
   0x7   : > { %161 = sbr.rel (%p158_p3) target bundleno = 383 (0x17f), region = 32  ;;  %p186_p4 = scmp.lt.s32.totalorder (!%p158_p3), %s1505_s16, 255 }
   0x8   : > { %p195_p5 = scmp.lt.s32.totalorder (!%p158_p3), %s1507_s17, 127  ;;  %s1986_s26 = smov (!%p158_p3), 0  }
   0xc   : > { %s2508_s16 = smov (!%p186_p4, %s1505_s16), 255  ;;  %s2510_s17 = smov (!%p195_p5, %s1507_s17), 127 }
   0xd   : > { %s1695_s18 = smul.u32 20, %s2508_s16  ;;  %s1508_s19 = sshll.u32 %s2510_s17, 2 }
   0xe   : > { %s1984_s25 = scalar_lea.vmem %s2488_s3, %s1508_s19 }
   0xf   : > { %s1979_s22 = scalar_lea.vmem %s2485_s0, %s1695_s18 }
  0x10 LB: >> { %v1729_v0 = vld [vmem:[%s2486_s1 + $0x74] ss:$8 sps:$4 sm:$0xff]   ;;  %v1733_v2 = vld [vmem:[%s2486_s1 + $0x70] ss:$8 sps:$4 sm:$0xff]   ;;  %v1735_v4 = vld [vmem:[%s2486_s1 + $0x64] ss:$8 sps:$4 sm:$0xff]   ;;  %s1935_s26 = sphi %s1986_s26, %s207_s26  }
  0x11   : >> { %v1731_v1 = vld [vmem:[%s2486_s1 + $0x174] ss:$8 sps:$4 sm:$0xff]   ;;  %950 = vmatprep.subr.bf16.mxu0 %v1729_v0  ;;  %v1734_v3 = vld [vmem:[%s2486_s1 + $0x170] ss:$8 sps:$4 sm:$0xff]   ;;  %v1737_v5 = vld [vmem:[%s2486_s1 + $0x164] ss:$8 sps:$4 sm:$0xff]  }
  0x12   : >> { %1063 = vmatprep.subr.bf16.mxu1 %v1731_v1  ;;  %951 = vmatpush1.bf16.msra.mxu0 %v1733_v2  ;;  %v1739_v6 = vld [vmem:[%s2486_s1 + $0x60] ss:$8 sps:$4 sm:$0xff]   ;;  %v1741_v8 = vld [vmem:[%s2486_s1 + $0x54] ss:$8 sps:$4 sm:$0xff]   ;;  %v1745_v10 = vld [vmem:[%s2486_s1 + $0x50] ss:$8 sps:$4 sm:$0xff]  }
  0x13   : >> { %1064 = vmatpush1.bf16.msra.mxu1 %v1734_v3  ;;  %952 = vmatprep.subr.bf16.mxu0 %v1735_v4  ;;  %v1740_v7 = vld [vmem:[%s2486_s1 + $0x160] ss:$8 sps:$4 sm:$0xff]   ;;  %v1743_v9 = vld [vmem:[%s2486_s1 + $0x154] ss:$8 sps:$4 sm:$0xff]   ;;  %v1746_v11 = vld [vmem:[%s2486_s1 + $0x150] ss:$8 sps:$4 sm:$0xff]  }
  0x14   : >> { %1065 = vmatprep.subr.bf16.mxu1 %v1737_v5  ;;  %v1747_v12 = vld [vmem:[%s2486_s1 + $0x44] ss:$8 sps:$4 sm:$0xff]   ;;  %v1751_v14 = vld [vmem:[%s2486_s1 + $0x40] ss:$8 sps:$4 sm:$0xff]   ;;  %v1753_v16 = vld [vmem:[%s2486_s1 + $0x34] ss:$8 sps:$4 sm:$0xff]  }
  0x15   : >> { %v1749_v13 = vld [vmem:[%s2486_s1 + $0x144] ss:$8 sps:$4 sm:$0xff]   ;;  %v1752_v15 = vld [vmem:[%s2486_s1 + $0x140] ss:$8 sps:$4 sm:$0xff]   ;;  %v1755_v17 = vld [vmem:[%s2486_s1 + $0x134] ss:$8 sps:$4 sm:$0xff]  }
  0x16   : >> { %953 = vmatpush1.bf16.msra.mxu0 %v1739_v6  ;;  %v1757_v18 = vld [vmem:[%s2486_s1 + $0x30] ss:$8 sps:$4 sm:$0xff]   ;;  %v1759_v20 = vld [vmem:[%s2486_s1 + $0x24] ss:$8 sps:$4 sm:$0xff]   ;;  %v1763_v22 = vld [vmem:[%s2486_s1 + $0x20] ss:$8 sps:$4 sm:$0xff]  }
  0x17   : >> { %1066 = vmatpush1.bf16.msra.mxu1 %v1740_v7  ;;  %954 = vmatprep.subr.bf16.mxu0 %v1741_v8  ;;  %v1758_v19 = vld [vmem:[%s2486_s1 + $0x130] ss:$8 sps:$4 sm:$0xff]   ;;  %v1761_v21 = vld [vmem:[%s2486_s1 + $0x124] ss:$8 sps:$4 sm:$0xff]   ;;  %v1764_v23 = vld [vmem:[%s2486_s1 + $0x120] ss:$8 sps:$4 sm:$0xff]  }
  0x18   : >> { %1067 = vmatprep.subr.bf16.mxu1 %v1743_v9  ;;  %v1765_v24 = vld [vmem:[%s2486_s1 + $0x14] ss:$8 sps:$4 sm:$0xff]   ;;  %v1769_v26 = vld [vmem:[%s2486_s1 + $0x10] ss:$8 sps:$4 sm:$0xff]   ;;  %v1771_v28 = vld [vmem:[%s2486_s1 + $0x4] ss:$8 sps:$4 sm:$0xff]  }
  0x19   : >> { %v1767_v25 = vld [vmem:[%s2486_s1 + $0x114] ss:$8 sps:$4 sm:$0xff]   ;;  %v1770_v27 = vld [vmem:[%s2486_s1 + $0x110] ss:$8 sps:$4 sm:$0xff]   ;;  %v1773_v29 = vld [vmem:[%s2486_s1 + $0x104] ss:$8 sps:$4 sm:$0xff]  }
  0x1a   : >> { %955 = vmatpush1.bf16.msra.mxu0 %v1745_v10  ;;  %v1775_v30 = vld [vmem:[%s2486_s1] ss:$8 sps:$4 sm:$0xff]   ;;  %v1777_v32 = vld [vmem:[%s2486_s1 + $0xf4] ss:$8 sps:$4 sm:$0xff]   ;;  %s1509_s5 = sshll.u32 %s1935_s26, 7 }
  0x1b   : >> { %1068 = vmatpush1.bf16.msra.mxu1 %v1746_v11  ;;  %956 = vmatprep.subr.bf16.mxu0 %v1747_v12  ;;  %v1776_v31 = vld [vmem:[%s2486_s1 + $0x100] ss:$8 sps:$4 sm:$0xff]   ;;  %v1779_v33 = vld [vmem:[%s2486_s1 + $0x1f4] ss:$8 sps:$4 sm:$0xff]   ;;  %v1781_v34 = vld [vmem:[%s2486_s1 + $0xf0] ss:$8 sps:$4 sm:$0xff]  }
  0x1c   : >> { %1069 = vmatprep.subr.bf16.mxu1 %v1749_v13  ;;  %v1782_v35 = vld [vmem:[%s2486_s1 + $0x1f0] ss:$8 sps:$4 sm:$0xff]   ;;  %v1783_v36 = vld [vmem:[%s2486_s1 + $0xe4] ss:$8 sps:$4 sm:$0xff]   ;;  %s209_s17 = sshra.s32 %s1509_s5, 3 }
  0x1d   : >> { %v1785_v37 = vld [vmem:[%s2486_s1 + $0x1e4] ss:$8 sps:$4 sm:$0xff]   ;;  %v1787_v38 = vld [vmem:[%s2486_s1 + $0xe0] ss:$8 sps:$4 sm:$0xff]   ;;  %v1789_v40 = vld [vmem:[%s2486_s1 + $0xd4] ss:$8 sps:$4 sm:$0xff]  }
  0x1e   : >> { %957 = vmatpush1.bf16.msra.mxu0 %v1751_v14  ;;  %v1788_v39 = vld [vmem:[%s2486_s1 + $0x1e0] ss:$8 sps:$4 sm:$0xff]   ;;  %s1650_s27 = smul.u32 20, %s209_s17  ;;  %v1791_v41 = vld [vmem:[%s2486_s1 + $0x1d4] ss:$8 sps:$4 sm:$0xff]  }
  0x1f   : >> { %1070 = vmatpush1.bf16.msra.mxu1 %v1752_v15  ;;  %958 = vmatprep.subr.bf16.mxu0 %v1753_v16  ;;  %v1793_v42 = vld [vmem:[%s2486_s1 + $0xd0] ss:$8 sps:$4 sm:$0xff]   ;;  %v1795_v44 = vld [vmem:[%s2486_s1 + $0xc4] ss:$8 sps:$4 sm:$0xff]   ;;  %v1799_v46 = vld [vmem:[%s2486_s1 + $0xc0] ss:$8 sps:$4 sm:$0xff]  }
  0x20   : >> { %1071 = vmatprep.subr.bf16.mxu1 %v1755_v17  ;;  %v1794_v43 = vld [vmem:[%s2486_s1 + $0x1d0] ss:$8 sps:$4 sm:$0xff]   ;;  %s2128_s9 = scalar_lea.vmem %s1979_s22, %s1650_s27  ;;  %v1797_v45 = vld [vmem:[%s2486_s1 + $0x1c4] ss:$8 sps:$4 sm:$0xff]   ;;  %v1800_v47 = vld [vmem:[%s2486_s1 + $0x1c0] ss:$8 sps:$4 sm:$0xff]  }
  0x21   : >> { %v1801_v48 = vld [vmem:[%s2486_s1 + $0xb4] ss:$8 sps:$4 sm:$0xff]   ;;  %v1827_v49 = vld [vmem:[%s2128_s9 + $0x4] ss:$20 sps:$4 sm:$0xff]   ;;  %v1830_v51 = vld [vmem:[%s2128_s9 + $0xc] ss:$20 sps:$4 sm:$0xff]  }
  0x22   : >> { %959 = vmatpush1.bf16.msra.mxu0 %v1757_v18  ;;  %v1803_v50 = vld [vmem:[%s2486_s1 + $0x1b4] ss:$8 sps:$4 sm:$0xff]   ;;  %982 = vmatprep.mubr.bf16.mxu0 %v1827_v49  ;;  %v1805_v52 = vld [vmem:[%s2486_s1 + $0xb0] ss:$8 sps:$4 sm:$0xff]   ;;  %v1807_v54 = vld [vmem:[%s2486_s1 + $0xa4] ss:$8 sps:$4 sm:$0xff]  }
  0x23   : >> { %1072 = vmatpush1.bf16.msra.mxu1 %v1758_v19  ;;  %960 = vmatprep.subr.bf16.mxu0 %v1759_v20  ;;  %v1806_v53 = vld [vmem:[%s2486_s1 + $0x1b0] ss:$8 sps:$4 sm:$0xff]   ;;  %v1809_v55 = vld [vmem:[%s2486_s1 + $0x1a4] ss:$8 sps:$4 sm:$0xff]   ;;  %v1811_v56 = vld [vmem:[%s2486_s1 + $0xa0] ss:$8 sps:$4 sm:$0xff]  }
  0x24   : >> { %1073 = vmatprep.subr.bf16.mxu1 %v1761_v21  ;;  %1095 = vmatprep.mubr.bf16.mxu1 %v1830_v51  ;;  %v1812_v57 = vld [vmem:[%s2486_s1 + $0x1a0] ss:$8 sps:$4 sm:$0xff]   ;;  %v1813_v58 = vld [vmem:[%s2486_s1 + $0x94] ss:$8 sps:$4 sm:$0xff]   ;;  %v1817_v60 = vld [vmem:[%s2486_s1 + $0x90] ss:$8 sps:$4 sm:$0xff]  }
  0x25   : >> { %v1815_v59 = vld [vmem:[%s2486_s1 + $0x194] ss:$8 sps:$4 sm:$0xff]   ;;  %v1818_v61 = vld [vmem:[%s2486_s1 + $0x190] ss:$8 sps:$4 sm:$0xff]   ;;  %v1819_v62 = vld [vmem:[%s2486_s1 + $0x84] ss:$8 sps:$4 sm:$0xff]  }
  0x26   : >> { %961 = vmatpush1.bf16.msra.mxu0 %v1763_v22  ;;  %v1821_v63 = vld [vmem:[%s2486_s1 + $0x184] ss:$8 sps:$4 sm:$0xff]   ;;  %v1823_v0 = vld [vmem:[%s2486_s1 + $0x80] ss:$8 sps:$4 sm:$0xff]   ;;  %v1833_v2 = vld [vmem:[%s2486_s1 + $0x274] ss:$8 sps:$4 sm:$0xff]  }
  0x27   : >> { %1074 = vmatpush1.bf16.msra.mxu1 %v1764_v23  ;;  %962 = vmatprep.subr.bf16.mxu0 %v1765_v24  ;;  %v1824_v1 = vld [vmem:[%s2486_s1 + $0x180] ss:$8 sps:$4 sm:$0xff]   ;;  %v1831_v5 = vld [vmem:[%s2486_s1 + $0x270] ss:$8 sps:$4 sm:$0xff]   ;;  %v1842_v8 = vld [vmem:[%s2486_s1 + $0x264] ss:$8 sps:$4 sm:$0xff]  }
  0x28   : >> { %1075 = vmatprep.subr.bf16.mxu1 %v1767_v25  ;;  %v1825_v3 = vld [vmem:[%s2128_s9] ss:$20 sps:$4 sm:$0xff]   ;;  %v1828_v4 = vld [vmem:[%s2128_s9 + $0x8] ss:$20 sps:$4 sm:$0xff]   ;;  %v1839_v12 = vld [vmem:[%s2128_s9 + $0x30] ss:$20 sps:$4 sm:$0xff]  }
  0x29   : >> { %v1834_v6 = vld [vmem:[%s2128_s9 + $0x2c] ss:$20 sps:$4 sm:$0xff]   ;;  %v1836_v7 = vld [vmem:[%s2128_s9 + $0x34] ss:$20 sps:$4 sm:$0xff]   ;;  %v1845_v14 = vld [vmem:[%s2128_s9 + $0x5c] ss:$20 sps:$4 sm:$0xff]  }
  0x2a   : >> { %963 = vmatpush1.bf16.msra.mxu0 %v1769_v26  ;;  %v1840_v9 = vld [vmem:[%s2486_s1 + $0x260] ss:$8 sps:$4 sm:$0xff]   ;;  %v1851_v10 = vld [vmem:[%s2486_s1 + $0x254] ss:$8 sps:$4 sm:$0xff]   ;;  %v1849_v15 = vld [vmem:[%s2486_s1 + $0x250] ss:$8 sps:$4 sm:$0xff]  }
  0x2b   : >> { %1076 = vmatpush1.bf16.msra.mxu1 %v1770_v27  ;;  %964 = vmatprep.subr.bf16.mxu0 %v1771_v28  ;;  %v1838_v11 = vld [vmem:[%s2128_s9 + $0x28] ss:$20 sps:$4 sm:$0xff]   ;;  %v1860_v16 = vld [vmem:[%s2486_s1 + $0x244] ss:$8 sps:$4 sm:$0xff]   ;;  %v1867_v23 = vld [vmem:[%s2486_s1 + $0x230] ss:$8 sps:$4 sm:$0xff]  }
  0x2c   : >> { %1077 = vmatprep.subr.bf16.mxu1 %v1773_v29  ;;  %v1843_v13 = vld [vmem:[%s2128_s9 + $0x54] ss:$20 sps:$4 sm:$0xff]   ;;  %v1847_v17 = vld [vmem:[%s2128_s9 + $0x50] ss:$20 sps:$4 sm:$0xff]   ;;  %v1848_v18 = vld [vmem:[%s2128_s9 + $0x58] ss:$20 sps:$4 sm:$0xff]  }
  0x2d   : >> { %v1858_v19 = vld [vmem:[%s2486_s1 + $0x240] ss:$8 sps:$4 sm:$0xff]   ;;  %v1869_v20 = vld [vmem:[%s2486_s1 + $0x234] ss:$8 sps:$4 sm:$0xff]   ;;  %v1854_v22 = vld [vmem:[%s2128_s9 + $0x84] ss:$20 sps:$4 sm:$0xff]  }
  0x2e   : >> { %965 = vmatpush1.bf16.msra.mxu0 %v1775_v30  ;;  %v1852_v21 = vld [vmem:[%s2128_s9 + $0x7c] ss:$20 sps:$4 sm:$0xff]   ;;  %v1878_v24 = vld [vmem:[%s2486_s1 + $0x224] ss:$8 sps:$4 sm:$0xff]   ;;  %v1876_v25 = vld [vmem:[%s2486_s1 + $0x220] ss:$8 sps:$4 sm:$0xff]  }
  0x2f   : >> { %1078 = vmatpush1.bf16.msra.mxu1 %v1776_v31  ;;  %966 = vmatprep.subr.bf16.mxu0 %v1777_v32  ;;  %v1887_v26 = vld [vmem:[%s2486_s1 + $0x214] ss:$8 sps:$4 sm:$0xff]   ;;  %v1856_v27 = vld [vmem:[%s2128_s9 + $0x78] ss:$20 sps:$4 sm:$0xff]   ;;  %v1897_v49 = vld [vmem:[%s2128_s9 + $0x10] ss:$20 sps:$4 sm:$0xff]  }
  0x30   : >> { %1079 = vmatprep.subr.bf16.mxu1 %v1779_v33  ;;  %v1857_v28 = vld [vmem:[%s2128_s9 + $0x80] ss:$20 sps:$4 sm:$0xff]   ;;  %v1861_v29 = vld [vmem:[%s2128_s9 + $0xa4] ss:$20 sps:$4 sm:$0xff]  }
  0x31   : >> { %v1863_v30 = vld [vmem:[%s2128_s9 + $0xac] ss:$20 sps:$4 sm:$0xff]   ;;  %v1885_v31 = vld [vmem:[%s2486_s1 + $0x210] ss:$8 sps:$4 sm:$0xff]  }
  0x32   : >> { %967 = vmatpush2.bf16.msra.mxu0 %v1781_v34  ;;  %v1896_v32 = vld [vmem:[%s2486_s1 + $0x204] ss:$8 sps:$4 sm:$0xff]   ;;  %v1894_v33 = vld [vmem:[%s2486_s1 + $0x200] ss:$8 sps:$4 sm:$0xff]  }
  0x33   : >> { %1080 = vmatpush2.bf16.msra.mxu1 %v1782_v35  ;;  %968 = vmatprep.subr.bf16.mxu0 %v1783_v36  ;;  %v1865_v34 = vld [vmem:[%s2128_s9 + $0xa0] ss:$20 sps:$4 sm:$0xff]   ;;  %v1866_v35 = vld [vmem:[%s2128_s9 + $0xa8] ss:$20 sps:$4 sm:$0xff]   ;;  %v1899_v51 = vld [vmem:[%s2128_s9 + $0x38] ss:$20 sps:$4 sm:$0xff]  }
  0x34   : >> { %1081 = vmatprep.subr.bf16.mxu1 %v1785_v37  ;;  %v1870_v36 = vld [vmem:[%s2128_s9 + $0xcc] ss:$20 sps:$4 sm:$0xff]   ;;  %v1872_v37 = vld [vmem:[%s2128_s9 + $0xd4] ss:$20 sps:$4 sm:$0xff]  }
  0x36   : >> { %969 = vmatpush2.bf16.msra.mxu0 %v1787_v38  ;;  %v1874_v38 = vld [vmem:[%s2128_s9 + $0xc8] ss:$20 sps:$4 sm:$0xff]  }
  0x37   : >> { %1082 = vmatpush2.bf16.msra.mxu1 %v1788_v39  ;;  %970 = vmatprep.subr.bf16.mxu0 %v1789_v40  ;;  %v1875_v39 = vld [vmem:[%s2128_s9 + $0xd0] ss:$20 sps:$4 sm:$0xff]   ;;  %v1879_v40 = vld [vmem:[%s2128_s9 + $0xf4] ss:$20 sps:$4 sm:$0xff]  }
  0x38   : >> { %1083 = vmatprep.subr.bf16.mxu1 %v1791_v41  ;;  %v1881_v41 = vld [vmem:[%s2128_s9 + $0xfc] ss:$20 sps:$4 sm:$0xff]  }
  0x3a   : >> { %971 = vmatpush2.bf16.msra.mxu0 %v1793_v42  ;;  %v1883_v42 = vld [vmem:[%s2128_s9 + $0xf0] ss:$20 sps:$4 sm:$0xff]  }
  0x3b   : >> { %1084 = vmatpush2.bf16.msra.mxu1 %v1794_v43  ;;  %972 = vmatprep.subr.bf16.mxu0 %v1795_v44  ;;  %v1884_v43 = vld [vmem:[%s2128_s9 + $0xf8] ss:$20 sps:$4 sm:$0xff]   ;;  %v1888_v44 = vld [vmem:[%s2128_s9 + $0x11c] ss:$20 sps:$4 sm:$0xff]  }
  0x3c   : >> { %1085 = vmatprep.subr.bf16.mxu1 %v1797_v45  ;;  %v1890_v45 = vld [vmem:[%s2128_s9 + $0x124] ss:$20 sps:$4 sm:$0xff]  }
  0x3e   : >> { %973 = vmatpush2.bf16.msra.mxu0 %v1799_v46  ;;  %v1892_v46 = vld [vmem:[%s2128_s9 + $0x118] ss:$20 sps:$4 sm:$0xff]  }
  0x3f   : >> { %1086 = vmatpush2.bf16.msra.mxu1 %v1800_v47  ;;  %974 = vmatprep.subr.bf16.mxu0 %v1801_v48  ;;  %v1893_v47 = vld [vmem:[%s2128_s9 + $0x120] ss:$20 sps:$4 sm:$0xff]   ;;  %v1937_v48 = vmov 0  }
  0x40   : >> { %1087 = vmatprep.subr.bf16.mxu1 %v1803_v50  ;;  %v1898_v50 = vld [vmem:[%s2128_s9 + $0xb0] ss:$20 sps:$4 sm:$0xff]  }
  0x42   : >> { %975 = vmatpush2.bf16.msra.mxu0 %v1805_v52  ;;  %v1900_v52 = vld [vmem:[%s2128_s9 + $0xd8] ss:$20 sps:$4 sm:$0xff]  }
  0x43   : >> { %1088 = vmatpush2.bf16.msra.mxu1 %v1806_v53  ;;  %976 = vmatprep.subr.bf16.mxu0 %v1807_v54  ;;  %v1901_v53 = vld [vmem:[%s2128_s9 + $0x60] ss:$20 sps:$4 sm:$0xff]  }
  0x44   : >> { %1089 = vmatprep.subr.bf16.mxu1 %v1809_v55  ;;  %v1902_v54 = vld [vmem:[%s2128_s9 + $0x100] ss:$20 sps:$4 sm:$0xff]   ;;  %v1903_v55 = vld [vmem:[%s2128_s9 + $0x88] ss:$20 sps:$4 sm:$0xff]  }
  0x46   : >> { %977 = vmatpush2.bf16.msra.mxu0 %v1811_v56  ;;  %v1904_v56 = vld [vmem:[%s2128_s9 + $0x128] ss:$20 sps:$4 sm:$0xff]   ;;  %s2398_s9 = sshll.u32 %s1935_s26, 6  ;;  %s207_s26 = sadd.s32 1, %s1935_s26  }
  0x47   : >> { %1090 = vmatpush2.bf16.msra.mxu1 %v1812_v57  ;;  %978 = vmatprep.subr.bf16.mxu0 %v1813_v58  ;;  %s1327_s28 = sshra.s32 %s2398_s9, 3  ;;  %s1347_s4 = sadd.s32 16, %s2398_s9 }
  0x48   : >> { %1091 = vmatprep.subr.bf16.mxu1 %v1815_v59  ;;  %s1635_s29 = sshll.u32 %s1327_s28, 2  ;;  %s1375_s5 = sadd.s32 32, %s2398_s9 }
  0x49   : >> { %s1330_s30 = scalar_lea.vmem %s1984_s25, %s1635_s29  ;;  %s1403_s6 = sadd.s32 48, %s2398_s9 }
  0x4a   : >> { %979 = vmatpush2.bf16.msra.mxu0 %v1817_v60  ;;  %s1355_s7 = sshra.s32 %s1347_s4, 3  ;;  %s1383_s8 = sshra.s32 %s1375_s5, 3 }
  0x4b   : >> { %1092 = vmatpush2.bf16.msra.mxu1 %v1818_v61  ;;  %980 = vmatprep.subr.bf16.mxu0 %v1819_v62  ;;  %s1411_s10 = sshra.s32 %s1403_s6, 3  ;;  %s1639_s11 = sshll.u32 %s1355_s7, 2 }
  0x4c   : >> { %1093 = vmatprep.subr.bf16.mxu1 %v1821_v63  ;;  %s1643_s12 = sshll.u32 %s1383_s8, 2  ;;  %s1647_s16 = sshll.u32 %s1411_s10, 2 }
  0x4d   : >> { %s1358_s17 = scalar_lea.vmem %s1984_s25, %s1639_s11  ;;  %s1386_s18 = scalar_lea.vmem %s1984_s25, %s1643_s12 }
  0x4e   : >> { %981 = vmatpush2.bf16.msra.mxu0 %v1823_v0  ;;  %s1414_s19 = scalar_lea.vmem %s1984_s25, %s1647_s16  ;;  %p204_p6 = scmp.ge.s32.totalorder %s207_s26, 8  }
  0x4f   : >> { %1094 = vmatpush2.bf16.msra.mxu1 %v1824_v1  ;;  %1176 = vmatprep.subr.bf16.mxu0 %v1833_v2 }
  0x50   : >> { %1679 = vmatprep.subr.bf16.mxu1 %v1833_v2 }
  0x51   : >> { %983 = vmatmul.mubr.bf16.vlgmr.msra.gmra.mxu0 %v1825_v3 }
  0x52   : >> { %1096 = vmatmul.mubr.bf16.vlgmr.msra.gmra.mxu1 %v1828_v4  ;;  %1177 = vmatpush1.bf16.msra.mxu0 %v1831_v5 }
  0x53   : >> { %1687 = vmatpush1.bf16.msra.mxu1 %v1831_v5  ;;  %992 = vmatprep.mubr.bf16.mxu0 %v1834_v6 }
  0x54   : >> { %1105 = vmatprep.mubr.bf16.mxu1 %v1836_v7  ;;  %1178 = vmatprep.subr.bf16.mxu0 %v1842_v8 }
  0x55   : >> { %1680 = vmatprep.subr.bf16.mxu1 %v1842_v8 }
  0x56   : >> { %1179 = vmatpush1.bf16.msra.mxu0 %v1840_v9 }
  0x57   : >> { %1688 = vmatpush1.bf16.msra.mxu1 %v1840_v9  ;;  %1180 = vmatprep.subr.bf16.mxu0 %v1851_v10 }
  0x58   : >> { %1681 = vmatprep.subr.bf16.mxu1 %v1851_v10 }
  0x59   : >> { %993 = vmatmul.mubr.bf16.gmra.mxu0 %v1838_v11 }
  0x5a   : >> { %1106 = vmatmul.mubr.bf16.gmra.mxu1 %v1839_v12  ;;  %1002 = vmatprep.mubr.bf16.mxu0 %v1843_v13 }
  0x5b   : >> { %1115 = vmatprep.mubr.bf16.mxu1 %v1845_v14  ;;  %1181 = vmatpush1.bf16.msra.mxu0 %v1849_v15 }
  0x5c   : >> { %1689 = vmatpush1.bf16.msra.mxu1 %v1849_v15  ;;  %1182 = vmatprep.subr.bf16.mxu0 %v1860_v16 }
  0x5d   : >> { %1682 = vmatprep.subr.bf16.mxu1 %v1860_v16 }
  0x5f   : >> { %1183 = vmatpush1.bf16.msra.mxu0 %v1858_v19 }
  0x60   : >> { %1690 = vmatpush1.bf16.msra.mxu1 %v1858_v19  ;;  %1184 = vmatprep.subr.bf16.mxu0 %v1869_v20 }
  0x61   : >> { %1683 = vmatprep.subr.bf16.mxu1 %v1869_v20  ;;  %1003 = vmatmul.mubr.bf16.gmra.mxu0 %v1847_v17 }
  0x62   : >> { %1116 = vmatmul.mubr.bf16.gmra.mxu1 %v1848_v18  ;;  %1012 = vmatprep.mubr.bf16.mxu0 %v1852_v21 }
  0x63   : >> { %1125 = vmatprep.mubr.bf16.mxu1 %v1854_v22  ;;  %1185 = vmatpush1.bf16.msra.mxu0 %v1867_v23 }
  0x64   : >> { %1691 = vmatpush1.bf16.msra.mxu1 %v1867_v23  ;;  %1186 = vmatprep.subr.bf16.mxu0 %v1878_v24 }
  0x65   : >> { %1684 = vmatprep.subr.bf16.mxu1 %v1878_v24 }
  0x67   : >> { %1187 = vmatpush1.bf16.msra.mxu0 %v1876_v25 }
  0x68   : >> { %1692 = vmatpush1.bf16.msra.mxu1 %v1876_v25  ;;  %1188 = vmatprep.subr.bf16.mxu0 %v1887_v26 }
  0x69   : >> { %1685 = vmatprep.subr.bf16.mxu1 %v1887_v26  ;;  %1013 = vmatmul.mubr.bf16.gmra.mxu0 %v1856_v27 }
  0x6a   : >> { %1126 = vmatmul.mubr.bf16.gmra.mxu1 %v1857_v28  ;;  %1022 = vmatprep.mubr.bf16.mxu0 %v1861_v29 }
  0x6b   : >> { %1135 = vmatprep.mubr.bf16.mxu1 %v1863_v30  ;;  %1189 = vmatpush1.bf16.msra.mxu0 %v1885_v31 }
  0x6c   : >> { %1693 = vmatpush1.bf16.msra.mxu1 %v1885_v31  ;;  %1190 = vmatprep.subr.bf16.mxu0 %v1896_v32 }
  0x6d   : >> { %1686 = vmatprep.subr.bf16.mxu1 %v1896_v32 }
  0x6f   : >> { %1191 = vmatpush1.bf16.msra.mxu0 %v1894_v33 }
  0x70   : >> { %1694 = vmatpush1.bf16.msra.mxu1 %v1894_v33 }
  0x71   : >> { %1023 = vmatmul.mubr.bf16.gmra.mxu0 %v1865_v34 }
  0x72   : >> { %1136 = vmatmul.mubr.bf16.gmra.mxu1 %v1866_v35  ;;  %1032 = vmatprep.mubr.bf16.mxu0 %v1870_v36 }
  0x73   : >> { %1145 = vmatprep.mubr.bf16.mxu1 %v1872_v37 }
  0x79   : >> { %1033 = vmatmul.mubr.bf16.gmra.mxu0 %v1874_v38 }
  0x7a   : >> { %1146 = vmatmul.mubr.bf16.gmra.mxu1 %v1875_v39  ;;  %1042 = vmatprep.mubr.bf16.mxu0 %v1879_v40 }
  0x7b   : >> { %1155 = vmatprep.mubr.bf16.mxu1 %v1881_v41 }
  0x81   : >> { %1043 = vmatmul.mubr.bf16.gmra.mxu0 %v1883_v42 }
  0x82   : >> { %1156 = vmatmul.mubr.bf16.gmra.mxu1 %v1884_v43  ;;  %1052 = vmatprep.mubr.bf16.mxu0 %v1888_v44 }
  0x83   : >> { %1165 = vmatprep.mubr.bf16.mxu1 %v1890_v45 }
  0x89   : >> { %1053 = vmatmul.mubr.bf16.gmra.mxu0 %v1892_v46 }
  0x8a   : >> { %1166 = vmatmul.mubr.bf16.gmra.mxu1 %v1893_v47  ;;  %1208 = vmatprep.mubr.bf16.mxu0 %v1937_v48 }
  0x8b   : >> { %1248 = vmatprep.mubr.bf16.mxu1 %v1937_v48 }
  0x91   : >> { %1209 = vmatmul.mubr.bf16.vlgmr.msra.gmra.mxu0 %v1897_v49 }
  0x92   : >> { %1249 = vmatmul.mubr.bf16.vlgmr.msra.gmra.mxu1 %v1898_v50  ;;  %1218 = vmatprep.mubr.bf16.mxu0 %v1937_v48 }
  0x93   : >> { %1258 = vmatprep.mubr.bf16.mxu1 %v1937_v48 }
  0x99   : >> { %1219 = vmatmul.mubr.bf16.gmra.mxu0 %v1899_v51 }
  0x9a   : >> { %1259 = vmatmul.mubr.bf16.gmra.mxu1 %v1900_v52  ;;  %1228 = vmatprep.mubr.bf16.mxu0 %v1937_v48 }
  0x9b   : >> { %1268 = vmatprep.mubr.bf16.mxu1 %v1937_v48 }
  0xa1   : >> { %1229 = vmatmul.mubr.bf16.gmra.mxu0 %v1901_v53 }
  0xa2   : >> { %1269 = vmatmul.mubr.bf16.gmra.mxu1 %v1902_v54  ;;  %1238 = vmatprep.mubr.bf16.mxu0 %v1937_v48 }
  0xa3   : >> { %1278 = vmatprep.mubr.bf16.mxu1 %v1937_v48 }
  0xa9   : >> { %1239 = vmatmul.mubr.bf16.gmra.mxu0 %v1903_v55 }
  0xaa   : >> { %1279 = vmatmul.mubr.bf16.gmra.mxu1 %v1904_v56 }
 0x111   : >> { %v984_v57 = vpop.f32.mrf.mxu0 }
 0x112   : >> { %v1097_v58 = vpop.f32.mrf.mxu1 }
 0x113   : >> { %v2275_v59 = vadd.f32 %v1097_v58, %v984_v57  ;;  %v986_v60 = vpop.f32.mrf.mxu0 }
 0x114   : >> { %v1099_v61 = vpop.f32.mrf.mxu1 }
 0x115   : >> { %v2277_v62 = vadd.f32 %v1099_v61, %v986_v60  ;;  %v988_v63 = vpop.f32.mrf.mxu0 }
 0x116   : >> { %v1101_v0 = vpop.f32.mrf.mxu1 }
 0x117   : >> { %v2279_v1 = vadd.f32 %v1101_v0, %v988_v63  ;;  %v990_v2 = vpop.f32.mrf.mxu0 }
 0x118   : >> { %v1103_v3 = vpop.f32.mrf.mxu1 }
 0x119   : >> { %v2281_v4 = vadd.f32 %v1103_v3, %v990_v2  ;;  %v994_v5 = vpop.f32.mrf.mxu0 }
 0x11a   : >> { %v1107_v6 = vpop.f32.mrf.mxu1 }
 0x11b   : >> { %v2283_v7 = vadd.f32 %v1107_v6, %v994_v5  ;;  %v996_v8 = vpop.f32.mrf.mxu0 }
 0x11c   : >> { %v1109_v9 = vpop.f32.mrf.mxu1 }
 0x11d   : >> { %v2285_v10 = vadd.f32 %v1109_v9, %v996_v8  ;;  %v2287_v11 = vpop.f32.mrf.mxu0 }
 0x11e   : >> { %v2289_v12 = vpop.f32.mrf.mxu1 }
 0x11f   : >> { %v2291_v13 = vpop.f32.mrf.mxu0 }
 0x120   : >> { %v2293_v14 = vpop.f32.mrf.mxu1 }
 0x121   : >> { %v1004_v15 = vpop.f32.mrf.mxu0 }
 0x122   : >> { %v1117_v16 = vpop.f32.mrf.mxu1 }
 0x123   : >> { %v2295_v17 = vadd.f32 %v1117_v16, %v1004_v15  ;;  %v1006_v18 = vpop.f32.mrf.mxu0 }
 0x124   : >> { %v1119_v19 = vpop.f32.mrf.mxu1 }
 0x125   : >> { %v2297_v20 = vadd.f32 %v1119_v19, %v1006_v18  ;;  %v1008_v21 = vpop.f32.mrf.mxu0 }
 0x126   : >> { %v1121_v22 = vpop.f32.mrf.mxu1 }
 0x127   : >> { %v2299_v23 = vadd.f32 %v1121_v22, %v1008_v21  ;;  %v1010_v24 = vpop.f32.mrf.mxu0 }
 0x128   : >> { %v1123_v25 = vpop.f32.mrf.mxu1 }
 0x129   : >> { %v2301_v26 = vadd.f32 %v1123_v25, %v1010_v24  ;;  %v1014_v27 = vpop.f32.mrf.mxu0 }
 0x12a   : >> { %v1127_v28 = vpop.f32.mrf.mxu1 }
 0x12b   : >> { %v2303_v29 = vadd.f32 %v1127_v28, %v1014_v27  ;;  %v1016_v30 = vpop.f32.mrf.mxu0 }
 0x12c   : >> { %v1129_v31 = vpop.f32.mrf.mxu1 }
 0x12d   : >> { %2489 = vst [vmem:[#allocation2_spill] sm:$0xff] %v2303_v29  ;;  %v2305_v32 = vadd.f32 %v1129_v31, %v1016_v30  ;;  %v2307_v33 = vpop.f32.mrf.mxu0 }
 0x12e   : >> { %v2309_v34 = vpop.f32.mrf.mxu1 }
 0x12f   : >> { %2490 = vst [vmem:[#allocation3_spill] sm:$0xff] %v2305_v32  ;;  %v2311_v35 = vpop.f32.mrf.mxu0 }
 0x130   : >> { %v2313_v36 = vpop.f32.mrf.mxu1 }
 0x131   : >> { %v2315_v37 = vpop.f32.mrf.mxu0 }
 0x132   : >> { %v2317_v38 = vpop.f32.mrf.mxu1 }
 0x133   : >> { %v2319_v39 = vpop.f32.mrf.mxu0 }
 0x134   : >> { %v2321_v40 = vpop.f32.mrf.mxu1 }
 0x135   : >> { %v2323_v41 = vpop.f32.mrf.mxu0 }
 0x136   : >> { %v2325_v42 = vpop.f32.mrf.mxu1 }
 0x137   : >> { %v2327_v43 = vpop.f32.mrf.mxu0 }
 0x138   : >> { %v2329_v44 = vpop.f32.mrf.mxu1 }
 0x139   : >> { %v2331_v45 = vpop.f32.mrf.mxu0 }
 0x13a   : >> { %v2333_v46 = vpop.f32.mrf.mxu1 }
 0x13b   : >> { %v2335_v47 = vpop.f32.mrf.mxu0 }
 0x13c   : >> { %v2337_v48 = vpop.f32.mrf.mxu1 }
 0x13d   : >> { %v2339_v49 = vpop.f32.mrf.mxu0 }
 0x13e   : >> { %v2341_v50 = vpop.f32.mrf.mxu1 }
 0x13f   : >> { %v2343_v51 = vpop.f32.mrf.mxu0 }
 0x140   : >> { %v2345_v52 = vpop.f32.mrf.mxu1 }
 0x141   : >> { %v2347_v53 = vpop.f32.mrf.mxu0 }
 0x142   : >> { %v2349_v54 = vpop.f32.mrf.mxu1 }
 0x143   : >> { %v2351_v55 = vpop.f32.mrf.mxu0 }
 0x144   : >> { %v2353_v56 = vpop.f32.mrf.mxu1 }
 0x145   : >> { %v2355_v57 = vpop.f32.mrf.mxu0 }
 0x146   : >> { %v2357_v58 = vpop.f32.mrf.mxu1 }
 0x147   : >> { %v2359_v60 = vpop.f32.mrf.mxu0 }
 0x148   : >> { %v2361_v61 = vpop.f32.mrf.mxu1 }
 0x149   : >> { %v2363_v63 = vpop.f32.mrf.mxu0 }
 0x14a   : >> { %v2365_v0 = vpop.f32.mrf.mxu1 }
 0x14b   : >> { %v2367_v2 = vpop.f32.mrf.mxu0 }
 0x14c   : >> { %v2369_v3 = vpop.f32.mrf.mxu1 }
 0x14d   : >> { %v2371_v5 = vpop.f32.mrf.mxu0 }
 0x14e   : >> { %v2373_v6 = vpop.f32.mrf.mxu1 }
 0x14f   : >> { %v2375_v8 = vpop.f32.mrf.mxu0 }
 0x150   : >> { %2491 = vst [vmem:[#allocation4_spill] sm:$0xff] %v2375_v8  ;;  %v2377_v9 = vpop.f32.mrf.mxu1 }
 0x151   : >> { %2492 = vst [vmem:[#allocation5_spill] sm:$0xff] %v2377_v9  ;;  %v1210_v15 = vpop.f32.mrf.mxu0 }
 0x152   : >> { %v2379_v16 = vpop.f32.mrf.mxu1  ;;  %v1211_v21 = vadd.f32 %v1210_v15, %v2275_v59 }
 0x153   : >> { %2493 = vst [vmem:[#allocation6_spill] sm:$0xff] %v2379_v16  ;;  %v1212_v18 = vpop.f32.mrf.mxu0 }
 0x154   : >> { %v2381_v19 = vpop.f32.mrf.mxu1  ;;  %v1213_v22 = vadd.f32 %v1212_v18, %v2277_v62 }
 0x155   : >> { %2494 = vst [vmem:[#allocation7_spill] sm:$0xff] %v2381_v19  ;;  %v1214_v24 = vpop.f32.mrf.mxu0 }
 0x156   : >> { %v2385_v25 = vpop.f32.mrf.mxu1  ;;  %v1289_v27 = vmax.f32 %v1211_v21, %v1213_v22  ;;  %v1215_v31 = vadd.f32 %v1214_v24, %v2279_v1  ;;  %v1112_v21 = vadd.f32 %v2289_v12, %v2287_v11  ;;  %v1114_v1 = vadd.f32 %v2293_v14, %v2291_v13 }
 0x157   : >> { %v1216_v28 = vpop.f32.mrf.mxu0  ;;  %v2407_v11 = vadd.f32 %v2309_v34, %v2307_v33  ;;  %v2411_v12 = vadd.f32 %v2313_v36, %v2311_v35  ;;  %v1138_v13 = vadd.f32 %v2317_v38, %v2315_v37  ;;  %v1148_v33 = vadd.f32 %v2333_v46, %v2331_v45 }
 0x158   : >> { %v1256_v30 = vpop.f32.mrf.mxu1  ;;  %v1217_v9 = vadd.f32 %v1216_v28, %v2281_v4  ;;  %v1150_v36 = vadd.f32 %v2337_v48, %v2335_v47  ;;  %v1160_v45 = vadd.f32 %v2353_v56, %v2351_v55  ;;  %v1162_v46 = vadd.f32 %v2357_v58, %v2355_v57 }
 0x159   : >> { %v1220_v8 = vpop.f32.mrf.mxu0  ;;  %v1172_v56 = vadd.f32 %v2373_v6, %v2371_v5  ;;  %v2499_v6 = vld [vmem:[#allocation2_spill] sm:$0xff] }
 0x15a   : >> { %v2389_v32 = vpop.f32.mrf.mxu1  ;;  %v1290_v29 = vmax.f32 %v1215_v31, %v1217_v9  ;;  %v1221_v59 = vadd.f32 %v1220_v8, %v2283_v7  ;;  %v2403_v7 = vld [vmem:[%s2487_s2] ss:$0 sm:$0xff]  ;;  %v1144_v31 = vadd.f32 %v2329_v44, %v2327_v43 }
 0x15b   : >> { %2495 = vst [vmem:[#allocation8_spill] sm:$0xff] %v2389_v32  ;;  %v1222_v19 = vpop.f32.mrf.mxu0 }
 0x15c   : >> { %v1262_v16 = vpop.f32.mrf.mxu1  ;;  %v1223_v62 = vadd.f32 %v1222_v19, %v2285_v10  ;;  %v1140_v19 = vadd.f32 %v2321_v40, %v2319_v39  ;;  %v1154_v39 = vadd.f32 %v2345_v52, %v2343_v51  ;;  %v1158_v40 = vadd.f32 %v2349_v54, %v2347_v53 }
 0x15d   : >> { %v1224_v15 = vpop.f32.mrf.mxu0  ;;  %v1257_v57 = vadd.f32 %v1256_v30, %v1144_v31  ;;  %v1263_v58 = vadd.f32 %v1262_v16, %v1150_v36 }
 0x15e   : >> { %v1264_v18 = vpop.f32.mrf.mxu1  ;;  %v1291_v4 = vmax.f32 %v1221_v59, %v1223_v62  ;;  %v1225_v32 = vadd.f32 %v1224_v15, %v1112_v21 }
 0x15f   : >> { %v1226_v22 = vpop.f32.mrf.mxu0 }
 0x160   : >> { %v1266_v24 = vpop.f32.mrf.mxu1  ;;  %v1306_v28 = vmax.f32 %v1289_v27, %v1291_v4  ;;  %v1227_v9 = vadd.f32 %v1226_v22, %v1114_v1  ;;  %v1142_v27 = vadd.f32 %v2325_v42, %v2323_v41 }
 0x161   : >> { %v1230_v10 = vpop.f32.mrf.mxu0  ;;  %v1267_v48 = vadd.f32 %v1266_v24, %v1154_v39 }
 0x162   : >> { %v1270_v8 = vpop.f32.mrf.mxu1  ;;  %v1292_v14 = vmax.f32 %v1225_v32, %v1227_v9  ;;  %v1152_v32 = vadd.f32 %v2341_v50, %v2339_v49  ;;  %v1315_v37 = vadd.f32 %v2403_v7, %v1306_v28  ;;  %v1231_v41 = vadd.f32 %v1230_v10, %v2295_v17  ;;  %v2501_v9 = vld [vmem:[#allocation4_spill] sm:$0xff]  ;;  %v2502_v10 = vld [vmem:[#allocation5_spill] sm:$0xff] }
 0x163   : >> { %v1232_v34 = vpop.f32.mrf.mxu0  ;;  %v1168_v17 = vadd.f32 %v2365_v0, %v2363_v63  ;;  %v2496_v0 = vld [vmem:[#allocation6_spill] sm:$0xff]  ;;  %v1255_v21 = vadd.f32 %v2385_v25, %v1142_v27  ;;  %v1271_v31 = vadd.f32 %v1270_v8, %v1158_v40 }
 0x164   : >> { %v1272_v35 = vpop.f32.mrf.mxu1  ;;  %v1307_v38 = vmax.f32 %v1290_v29, %v1292_v14  ;;  %v1233_v42 = vadd.f32 %v1232_v34, %v2297_v20  ;;  %v1164_v29 = vadd.f32 %v2361_v61, %v2359_v60  ;;  %v1170_v20 = vadd.f32 %v2369_v3, %v2367_v2  ;;  %v2497_v3 = vld [vmem:[#allocation7_spill] sm:$0xff] }
 0x165   : >> { %v1234_v43 = vpop.f32.mrf.mxu0  ;;  %v1317_v52 = vmax.f32 %v1315_v37, 0.0  ;;  %v1265_v60 = vadd.f32 %v1264_v18, %v1152_v32  ;;  %v1251_v2 = vadd.f32 %v2496_v0, %v1138_v13  ;;  %v1253_v59 = vadd.f32 %v2497_v3, %v1140_v19  ;;  %v2500_v18 = vld [vmem:[#allocation3_spill] sm:$0xff] }
 0x166   : >> { %v1274_v44 = vpop.f32.mrf.mxu1  ;;  %v1316_v47 = vadd.f32 %v2403_v7, %v1307_v38  ;;  %v1293_v49 = vmax.f32 %v1231_v41, %v1233_v42  ;;  %v1235_v54 = vadd.f32 %v1234_v43, %v2299_v23  ;;  %v2498_v23 = vld [vmem:[#allocation8_spill] sm:$0xff]  ;;  %v1273_v4 = vadd.f32 %v1272_v35, %v1160_v45 }
 0x167   : >> { %v1236_v50 = vpop.f32.mrf.mxu0  ;;  %v1261_v1 = vadd.f32 %v2498_v23, %v1148_v33  ;;  %v1174_v13 = vadd.f32 %v2502_v10, %v2501_v9  ;;  %v1298_v14 = vmax.f32 %v1255_v21, %v1257_v57  ;;  %v1297_v33 = vmax.f32 %v1251_v2, %v1253_v59 }
 0x168   : >> { %v1276_v51 = vpop.f32.mrf.mxu1  ;;  %v1318_v53 = vmax.f32 %v1316_v47, 0.0  ;;  %v1237_v55 = vadd.f32 %v1236_v50, %v2301_v26  ;;  %v1300_v26 = vmax.f32 %v1265_v60, %v1267_v48  ;;  %v1301_v37 = vmax.f32 %v1271_v31, %v1273_v4 }
 0x169   : >> { %v1240_v61 = vpop.f32.mrf.mxu0  ;;  %v1299_v19 = vmax.f32 %v1261_v1, %v1263_v58  ;;  %v1277_v34 = vadd.f32 %v1276_v51, %v1164_v29  ;;  %v1275_v38 = vadd.f32 %v1274_v44, %v1162_v46 }
 0x16a   : >> { %v1280_v63 = vpop.f32.mrf.mxu1  ;;  %v1662_v62 = vpack.c.bf16 %v1318_v53, %v1317_v52  ;;  %v1294_v15 = vmax.f32 %v1235_v54, %v1237_v55  ;;  %v1241_v16 = vadd.f32 %v1240_v61, %v2499_v6  ;;  %v1362_v32 = vmax.f32 %v1298_v14, %v1300_v26 }
 0x16b   : >> { %v1242_v22 = vpop.f32.mrf.mxu0  ;;  %v1281_v30 = vadd.f32 %v1280_v63, %v1168_v17  ;;  %v1361_v47 = vmax.f32 %v1297_v33, %v1299_v19  ;;  %v1302_v29 = vmax.f32 %v1275_v38, %v1277_v34 }
 0x16c   : >> { %v1282_v5 = vpop.f32.mrf.mxu1  ;;  %1663 = vst [vmem:[%s1330_s30] sm:$0xff] %v1662_v62   ;;  %v1243_v24 = vadd.f32 %v1242_v22, %v2500_v18  ;;  %v1371_v50 = vadd.f32 %v2403_v7, %v1362_v32 }
 0x16d   : >> { %v1283_v28 = vadd.f32 %v1282_v5, %v1170_v20  ;;  %v1244_v25 = vpop.f32.mrf.mxu0 }
 0x16e   : >> { %v1284_v27 = vpop.f32.mrf.mxu1  ;;  %v1295_v35 = vmax.f32 %v1241_v16, %v1243_v24  ;;  %v1245_v39 = vadd.f32 %v1244_v25, %v2407_v11  ;;  %v1373_v53 = vmax.f32 %v1371_v50, 0.0 }
 0x16f   : >> { %v1303_v36 = vmax.f32 %v1281_v30, %v1283_v28  ;;  %v1246_v41 = vpop.f32.mrf.mxu0  ;;  %v1285_v45 = vadd.f32 %v1284_v27, %v1172_v56 }
 0x170   : >> { %v1286_v42 = vpop.f32.mrf.mxu1  ;;  %v1333_v43 = vmax.f32 %v1293_v49, %v1295_v35  ;;  %v1247_v8 = vadd.f32 %v1246_v41, %v2411_v12  ;;  %v1370_v12 = vadd.f32 %v2403_v7, %v1361_v47 }
 0x171   : >> { %v1287_v40 = vadd.f32 %v1286_v42, %v1174_v13  ;;  %v1389_v17 = vmax.f32 %v1301_v37, %v1303_v36 }
 0x172   : >> { %v1296_v20 = vmax.f32 %v1245_v39, %v1247_v8  ;;  %v1342_v11 = vadd.f32 %v2403_v7, %v1333_v43  ;;  %v1372_v57 = vmax.f32 %v1370_v12, 0.0 }
 0x173   : >> { %v1304_v48 = vmax.f32 %v1285_v45, %v1287_v40  ;;  %v1398_v49 = vadd.f32 %v2403_v7, %v1389_v17 }
 0x174   : >> { %v1334_v44 = vmax.f32 %v1294_v15, %v1296_v20  ;;  %v1344_v54 = vmax.f32 %v1342_v11, 0.0  ;;  %v1672_v61 = vpack.c.bf16 %v1373_v53, %v1372_v57 }
 0x175   : >> { %v1390_v46 = vmax.f32 %v1302_v29, %v1304_v48  ;;  %v1400_v58 = vmax.f32 %v1398_v49, 0.0 }
 0x176   : >> { %v1343_v51 = vadd.f32 %v2403_v7, %v1334_v44 }
 0x177   : >> { %v1399_v52 = vadd.f32 %v2403_v7, %v1390_v46 }
 0x178   : >> { %v1345_v55 = vmax.f32 %v1343_v51, 0.0 }
 0x179   : >> { %v1401_v56 = vmax.f32 %v1399_v52, 0.0 }
 0x17a   : >> { %v1667_v60 = vpack.c.bf16 %v1345_v55, %v1344_v54  ;;  %206 = sbr.rel (!%p204_p6) target bundleno = 16 (0x10), region = 74 }
 0x17b   : >> { %v1677_v63 = vpack.c.bf16 %v1401_v56, %v1400_v58 }
 0x17c   : >> { %1668 = vst [vmem:[%s1358_s17] sm:$0xff] %v1667_v60  }
 0x17d   : >> { %1673 = vst [vmem:[%s1386_s18] sm:$0xff] %v1672_v61  }
 0x17e   : >> { %1678 = vst [vmem:[%s1414_s19] sm:$0xff] %v1677_v63  }
 0x17f PF: > { %s13_s14 = sadd.s32 1, %s1931_s14   ;;  %s2503_s12 = smov %s1927_s13 }
 0x180   : > { %p10_p7 = scmp.ge.s32.totalorder %s13_s14, 4   ;;  %s2504_s13 = smov %s2506_s15 }
 0x182   :  { %12 = sbr.rel (!%p10_p7) target bundleno = 2 (0x2), region = 85 }

// kernel: attributes_network_forward.13
= control target key start
LH: loop header
LB: loop body
LE: loop exit
PB: predicated region body
PF: predicated region fallthrough
CT: control target
= control target key end

     0   :  { %s2163_s12 = smov 0   ;;  %s2165_s13 = smov 0   ;;  %s2746_s0 = inlined_call_operand.vmem [shape: bf16[1024,768], index: 0, kind: input, shape index: {}]   ;;  %s2747_s1 = inlined_call_operand.vmem [shape: bf16[768,256], index: 1, kind: input, shape index: {}]   ;;  %s2748_s2 = inlined_call_operand.vmem [shape: f32[1,128], index: 2, kind: input, shape index: {}]   ;;  %s2749_s3 = inlined_call_operand.vmem [shape: bf16[512,128], index: 3, kind: output, shape index: {}]  }
   0x1   :  { %s2167_s14 = smov 0  }
   0x2 LB: > { %s25_s15 = sadd.s32 1, %s2133_s13  ;;  %p1631_p0 = scmp.ge.s32.totalorder %s2137_s14, 1  ;;  %s2137_s14 = sphi %s2167_s14, %s13_s14   ;;  %s2133_s13 = sphi %s2165_s13, %s2765_s13   ;;  %s2129_s12 = sphi %s2163_s12, %s2764_s12  }
   0x3   : > { %p27_p1 = scmp.ge.s32.totalorder %s25_s15, 2  ;;  %p157_p2 = scmp.lt.s32.totalorder %s2137_s14, 3 }
   0x5   : > { %s2767_s15 = smov (%p27_p1, %s25_s15), 0  ;;  %p158_p3 = pnand %p1631_p0, %p157_p2 }
   0x6   : > { %s1632_s16 = sshll.u32 (!%p158_p3), %s2129_s12, 6  ;;  %s1634_s17 = sshll.u32 (!%p158_p3), %s2129_s12, 5 }
   0x7   : > { %161 = sbr.rel (%p158_p3) target bundleno = 383 (0x17f), region = 32  ;;  %p186_p4 = scmp.lt.s32.totalorder (!%p158_p3), %s1632_s16, 127 }
   0x8   : > { %p195_p5 = scmp.lt.s32.totalorder (!%p158_p3), %s1634_s17, 63  ;;  %s2191_s26 = smov (!%p158_p3), 0  }
   0xc   : > { %s2769_s16 = smov (!%p186_p4, %s1632_s16), 127  ;;  %s2771_s17 = smov (!%p195_p5, %s1634_s17), 63 }
   0xd   : > { %s1862_s18 = smul.u32 24, %s2769_s16  ;;  %s1635_s19 = sshll.u32 %s2771_s17, 2 }
   0xe   : > { %s2189_s25 = scalar_lea.vmem %s2749_s3, %s1635_s19 }
   0xf   : > { %s2184_s22 = scalar_lea.vmem %s2746_s0, %s1862_s18 }
  0x10 LB: >> { %v1895_v0 = vld [vmem:[%s2747_s1 + $0x74] ss:$8 sps:$4 sm:$0xff]   ;;  %v1899_v2 = vld [vmem:[%s2747_s1 + $0x70] ss:$8 sps:$4 sm:$0xff]   ;;  %v1901_v4 = vld [vmem:[%s2747_s1 + $0x64] ss:$8 sps:$4 sm:$0xff]   ;;  %s2141_s26 = sphi %s2191_s26, %s206_s26  }
  0x11   : >> { %v1897_v1 = vld [vmem:[%s2747_s1 + $0x174] ss:$8 sps:$4 sm:$0xff]   ;;  %1077 = vmatprep.subr.bf16.mxu0 %v1895_v0  ;;  %v1900_v3 = vld [vmem:[%s2747_s1 + $0x170] ss:$8 sps:$4 sm:$0xff]   ;;  %v1903_v5 = vld [vmem:[%s2747_s1 + $0x164] ss:$8 sps:$4 sm:$0xff]  }
  0x12   : >> { %1190 = vmatprep.subr.bf16.mxu1 %v1897_v1  ;;  %1078 = vmatpush1.bf16.msra.mxu0 %v1899_v2  ;;  %v1905_v6 = vld [vmem:[%s2747_s1 + $0x60] ss:$8 sps:$4 sm:$0xff]   ;;  %v1907_v8 = vld [vmem:[%s2747_s1 + $0x54] ss:$8 sps:$4 sm:$0xff]   ;;  %v1911_v10 = vld [vmem:[%s2747_s1 + $0x50] ss:$8 sps:$4 sm:$0xff]  }
  0x13   : >> { %1191 = vmatpush1.bf16.msra.mxu1 %v1900_v3  ;;  %1079 = vmatprep.subr.bf16.mxu0 %v1901_v4  ;;  %v1906_v7 = vld [vmem:[%s2747_s1 + $0x160] ss:$8 sps:$4 sm:$0xff]   ;;  %v1909_v9 = vld [vmem:[%s2747_s1 + $0x154] ss:$8 sps:$4 sm:$0xff]   ;;  %v1912_v11 = vld [vmem:[%s2747_s1 + $0x150] ss:$8 sps:$4 sm:$0xff]  }
  0x14   : >> { %1192 = vmatprep.subr.bf16.mxu1 %v1903_v5  ;;  %v1913_v12 = vld [vmem:[%s2747_s1 + $0x44] ss:$8 sps:$4 sm:$0xff]   ;;  %v1917_v14 = vld [vmem:[%s2747_s1 + $0x40] ss:$8 sps:$4 sm:$0xff]   ;;  %v1919_v16 = vld [vmem:[%s2747_s1 + $0x34] ss:$8 sps:$4 sm:$0xff]  }
  0x15   : >> { %v1915_v13 = vld [vmem:[%s2747_s1 + $0x144] ss:$8 sps:$4 sm:$0xff]   ;;  %v1918_v15 = vld [vmem:[%s2747_s1 + $0x140] ss:$8 sps:$4 sm:$0xff]   ;;  %v1921_v17 = vld [vmem:[%s2747_s1 + $0x134] ss:$8 sps:$4 sm:$0xff]  }
  0x16   : >> { %1080 = vmatpush1.bf16.msra.mxu0 %v1905_v6  ;;  %v1923_v18 = vld [vmem:[%s2747_s1 + $0x30] ss:$8 sps:$4 sm:$0xff]   ;;  %v1925_v20 = vld [vmem:[%s2747_s1 + $0x24] ss:$8 sps:$4 sm:$0xff]   ;;  %v1929_v22 = vld [vmem:[%s2747_s1 + $0x20] ss:$8 sps:$4 sm:$0xff]  }
  0x17   : >> { %1193 = vmatpush1.bf16.msra.mxu1 %v1906_v7  ;;  %1081 = vmatprep.subr.bf16.mxu0 %v1907_v8  ;;  %v1924_v19 = vld [vmem:[%s2747_s1 + $0x130] ss:$8 sps:$4 sm:$0xff]   ;;  %v1927_v21 = vld [vmem:[%s2747_s1 + $0x124] ss:$8 sps:$4 sm:$0xff]   ;;  %v1930_v23 = vld [vmem:[%s2747_s1 + $0x120] ss:$8 sps:$4 sm:$0xff]  }
  0x18   : >> { %1194 = vmatprep.subr.bf16.mxu1 %v1909_v9  ;;  %v1931_v24 = vld [vmem:[%s2747_s1 + $0x14] ss:$8 sps:$4 sm:$0xff]   ;;  %v1935_v26 = vld [vmem:[%s2747_s1 + $0x10] ss:$8 sps:$4 sm:$0xff]   ;;  %v1937_v28 = vld [vmem:[%s2747_s1 + $0x4] ss:$8 sps:$4 sm:$0xff]  }
  0x19   : >> { %v1933_v25 = vld [vmem:[%s2747_s1 + $0x114] ss:$8 sps:$4 sm:$0xff]   ;;  %v1936_v27 = vld [vmem:[%s2747_s1 + $0x110] ss:$8 sps:$4 sm:$0xff]   ;;  %v1939_v29 = vld [vmem:[%s2747_s1 + $0x104] ss:$8 sps:$4 sm:$0xff]  }
  0x1a   : >> { %1082 = vmatpush1.bf16.msra.mxu0 %v1911_v10  ;;  %v1941_v30 = vld [vmem:[%s2747_s1] ss:$8 sps:$4 sm:$0xff]   ;;  %v1943_v32 = vld [vmem:[%s2747_s1 + $0xf4] ss:$8 sps:$4 sm:$0xff]   ;;  %s1636_s5 = sshll.u32 %s2141_s26, 7 }
  0x1b   : >> { %1195 = vmatpush1.bf16.msra.mxu1 %v1912_v11  ;;  %1083 = vmatprep.subr.bf16.mxu0 %v1913_v12  ;;  %v1942_v31 = vld [vmem:[%s2747_s1 + $0x100] ss:$8 sps:$4 sm:$0xff]   ;;  %v1945_v33 = vld [vmem:[%s2747_s1 + $0x1f4] ss:$8 sps:$4 sm:$0xff]   ;;  %v1947_v34 = vld [vmem:[%s2747_s1 + $0xf0] ss:$8 sps:$4 sm:$0xff]  }
  0x1c   : >> { %1196 = vmatprep.subr.bf16.mxu1 %v1915_v13  ;;  %v1948_v35 = vld [vmem:[%s2747_s1 + $0x1f0] ss:$8 sps:$4 sm:$0xff]   ;;  %v1949_v36 = vld [vmem:[%s2747_s1 + $0xe4] ss:$8 sps:$4 sm:$0xff]   ;;  %s208_s17 = sshra.s32 %s1636_s5, 3 }
  0x1d   : >> { %v1951_v37 = vld [vmem:[%s2747_s1 + $0x1e4] ss:$8 sps:$4 sm:$0xff]   ;;  %v1953_v38 = vld [vmem:[%s2747_s1 + $0xe0] ss:$8 sps:$4 sm:$0xff]   ;;  %v1955_v40 = vld [vmem:[%s2747_s1 + $0xd4] ss:$8 sps:$4 sm:$0xff]  }
  0x1e   : >> { %1084 = vmatpush1.bf16.msra.mxu0 %v1917_v14  ;;  %v1954_v39 = vld [vmem:[%s2747_s1 + $0x1e0] ss:$8 sps:$4 sm:$0xff]   ;;  %s1801_s27 = smul.u32 24, %s208_s17  ;;  %v1957_v41 = vld [vmem:[%s2747_s1 + $0x1d4] ss:$8 sps:$4 sm:$0xff]  }
  0x1f   : >> { %1197 = vmatpush1.bf16.msra.mxu1 %v1918_v15  ;;  %1085 = vmatprep.subr.bf16.mxu0 %v1919_v16  ;;  %v1959_v42 = vld [vmem:[%s2747_s1 + $0xd0] ss:$8 sps:$4 sm:$0xff]   ;;  %v1961_v44 = vld [vmem:[%s2747_s1 + $0xc4] ss:$8 sps:$4 sm:$0xff]   ;;  %v1965_v46 = vld [vmem:[%s2747_s1 + $0xc0] ss:$8 sps:$4 sm:$0xff]  }
  0x20   : >> { %1198 = vmatprep.subr.bf16.mxu1 %v1921_v17  ;;  %v1960_v43 = vld [vmem:[%s2747_s1 + $0x1d0] ss:$8 sps:$4 sm:$0xff]   ;;  %s2333_s9 = scalar_lea.vmem %s2184_s22, %s1801_s27  ;;  %v1963_v45 = vld [vmem:[%s2747_s1 + $0x1c4] ss:$8 sps:$4 sm:$0xff]   ;;  %v1966_v47 = vld [vmem:[%s2747_s1 + $0x1c0] ss:$8 sps:$4 sm:$0xff]  }
  0x21   : >> { %v1967_v48 = vld [vmem:[%s2747_s1 + $0xb4] ss:$8 sps:$4 sm:$0xff]   ;;  %v1996_v51 = vld [vmem:[%s2333_s9 + $0xc] ss:$24 sps:$4 sm:$0xff]   ;;  %v1971_v52 = vld [vmem:[%s2747_s1 + $0xb0] ss:$8 sps:$4 sm:$0xff]  }
  0x22   : >> { %1086 = vmatpush1.bf16.msra.mxu0 %v1923_v18  ;;  %v1993_v49 = vld [vmem:[%s2333_s9 + $0x4] ss:$24 sps:$4 sm:$0xff]   ;;  %v1972_v53 = vld [vmem:[%s2747_s1 + $0x1b0] ss:$8 sps:$4 sm:$0xff]   ;;  %1222 = vmatprep.mubr.bf16.mxu1 %v1996_v51  ;;  %v1977_v56 = vld [vmem:[%s2747_s1 + $0xa0] ss:$8 sps:$4 sm:$0xff]  }
  0x23   : >> { %1199 = vmatpush1.bf16.msra.mxu1 %v1924_v19  ;;  %1087 = vmatprep.subr.bf16.mxu0 %v1925_v20  ;;  %v1969_v50 = vld [vmem:[%s2747_s1 + $0x1b4] ss:$8 sps:$4 sm:$0xff]   ;;  %v1973_v54 = vld [vmem:[%s2747_s1 + $0xa4] ss:$8 sps:$4 sm:$0xff]   ;;  %v1978_v57 = vld [vmem:[%s2747_s1 + $0x1a0] ss:$8 sps:$4 sm:$0xff]  }
  0x24   : >> { %1200 = vmatprep.subr.bf16.mxu1 %v1927_v21  ;;  %1109 = vmatprep.mubr.bf16.mxu0 %v1993_v49  ;;  %v1975_v55 = vld [vmem:[%s2747_s1 + $0x1a4] ss:$8 sps:$4 sm:$0xff]   ;;  %v1979_v58 = vld [vmem:[%s2747_s1 + $0x94] ss:$8 sps:$4 sm:$0xff]   ;;  %v1983_v60 = vld [vmem:[%s2747_s1 + $0x90] ss:$8 sps:$4 sm:$0xff]  }
  0x25   : >> { %v1981_v59 = vld [vmem:[%s2747_s1 + $0x194] ss:$8 sps:$4 sm:$0xff]   ;;  %v1984_v61 = vld [vmem:[%s2747_s1 + $0x190] ss:$8 sps:$4 sm:$0xff]   ;;  %v1985_v62 = vld [vmem:[%s2747_s1 + $0x84] ss:$8 sps:$4 sm:$0xff]  }
  0x26   : >> { %1088 = vmatpush1.bf16.msra.mxu0 %v1929_v22  ;;  %v1987_v63 = vld [vmem:[%s2747_s1 + $0x184] ss:$8 sps:$4 sm:$0xff]   ;;  %v1989_v0 = vld [vmem:[%s2747_s1 + $0x80] ss:$8 sps:$4 sm:$0xff]   ;;  %v1999_v2 = vld [vmem:[%s2747_s1 + $0x274] ss:$8 sps:$4 sm:$0xff]  }
  0x27   : >> { %1201 = vmatpush1.bf16.msra.mxu1 %v1930_v23  ;;  %1089 = vmatprep.subr.bf16.mxu0 %v1931_v24  ;;  %v1990_v1 = vld [vmem:[%s2747_s1 + $0x180] ss:$8 sps:$4 sm:$0xff]   ;;  %v1997_v5 = vld [vmem:[%s2747_s1 + $0x270] ss:$8 sps:$4 sm:$0xff]   ;;  %v2002_v6 = vld [vmem:[%s2747_s1 + $0x264] ss:$8 sps:$4 sm:$0xff]  }
  0x28   : >> { %1202 = vmatprep.subr.bf16.mxu1 %v1933_v25  ;;  %v1991_v3 = vld [vmem:[%s2333_s9] ss:$24 sps:$4 sm:$0xff]   ;;  %v2003_v7 = vld [vmem:[%s2333_s9 + $0x34] ss:$24 sps:$4 sm:$0xff]   ;;  %v2007_v11 = vld [vmem:[%s2333_s9 + $0x30] ss:$24 sps:$4 sm:$0xff]  }
  0x29   : >> { %v1994_v4 = vld [vmem:[%s2333_s9 + $0x8] ss:$24 sps:$4 sm:$0xff]   ;;  %v2005_v8 = vld [vmem:[%s2333_s9 + $0x3c] ss:$24 sps:$4 sm:$0xff]   ;;  %v2008_v12 = vld [vmem:[%s2333_s9 + $0x38] ss:$24 sps:$4 sm:$0xff]  }
  0x2a   : >> { %1090 = vmatpush1.bf16.msra.mxu0 %v1935_v26  ;;  %v2000_v9 = vld [vmem:[%s2747_s1 + $0x260] ss:$8 sps:$4 sm:$0xff]   ;;  %v2011_v10 = vld [vmem:[%s2747_s1 + $0x254] ss:$8 sps:$4 sm:$0xff]   ;;  %v2009_v13 = vld [vmem:[%s2747_s1 + $0x250] ss:$8 sps:$4 sm:$0xff]  }
  0x2b   : >> { %1203 = vmatpush1.bf16.msra.mxu1 %v1936_v27  ;;  %1091 = vmatprep.subr.bf16.mxu0 %v1937_v28  ;;  %v2014_v14 = vld [vmem:[%s2747_s1 + $0x244] ss:$8 sps:$4 sm:$0xff]   ;;  %v2012_v17 = vld [vmem:[%s2747_s1 + $0x240] ss:$8 sps:$4 sm:$0xff]   ;;  %v2023_v18 = vld [vmem:[%s2747_s1 + $0x234] ss:$8 sps:$4 sm:$0xff]  }
  0x2c   : >> { %1204 = vmatprep.subr.bf16.mxu1 %v1939_v29  ;;  %v2015_v15 = vld [vmem:[%s2333_s9 + $0x64] ss:$24 sps:$4 sm:$0xff]   ;;  %v2019_v19 = vld [vmem:[%s2333_s9 + $0x60] ss:$24 sps:$4 sm:$0xff]   ;;  %v2027_v23 = vld [vmem:[%s2333_s9 + $0x94] ss:$24 sps:$4 sm:$0xff]  }
  0x2d   : >> { %v2017_v16 = vld [vmem:[%s2333_s9 + $0x6c] ss:$24 sps:$4 sm:$0xff]   ;;  %v2020_v20 = vld [vmem:[%s2333_s9 + $0x68] ss:$24 sps:$4 sm:$0xff]   ;;  %v2021_v21 = vld [vmem:[%s2747_s1 + $0x230] ss:$8 sps:$4 sm:$0xff]  }
  0x2e   : >> { %1092 = vmatpush1.bf16.msra.mxu0 %v1941_v30  ;;  %v2026_v22 = vld [vmem:[%s2747_s1 + $0x224] ss:$8 sps:$4 sm:$0xff]   ;;  %v2029_v24 = vld [vmem:[%s2333_s9 + $0x9c] ss:$24 sps:$4 sm:$0xff]   ;;  %v2024_v25 = vld [vmem:[%s2747_s1 + $0x220] ss:$8 sps:$4 sm:$0xff]  }
  0x2f   : >> { %1205 = vmatpush1.bf16.msra.mxu1 %v1942_v31  ;;  %1093 = vmatprep.subr.bf16.mxu0 %v1943_v32  ;;  %v2035_v26 = vld [vmem:[%s2747_s1 + $0x214] ss:$8 sps:$4 sm:$0xff]   ;;  %v2031_v27 = vld [vmem:[%s2333_s9 + $0x90] ss:$24 sps:$4 sm:$0xff]   ;;  %v2038_v30 = vld [vmem:[%s2747_s1 + $0x204] ss:$8 sps:$4 sm:$0xff]  }
  0x30   : >> { %1206 = vmatprep.subr.bf16.mxu1 %v1945_v33  ;;  %v2032_v28 = vld [vmem:[%s2333_s9 + $0x98] ss:$24 sps:$4 sm:$0xff]   ;;  %v2039_v31 = vld [vmem:[%s2333_s9 + $0xc4] ss:$24 sps:$4 sm:$0xff]   ;;  %v2036_v33 = vld [vmem:[%s2747_s1 + $0x200] ss:$8 sps:$4 sm:$0xff]  }
  0x31   : >> { %v2033_v29 = vld [vmem:[%s2747_s1 + $0x210] ss:$8 sps:$4 sm:$0xff]   ;;  %v2041_v32 = vld [vmem:[%s2333_s9 + $0xcc] ss:$24 sps:$4 sm:$0xff]   ;;  %v2060_v49 = vld [vmem:[%s2747_s1 + $0x2c0] ss:$8 sps:$4 sm:$0xff]  }
  0x32   : >> { %1094 = vmatpush2.bf16.msra.mxu0 %v1947_v34  ;;  %v2047_v34 = vld [vmem:[%s2747_s1 + $0x2f4] ss:$8 sps:$4 sm:$0xff]   ;;  %v2067_v51 = vld [vmem:[%s2333_s9 + $0x120] ss:$24 sps:$4 sm:$0xff]  }
  0x33   : >> { %1207 = vmatpush2.bf16.msra.mxu1 %v1948_v35  ;;  %1095 = vmatprep.subr.bf16.mxu0 %v1949_v36  ;;  %v2043_v35 = vld [vmem:[%s2333_s9 + $0xc0] ss:$24 sps:$4 sm:$0xff]  }
  0x34   : >> { %1208 = vmatprep.subr.bf16.mxu1 %v1951_v37  ;;  %v2044_v36 = vld [vmem:[%s2333_s9 + $0xc8] ss:$24 sps:$4 sm:$0xff]   ;;  %v2045_v37 = vld [vmem:[%s2747_s1 + $0x2f0] ss:$8 sps:$4 sm:$0xff]  }
  0x36   : >> { %1096 = vmatpush2.bf16.msra.mxu0 %v1953_v38  ;;  %v2050_v38 = vld [vmem:[%s2747_s1 + $0x2e4] ss:$8 sps:$4 sm:$0xff]  }
  0x37   : >> { %1209 = vmatpush2.bf16.msra.mxu1 %v1954_v39  ;;  %1097 = vmatprep.subr.bf16.mxu0 %v1955_v40  ;;  %v2051_v39 = vld [vmem:[%s2333_s9 + $0xf4] ss:$24 sps:$4 sm:$0xff]  }
  0x38   : >> { %1210 = vmatprep.subr.bf16.mxu1 %v1957_v41  ;;  %v2053_v40 = vld [vmem:[%s2333_s9 + $0xfc] ss:$24 sps:$4 sm:$0xff]   ;;  %v2048_v41 = vld [vmem:[%s2747_s1 + $0x2e0] ss:$8 sps:$4 sm:$0xff]  }
  0x3a   : >> { %1098 = vmatpush2.bf16.msra.mxu0 %v1959_v42  ;;  %v2059_v42 = vld [vmem:[%s2747_s1 + $0x2d4] ss:$8 sps:$4 sm:$0xff]  }
  0x3b   : >> { %1211 = vmatpush2.bf16.msra.mxu1 %v1960_v43  ;;  %1099 = vmatprep.subr.bf16.mxu0 %v1961_v44  ;;  %v2055_v43 = vld [vmem:[%s2333_s9 + $0xf0] ss:$24 sps:$4 sm:$0xff]  }
  0x3c   : >> { %1212 = vmatprep.subr.bf16.mxu1 %v1963_v45  ;;  %v2056_v44 = vld [vmem:[%s2333_s9 + $0xf8] ss:$24 sps:$4 sm:$0xff]  }
  0x3d   : >> { %v2057_v45 = vld [vmem:[%s2747_s1 + $0x2d0] ss:$8 sps:$4 sm:$0xff]  }
  0x3e   : >> { %1100 = vmatpush2.bf16.msra.mxu0 %v1965_v46  ;;  %v2062_v46 = vld [vmem:[%s2747_s1 + $0x2c4] ss:$8 sps:$4 sm:$0xff]  }
  0x3f   : >> { %1213 = vmatpush2.bf16.msra.mxu1 %v1966_v47  ;;  %1101 = vmatprep.subr.bf16.mxu0 %v1967_v48  ;;  %v2063_v47 = vld [vmem:[%s2333_s9 + $0x124] ss:$24 sps:$4 sm:$0xff]  }
  0x40   : >> { %1214 = vmatprep.subr.bf16.mxu1 %v1969_v50  ;;  %v2065_v48 = vld [vmem:[%s2333_s9 + $0x12c] ss:$24 sps:$4 sm:$0xff]   ;;  %v2071_v50 = vld [vmem:[%s2747_s1 + $0x2b4] ss:$8 sps:$4 sm:$0xff]  }
  0x42   : >> { %1102 = vmatpush2.bf16.msra.mxu0 %v1971_v52  ;;  %v2068_v52 = vld [vmem:[%s2333_s9 + $0x128] ss:$24 sps:$4 sm:$0xff]  }
  0x43   : >> { %1215 = vmatpush2.bf16.msra.mxu1 %v1972_v53  ;;  %1103 = vmatprep.subr.bf16.mxu0 %v1973_v54  ;;  %v2069_v53 = vld [vmem:[%s2747_s1 + $0x2b0] ss:$8 sps:$4 sm:$0xff]   ;;  %v2074_v54 = vld [vmem:[%s2747_s1 + $0x2a4] ss:$8 sps:$4 sm:$0xff]  }
  0x44   : >> { %1216 = vmatprep.subr.bf16.mxu1 %v1975_v55  ;;  %v2075_v55 = vld [vmem:[%s2333_s9 + $0x154] ss:$24 sps:$4 sm:$0xff]  }
  0x46   : >> { %1104 = vmatpush2.bf16.msra.mxu0 %v1977_v56  ;;  %v2077_v56 = vld [vmem:[%s2333_s9 + $0x15c] ss:$24 sps:$4 sm:$0xff]  }
  0x47   : >> { %1217 = vmatpush2.bf16.msra.mxu1 %v1978_v57  ;;  %1105 = vmatprep.subr.bf16.mxu0 %v1979_v58  ;;  %v2072_v57 = vld [vmem:[%s2747_s1 + $0x2a0] ss:$8 sps:$4 sm:$0xff]   ;;  %v2083_v58 = vld [vmem:[%s2747_s1 + $0x294] ss:$8 sps:$4 sm:$0xff]  }
  0x48   : >> { %1218 = vmatprep.subr.bf16.mxu1 %v1981_v59  ;;  %v2079_v59 = vld [vmem:[%s2333_s9 + $0x150] ss:$24 sps:$4 sm:$0xff]  }
  0x4a   : >> { %1106 = vmatpush2.bf16.msra.mxu0 %v1983_v60  ;;  %v2080_v60 = vld [vmem:[%s2333_s9 + $0x158] ss:$24 sps:$4 sm:$0xff]  }
  0x4b   : >> { %1219 = vmatpush2.bf16.msra.mxu1 %v1984_v61  ;;  %1107 = vmatprep.subr.bf16.mxu0 %v1985_v62  ;;  %v2081_v61 = vld [vmem:[%s2747_s1 + $0x290] ss:$8 sps:$4 sm:$0xff]   ;;  %v2086_v62 = vld [vmem:[%s2747_s1 + $0x284] ss:$8 sps:$4 sm:$0xff]  }
  0x4c   : >> { %1220 = vmatprep.subr.bf16.mxu1 %v1987_v63  ;;  %v2089_v63 = vld [vmem:[%s2333_s9 + $0x14] ss:$24 sps:$4 sm:$0xff]  }
  0x4e   : >> { %1108 = vmatpush2.bf16.msra.mxu0 %v1989_v0  ;;  %v2092_v0 = vld [vmem:[%s2333_s9 + $0xd4] ss:$24 sps:$4 sm:$0xff]  }
  0x4f   : >> { %1221 = vmatpush2.bf16.msra.mxu1 %v1990_v1  ;;  %1303 = vmatprep.subr.bf16.mxu0 %v1999_v2  ;;  %v2084_v1 = vld [vmem:[%s2747_s1 + $0x280] ss:$8 sps:$4 sm:$0xff]  }
  0x50   : >> { %1830 = vmatprep.subr.bf16.mxu1 %v1999_v2  ;;  %v2087_v2 = vld [vmem:[%s2333_s9 + $0x10] ss:$24 sps:$4 sm:$0xff]  }
  0x51   : >> { %1110 = vmatmul.mubr.bf16.vlgmr.msra.gmra.mxu0 %v1991_v3  ;;  %v2090_v3 = vld [vmem:[%s2333_s9 + $0xd0] ss:$24 sps:$4 sm:$0xff]  }
  0x52   : >> { %1223 = vmatmul.mubr.bf16.vlgmr.msra.gmra.mxu1 %v1994_v4  ;;  %1304 = vmatpush1.bf16.msra.mxu0 %v1997_v5  ;;  %v2093_v4 = vld [vmem:[%s2333_s9 + $0x44] ss:$24 sps:$4 sm:$0xff]  }
  0x53   : >> { %1846 = vmatpush1.bf16.msra.mxu1 %v1997_v5  ;;  %1305 = vmatprep.subr.bf16.mxu0 %v2002_v6  ;;  %v2095_v5 = vld [vmem:[%s2333_s9 + $0x104] ss:$24 sps:$4 sm:$0xff]  }
  0x54   : >> { %1831 = vmatprep.subr.bf16.mxu1 %v2002_v6  ;;  %1119 = vmatprep.mubr.bf16.mxu0 %v2003_v7  ;;  %v2097_v6 = vld [vmem:[%s2333_s9 + $0x40] ss:$24 sps:$4 sm:$0xff]  }
  0x55   : >> { %1232 = vmatprep.mubr.bf16.mxu1 %v2005_v8  ;;  %v2098_v7 = vld [vmem:[%s2333_s9 + $0x100] ss:$24 sps:$4 sm:$0xff]   ;;  %v2099_v8 = vld [vmem:[%s2333_s9 + $0x74] ss:$24 sps:$4 sm:$0xff]  }
  0x56   : >> { %1306 = vmatpush1.bf16.msra.mxu0 %v2000_v9 }
  0x57   : >> { %1847 = vmatpush1.bf16.msra.mxu1 %v2000_v9  ;;  %1307 = vmatprep.subr.bf16.mxu0 %v2011_v10  ;;  %v2101_v9 = vld [vmem:[%s2333_s9 + $0x134] ss:$24 sps:$4 sm:$0xff]  }
  0x58   : >> { %1832 = vmatprep.subr.bf16.mxu1 %v2011_v10  ;;  %v2103_v10 = vld [vmem:[%s2333_s9 + $0x70] ss:$24 sps:$4 sm:$0xff]  }
  0x59   : >> { %1120 = vmatmul.mubr.bf16.gmra.mxu0 %v2007_v11  ;;  %v2104_v11 = vld [vmem:[%s2333_s9 + $0x130] ss:$24 sps:$4 sm:$0xff]  }
  0x5a   : >> { %1233 = vmatmul.mubr.bf16.gmra.mxu1 %v2008_v12  ;;  %1308 = vmatpush1.bf16.msra.mxu0 %v2009_v13  ;;  %v2105_v12 = vld [vmem:[%s2333_s9 + $0xa4] ss:$24 sps:$4 sm:$0xff]  }
  0x5b   : >> { %1848 = vmatpush1.bf16.msra.mxu1 %v2009_v13  ;;  %1309 = vmatprep.subr.bf16.mxu0 %v2014_v14  ;;  %v2107_v13 = vld [vmem:[%s2333_s9 + $0x164] ss:$24 sps:$4 sm:$0xff]  }
  0x5c   : >> { %1833 = vmatprep.subr.bf16.mxu1 %v2014_v14  ;;  %1129 = vmatprep.mubr.bf16.mxu0 %v2015_v15  ;;  %v2109_v14 = vld [vmem:[%s2333_s9 + $0xa0] ss:$24 sps:$4 sm:$0xff]  }
  0x5d   : >> { %1242 = vmatprep.mubr.bf16.mxu1 %v2017_v16  ;;  %v2110_v15 = vld [vmem:[%s2333_s9 + $0x160] ss:$24 sps:$4 sm:$0xff]   ;;  %s2659_s9 = sshll.u32 %s2141_s26, 6  ;;  %s206_s26 = sadd.s32 1, %s2141_s26  }
  0x5e   : >> { %1310 = vmatpush1.bf16.msra.mxu0 %v2012_v17  ;;  %s1454_s17 = sshra.s32 %s2659_s9, 3  ;;  %s1474_s20 = sadd.s32 16, %s2659_s9 }
  0x5f   : >> { %1849 = vmatpush1.bf16.msra.mxu1 %v2012_v17  ;;  %1311 = vmatprep.subr.bf16.mxu0 %v2023_v18  ;;  %s1786_s18 = sshll.u32 %s1454_s17, 2  ;;  %s1502_s21 = sadd.s32 32, %s2659_s9 }
  0x60   : >> { %1834 = vmatprep.subr.bf16.mxu1 %v2023_v18  ;;  %s1457_s19 = scalar_lea.vmem %s2189_s25, %s1786_s18  ;;  %s1530_s23 = sadd.s32 48, %s2659_s9 }
  0x61   : >> { %1130 = vmatmul.mubr.bf16.gmra.mxu0 %v2019_v19  ;;  %s1482_s24 = sshra.s32 %s1474_s20, 3  ;;  %s1510_s27 = sshra.s32 %s1502_s21, 3 }
  0x62   : >> { %1243 = vmatmul.mubr.bf16.gmra.mxu1 %v2020_v20  ;;  %1312 = vmatpush1.bf16.msra.mxu0 %v2021_v21  ;;  %s1538_s28 = sshra.s32 %s1530_s23, 3  ;;  %s1790_s29 = sshll.u32 %s1482_s24, 2 }
  0x63   : >> { %1850 = vmatpush1.bf16.msra.mxu1 %v2021_v21  ;;  %1313 = vmatprep.subr.bf16.mxu0 %v2026_v22  ;;  %s1794_s30 = sshll.u32 %s1510_s27, 2  ;;  %s1798_s4 = sshll.u32 %s1538_s28, 2 }
  0x64   : >> { %1835 = vmatprep.subr.bf16.mxu1 %v2026_v22  ;;  %1139 = vmatprep.mubr.bf16.mxu0 %v2027_v23  ;;  %s1485_s5 = scalar_lea.vmem %s2189_s25, %s1790_s29  ;;  %s1513_s6 = scalar_lea.vmem %s2189_s25, %s1794_s30 }
  0x65   : >> { %1252 = vmatprep.mubr.bf16.mxu1 %v2029_v24  ;;  %s1541_s7 = scalar_lea.vmem %s2189_s25, %s1798_s4  ;;  %p203_p6 = scmp.ge.s32.totalorder %s206_s26, 4  }
  0x66   : >> { %1314 = vmatpush1.bf16.msra.mxu0 %v2024_v25 }
  0x67   : >> { %1851 = vmatpush1.bf16.msra.mxu1 %v2024_v25  ;;  %1315 = vmatprep.subr.bf16.mxu0 %v2035_v26 }
  0x68   : >> { %1836 = vmatprep.subr.bf16.mxu1 %v2035_v26 }
  0x69   : >> { %1140 = vmatmul.mubr.bf16.gmra.mxu0 %v2031_v27 }
  0x6a   : >> { %1253 = vmatmul.mubr.bf16.gmra.mxu1 %v2032_v28  ;;  %1316 = vmatpush1.bf16.msra.mxu0 %v2033_v29 }
  0x6b   : >> { %1852 = vmatpush1.bf16.msra.mxu1 %v2033_v29  ;;  %1317 = vmatprep.subr.bf16.mxu0 %v2038_v30 }
  0x6c   : >> { %1837 = vmatprep.subr.bf16.mxu1 %v2038_v30  ;;  %1149 = vmatprep.mubr.bf16.mxu0 %v2039_v31 }
  0x6d   : >> { %1262 = vmatprep.mubr.bf16.mxu1 %v2041_v32 }
  0x6e   : >> { %1318 = vmatpush1.bf16.msra.mxu0 %v2036_v33 }
  0x6f   : >> { %1853 = vmatpush1.bf16.msra.mxu1 %v2036_v33  ;;  %1319 = vmatprep.subr.bf16.mxu0 %v2047_v34 }
  0x70   : >> { %1838 = vmatprep.subr.bf16.mxu1 %v2047_v34 }
  0x71   : >> { %1150 = vmatmul.mubr.bf16.gmra.mxu0 %v2043_v35 }
  0x72   : >> { %1263 = vmatmul.mubr.bf16.gmra.mxu1 %v2044_v36  ;;  %1320 = vmatpush2.bf16.msra.mxu0 %v2045_v37 }
  0x73   : >> { %1854 = vmatpush2.bf16.msra.mxu1 %v2045_v37  ;;  %1321 = vmatprep.subr.bf16.mxu0 %v2050_v38 }
  0x74   : >> { %1839 = vmatprep.subr.bf16.mxu1 %v2050_v38  ;;  %1159 = vmatprep.mubr.bf16.mxu0 %v2051_v39 }
  0x75   : >> { %1272 = vmatprep.mubr.bf16.mxu1 %v2053_v40 }
  0x76   : >> { %1322 = vmatpush2.bf16.msra.mxu0 %v2048_v41 }
  0x77   : >> { %1855 = vmatpush2.bf16.msra.mxu1 %v2048_v41  ;;  %1323 = vmatprep.subr.bf16.mxu0 %v2059_v42 }
  0x78   : >> { %1840 = vmatprep.subr.bf16.mxu1 %v2059_v42 }
  0x79   : >> { %1160 = vmatmul.mubr.bf16.gmra.mxu0 %v2055_v43 }
  0x7a   : >> { %1273 = vmatmul.mubr.bf16.gmra.mxu1 %v2056_v44  ;;  %1324 = vmatpush2.bf16.msra.mxu0 %v2057_v45 }
  0x7b   : >> { %1856 = vmatpush2.bf16.msra.mxu1 %v2057_v45  ;;  %1325 = vmatprep.subr.bf16.mxu0 %v2062_v46 }
  0x7c   : >> { %1841 = vmatprep.subr.bf16.mxu1 %v2062_v46  ;;  %1169 = vmatprep.mubr.bf16.mxu0 %v2063_v47 }
  0x7d   : >> { %1282 = vmatprep.mubr.bf16.mxu1 %v2065_v48 }
  0x7e   : >> { %1326 = vmatpush2.bf16.msra.mxu0 %v2060_v49 }
  0x7f   : >> { %1857 = vmatpush2.bf16.msra.mxu1 %v2060_v49  ;;  %1327 = vmatprep.subr.bf16.mxu0 %v2071_v50 }
  0x80   : >> { %1842 = vmatprep.subr.bf16.mxu1 %v2071_v50 }
  0x81   : >> { %1170 = vmatmul.mubr.bf16.gmra.mxu0 %v2067_v51 }
  0x82   : >> { %1283 = vmatmul.mubr.bf16.gmra.mxu1 %v2068_v52  ;;  %1328 = vmatpush2.bf16.msra.mxu0 %v2069_v53 }
  0x83   : >> { %1858 = vmatpush2.bf16.msra.mxu1 %v2069_v53  ;;  %1329 = vmatprep.subr.bf16.mxu0 %v2074_v54 }
  0x84   : >> { %1843 = vmatprep.subr.bf16.mxu1 %v2074_v54  ;;  %1179 = vmatprep.mubr.bf16.mxu0 %v2075_v55 }
  0x85   : >> { %1292 = vmatprep.mubr.bf16.mxu1 %v2077_v56 }
  0x86   : >> { %1330 = vmatpush2.bf16.msra.mxu0 %v2072_v57 }
  0x87   : >> { %1859 = vmatpush2.bf16.msra.mxu1 %v2072_v57  ;;  %1331 = vmatprep.subr.bf16.mxu0 %v2083_v58 }
  0x88   : >> { %1844 = vmatprep.subr.bf16.mxu1 %v2083_v58 }
  0x89   : >> { %1180 = vmatmul.mubr.bf16.gmra.mxu0 %v2079_v59 }
  0x8a   : >> { %1293 = vmatmul.mubr.bf16.gmra.mxu1 %v2080_v60  ;;  %1332 = vmatpush2.bf16.msra.mxu0 %v2081_v61 }
  0x8b   : >> { %1860 = vmatpush2.bf16.msra.mxu1 %v2081_v61  ;;  %1333 = vmatprep.subr.bf16.mxu0 %v2086_v62 }
  0x8c   : >> { %1845 = vmatprep.subr.bf16.mxu1 %v2086_v62  ;;  %1335 = vmatprep.mubr.bf16.mxu0 %v2089_v63 }
  0x8d   : >> { %1375 = vmatprep.mubr.bf16.mxu1 %v2092_v0 }
  0x8e   : >> { %1334 = vmatpush2.bf16.msra.mxu0 %v2084_v1 }
  0x8f   : >> { %1861 = vmatpush2.bf16.msra.mxu1 %v2084_v1 }
  0x91   : >> { %1336 = vmatmul.mubr.bf16.vlgmr.msra.gmra.mxu0 %v2087_v2 }
  0x92   : >> { %1376 = vmatmul.mubr.bf16.vlgmr.msra.gmra.mxu1 %v2090_v3  ;;  %1345 = vmatprep.mubr.bf16.mxu0 %v2093_v4 }
  0x93   : >> { %1385 = vmatprep.mubr.bf16.mxu1 %v2095_v5 }
  0x99   : >> { %1346 = vmatmul.mubr.bf16.gmra.mxu0 %v2097_v6 }
  0x9a   : >> { %1386 = vmatmul.mubr.bf16.gmra.mxu1 %v2098_v7  ;;  %1355 = vmatprep.mubr.bf16.mxu0 %v2099_v8 }
  0x9b   : >> { %1395 = vmatprep.mubr.bf16.mxu1 %v2101_v9 }
  0xa1   : >> { %1356 = vmatmul.mubr.bf16.gmra.mxu0 %v2103_v10 }
  0xa2   : >> { %1396 = vmatmul.mubr.bf16.gmra.mxu1 %v2104_v11  ;;  %1365 = vmatprep.mubr.bf16.mxu0 %v2105_v12 }
  0xa3   : >> { %1405 = vmatprep.mubr.bf16.mxu1 %v2107_v13 }
  0xa9   : >> { %1366 = vmatmul.mubr.bf16.gmra.mxu0 %v2109_v14 }
  0xaa   : >> { %1406 = vmatmul.mubr.bf16.gmra.mxu1 %v2110_v15 }
 0x111   : >> { %v1111_v16 = vpop.f32.mrf.mxu0 }
 0x112   : >> { %v1224_v17 = vpop.f32.mrf.mxu1 }
 0x113   : >> { %v2536_v18 = vadd.f32 %v1224_v17, %v1111_v16  ;;  %v1113_v19 = vpop.f32.mrf.mxu0 }
 0x114   : >> { %v1226_v20 = vpop.f32.mrf.mxu1 }
 0x115   : >> { %v2538_v21 = vadd.f32 %v1226_v20, %v1113_v19  ;;  %v1115_v22 = vpop.f32.mrf.mxu0 }
 0x116   : >> { %v1228_v23 = vpop.f32.mrf.mxu1 }
 0x117   : >> { %v2540_v24 = vadd.f32 %v1228_v23, %v1115_v22  ;;  %v1117_v25 = vpop.f32.mrf.mxu0 }
 0x118   : >> { %v1230_v26 = vpop.f32.mrf.mxu1 }
 0x119   : >> { %v2542_v27 = vadd.f32 %v1230_v26, %v1117_v25  ;;  %v1121_v28 = vpop.f32.mrf.mxu0 }
 0x11a   : >> { %v1234_v29 = vpop.f32.mrf.mxu1 }
 0x11b   : >> { %v2544_v30 = vadd.f32 %v1234_v29, %v1121_v28  ;;  %v1123_v31 = vpop.f32.mrf.mxu0 }
 0x11c   : >> { %v1236_v32 = vpop.f32.mrf.mxu1 }
 0x11d   : >> { %v2546_v33 = vadd.f32 %v1236_v32, %v1123_v31  ;;  %v2548_v34 = vpop.f32.mrf.mxu0 }
 0x11e   : >> { %v2550_v35 = vpop.f32.mrf.mxu1 }
 0x11f   : >> { %v2552_v36 = vpop.f32.mrf.mxu0 }
 0x120   : >> { %v2554_v37 = vpop.f32.mrf.mxu1 }
 0x121   : >> { %v1131_v38 = vpop.f32.mrf.mxu0 }
 0x122   : >> { %v1244_v39 = vpop.f32.mrf.mxu1 }
 0x123   : >> { %v2556_v40 = vadd.f32 %v1244_v39, %v1131_v38  ;;  %v1133_v41 = vpop.f32.mrf.mxu0 }
 0x124   : >> { %v1246_v42 = vpop.f32.mrf.mxu1 }
 0x125   : >> { %v2558_v43 = vadd.f32 %v1246_v42, %v1133_v41  ;;  %v1135_v44 = vpop.f32.mrf.mxu0 }
 0x126   : >> { %v1248_v45 = vpop.f32.mrf.mxu1 }
 0x127   : >> { %v2560_v46 = vadd.f32 %v1248_v45, %v1135_v44  ;;  %v1137_v47 = vpop.f32.mrf.mxu0 }
 0x128   : >> { %v1250_v48 = vpop.f32.mrf.mxu1 }
 0x129   : >> { %v2562_v49 = vadd.f32 %v1250_v48, %v1137_v47  ;;  %v1141_v50 = vpop.f32.mrf.mxu0 }
 0x12a   : >> { %v1254_v51 = vpop.f32.mrf.mxu1 }
 0x12b   : >> { %v2564_v52 = vadd.f32 %v1254_v51, %v1141_v50  ;;  %v1143_v53 = vpop.f32.mrf.mxu0 }
 0x12c   : >> { %v1256_v54 = vpop.f32.mrf.mxu1 }
 0x12d   : >> { %2750 = vst [vmem:[#allocation2_spill] sm:$0xff] %v2564_v52  ;;  %v2566_v55 = vadd.f32 %v1256_v54, %v1143_v53  ;;  %v2568_v56 = vpop.f32.mrf.mxu0 }
 0x12e   : >> { %v2570_v57 = vpop.f32.mrf.mxu1 }
 0x12f   : >> { %2751 = vst [vmem:[#allocation3_spill] sm:$0xff] %v2566_v55  ;;  %v2572_v58 = vpop.f32.mrf.mxu0 }
 0x130   : >> { %v2574_v59 = vpop.f32.mrf.mxu1 }
 0x131   : >> { %v2576_v60 = vpop.f32.mrf.mxu0 }
 0x132   : >> { %v2578_v61 = vpop.f32.mrf.mxu1 }
 0x133   : >> { %v2580_v62 = vpop.f32.mrf.mxu0 }
 0x134   : >> { %v2582_v63 = vpop.f32.mrf.mxu1 }
 0x135   : >> { %v2584_v0 = vpop.f32.mrf.mxu0 }
 0x136   : >> { %v2586_v1 = vpop.f32.mrf.mxu1 }
 0x137   : >> { %v2588_v2 = vpop.f32.mrf.mxu0 }
 0x138   : >> { %v2590_v3 = vpop.f32.mrf.mxu1 }
 0x139   : >> { %v2592_v4 = vpop.f32.mrf.mxu0 }
 0x13a   : >> { %v2594_v5 = vpop.f32.mrf.mxu1 }
 0x13b   : >> { %v2596_v6 = vpop.f32.mrf.mxu0 }
 0x13c   : >> { %v2598_v7 = vpop.f32.mrf.mxu1 }
 0x13d   : >> { %v2600_v8 = vpop.f32.mrf.mxu0 }
 0x13e   : >> { %v2602_v9 = vpop.f32.mrf.mxu1 }
 0x13f   : >> { %v2604_v10 = vpop.f32.mrf.mxu0 }
 0x140   : >> { %v2606_v11 = vpop.f32.mrf.mxu1 }
 0x141   : >> { %v2608_v12 = vpop.f32.mrf.mxu0 }
 0x142   : >> { %v2610_v13 = vpop.f32.mrf.mxu1 }
 0x143   : >> { %v2612_v14 = vpop.f32.mrf.mxu0 }
 0x144   : >> { %v2614_v15 = vpop.f32.mrf.mxu1 }
 0x145   : >> { %v2616_v16 = vpop.f32.mrf.mxu0 }
 0x146   : >> { %v2618_v17 = vpop.f32.mrf.mxu1 }
 0x147   : >> { %v2620_v19 = vpop.f32.mrf.mxu0 }
 0x148   : >> { %v2622_v20 = vpop.f32.mrf.mxu1 }
 0x149   : >> { %v2624_v22 = vpop.f32.mrf.mxu0 }
 0x14a   : >> { %v2626_v23 = vpop.f32.mrf.mxu1 }
 0x14b   : >> { %v2628_v25 = vpop.f32.mrf.mxu0 }
 0x14c   : >> { %v2630_v26 = vpop.f32.mrf.mxu1 }
 0x14d   : >> { %v2632_v28 = vpop.f32.mrf.mxu0 }
 0x14e   : >> { %v2634_v29 = vpop.f32.mrf.mxu1 }
 0x14f   : >> { %v2636_v31 = vpop.f32.mrf.mxu0 }
 0x150   : >> { %2752 = vst [vmem:[#allocation4_spill] sm:$0xff] %v2636_v31  ;;  %v2638_v32 = vpop.f32.mrf.mxu1 }
 0x151   : >> { %2753 = vst [vmem:[#allocation5_spill] sm:$0xff] %v2638_v32  ;;  %v1337_v38 = vpop.f32.mrf.mxu0 }
 0x152   : >> { %v2640_v39 = vpop.f32.mrf.mxu1  ;;  %v1338_v44 = vadd.f32 %v1337_v38, %v2536_v18 }
 0x153   : >> { %2754 = vst [vmem:[#allocation6_spill] sm:$0xff] %v2640_v39  ;;  %v1339_v41 = vpop.f32.mrf.mxu0 }
 0x154   : >> { %v2642_v42 = vpop.f32.mrf.mxu1  ;;  %v1340_v45 = vadd.f32 %v1339_v41, %v2538_v21 }
 0x155   : >> { %2755 = vst [vmem:[#allocation7_spill] sm:$0xff] %v2642_v42  ;;  %v1341_v47 = vpop.f32.mrf.mxu0 }
 0x156   : >> { %v2646_v48 = vpop.f32.mrf.mxu1  ;;  %v1416_v50 = vmax.f32 %v1338_v44, %v1340_v45  ;;  %v1342_v54 = vadd.f32 %v1341_v47, %v2540_v24  ;;  %v1239_v44 = vadd.f32 %v2550_v35, %v2548_v34  ;;  %v1241_v24 = vadd.f32 %v2554_v37, %v2552_v36 }
 0x157   : >> { %v1343_v51 = vpop.f32.mrf.mxu0  ;;  %v2668_v34 = vadd.f32 %v2570_v57, %v2568_v56  ;;  %v2672_v35 = vadd.f32 %v2574_v59, %v2572_v58  ;;  %v1265_v36 = vadd.f32 %v2578_v61, %v2576_v60  ;;  %v1275_v56 = vadd.f32 %v2594_v5, %v2592_v4 }
 0x158   : >> { %v1383_v53 = vpop.f32.mrf.mxu1  ;;  %v1344_v32 = vadd.f32 %v1343_v51, %v2542_v27  ;;  %v1277_v59 = vadd.f32 %v2598_v7, %v2596_v6  ;;  %v1287_v4 = vadd.f32 %v2614_v15, %v2612_v14  ;;  %v1289_v5 = vadd.f32 %v2618_v17, %v2616_v16 }
 0x159   : >> { %v1347_v31 = vpop.f32.mrf.mxu0  ;;  %v1299_v15 = vadd.f32 %v2634_v29, %v2632_v28  ;;  %v2760_v29 = vld [vmem:[#allocation2_spill] sm:$0xff] }
 0x15a   : >> { %v2650_v55 = vpop.f32.mrf.mxu1  ;;  %v1417_v52 = vmax.f32 %v1342_v54, %v1344_v32  ;;  %v1348_v18 = vadd.f32 %v1347_v31, %v2544_v30  ;;  %v2664_v30 = vld [vmem:[%s2748_s2] ss:$0 sm:$0xff]  ;;  %v1271_v54 = vadd.f32 %v2590_v3, %v2588_v2 }
 0x15b   : >> { %2756 = vst [vmem:[#allocation8_spill] sm:$0xff] %v2650_v55  ;;  %v1349_v42 = vpop.f32.mrf.mxu0 }
 0x15c   : >> { %v1389_v39 = vpop.f32.mrf.mxu1  ;;  %v1350_v21 = vadd.f32 %v1349_v42, %v2546_v33  ;;  %v1267_v42 = vadd.f32 %v2582_v63, %v2580_v62  ;;  %v1281_v62 = vadd.f32 %v2606_v11, %v2604_v10  ;;  %v1285_v63 = vadd.f32 %v2610_v13, %v2608_v12 }
 0x15d   : >> { %v1351_v38 = vpop.f32.mrf.mxu0  ;;  %v1384_v16 = vadd.f32 %v1383_v53, %v1271_v54  ;;  %v1390_v17 = vadd.f32 %v1389_v39, %v1277_v59 }
 0x15e   : >> { %v1391_v41 = vpop.f32.mrf.mxu1  ;;  %v1418_v27 = vmax.f32 %v1348_v18, %v1350_v21  ;;  %v1352_v55 = vadd.f32 %v1351_v38, %v1239_v44 }
 0x15f   : >> { %v1353_v45 = vpop.f32.mrf.mxu0 }
 0x160   : >> { %v1393_v47 = vpop.f32.mrf.mxu1  ;;  %v1433_v51 = vmax.f32 %v1416_v50, %v1418_v27  ;;  %v1354_v32 = vadd.f32 %v1353_v45, %v1241_v24  ;;  %v1269_v50 = vadd.f32 %v2586_v1, %v2584_v0 }
 0x161   : >> { %v1357_v33 = vpop.f32.mrf.mxu0  ;;  %v1394_v7 = vadd.f32 %v1393_v47, %v1281_v62 }
 0x162   : >> { %v1397_v31 = vpop.f32.mrf.mxu1  ;;  %v1419_v37 = vmax.f32 %v1352_v55, %v1354_v32  ;;  %v1279_v55 = vadd.f32 %v2602_v9, %v2600_v8  ;;  %v1442_v60 = vadd.f32 %v2664_v30, %v1433_v51  ;;  %v1358_v0 = vadd.f32 %v1357_v33, %v2556_v40  ;;  %v2762_v32 = vld [vmem:[#allocation4_spill] sm:$0xff]  ;;  %v2763_v33 = vld [vmem:[#allocation5_spill] sm:$0xff] }
 0x163   : >> { %v1359_v57 = vpop.f32.mrf.mxu0  ;;  %v1295_v40 = vadd.f32 %v2626_v23, %v2624_v22  ;;  %v2757_v23 = vld [vmem:[#allocation6_spill] sm:$0xff]  ;;  %v1382_v44 = vadd.f32 %v2646_v48, %v1269_v50  ;;  %v1398_v54 = vadd.f32 %v1397_v31, %v1285_v63 }
 0x164   : >> { %v1399_v58 = vpop.f32.mrf.mxu1  ;;  %v1434_v61 = vmax.f32 %v1417_v52, %v1419_v37  ;;  %v1360_v1 = vadd.f32 %v1359_v57, %v2558_v43  ;;  %v1291_v52 = vadd.f32 %v2622_v20, %v2620_v19  ;;  %v1297_v43 = vadd.f32 %v2630_v26, %v2628_v25  ;;  %v2758_v26 = vld [vmem:[#allocation7_spill] sm:$0xff] }
 0x165   : >> { %v1361_v2 = vpop.f32.mrf.mxu0  ;;  %v1444_v11 = vmax.f32 %v1442_v60, 0.0  ;;  %v1392_v19 = vadd.f32 %v1391_v41, %v1279_v55  ;;  %v1378_v25 = vadd.f32 %v2757_v23, %v1265_v36  ;;  %v1380_v18 = vadd.f32 %v2758_v26, %v1267_v42  ;;  %v2761_v41 = vld [vmem:[#allocation3_spill] sm:$0xff] }
 0x166   : >> { %v1401_v3 = vpop.f32.mrf.mxu1  ;;  %v1443_v6 = vadd.f32 %v2664_v30, %v1434_v61  ;;  %v1420_v8 = vmax.f32 %v1358_v0, %v1360_v1  ;;  %v1362_v13 = vadd.f32 %v1361_v2, %v2560_v46  ;;  %v2759_v46 = vld [vmem:[#allocation8_spill] sm:$0xff]  ;;  %v1400_v27 = vadd.f32 %v1399_v58, %v1287_v4 }
 0x167   : >> { %v1363_v9 = vpop.f32.mrf.mxu0  ;;  %v1388_v24 = vadd.f32 %v2759_v46, %v1275_v56  ;;  %v1301_v36 = vadd.f32 %v2763_v33, %v2762_v32  ;;  %v1425_v37 = vmax.f32 %v1382_v44, %v1384_v16  ;;  %v1424_v56 = vmax.f32 %v1378_v25, %v1380_v18 }
 0x168   : >> { %v1403_v10 = vpop.f32.mrf.mxu1  ;;  %v1445_v12 = vmax.f32 %v1443_v6, 0.0  ;;  %v1364_v14 = vadd.f32 %v1363_v9, %v2562_v49  ;;  %v1427_v49 = vmax.f32 %v1392_v19, %v1394_v7  ;;  %v1428_v60 = vmax.f32 %v1398_v54, %v1400_v27 }
 0x169   : >> { %v1367_v20 = vpop.f32.mrf.mxu0  ;;  %v1426_v42 = vmax.f32 %v1388_v24, %v1390_v17  ;;  %v1404_v57 = vadd.f32 %v1403_v10, %v1291_v52  ;;  %v1402_v61 = vadd.f32 %v1401_v3, %v1289_v5 }
 0x16a   : >> { %v1407_v22 = vpop.f32.mrf.mxu1  ;;  %v1813_v21 = vpack.c.bf16 %v1445_v12, %v1444_v11  ;;  %v1421_v38 = vmax.f32 %v1362_v13, %v1364_v14  ;;  %v1368_v39 = vadd.f32 %v1367_v20, %v2760_v29  ;;  %v1489_v55 = vmax.f32 %v1425_v37, %v1427_v49 }
 0x16b   : >> { %v1369_v45 = vpop.f32.mrf.mxu0  ;;  %v1408_v53 = vadd.f32 %v1407_v22, %v1295_v40  ;;  %v1488_v6 = vmax.f32 %v1424_v56, %v1426_v42  ;;  %v1429_v52 = vmax.f32 %v1402_v61, %v1404_v57 }
 0x16c   : >> { %v1409_v28 = vpop.f32.mrf.mxu1  ;;  %1814 = vst [vmem:[%s1457_s19] sm:$0xff] %v1813_v21   ;;  %v1370_v47 = vadd.f32 %v1369_v45, %v2761_v41  ;;  %v1498_v9 = vadd.f32 %v2664_v30, %v1489_v55 }
 0x16d   : >> { %v1410_v51 = vadd.f32 %v1409_v28, %v1297_v43  ;;  %v1371_v48 = vpop.f32.mrf.mxu0 }
 0x16e   : >> { %v1411_v50 = vpop.f32.mrf.mxu1  ;;  %v1422_v58 = vmax.f32 %v1368_v39, %v1370_v47  ;;  %v1372_v62 = vadd.f32 %v1371_v48, %v2668_v34  ;;  %v1500_v12 = vmax.f32 %v1498_v9, 0.0 }
 0x16f   : >> { %v1430_v59 = vmax.f32 %v1408_v53, %v1410_v51  ;;  %v1373_v0 = vpop.f32.mrf.mxu0  ;;  %v1412_v4 = vadd.f32 %v1411_v50, %v1299_v15 }
 0x170   : >> { %v1413_v1 = vpop.f32.mrf.mxu1  ;;  %v1460_v2 = vmax.f32 %v1420_v8, %v1422_v58  ;;  %v1374_v31 = vadd.f32 %v1373_v0, %v2672_v35  ;;  %v1497_v35 = vadd.f32 %v2664_v30, %v1488_v6 }
 0x171   : >> { %v1414_v63 = vadd.f32 %v1413_v1, %v1301_v36  ;;  %v1516_v40 = vmax.f32 %v1428_v60, %v1430_v59 }
 0x172   : >> { %v1423_v43 = vmax.f32 %v1372_v62, %v1374_v31  ;;  %v1469_v34 = vadd.f32 %v2664_v30, %v1460_v2  ;;  %v1499_v16 = vmax.f32 %v1497_v35, 0.0 }
 0x173   : >> { %v1431_v7 = vmax.f32 %v1412_v4, %v1414_v63  ;;  %v1525_v8 = vadd.f32 %v2664_v30, %v1516_v40 }
 0x174   : >> { %v1461_v3 = vmax.f32 %v1421_v38, %v1423_v43  ;;  %v1471_v13 = vmax.f32 %v1469_v34, 0.0  ;;  %v1823_v20 = vpack.c.bf16 %v1500_v12, %v1499_v16 }
 0x175   : >> { %v1517_v5 = vmax.f32 %v1429_v52, %v1431_v7  ;;  %v1527_v17 = vmax.f32 %v1525_v8, 0.0 }
 0x176   : >> { %v1470_v10 = vadd.f32 %v2664_v30, %v1461_v3 }
 0x177   : >> { %v1526_v11 = vadd.f32 %v2664_v30, %v1517_v5 }
 0x178   : >> { %v1472_v14 = vmax.f32 %v1470_v10, 0.0 }
 0x179   : >> { %v1528_v15 = vmax.f32 %v1526_v11, 0.0 }
 0x17a   : >> { %v1818_v19 = vpack.c.bf16 %v1472_v14, %v1471_v13  ;;  %205 = sbr.rel (!%p203_p6) target bundleno = 16 (0x10), region = 74 }
 0x17b   : >> { %v1828_v22 = vpack.c.bf16 %v1528_v15, %v1527_v17 }
 0x17c   : >> { %1819 = vst [vmem:[%s1485_s5] sm:$0xff] %v1818_v19  }
 0x17d   : >> { %1824 = vst [vmem:[%s1513_s6] sm:$0xff] %v1823_v20  }
 0x17e   : >> { %1829 = vst [vmem:[%s1541_s7] sm:$0xff] %v1828_v22  }
 0x17f PF: > { %s13_s14 = sadd.s32 1, %s2137_s14   ;;  %s2764_s12 = smov %s2133_s13 }
 0x180   : > { %p10_p7 = scmp.ge.s32.totalorder %s13_s14, 4   ;;  %s2765_s13 = smov %s2767_s15 }
 0x182   :  { %12 = sbr.rel (!%p10_p7) target bundleno = 2 (0x2), region = 85 }

// kernel: attributes_network_forward.14
= control target key start
LH: loop header
LB: loop body
LE: loop exit
PB: predicated region body
PF: predicated region fallthrough
CT: control target
= control target key end

     0   :  { %s5166_s12 = smov 0   ;;  %s5168_s13 = smov 0   ;;  %s6787_s0 = inlined_call_operand.vmem [shape: bf16[256,1536], index: 0, kind: input, shape index: {}]   ;;  %s6788_s1 = inlined_call_operand.vmem [shape: bf16[1536,512], index: 1, kind: input, shape index: {}]   ;;  %s6789_s2 = inlined_call_operand.vmem [shape: f32[1,256], index: 2, kind: input, shape index: {}]   ;;  %s6790_s3 = inlined_call_operand.vmem [shape: bf16[128,256], index: 3, kind: output, shape index: {}]  }
   0x1   :  { %s5170_s14 = smov 0  }
   0x2 LB: > { %s25_s15 = sadd.s32 1, %s5136_s13  ;;  %p3920_p0 = scmp.ge.s32.totalorder %s5140_s14, 1  ;;  %s5140_s14 = sphi %s5170_s14, %s13_s14   ;;  %s5136_s13 = sphi %s5168_s13, %s6848_s13   ;;  %s5132_s12 = sphi %s5166_s12, %s6847_s12  }
   0x3   : > { %p27_p1 = scmp.ge.s32.totalorder %s25_s15, 2  ;;  %p157_p2 = scmp.lt.s32.totalorder %s5140_s14, 3 }
   0x5   : > { %s6850_s15 = smov (%p27_p1, %s25_s15), 0  ;;  %p158_p3 = pnand %p3920_p0, %p157_p2 }
   0x6   : > { %s3921_s16 = sshll.u32 (!%p158_p3), %s5132_s12, 4  ;;  %s3923_s17 = sshll.u32 (!%p158_p3), %s5132_s12, 3 }
   0x7   : > { %161 = sbr.rel (%p158_p3) target bundleno = 639 (0x27f), region = 32  ;;  %p187_p4 = scmp.lt.s32.totalorder (!%p158_p3), %s3921_s16, 31 }
   0x8   : > { %p196_p5 = scmp.lt.s32.totalorder (!%p158_p3), %s3923_s17, 15  ;;  %s5194_s26 = smov (!%p158_p3), 0  }
   0xc   : > { %s6852_s16 = smov (!%p187_p4, %s3921_s16), 31  ;;  %s6854_s17 = smov (!%p196_p5, %s3923_s17), 15 }
   0xd   : > { %s4385_s18 = smul.u32 48, %s6852_s16  ;;  %s4375_s19 = sshll.u32 %s6854_s17, 3 }
   0xe   : > { %s5192_s25 = scalar_lea.vmem %s6790_s3, %s4375_s19 }
   0xf   : > { %s5187_s22 = scalar_lea.vmem %s6787_s0, %s4385_s18 }
  0x10 LB: >> { %v4418_v0 = vld [vmem:[%s6788_s1 + $0xe4] ss:$16 sps:$4 sm:$0xff]   ;;  %v4422_v2 = vld [vmem:[%s6788_s1 + $0xe0] ss:$16 sps:$4 sm:$0xff]   ;;  %s3926_s5 = sshll.u32 %s5144_s26, 6  ;;  %s6719_s11 = sshll.u32 %s5144_s26, 5  ;;  %s5144_s26 = sphi %s5194_s26, %s208_s26  }
  0x11   : >> { %v4420_v1 = vld [vmem:[%s6788_s1 + $0x2e4] ss:$16 sps:$4 sm:$0xff]   ;;  %2807 = vmatprep.subr.bf16.mxu0 %v4418_v0  ;;  %v4423_v3 = vld [vmem:[%s6788_s1 + $0x2e0] ss:$16 sps:$4 sm:$0xff]   ;;  %s210_s17 = sshra.s32 %s3926_s5, 3  ;;  %s3752_s12 = sadd.s32 8, %s6719_s11 }
  0x12   : >> { %2880 = vmatprep.subr.bf16.mxu1 %v4420_v1  ;;  %v4424_v4 = vld [vmem:[%s6788_s1 + $0xc4] ss:$16 sps:$4 sm:$0xff]   ;;  %2808 = vmatpush1.bf16.msra.mxu0 %v4422_v2  ;;  %v4428_v6 = vld [vmem:[%s6788_s1 + $0xc0] ss:$16 sps:$4 sm:$0xff]   ;;  %s4376_s27 = smul.u32 48, %s210_s17  ;;  %s3730_s16 = scalar_lea.vmem %s5192_s25, %s6719_s11 }
  0x13   : >> { %2881 = vmatpush1.bf16.msra.mxu1 %v4423_v3  ;;  %v4426_v5 = vld [vmem:[%s6788_s1 + $0x2c4] ss:$16 sps:$4 sm:$0xff]   ;;  %2809 = vmatprep.subr.bf16.mxu0 %v4424_v4  ;;  %v4429_v7 = vld [vmem:[%s6788_s1 + $0x2c0] ss:$16 sps:$4 sm:$0xff]   ;;  %s6741_s17 = sshra.s32 %s3752_s12, 3  ;;  %s3785_s21 = sadd.s32 16, %s6719_s11 }
  0x14   : >> { %2882 = vmatprep.subr.bf16.mxu1 %v4426_v5  ;;  %v4430_v8 = vld [vmem:[%s6788_s1 + $0xa4] ss:$16 sps:$4 sm:$0xff]   ;;  %v4434_v10 = vld [vmem:[%s6788_s1 + $0xa0] ss:$16 sps:$4 sm:$0xff]   ;;  %s5336_s9 = scalar_lea.vmem %s5187_s22, %s4376_s27  ;;  %s4380_s20 = sshll.u32 %s6741_s17, 3 }
  0x15   : >> { %v4432_v9 = vld [vmem:[%s6788_s1 + $0x2a4] ss:$16 sps:$4 sm:$0xff]   ;;  %v4435_v11 = vld [vmem:[%s6788_s1 + $0x2a0] ss:$16 sps:$4 sm:$0xff]   ;;  %v4519_v51 = vld [vmem:[%s5336_s9 + $0xc] ss:$48 sps:$4 sm:$0xff]   ;;  %s3763_s23 = scalar_lea.vmem %s5192_s25, %s4380_s20 }
  0x16   : >> { %2810 = vmatpush1.bf16.msra.mxu0 %v4428_v6  ;;  %v4436_v12 = vld [vmem:[%s6788_s1 + $0x84] ss:$16 sps:$4 sm:$0xff]   ;;  %v4440_v14 = vld [vmem:[%s6788_s1 + $0x80] ss:$16 sps:$4 sm:$0xff]   ;;  %2912 = vmatprep.mubr.bf16.mxu1 %v4519_v51  ;;  %v4517_v5 = vld [vmem:[%s5336_s9 + $0x8] ss:$48 sps:$4 sm:$0xff]  }
  0x17   : >> { %2883 = vmatpush1.bf16.msra.mxu1 %v4429_v7  ;;  %2811 = vmatprep.subr.bf16.mxu0 %v4430_v8  ;;  %v4438_v13 = vld [vmem:[%s6788_s1 + $0x284] ss:$16 sps:$4 sm:$0xff]   ;;  %v4441_v15 = vld [vmem:[%s6788_s1 + $0x280] ss:$16 sps:$4 sm:$0xff]   ;;  %s3792_s24 = sshra.s32 %s3785_s21, 3  ;;  %s3818_s30 = sadd.s32 24, %s6719_s11 }
  0x18   : >> { %2884 = vmatprep.subr.bf16.mxu1 %v4432_v9  ;;  %v4442_v16 = vld [vmem:[%s6788_s1 + $0x64] ss:$16 sps:$4 sm:$0xff]   ;;  %v4446_v18 = vld [vmem:[%s6788_s1 + $0x60] ss:$16 sps:$4 sm:$0xff]   ;;  %s4382_s29 = sshll.u32 %s3792_s24, 3  ;;  %s3825_s5 = sshra.s32 %s3818_s30, 3 }
  0x19   : >> { %v4444_v17 = vld [vmem:[%s6788_s1 + $0x264] ss:$16 sps:$4 sm:$0xff]   ;;  %v4447_v19 = vld [vmem:[%s6788_s1 + $0x260] ss:$16 sps:$4 sm:$0xff]   ;;  %s3796_s4 = scalar_lea.vmem %s5192_s25, %s4382_s29  ;;  %s4384_s6 = sshll.u32 %s3825_s5, 3 }
  0x1a   : >> { %2812 = vmatpush1.bf16.msra.mxu0 %v4434_v10  ;;  %v4448_v20 = vld [vmem:[%s6788_s1 + $0x44] ss:$16 sps:$4 sm:$0xff]   ;;  %v4452_v22 = vld [vmem:[%s6788_s1 + $0x40] ss:$16 sps:$4 sm:$0xff]   ;;  %s208_s26 = sadd.s32 1, %s5144_s26  }
  0x1b   : >> { %2885 = vmatpush1.bf16.msra.mxu1 %v4435_v11  ;;  %2813 = vmatprep.subr.bf16.mxu0 %v4436_v12  ;;  %v4450_v21 = vld [vmem:[%s6788_s1 + $0x244] ss:$16 sps:$4 sm:$0xff]   ;;  %v4453_v23 = vld [vmem:[%s6788_s1 + $0x240] ss:$16 sps:$4 sm:$0xff]   ;;  %p205_p6 = scmp.ge.s32.totalorder %s208_s26, 2  }
  0x1c   : >> { %2886 = vmatprep.subr.bf16.mxu1 %v4438_v13  ;;  %v4454_v24 = vld [vmem:[%s6788_s1 + $0x24] ss:$16 sps:$4 sm:$0xff]   ;;  %v4458_v26 = vld [vmem:[%s6788_s1 + $0x20] ss:$16 sps:$4 sm:$0xff]  }
  0x1d   : >> { %v4456_v25 = vld [vmem:[%s6788_s1 + $0x224] ss:$16 sps:$4 sm:$0xff]   ;;  %v4459_v27 = vld [vmem:[%s6788_s1 + $0x220] ss:$16 sps:$4 sm:$0xff]  }
  0x1e   : >> { %2814 = vmatpush1.bf16.msra.mxu0 %v4440_v14  ;;  %v4460_v28 = vld [vmem:[%s6788_s1 + $0x4] ss:$16 sps:$4 sm:$0xff]   ;;  %v4464_v30 = vld [vmem:[%s6788_s1] ss:$16 sps:$4 sm:$0xff]  }
  0x1f   : >> { %2887 = vmatpush1.bf16.msra.mxu1 %v4441_v15  ;;  %2815 = vmatprep.subr.bf16.mxu0 %v4442_v16  ;;  %v4462_v29 = vld [vmem:[%s6788_s1 + $0x204] ss:$16 sps:$4 sm:$0xff]   ;;  %v4465_v31 = vld [vmem:[%s6788_s1 + $0x200] ss:$16 sps:$4 sm:$0xff]  }
  0x20   : >> { %2888 = vmatprep.subr.bf16.mxu1 %v4444_v17  ;;  %v4466_v32 = vld [vmem:[%s6788_s1 + $0x1e4] ss:$16 sps:$4 sm:$0xff]   ;;  %v4470_v34 = vld [vmem:[%s6788_s1 + $0x1e0] ss:$16 sps:$4 sm:$0xff]   ;;  %v4576_v17 = vld [vmem:[%s5336_s9 + $0x6c] ss:$48 sps:$4 sm:$0xff]  }
  0x21   : >> { %v4468_v33 = vld [vmem:[%s6788_s1 + $0x3e4] ss:$16 sps:$4 sm:$0xff]   ;;  %v4471_v35 = vld [vmem:[%s6788_s1 + $0x3e0] ss:$16 sps:$4 sm:$0xff]  }
  0x22   : >> { %2816 = vmatpush1.bf16.msra.mxu0 %v4446_v18  ;;  %v4472_v36 = vld [vmem:[%s6788_s1 + $0x1c4] ss:$16 sps:$4 sm:$0xff]   ;;  %v4476_v38 = vld [vmem:[%s6788_s1 + $0x1c0] ss:$16 sps:$4 sm:$0xff]  }
  0x23   : >> { %2889 = vmatpush1.bf16.msra.mxu1 %v4447_v19  ;;  %2817 = vmatprep.subr.bf16.mxu0 %v4448_v20  ;;  %v4474_v37 = vld [vmem:[%s6788_s1 + $0x3c4] ss:$16 sps:$4 sm:$0xff]   ;;  %v4477_v39 = vld [vmem:[%s6788_s1 + $0x3c0] ss:$16 sps:$4 sm:$0xff]   ;;  %v4579_v19 = vld [vmem:[%s5336_s9 + $0x68] ss:$48 sps:$4 sm:$0xff]  }
  0x24   : >> { %2890 = vmatprep.subr.bf16.mxu1 %v4450_v21  ;;  %v4478_v40 = vld [vmem:[%s6788_s1 + $0x1a4] ss:$16 sps:$4 sm:$0xff]   ;;  %v4482_v42 = vld [vmem:[%s6788_s1 + $0x1a0] ss:$16 sps:$4 sm:$0xff]  }
  0x25   : >> { %v4480_v41 = vld [vmem:[%s6788_s1 + $0x3a4] ss:$16 sps:$4 sm:$0xff]   ;;  %v4483_v43 = vld [vmem:[%s6788_s1 + $0x3a0] ss:$16 sps:$4 sm:$0xff]  }
  0x26   : >> { %2818 = vmatpush1.bf16.msra.mxu0 %v4452_v22  ;;  %v4484_v44 = vld [vmem:[%s6788_s1 + $0x184] ss:$16 sps:$4 sm:$0xff]   ;;  %v4488_v46 = vld [vmem:[%s6788_s1 + $0x180] ss:$16 sps:$4 sm:$0xff]  }
  0x27   : >> { %2891 = vmatpush1.bf16.msra.mxu1 %v4453_v23  ;;  %2819 = vmatprep.subr.bf16.mxu0 %v4454_v24  ;;  %v4486_v45 = vld [vmem:[%s6788_s1 + $0x384] ss:$16 sps:$4 sm:$0xff]   ;;  %v4489_v47 = vld [vmem:[%s6788_s1 + $0x380] ss:$16 sps:$4 sm:$0xff]  }
  0x28   : >> { %2892 = vmatprep.subr.bf16.mxu1 %v4456_v25  ;;  %v4490_v48 = vld [vmem:[%s6788_s1 + $0x164] ss:$16 sps:$4 sm:$0xff]   ;;  %v4494_v52 = vld [vmem:[%s6788_s1 + $0x160] ss:$16 sps:$4 sm:$0xff]  }
  0x29   : >> { %v4516_v49 = vld [vmem:[%s5336_s9 + $0x4] ss:$48 sps:$4 sm:$0xff]   ;;  %v4495_v53 = vld [vmem:[%s6788_s1 + $0x360] ss:$16 sps:$4 sm:$0xff]  }
  0x2a   : >> { %2820 = vmatpush1.bf16.msra.mxu0 %v4458_v26  ;;  %v4492_v50 = vld [vmem:[%s6788_s1 + $0x364] ss:$16 sps:$4 sm:$0xff]   ;;  %2839 = vmatprep.mubr.bf16.mxu0 %v4516_v49  ;;  %v4500_v56 = vld [vmem:[%s6788_s1 + $0x140] ss:$16 sps:$4 sm:$0xff]  }
  0x2b   : >> { %2893 = vmatpush1.bf16.msra.mxu1 %v4459_v27  ;;  %2821 = vmatprep.subr.bf16.mxu0 %v4460_v28  ;;  %v4496_v54 = vld [vmem:[%s6788_s1 + $0x144] ss:$16 sps:$4 sm:$0xff]   ;;  %v4501_v57 = vld [vmem:[%s6788_s1 + $0x340] ss:$16 sps:$4 sm:$0xff]  }
  0x2c   : >> { %2894 = vmatprep.subr.bf16.mxu1 %v4462_v29  ;;  %v4498_v55 = vld [vmem:[%s6788_s1 + $0x344] ss:$16 sps:$4 sm:$0xff]   ;;  %v4506_v60 = vld [vmem:[%s6788_s1 + $0x120] ss:$16 sps:$4 sm:$0xff]   ;;  %v4594_v29 = vld [vmem:[%s5336_s9 + $0xcc] ss:$48 sps:$4 sm:$0xff]  }
  0x2d   : >> { %v4502_v58 = vld [vmem:[%s6788_s1 + $0x124] ss:$16 sps:$4 sm:$0xff]   ;;  %v4507_v61 = vld [vmem:[%s6788_s1 + $0x320] ss:$16 sps:$4 sm:$0xff]  }
  0x2e   : >> { %2822 = vmatpush1.bf16.msra.mxu0 %v4464_v30  ;;  %v4504_v59 = vld [vmem:[%s6788_s1 + $0x324] ss:$16 sps:$4 sm:$0xff]   ;;  %v4512_v0 = vld [vmem:[%s6788_s1 + $0x100] ss:$16 sps:$4 sm:$0xff]  }
  0x2f   : >> { %2895 = vmatpush1.bf16.msra.mxu1 %v4465_v31  ;;  %2823 = vmatprep.subr.bf16.mxu0 %v4466_v32  ;;  %v4508_v62 = vld [vmem:[%s6788_s1 + $0x104] ss:$16 sps:$4 sm:$0xff]   ;;  %v4513_v1 = vld [vmem:[%s6788_s1 + $0x300] ss:$16 sps:$4 sm:$0xff]   ;;  %v4597_v31 = vld [vmem:[%s5336_s9 + $0xc8] ss:$48 sps:$4 sm:$0xff]  }
  0x30   : >> { %2896 = vmatprep.subr.bf16.mxu1 %v4468_v33  ;;  %v4510_v63 = vld [vmem:[%s6788_s1 + $0x304] ss:$16 sps:$4 sm:$0xff]   ;;  %v4514_v4 = vld [vmem:[%s5336_s9] ss:$48 sps:$4 sm:$0xff]  }
  0x31   : >> { %v4522_v2 = vld [vmem:[%s6788_s1 + $0x4e4] ss:$16 sps:$4 sm:$0xff]   ;;  %v4520_v6 = vld [vmem:[%s6788_s1 + $0x4e0] ss:$16 sps:$4 sm:$0xff]  }
  0x32   : >> { %2824 = vmatpush2.bf16.msra.mxu0 %v4470_v34  ;;  %v4525_v3 = vld [vmem:[%s6788_s1 + $0x6e4] ss:$16 sps:$4 sm:$0xff]   ;;  %v4523_v7 = vld [vmem:[%s6788_s1 + $0x6e0] ss:$16 sps:$4 sm:$0xff]  }
  0x33   : >> { %2897 = vmatpush2.bf16.msra.mxu1 %v4471_v35  ;;  %2825 = vmatprep.subr.bf16.mxu0 %v4472_v36  ;;  %v4528_v8 = vld [vmem:[%s6788_s1 + $0x4c4] ss:$16 sps:$4 sm:$0xff]   ;;  %v4526_v10 = vld [vmem:[%s6788_s1 + $0x4c0] ss:$16 sps:$4 sm:$0xff]  }
  0x34   : >> { %2898 = vmatprep.subr.bf16.mxu1 %v4474_v37  ;;  %v4531_v9 = vld [vmem:[%s6788_s1 + $0x6c4] ss:$16 sps:$4 sm:$0xff]   ;;  %v4529_v11 = vld [vmem:[%s6788_s1 + $0x6c0] ss:$16 sps:$4 sm:$0xff]  }
  0x35   : >> { %v4534_v12 = vld [vmem:[%s6788_s1 + $0x4a4] ss:$16 sps:$4 sm:$0xff]   ;;  %v4532_v14 = vld [vmem:[%s6788_s1 + $0x4a0] ss:$16 sps:$4 sm:$0xff]  }
  0x36   : >> { %2826 = vmatpush2.bf16.msra.mxu0 %v4476_v38  ;;  %v4537_v13 = vld [vmem:[%s6788_s1 + $0x6a4] ss:$16 sps:$4 sm:$0xff]   ;;  %v4535_v15 = vld [vmem:[%s6788_s1 + $0x6a0] ss:$16 sps:$4 sm:$0xff]  }
  0x37   : >> { %2899 = vmatpush2.bf16.msra.mxu1 %v4477_v39  ;;  %2827 = vmatprep.subr.bf16.mxu0 %v4478_v40  ;;  %v4574_v16 = vld [vmem:[%s5336_s9 + $0x64] ss:$48 sps:$4 sm:$0xff]   ;;  %v4578_v18 = vld [vmem:[%s5336_s9 + $0x60] ss:$48 sps:$4 sm:$0xff]  }
  0x38   : >> { %2900 = vmatprep.subr.bf16.mxu1 %v4480_v41  ;;  %v4540_v20 = vld [vmem:[%s6788_s1 + $0x484] ss:$16 sps:$4 sm:$0xff]   ;;  %v4538_v22 = vld [vmem:[%s6788_s1 + $0x480] ss:$16 sps:$4 sm:$0xff]   ;;  %v4612_v41 = vld [vmem:[%s5336_s9 + $0x12c] ss:$48 sps:$4 sm:$0xff]  }
  0x39   : >> { %v4543_v21 = vld [vmem:[%s6788_s1 + $0x684] ss:$16 sps:$4 sm:$0xff]   ;;  %v4541_v23 = vld [vmem:[%s6788_s1 + $0x680] ss:$16 sps:$4 sm:$0xff]  }
  0x3a   : >> { %2828 = vmatpush2.bf16.msra.mxu0 %v4482_v42  ;;  %v4546_v24 = vld [vmem:[%s6788_s1 + $0x464] ss:$16 sps:$4 sm:$0xff]   ;;  %v4544_v26 = vld [vmem:[%s6788_s1 + $0x460] ss:$16 sps:$4 sm:$0xff]  }
  0x3b   : >> { %2901 = vmatpush2.bf16.msra.mxu1 %v4483_v43  ;;  %2829 = vmatprep.subr.bf16.mxu0 %v4484_v44  ;;  %v4549_v25 = vld [vmem:[%s6788_s1 + $0x664] ss:$16 sps:$4 sm:$0xff]   ;;  %v4547_v27 = vld [vmem:[%s6788_s1 + $0x660] ss:$16 sps:$4 sm:$0xff]   ;;  %v4615_v43 = vld [vmem:[%s5336_s9 + $0x128] ss:$48 sps:$4 sm:$0xff]  }
  0x3c   : >> { %2902 = vmatprep.subr.bf16.mxu1 %v4486_v45  ;;  %v4592_v28 = vld [vmem:[%s5336_s9 + $0xc4] ss:$48 sps:$4 sm:$0xff]   ;;  %v4596_v30 = vld [vmem:[%s5336_s9 + $0xc0] ss:$48 sps:$4 sm:$0xff]  }
  0x3d   : >> { %v4552_v32 = vld [vmem:[%s6788_s1 + $0x444] ss:$16 sps:$4 sm:$0xff]   ;;  %v4550_v34 = vld [vmem:[%s6788_s1 + $0x440] ss:$16 sps:$4 sm:$0xff]  }
  0x3e   : >> { %2830 = vmatpush2.bf16.msra.mxu0 %v4488_v46  ;;  %v4555_v33 = vld [vmem:[%s6788_s1 + $0x644] ss:$16 sps:$4 sm:$0xff]   ;;  %v4553_v35 = vld [vmem:[%s6788_s1 + $0x640] ss:$16 sps:$4 sm:$0xff]  }
  0x3f   : >> { %2903 = vmatpush2.bf16.msra.mxu1 %v4489_v47  ;;  %2831 = vmatprep.subr.bf16.mxu0 %v4490_v48  ;;  %v4558_v36 = vld [vmem:[%s6788_s1 + $0x424] ss:$16 sps:$4 sm:$0xff]   ;;  %v4556_v38 = vld [vmem:[%s6788_s1 + $0x420] ss:$16 sps:$4 sm:$0xff]  }
  0x40   : >> { %2904 = vmatprep.subr.bf16.mxu1 %v4492_v50  ;;  %v4561_v37 = vld [vmem:[%s6788_s1 + $0x624] ss:$16 sps:$4 sm:$0xff]   ;;  %v4559_v39 = vld [vmem:[%s6788_s1 + $0x620] ss:$16 sps:$4 sm:$0xff]  }
  0x41   : >> { %v4610_v40 = vld [vmem:[%s5336_s9 + $0x124] ss:$48 sps:$4 sm:$0xff]   ;;  %v4614_v42 = vld [vmem:[%s5336_s9 + $0x120] ss:$48 sps:$4 sm:$0xff]  }
  0x42   : >> { %2832 = vmatpush2.bf16.msra.mxu0 %v4494_v52  ;;  %v4564_v44 = vld [vmem:[%s6788_s1 + $0x404] ss:$16 sps:$4 sm:$0xff]   ;;  %v4562_v46 = vld [vmem:[%s6788_s1 + $0x400] ss:$16 sps:$4 sm:$0xff]  }
  0x43   : >> { %2905 = vmatpush2.bf16.msra.mxu1 %v4495_v53  ;;  %2833 = vmatprep.subr.bf16.mxu0 %v4496_v54  ;;  %v4567_v45 = vld [vmem:[%s6788_s1 + $0x604] ss:$16 sps:$4 sm:$0xff]   ;;  %v4565_v47 = vld [vmem:[%s6788_s1 + $0x600] ss:$16 sps:$4 sm:$0xff]  }
  0x44   : >> { %2906 = vmatprep.subr.bf16.mxu1 %v4498_v55  ;;  %v4570_v48 = vld [vmem:[%s6788_s1 + $0x5e4] ss:$16 sps:$4 sm:$0xff]   ;;  %v4568_v50 = vld [vmem:[%s6788_s1 + $0x5e0] ss:$16 sps:$4 sm:$0xff]   ;;  %v4639_v55 = vld [vmem:[%s5336_s9 + $0x1c] ss:$48 sps:$4 sm:$0xff]  }
  0x45   : >> { %v4573_v49 = vld [vmem:[%s6788_s1 + $0x7e4] ss:$16 sps:$4 sm:$0xff]   ;;  %v4571_v51 = vld [vmem:[%s6788_s1 + $0x7e0] ss:$16 sps:$4 sm:$0xff]  }
  0x46   : >> { %2834 = vmatpush2.bf16.msra.mxu0 %v4500_v56  ;;  %v4582_v52 = vld [vmem:[%s6788_s1 + $0x5c4] ss:$16 sps:$4 sm:$0xff]   ;;  %v4580_v56 = vld [vmem:[%s6788_s1 + $0x5c0] ss:$16 sps:$4 sm:$0xff]  }
  0x47   : >> { %2907 = vmatpush2.bf16.msra.mxu1 %v4501_v57  ;;  %2835 = vmatprep.subr.bf16.mxu0 %v4502_v58  ;;  %v4585_v53 = vld [vmem:[%s6788_s1 + $0x7c4] ss:$16 sps:$4 sm:$0xff]   ;;  %v4583_v57 = vld [vmem:[%s6788_s1 + $0x7c0] ss:$16 sps:$4 sm:$0xff]  }
  0x48   : >> { %2908 = vmatprep.subr.bf16.mxu1 %v4504_v59  ;;  %v4636_v54 = vld [vmem:[%s5336_s9 + $0x14] ss:$48 sps:$4 sm:$0xff]  }
  0x49   : >> { %v4588_v58 = vld [vmem:[%s6788_s1 + $0x5a4] ss:$16 sps:$4 sm:$0xff]  }
  0x4a   : >> { %2836 = vmatpush2.bf16.msra.mxu0 %v4506_v60  ;;  %v4591_v59 = vld [vmem:[%s6788_s1 + $0x7a4] ss:$16 sps:$4 sm:$0xff]   ;;  %v4586_v60 = vld [vmem:[%s6788_s1 + $0x5a0] ss:$16 sps:$4 sm:$0xff]  }
  0x4b   : >> { %2909 = vmatpush2.bf16.msra.mxu1 %v4507_v61  ;;  %2837 = vmatprep.subr.bf16.mxu0 %v4508_v62  ;;  %v4589_v61 = vld [vmem:[%s6788_s1 + $0x7a0] ss:$16 sps:$4 sm:$0xff]   ;;  %v4600_v62 = vld [vmem:[%s6788_s1 + $0x584] ss:$16 sps:$4 sm:$0xff]  }
  0x4c   : >> { %2910 = vmatprep.subr.bf16.mxu1 %v4510_v63  ;;  %v4603_v63 = vld [vmem:[%s6788_s1 + $0x784] ss:$16 sps:$4 sm:$0xff]  }
  0x4e   : >> { %2838 = vmatpush2.bf16.msra.mxu0 %v4512_v0  ;;  %v4598_v0 = vld [vmem:[%s6788_s1 + $0x580] ss:$16 sps:$4 sm:$0xff]  }
  0x4f   : >> { %2911 = vmatpush2.bf16.msra.mxu1 %v4513_v1  ;;  %2953 = vmatprep.subr.bf16.mxu0 %v4522_v2  ;;  %v4601_v1 = vld [vmem:[%s6788_s1 + $0x780] ss:$16 sps:$4 sm:$0xff]   ;;  %v4606_v2 = vld [vmem:[%s6788_s1 + $0x564] ss:$16 sps:$4 sm:$0xff]  }
  0x50   : >> { %3026 = vmatprep.subr.bf16.mxu1 %v4525_v3  ;;  %v4609_v3 = vld [vmem:[%s6788_s1 + $0x764] ss:$16 sps:$4 sm:$0xff]  }
  0x51   : >> { %2840 = vmatmul.mubr.bf16.vlgmr.msra.gmra.mxu0 %v4514_v4  ;;  %v4604_v4 = vld [vmem:[%s6788_s1 + $0x560] ss:$16 sps:$4 sm:$0xff]  }
  0x52   : >> { %2913 = vmatmul.mubr.bf16.vlgmr.msra.gmra.mxu1 %v4517_v5  ;;  %2954 = vmatpush1.bf16.msra.mxu0 %v4520_v6  ;;  %v4607_v5 = vld [vmem:[%s6788_s1 + $0x760] ss:$16 sps:$4 sm:$0xff]   ;;  %v4618_v6 = vld [vmem:[%s6788_s1 + $0x544] ss:$16 sps:$4 sm:$0xff]  }
  0x53   : >> { %3027 = vmatpush1.bf16.msra.mxu1 %v4523_v7  ;;  %2955 = vmatprep.subr.bf16.mxu0 %v4528_v8  ;;  %v4621_v7 = vld [vmem:[%s6788_s1 + $0x744] ss:$16 sps:$4 sm:$0xff]   ;;  %v4616_v8 = vld [vmem:[%s6788_s1 + $0x540] ss:$16 sps:$4 sm:$0xff]  }
  0x54   : >> { %3028 = vmatprep.subr.bf16.mxu1 %v4531_v9  ;;  %2849 = vmatprep.mubr.bf16.mxu0 %v4574_v16  ;;  %v4619_v9 = vld [vmem:[%s6788_s1 + $0x740] ss:$16 sps:$4 sm:$0xff]  }
  0x55   : >> { %2922 = vmatprep.mubr.bf16.mxu1 %v4576_v17  ;;  %v4628_v16 = vld [vmem:[%s6788_s1 + $0x500] ss:$16 sps:$4 sm:$0xff]  }
  0x56   : >> { %2956 = vmatpush1.bf16.msra.mxu0 %v4526_v10  ;;  %v4624_v10 = vld [vmem:[%s6788_s1 + $0x524] ss:$16 sps:$4 sm:$0xff]   ;;  %v4631_v17 = vld [vmem:[%s6788_s1 + $0x700] ss:$16 sps:$4 sm:$0xff]  }
  0x57   : >> { %3029 = vmatpush1.bf16.msra.mxu1 %v4529_v11  ;;  %2957 = vmatprep.subr.bf16.mxu0 %v4534_v12  ;;  %v4627_v11 = vld [vmem:[%s6788_s1 + $0x724] ss:$16 sps:$4 sm:$0xff]   ;;  %v4622_v12 = vld [vmem:[%s6788_s1 + $0x520] ss:$16 sps:$4 sm:$0xff]  }
  0x58   : >> { %3030 = vmatprep.subr.bf16.mxu1 %v4537_v13  ;;  %v4625_v13 = vld [vmem:[%s6788_s1 + $0x720] ss:$16 sps:$4 sm:$0xff]  }
  0x59   : >> { %2850 = vmatmul.mubr.bf16.gmra.mxu0 %v4578_v18  ;;  %v4642_v18 = vld [vmem:[%s6788_s1 + $0x8e4] ss:$16 sps:$4 sm:$0xff]  }
  0x5a   : >> { %2923 = vmatmul.mubr.bf16.gmra.mxu1 %v4579_v19  ;;  %2958 = vmatpush1.bf16.msra.mxu0 %v4532_v14  ;;  %v4630_v14 = vld [vmem:[%s6788_s1 + $0x504] ss:$16 sps:$4 sm:$0xff]  }
  0x5b   : >> { %3031 = vmatpush1.bf16.msra.mxu1 %v4535_v15  ;;  %2959 = vmatprep.subr.bf16.mxu0 %v4540_v20  ;;  %v4633_v15 = vld [vmem:[%s6788_s1 + $0x704] ss:$16 sps:$4 sm:$0xff]   ;;  %v4634_v20 = vld [vmem:[%s5336_s9 + $0x10] ss:$48 sps:$4 sm:$0xff]  }
  0x5c   : >> { %3032 = vmatprep.subr.bf16.mxu1 %v4543_v21  ;;  %2859 = vmatprep.mubr.bf16.mxu0 %v4592_v28  ;;  %v4645_v19 = vld [vmem:[%s6788_s1 + $0xae4] ss:$16 sps:$4 sm:$0xff]   ;;  %v4637_v21 = vld [vmem:[%s5336_s9 + $0x18] ss:$48 sps:$4 sm:$0xff]   ;;  %v4646_v28 = vld [vmem:[%s6788_s1 + $0x8c0] ss:$16 sps:$4 sm:$0xff]  }
  0x5d   : >> { %2932 = vmatprep.mubr.bf16.mxu1 %v4594_v29  ;;  %v4649_v29 = vld [vmem:[%s6788_s1 + $0xac0] ss:$16 sps:$4 sm:$0xff]  }
  0x5e   : >> { %2960 = vmatpush1.bf16.msra.mxu0 %v4538_v22  ;;  %v4640_v22 = vld [vmem:[%s6788_s1 + $0x8e0] ss:$16 sps:$4 sm:$0xff]  }
  0x5f   : >> { %3033 = vmatpush1.bf16.msra.mxu1 %v4541_v23  ;;  %2961 = vmatprep.subr.bf16.mxu0 %v4546_v24  ;;  %v4643_v23 = vld [vmem:[%s6788_s1 + $0xae0] ss:$16 sps:$4 sm:$0xff]   ;;  %v4648_v24 = vld [vmem:[%s6788_s1 + $0x8c4] ss:$16 sps:$4 sm:$0xff]  }
  0x60   : >> { %3034 = vmatprep.subr.bf16.mxu1 %v4549_v25  ;;  %v4651_v25 = vld [vmem:[%s6788_s1 + $0xac4] ss:$16 sps:$4 sm:$0xff]  }
  0x61   : >> { %2860 = vmatmul.mubr.bf16.gmra.mxu0 %v4596_v30  ;;  %v4657_v30 = vld [vmem:[%s6788_s1 + $0x8a4] ss:$16 sps:$4 sm:$0xff]  }
  0x62   : >> { %2933 = vmatmul.mubr.bf16.gmra.mxu1 %v4597_v31  ;;  %2962 = vmatpush1.bf16.msra.mxu0 %v4544_v26  ;;  %v4652_v26 = vld [vmem:[%s5336_s9 + $0x74] ss:$48 sps:$4 sm:$0xff]  }
  0x63   : >> { %3035 = vmatpush1.bf16.msra.mxu1 %v4547_v27  ;;  %2963 = vmatprep.subr.bf16.mxu0 %v4552_v32  ;;  %v4661_v27 = vld [vmem:[%s5336_s9 + $0x7c] ss:$48 sps:$4 sm:$0xff]   ;;  %v4660_v31 = vld [vmem:[%s6788_s1 + $0xaa4] ss:$16 sps:$4 sm:$0xff]   ;;  %v4654_v32 = vld [vmem:[%s5336_s9 + $0x70] ss:$48 sps:$4 sm:$0xff]  }
  0x64   : >> { %3036 = vmatprep.subr.bf16.mxu1 %v4555_v33  ;;  %2869 = vmatprep.mubr.bf16.mxu0 %v4610_v40  ;;  %v4655_v33 = vld [vmem:[%s6788_s1 + $0x8a0] ss:$16 sps:$4 sm:$0xff]  }
  0x65   : >> { %2942 = vmatprep.mubr.bf16.mxu1 %v4612_v41  ;;  %v4664_v40 = vld [vmem:[%s6788_s1 + $0x880] ss:$16 sps:$4 sm:$0xff]  }
  0x66   : >> { %2964 = vmatpush1.bf16.msra.mxu0 %v4550_v34  ;;  %v4658_v34 = vld [vmem:[%s6788_s1 + $0xaa0] ss:$16 sps:$4 sm:$0xff]  }
  0x67   : >> { %3037 = vmatpush1.bf16.msra.mxu1 %v4553_v35  ;;  %2965 = vmatprep.subr.bf16.mxu0 %v4558_v36  ;;  %v4663_v35 = vld [vmem:[%s5336_s9 + $0x78] ss:$48 sps:$4 sm:$0xff]   ;;  %v4666_v36 = vld [vmem:[%s6788_s1 + $0x884] ss:$16 sps:$4 sm:$0xff]   ;;  %v4667_v41 = vld [vmem:[%s6788_s1 + $0xa80] ss:$16 sps:$4 sm:$0xff]  }
  0x68   : >> { %3038 = vmatprep.subr.bf16.mxu1 %v4561_v37  ;;  %v4669_v37 = vld [vmem:[%s6788_s1 + $0xa84] ss:$16 sps:$4 sm:$0xff]  }
  0x69   : >> { %2870 = vmatmul.mubr.bf16.gmra.mxu0 %v4614_v42  ;;  %v4675_v42 = vld [vmem:[%s6788_s1 + $0x864] ss:$16 sps:$4 sm:$0xff]  }
  0x6a   : >> { %2943 = vmatmul.mubr.bf16.gmra.mxu1 %v4615_v43  ;;  %2966 = vmatpush1.bf16.msra.mxu0 %v4556_v38  ;;  %v4670_v38 = vld [vmem:[%s5336_s9 + $0xd4] ss:$48 sps:$4 sm:$0xff]  }
  0x6b   : >> { %3039 = vmatpush1.bf16.msra.mxu1 %v4559_v39  ;;  %2967 = vmatprep.subr.bf16.mxu0 %v4564_v44  ;;  %v4679_v39 = vld [vmem:[%s5336_s9 + $0xdc] ss:$48 sps:$4 sm:$0xff]   ;;  %v4678_v43 = vld [vmem:[%s6788_s1 + $0xa64] ss:$16 sps:$4 sm:$0xff]   ;;  %v4672_v44 = vld [vmem:[%s5336_s9 + $0xd0] ss:$48 sps:$4 sm:$0xff]  }
  0x6c   : >> { %3040 = vmatprep.subr.bf16.mxu1 %v4567_v45  ;;  %2985 = vmatprep.mubr.bf16.mxu0 %v4636_v54  ;;  %v4673_v45 = vld [vmem:[%s6788_s1 + $0x860] ss:$16 sps:$4 sm:$0xff]   ;;  %v4693_v54 = vld [vmem:[%s6788_s1 + $0x824] ss:$16 sps:$4 sm:$0xff]  }
  0x6d   : >> { %3058 = vmatprep.mubr.bf16.mxu1 %v4639_v55  ;;  %v4696_v55 = vld [vmem:[%s6788_s1 + $0xa24] ss:$16 sps:$4 sm:$0xff]  }
  0x6e   : >> { %2968 = vmatpush1.bf16.msra.mxu0 %v4562_v46  ;;  %v4676_v46 = vld [vmem:[%s6788_s1 + $0xa60] ss:$16 sps:$4 sm:$0xff]  }
  0x6f   : >> { %3041 = vmatpush1.bf16.msra.mxu1 %v4565_v47  ;;  %2969 = vmatprep.subr.bf16.mxu0 %v4570_v48  ;;  %v4681_v47 = vld [vmem:[%s5336_s9 + $0xd8] ss:$48 sps:$4 sm:$0xff]   ;;  %v4684_v48 = vld [vmem:[%s6788_s1 + $0x844] ss:$16 sps:$4 sm:$0xff]  }
  0x70   : >> { %3042 = vmatprep.subr.bf16.mxu1 %v4573_v49  ;;  %v4687_v49 = vld [vmem:[%s6788_s1 + $0xa44] ss:$16 sps:$4 sm:$0xff]  }
  0x72   : >> { %2970 = vmatpush2.bf16.msra.mxu0 %v4568_v50  ;;  %v4688_v50 = vld [vmem:[%s5336_s9 + $0x134] ss:$48 sps:$4 sm:$0xff]  }
  0x73   : >> { %3043 = vmatpush2.bf16.msra.mxu1 %v4571_v51  ;;  %2971 = vmatprep.subr.bf16.mxu0 %v4582_v52  ;;  %v4697_v51 = vld [vmem:[%s5336_s9 + $0x13c] ss:$48 sps:$4 sm:$0xff]   ;;  %v4682_v52 = vld [vmem:[%s6788_s1 + $0x840] ss:$16 sps:$4 sm:$0xff]  }
  0x74   : >> { %3044 = vmatprep.subr.bf16.mxu1 %v4585_v53  ;;  %v4685_v53 = vld [vmem:[%s6788_s1 + $0xa40] ss:$16 sps:$4 sm:$0xff]  }
  0x76   : >> { %2972 = vmatpush2.bf16.msra.mxu0 %v4580_v56  ;;  %v4690_v56 = vld [vmem:[%s5336_s9 + $0x130] ss:$48 sps:$4 sm:$0xff]  }
  0x77   : >> { %3045 = vmatpush2.bf16.msra.mxu1 %v4583_v57  ;;  %2973 = vmatprep.subr.bf16.mxu0 %v4588_v58  ;;  %v4691_v57 = vld [vmem:[%s6788_s1 + $0x820] ss:$16 sps:$4 sm:$0xff]  }
  0x78   : >> { %3046 = vmatprep.subr.bf16.mxu1 %v4591_v59  ;;  %v4694_v58 = vld [vmem:[%s6788_s1 + $0xa20] ss:$16 sps:$4 sm:$0xff]   ;;  %v4699_v59 = vld [vmem:[%s5336_s9 + $0x138] ss:$48 sps:$4 sm:$0xff]  }
  0x7a   : >> { %2974 = vmatpush2.bf16.msra.mxu0 %v4586_v60  ;;  %v4702_v60 = vld [vmem:[%s6788_s1 + $0x804] ss:$16 sps:$4 sm:$0xff]  }
  0x7b   : >> { %3047 = vmatpush2.bf16.msra.mxu1 %v4589_v61  ;;  %2975 = vmatprep.subr.bf16.mxu0 %v4600_v62  ;;  %v4705_v61 = vld [vmem:[%s6788_s1 + $0xa04] ss:$16 sps:$4 sm:$0xff]  }
  0x7c   : >> { %3048 = vmatprep.subr.bf16.mxu1 %v4603_v63  ;;  %v4756_v62 = vld [vmem:[%s5336_s9 + $0x24] ss:$48 sps:$4 sm:$0xff]   ;;  %v4759_v63 = vld [vmem:[%s5336_s9 + $0x2c] ss:$48 sps:$4 sm:$0xff]  }
  0x7e   : >> { %2976 = vmatpush2.bf16.msra.mxu0 %v4598_v0  ;;  %v4700_v0 = vld [vmem:[%s6788_s1 + $0x800] ss:$16 sps:$4 sm:$0xff]  }
  0x7f   : >> { %3049 = vmatpush2.bf16.msra.mxu1 %v4601_v1  ;;  %2977 = vmatprep.subr.bf16.mxu0 %v4606_v2  ;;  %v4703_v1 = vld [vmem:[%s6788_s1 + $0xa00] ss:$16 sps:$4 sm:$0xff]   ;;  %v4708_v2 = vld [vmem:[%s6788_s1 + $0x9e4] ss:$16 sps:$4 sm:$0xff]  }
  0x80   : >> { %3050 = vmatprep.subr.bf16.mxu1 %v4609_v3  ;;  %v4711_v3 = vld [vmem:[%s6788_s1 + $0xbe4] ss:$16 sps:$4 sm:$0xff]  }
  0x82   : >> { %2978 = vmatpush2.bf16.msra.mxu0 %v4604_v4  ;;  %v4706_v4 = vld [vmem:[%s6788_s1 + $0x9e0] ss:$16 sps:$4 sm:$0xff]  }
  0x83   : >> { %3051 = vmatpush2.bf16.msra.mxu1 %v4607_v5  ;;  %2979 = vmatprep.subr.bf16.mxu0 %v4618_v6  ;;  %v4709_v5 = vld [vmem:[%s6788_s1 + $0xbe0] ss:$16 sps:$4 sm:$0xff]   ;;  %v4714_v6 = vld [vmem:[%s6788_s1 + $0x9c4] ss:$16 sps:$4 sm:$0xff]  }
  0x84   : >> { %3052 = vmatprep.subr.bf16.mxu1 %v4621_v7  ;;  %v4717_v7 = vld [vmem:[%s6788_s1 + $0xbc4] ss:$16 sps:$4 sm:$0xff]  }
  0x86   : >> { %2980 = vmatpush2.bf16.msra.mxu0 %v4616_v8  ;;  %v4712_v8 = vld [vmem:[%s6788_s1 + $0x9c0] ss:$16 sps:$4 sm:$0xff]  }
  0x87   : >> { %3053 = vmatpush2.bf16.msra.mxu1 %v4619_v9  ;;  %2981 = vmatprep.subr.bf16.mxu0 %v4624_v10  ;;  %v4715_v9 = vld [vmem:[%s6788_s1 + $0xbc0] ss:$16 sps:$4 sm:$0xff]   ;;  %v4720_v10 = vld [vmem:[%s6788_s1 + $0x9a4] ss:$16 sps:$4 sm:$0xff]  }
  0x88   : >> { %3054 = vmatprep.subr.bf16.mxu1 %v4627_v11  ;;  %v4723_v11 = vld [vmem:[%s6788_s1 + $0xba4] ss:$16 sps:$4 sm:$0xff]  }
  0x8a   : >> { %2982 = vmatpush2.bf16.msra.mxu0 %v4622_v12  ;;  %v4718_v12 = vld [vmem:[%s6788_s1 + $0x9a0] ss:$16 sps:$4 sm:$0xff]  }
  0x8b   : >> { %3055 = vmatpush2.bf16.msra.mxu1 %v4625_v13  ;;  %2983 = vmatprep.subr.bf16.mxu0 %v4630_v14  ;;  %v4721_v13 = vld [vmem:[%s6788_s1 + $0xba0] ss:$16 sps:$4 sm:$0xff]   ;;  %v4726_v14 = vld [vmem:[%s6788_s1 + $0x984] ss:$16 sps:$4 sm:$0xff]  }
  0x8c   : >> { %3056 = vmatprep.subr.bf16.mxu1 %v4633_v15  ;;  %v4729_v15 = vld [vmem:[%s6788_s1 + $0xb84] ss:$16 sps:$4 sm:$0xff]  }
  0x8e   : >> { %2984 = vmatpush2.bf16.msra.mxu0 %v4628_v16  ;;  %v4724_v16 = vld [vmem:[%s6788_s1 + $0x980] ss:$16 sps:$4 sm:$0xff]  }
  0x8f   : >> { %3057 = vmatpush2.bf16.msra.mxu1 %v4631_v17  ;;  %3099 = vmatprep.subr.bf16.mxu0 %v4642_v18  ;;  %v4727_v17 = vld [vmem:[%s6788_s1 + $0xb80] ss:$16 sps:$4 sm:$0xff]   ;;  %v4732_v18 = vld [vmem:[%s6788_s1 + $0x964] ss:$16 sps:$4 sm:$0xff]  }
  0x90   : >> { %3172 = vmatprep.subr.bf16.mxu1 %v4645_v19  ;;  %v4735_v19 = vld [vmem:[%s6788_s1 + $0xb64] ss:$16 sps:$4 sm:$0xff]  }
  0x91   : >> { %2986 = vmatmul.mubr.bf16.vlgmr.msra.gmra.mxu0 %v4634_v20  ;;  %v4730_v20 = vld [vmem:[%s6788_s1 + $0x960] ss:$16 sps:$4 sm:$0xff]  }
  0x92   : >> { %3059 = vmatmul.mubr.bf16.vlgmr.msra.gmra.mxu1 %v4637_v21  ;;  %3100 = vmatpush1.bf16.msra.mxu0 %v4640_v22  ;;  %v4733_v21 = vld [vmem:[%s6788_s1 + $0xb60] ss:$16 sps:$4 sm:$0xff]   ;;  %v4738_v22 = vld [vmem:[%s6788_s1 + $0x944] ss:$16 sps:$4 sm:$0xff]  }
  0x93   : >> { %3173 = vmatpush1.bf16.msra.mxu1 %v4643_v23  ;;  %3101 = vmatprep.subr.bf16.mxu0 %v4648_v24  ;;  %v4741_v23 = vld [vmem:[%s6788_s1 + $0xb44] ss:$16 sps:$4 sm:$0xff]   ;;  %v4736_v24 = vld [vmem:[%s6788_s1 + $0x940] ss:$16 sps:$4 sm:$0xff]  }
  0x94   : >> { %3174 = vmatprep.subr.bf16.mxu1 %v4651_v25  ;;  %2995 = vmatprep.mubr.bf16.mxu0 %v4652_v26  ;;  %v4739_v25 = vld [vmem:[%s6788_s1 + $0xb40] ss:$16 sps:$4 sm:$0xff]   ;;  %v4744_v26 = vld [vmem:[%s6788_s1 + $0x924] ss:$16 sps:$4 sm:$0xff]  }
  0x95   : >> { %3068 = vmatprep.mubr.bf16.mxu1 %v4661_v27  ;;  %v4747_v27 = vld [vmem:[%s6788_s1 + $0xb24] ss:$16 sps:$4 sm:$0xff]  }
  0x96   : >> { %3102 = vmatpush1.bf16.msra.mxu0 %v4646_v28  ;;  %v4742_v28 = vld [vmem:[%s6788_s1 + $0x920] ss:$16 sps:$4 sm:$0xff]  }
  0x97   : >> { %3175 = vmatpush1.bf16.msra.mxu1 %v4649_v29  ;;  %3103 = vmatprep.subr.bf16.mxu0 %v4657_v30  ;;  %v4745_v29 = vld [vmem:[%s6788_s1 + $0xb20] ss:$16 sps:$4 sm:$0xff]   ;;  %v4750_v30 = vld [vmem:[%s6788_s1 + $0x904] ss:$16 sps:$4 sm:$0xff]  }
  0x98   : >> { %3176 = vmatprep.subr.bf16.mxu1 %v4660_v31  ;;  %v4753_v31 = vld [vmem:[%s6788_s1 + $0xb04] ss:$16 sps:$4 sm:$0xff]  }
  0x99   : >> { %2996 = vmatmul.mubr.bf16.gmra.mxu0 %v4654_v32  ;;  %v4748_v32 = vld [vmem:[%s6788_s1 + $0x900] ss:$16 sps:$4 sm:$0xff]  }
  0x9a   : >> { %3069 = vmatmul.mubr.bf16.gmra.mxu1 %v4663_v35  ;;  %3104 = vmatpush1.bf16.msra.mxu0 %v4655_v33  ;;  %v4751_v33 = vld [vmem:[%s6788_s1 + $0xb00] ss:$16 sps:$4 sm:$0xff]   ;;  %v4765_v35 = vld [vmem:[%s6788_s1 + $0x2ec] ss:$16 sps:$4 sm:$0xff]  }
  0x9b   : >> { %3177 = vmatpush1.bf16.msra.mxu1 %v4658_v34  ;;  %3105 = vmatprep.subr.bf16.mxu0 %v4666_v36  ;;  %v4762_v34 = vld [vmem:[%s6788_s1 + $0xec] ss:$16 sps:$4 sm:$0xff]   ;;  %v4754_v36 = vld [vmem:[%s5336_s9 + $0x20] ss:$48 sps:$4 sm:$0xff]  }
  0x9c   : >> { %3178 = vmatprep.subr.bf16.mxu1 %v4669_v37  ;;  %3005 = vmatprep.mubr.bf16.mxu0 %v4670_v38  ;;  %v4757_v37 = vld [vmem:[%s5336_s9 + $0x28] ss:$48 sps:$4 sm:$0xff]  }
  0x9d   : >> { %3078 = vmatprep.mubr.bf16.mxu1 %v4679_v39  ;;  %v4760_v38 = vld [vmem:[%s6788_s1 + $0xe8] ss:$16 sps:$4 sm:$0xff]  }
  0x9e   : >> { %3106 = vmatpush1.bf16.msra.mxu0 %v4664_v40  ;;  %v4763_v39 = vld [vmem:[%s6788_s1 + $0x2e8] ss:$16 sps:$4 sm:$0xff]   ;;  %v4768_v40 = vld [vmem:[%s6788_s1 + $0xcc] ss:$16 sps:$4 sm:$0xff]  }
  0x9f   : >> { %3179 = vmatpush1.bf16.msra.mxu1 %v4667_v41  ;;  %3107 = vmatprep.subr.bf16.mxu0 %v4675_v42  ;;  %v4771_v41 = vld [vmem:[%s6788_s1 + $0x2cc] ss:$16 sps:$4 sm:$0xff]   ;;  %v4772_v42 = vld [vmem:[%s5336_s9 + $0x84] ss:$48 sps:$4 sm:$0xff]  }
  0xa0   : >> { %3180 = vmatprep.subr.bf16.mxu1 %v4678_v43  ;;  %v4781_v43 = vld [vmem:[%s5336_s9 + $0x8c] ss:$48 sps:$4 sm:$0xff]  }
  0xa1   : >> { %3006 = vmatmul.mubr.bf16.gmra.mxu0 %v4672_v44  ;;  %v4766_v44 = vld [vmem:[%s6788_s1 + $0xc8] ss:$16 sps:$4 sm:$0xff]  }
  0xa2   : >> { %3079 = vmatmul.mubr.bf16.gmra.mxu1 %v4681_v47  ;;  %3108 = vmatpush1.bf16.msra.mxu0 %v4673_v45  ;;  %v4769_v45 = vld [vmem:[%s6788_s1 + $0x2c8] ss:$16 sps:$4 sm:$0xff]   ;;  %v4780_v47 = vld [vmem:[%s6788_s1 + $0x2ac] ss:$16 sps:$4 sm:$0xff]  }
  0xa3   : >> { %3181 = vmatpush1.bf16.msra.mxu1 %v4676_v46  ;;  %3109 = vmatprep.subr.bf16.mxu0 %v4684_v48  ;;  %v4777_v46 = vld [vmem:[%s6788_s1 + $0xac] ss:$16 sps:$4 sm:$0xff]   ;;  %v4774_v48 = vld [vmem:[%s5336_s9 + $0x80] ss:$48 sps:$4 sm:$0xff]  }
  0xa4   : >> { %3182 = vmatprep.subr.bf16.mxu1 %v4687_v49  ;;  %3015 = vmatprep.mubr.bf16.mxu0 %v4688_v50  ;;  %v4775_v49 = vld [vmem:[%s6788_s1 + $0xa8] ss:$16 sps:$4 sm:$0xff]  }
  0xa5   : >> { %3088 = vmatprep.mubr.bf16.mxu1 %v4697_v51  ;;  %v4778_v50 = vld [vmem:[%s6788_s1 + $0x2a8] ss:$16 sps:$4 sm:$0xff]  }
  0xa6   : >> { %3110 = vmatpush1.bf16.msra.mxu0 %v4682_v52  ;;  %v4783_v51 = vld [vmem:[%s5336_s9 + $0x88] ss:$48 sps:$4 sm:$0xff]   ;;  %v4786_v52 = vld [vmem:[%s6788_s1 + $0x8c] ss:$16 sps:$4 sm:$0xff]  }
  0xa7   : >> { %3183 = vmatpush1.bf16.msra.mxu1 %v4685_v53  ;;  %3111 = vmatprep.subr.bf16.mxu0 %v4693_v54  ;;  %v4789_v53 = vld [vmem:[%s6788_s1 + $0x28c] ss:$16 sps:$4 sm:$0xff]   ;;  %v4790_v54 = vld [vmem:[%s5336_s9 + $0xe4] ss:$48 sps:$4 sm:$0xff]  }
  0xa8   : >> { %3184 = vmatprep.subr.bf16.mxu1 %v4696_v55  ;;  %v4799_v55 = vld [vmem:[%s5336_s9 + $0xec] ss:$48 sps:$4 sm:$0xff]  }
  0xa9   : >> { %3016 = vmatmul.mubr.bf16.gmra.mxu0 %v4690_v56  ;;  %v4784_v56 = vld [vmem:[%s6788_s1 + $0x88] ss:$16 sps:$4 sm:$0xff]  }
  0xaa   : >> { %3089 = vmatmul.mubr.bf16.gmra.mxu1 %v4699_v59  ;;  %3112 = vmatpush1.bf16.msra.mxu0 %v4691_v57  ;;  %v4787_v57 = vld [vmem:[%s6788_s1 + $0x288] ss:$16 sps:$4 sm:$0xff]   ;;  %v4798_v59 = vld [vmem:[%s6788_s1 + $0x26c] ss:$16 sps:$4 sm:$0xff]  }
  0xab   : >> { %3185 = vmatpush1.bf16.msra.mxu1 %v4694_v58  ;;  %3113 = vmatprep.subr.bf16.mxu0 %v4702_v60  ;;  %v4795_v58 = vld [vmem:[%s6788_s1 + $0x6c] ss:$16 sps:$4 sm:$0xff]   ;;  %v4792_v60 = vld [vmem:[%s5336_s9 + $0xe0] ss:$48 sps:$4 sm:$0xff]  }
  0xac   : >> { %3186 = vmatprep.subr.bf16.mxu1 %v4705_v61  ;;  %3131 = vmatprep.mubr.bf16.mxu0 %v4756_v62  ;;  %v4793_v61 = vld [vmem:[%s6788_s1 + $0x68] ss:$16 sps:$4 sm:$0xff]  }
  0xad   : >> { %3204 = vmatprep.mubr.bf16.mxu1 %v4759_v63  ;;  %v4796_v62 = vld [vmem:[%s6788_s1 + $0x268] ss:$16 sps:$4 sm:$0xff]  }
  0xae   : >> { %3114 = vmatpush1.bf16.msra.mxu0 %v4700_v0  ;;  %v4801_v63 = vld [vmem:[%s5336_s9 + $0xe8] ss:$48 sps:$4 sm:$0xff]   ;;  %v4804_v0 = vld [vmem:[%s6788_s1 + $0x4c] ss:$16 sps:$4 sm:$0xff]  }
  0xaf   : >> { %3187 = vmatpush1.bf16.msra.mxu1 %v4703_v1  ;;  %3115 = vmatprep.subr.bf16.mxu0 %v4708_v2  ;;  %v4807_v1 = vld [vmem:[%s6788_s1 + $0x24c] ss:$16 sps:$4 sm:$0xff]   ;;  %v4808_v2 = vld [vmem:[%s5336_s9 + $0x144] ss:$48 sps:$4 sm:$0xff]  }
  0xb0   : >> { %3188 = vmatprep.subr.bf16.mxu1 %v4711_v3  ;;  %v4817_v3 = vld [vmem:[%s5336_s9 + $0x14c] ss:$48 sps:$4 sm:$0xff]  }
  0xb2   : >> { %3116 = vmatpush2.bf16.msra.mxu0 %v4706_v4  ;;  %v4802_v4 = vld [vmem:[%s6788_s1 + $0x48] ss:$16 sps:$4 sm:$0xff]  }
  0xb3   : >> { %3189 = vmatpush2.bf16.msra.mxu1 %v4709_v5  ;;  %3117 = vmatprep.subr.bf16.mxu0 %v4714_v6  ;;  %v4805_v5 = vld [vmem:[%s6788_s1 + $0x248] ss:$16 sps:$4 sm:$0xff]   ;;  %v4813_v6 = vld [vmem:[%s6788_s1 + $0x2c] ss:$16 sps:$4 sm:$0xff]  }
  0xb4   : >> { %3190 = vmatprep.subr.bf16.mxu1 %v4717_v7  ;;  %v4816_v7 = vld [vmem:[%s6788_s1 + $0x22c] ss:$16 sps:$4 sm:$0xff]  }
  0xb6   : >> { %3118 = vmatpush2.bf16.msra.mxu0 %v4712_v8  ;;  %v4810_v8 = vld [vmem:[%s5336_s9 + $0x140] ss:$48 sps:$4 sm:$0xff]  }
  0xb7   : >> { %3191 = vmatpush2.bf16.msra.mxu1 %v4715_v9  ;;  %3119 = vmatprep.subr.bf16.mxu0 %v4720_v10  ;;  %v4811_v9 = vld [vmem:[%s6788_s1 + $0x28] ss:$16 sps:$4 sm:$0xff]  }
  0xb8   : >> { %3192 = vmatprep.subr.bf16.mxu1 %v4723_v11  ;;  %v4814_v10 = vld [vmem:[%s6788_s1 + $0x228] ss:$16 sps:$4 sm:$0xff]  }
  0xb9   : >> { %v4819_v11 = vld [vmem:[%s5336_s9 + $0x148] ss:$48 sps:$4 sm:$0xff]  }
  0xba   : >> { %3120 = vmatpush2.bf16.msra.mxu0 %v4718_v12  ;;  %v4822_v12 = vld [vmem:[%s6788_s1 + $0xc] ss:$16 sps:$4 sm:$0xff]  }
  0xbb   : >> { %3193 = vmatpush2.bf16.msra.mxu1 %v4721_v13  ;;  %3121 = vmatprep.subr.bf16.mxu0 %v4726_v14  ;;  %v4825_v13 = vld [vmem:[%s6788_s1 + $0x20c] ss:$16 sps:$4 sm:$0xff]   ;;  %v4820_v14 = vld [vmem:[%s6788_s1 + $0x8] ss:$16 sps:$4 sm:$0xff]  }
  0xbc   : >> { %3194 = vmatprep.subr.bf16.mxu1 %v4729_v15  ;;  %v4823_v15 = vld [vmem:[%s6788_s1 + $0x208] ss:$16 sps:$4 sm:$0xff]  }
  0xbe   : >> { %3122 = vmatpush2.bf16.msra.mxu0 %v4724_v16  ;;  %v4828_v16 = vld [vmem:[%s6788_s1 + $0x1ec] ss:$16 sps:$4 sm:$0xff]  }
  0xbf   : >> { %3195 = vmatpush2.bf16.msra.mxu1 %v4727_v17  ;;  %3123 = vmatprep.subr.bf16.mxu0 %v4732_v18  ;;  %v4831_v17 = vld [vmem:[%s6788_s1 + $0x3ec] ss:$16 sps:$4 sm:$0xff]   ;;  %v5066_v18 = vld [vmem:[%s5336_s9 + $0x4] ss:$48 sps:$4 sm:$0xff]  }
  0xc0   : >> { %3196 = vmatprep.subr.bf16.mxu1 %v4735_v19  ;;  %v5067_v19 = vld [vmem:[%s5336_s9 + $0xc] ss:$48 sps:$4 sm:$0xff]  }
  0xc2   : >> { %3124 = vmatpush2.bf16.msra.mxu0 %v4730_v20  ;;  %v4826_v20 = vld [vmem:[%s6788_s1 + $0x1e8] ss:$16 sps:$4 sm:$0xff]  }
  0xc3   : >> { %3197 = vmatpush2.bf16.msra.mxu1 %v4733_v21  ;;  %3125 = vmatprep.subr.bf16.mxu0 %v4738_v22  ;;  %v4829_v21 = vld [vmem:[%s6788_s1 + $0x3e8] ss:$16 sps:$4 sm:$0xff]   ;;  %v4834_v22 = vld [vmem:[%s6788_s1 + $0x1cc] ss:$16 sps:$4 sm:$0xff]  }
  0xc4   : >> { %3198 = vmatprep.subr.bf16.mxu1 %v4741_v23  ;;  %v4837_v23 = vld [vmem:[%s6788_s1 + $0x3cc] ss:$16 sps:$4 sm:$0xff]  }
  0xc6   : >> { %3126 = vmatpush2.bf16.msra.mxu0 %v4736_v24  ;;  %v4832_v24 = vld [vmem:[%s6788_s1 + $0x1c8] ss:$16 sps:$4 sm:$0xff]  }
  0xc7   : >> { %3199 = vmatpush2.bf16.msra.mxu1 %v4739_v25  ;;  %3127 = vmatprep.subr.bf16.mxu0 %v4744_v26  ;;  %v4835_v25 = vld [vmem:[%s6788_s1 + $0x3c8] ss:$16 sps:$4 sm:$0xff]   ;;  %v4840_v26 = vld [vmem:[%s6788_s1 + $0x1ac] ss:$16 sps:$4 sm:$0xff]  }
  0xc8   : >> { %3200 = vmatprep.subr.bf16.mxu1 %v4747_v27  ;;  %v4843_v27 = vld [vmem:[%s6788_s1 + $0x3ac] ss:$16 sps:$4 sm:$0xff]  }
  0xca   : >> { %3128 = vmatpush2.bf16.msra.mxu0 %v4742_v28  ;;  %v4838_v28 = vld [vmem:[%s6788_s1 + $0x1a8] ss:$16 sps:$4 sm:$0xff]  }
  0xcb   : >> { %3201 = vmatpush2.bf16.msra.mxu1 %v4745_v29  ;;  %3129 = vmatprep.subr.bf16.mxu0 %v4750_v30  ;;  %v4841_v29 = vld [vmem:[%s6788_s1 + $0x3a8] ss:$16 sps:$4 sm:$0xff]   ;;  %v4846_v30 = vld [vmem:[%s6788_s1 + $0x18c] ss:$16 sps:$4 sm:$0xff]  }
  0xcc   : >> { %3202 = vmatprep.subr.bf16.mxu1 %v4753_v31  ;;  %v4849_v31 = vld [vmem:[%s6788_s1 + $0x38c] ss:$16 sps:$4 sm:$0xff]  }
  0xce   : >> { %3130 = vmatpush2.bf16.msra.mxu0 %v4748_v32  ;;  %v4844_v32 = vld [vmem:[%s6788_s1 + $0x188] ss:$16 sps:$4 sm:$0xff]  }
  0xcf   : >> { %3203 = vmatpush2.bf16.msra.mxu1 %v4751_v33  ;;  %3245 = vmatprep.subr.bf16.mxu0 %v4762_v34  ;;  %v4847_v33 = vld [vmem:[%s6788_s1 + $0x388] ss:$16 sps:$4 sm:$0xff]   ;;  %v4852_v34 = vld [vmem:[%s6788_s1 + $0x16c] ss:$16 sps:$4 sm:$0xff]  }
  0xd0   : >> { %3318 = vmatprep.subr.bf16.mxu1 %v4765_v35  ;;  %v4855_v35 = vld [vmem:[%s6788_s1 + $0x36c] ss:$16 sps:$4 sm:$0xff]  }
  0xd1   : >> { %3132 = vmatmul.mubr.bf16.vlgmr.msra.gmra.mxu0 %v4754_v36  ;;  %v4850_v36 = vld [vmem:[%s6788_s1 + $0x168] ss:$16 sps:$4 sm:$0xff]  }
  0xd2   : >> { %3205 = vmatmul.mubr.bf16.vlgmr.msra.gmra.mxu1 %v4757_v37  ;;  %3246 = vmatpush1.bf16.msra.mxu0 %v4760_v38  ;;  %v4853_v37 = vld [vmem:[%s6788_s1 + $0x368] ss:$16 sps:$4 sm:$0xff]   ;;  %v4858_v38 = vld [vmem:[%s6788_s1 + $0x14c] ss:$16 sps:$4 sm:$0xff]  }
  0xd3   : >> { %3319 = vmatpush1.bf16.msra.mxu1 %v4763_v39  ;;  %3247 = vmatprep.subr.bf16.mxu0 %v4768_v40  ;;  %v4861_v39 = vld [vmem:[%s6788_s1 + $0x34c] ss:$16 sps:$4 sm:$0xff]   ;;  %v4856_v40 = vld [vmem:[%s6788_s1 + $0x148] ss:$16 sps:$4 sm:$0xff]  }
  0xd4   : >> { %3320 = vmatprep.subr.bf16.mxu1 %v4771_v41  ;;  %3141 = vmatprep.mubr.bf16.mxu0 %v4772_v42  ;;  %v4859_v41 = vld [vmem:[%s6788_s1 + $0x348] ss:$16 sps:$4 sm:$0xff]   ;;  %v4864_v42 = vld [vmem:[%s6788_s1 + $0x12c] ss:$16 sps:$4 sm:$0xff]  }
  0xd5   : >> { %3214 = vmatprep.mubr.bf16.mxu1 %v4781_v43  ;;  %v4867_v43 = vld [vmem:[%s6788_s1 + $0x32c] ss:$16 sps:$4 sm:$0xff]  }
  0xd6   : >> { %3248 = vmatpush1.bf16.msra.mxu0 %v4766_v44  ;;  %v4862_v44 = vld [vmem:[%s6788_s1 + $0x128] ss:$16 sps:$4 sm:$0xff]  }
  0xd7   : >> { %3321 = vmatpush1.bf16.msra.mxu1 %v4769_v45  ;;  %3249 = vmatprep.subr.bf16.mxu0 %v4777_v46  ;;  %v4865_v45 = vld [vmem:[%s6788_s1 + $0x328] ss:$16 sps:$4 sm:$0xff]   ;;  %v4870_v46 = vld [vmem:[%s6788_s1 + $0x10c] ss:$16 sps:$4 sm:$0xff]  }
  0xd8   : >> { %3322 = vmatprep.subr.bf16.mxu1 %v4780_v47  ;;  %v4873_v47 = vld [vmem:[%s6788_s1 + $0x30c] ss:$16 sps:$4 sm:$0xff]  }
  0xd9   : >> { %3142 = vmatmul.mubr.bf16.gmra.mxu0 %v4774_v48  ;;  %v4868_v48 = vld [vmem:[%s6788_s1 + $0x108] ss:$16 sps:$4 sm:$0xff]  }
  0xda   : >> { %3215 = vmatmul.mubr.bf16.gmra.mxu1 %v4783_v51  ;;  %3250 = vmatpush1.bf16.msra.mxu0 %v4775_v49  ;;  %v4871_v49 = vld [vmem:[%s6788_s1 + $0x308] ss:$16 sps:$4 sm:$0xff]   ;;  %v4879_v51 = vld [vmem:[%s6788_s1 + $0x6ec] ss:$16 sps:$4 sm:$0xff]  }
  0xdb   : >> { %3323 = vmatpush1.bf16.msra.mxu1 %v4778_v50  ;;  %3251 = vmatprep.subr.bf16.mxu0 %v4786_v52  ;;  %v4876_v50 = vld [vmem:[%s6788_s1 + $0x4ec] ss:$16 sps:$4 sm:$0xff]   ;;  %v4874_v52 = vld [vmem:[%s6788_s1 + $0x4e8] ss:$16 sps:$4 sm:$0xff]  }
  0xdc   : >> { %3324 = vmatprep.subr.bf16.mxu1 %v4789_v53  ;;  %3151 = vmatprep.mubr.bf16.mxu0 %v4790_v54  ;;  %v4877_v53 = vld [vmem:[%s6788_s1 + $0x6e8] ss:$16 sps:$4 sm:$0xff]   ;;  %v4882_v54 = vld [vmem:[%s6788_s1 + $0x4cc] ss:$16 sps:$4 sm:$0xff]  }
  0xdd   : >> { %3224 = vmatprep.mubr.bf16.mxu1 %v4799_v55  ;;  %v4885_v55 = vld [vmem:[%s6788_s1 + $0x6cc] ss:$16 sps:$4 sm:$0xff]  }
  0xde   : >> { %3252 = vmatpush1.bf16.msra.mxu0 %v4784_v56 }
  0xdf   : >> { %3325 = vmatpush1.bf16.msra.mxu1 %v4787_v57  ;;  %3253 = vmatprep.subr.bf16.mxu0 %v4795_v58  ;;  %v5068_v58 = vld [vmem:[%s5336_s9] ss:$48 sps:$4 sm:$0xff]  }
  0xe0   : >> { %3326 = vmatprep.subr.bf16.mxu1 %v4798_v59  ;;  %v5069_v59 = vld [vmem:[%s5336_s9 + $0x8] ss:$48 sps:$4 sm:$0xff]  }
  0xe1   : >> { %3152 = vmatmul.mubr.bf16.gmra.mxu0 %v4792_v60  ;;  %v4880_v60 = vld [vmem:[%s6788_s1 + $0x4c8] ss:$16 sps:$4 sm:$0xff]  }
  0xe2   : >> { %3225 = vmatmul.mubr.bf16.gmra.mxu1 %v4801_v63  ;;  %3254 = vmatpush1.bf16.msra.mxu0 %v4793_v61  ;;  %v4883_v61 = vld [vmem:[%s6788_s1 + $0x6c8] ss:$16 sps:$4 sm:$0xff]   ;;  %v4888_v63 = vld [vmem:[%s6788_s1 + $0x4ac] ss:$16 sps:$4 sm:$0xff]  }
  0xe3   : >> { %3327 = vmatpush1.bf16.msra.mxu1 %v4796_v62  ;;  %3255 = vmatprep.subr.bf16.mxu0 %v4804_v0 }
  0xe4   : >> { %3328 = vmatprep.subr.bf16.mxu1 %v4807_v1  ;;  %3161 = vmatprep.mubr.bf16.mxu0 %v4808_v2  ;;  %v4891_v2 = vld [vmem:[%s6788_s1 + $0x6ac] ss:$16 sps:$4 sm:$0xff]  }
  0xe5   : >> { %3234 = vmatprep.mubr.bf16.mxu1 %v4817_v3 }
  0xe6   : >> { %3256 = vmatpush1.bf16.msra.mxu0 %v4802_v4  ;;  %v5070_v4 = vld [vmem:[%s5336_s9 + $0x64] ss:$48 sps:$4 sm:$0xff]  }
  0xe7   : >> { %3329 = vmatpush1.bf16.msra.mxu1 %v4805_v5  ;;  %3257 = vmatprep.subr.bf16.mxu0 %v4813_v6  ;;  %v5071_v5 = vld [vmem:[%s5336_s9 + $0x6c] ss:$48 sps:$4 sm:$0xff]  }
  0xe8   : >> { %3330 = vmatprep.subr.bf16.mxu1 %v4816_v7 }
  0xe9   : >> { %3162 = vmatmul.mubr.bf16.gmra.mxu0 %v4810_v8  ;;  %v4886_v8 = vld [vmem:[%s6788_s1 + $0x4a8] ss:$16 sps:$4 sm:$0xff]  }
  0xea   : >> { %3235 = vmatmul.mubr.bf16.gmra.mxu1 %v4819_v11  ;;  %3258 = vmatpush1.bf16.msra.mxu0 %v4811_v9  ;;  %v4889_v9 = vld [vmem:[%s6788_s1 + $0x6a8] ss:$16 sps:$4 sm:$0xff]   ;;  %v4894_v11 = vld [vmem:[%s6788_s1 + $0x48c] ss:$16 sps:$4 sm:$0xff]  }
  0xeb   : >> { %3331 = vmatpush1.bf16.msra.mxu1 %v4814_v10  ;;  %3259 = vmatprep.subr.bf16.mxu0 %v4822_v12 }
  0xec   : >> { %3332 = vmatprep.subr.bf16.mxu1 %v4825_v13  ;;  %3277 = vmatprep.mubr.bf16.mxu0 %v5066_v18 }
  0xed   : >> { %3350 = vmatprep.mubr.bf16.mxu1 %v5067_v19 }
  0xee   : >> { %3260 = vmatpush1.bf16.msra.mxu0 %v4820_v14  ;;  %v4897_v14 = vld [vmem:[%s6788_s1 + $0x68c] ss:$16 sps:$4 sm:$0xff]  }
  0xef   : >> { %3333 = vmatpush1.bf16.msra.mxu1 %v4823_v15  ;;  %3261 = vmatprep.subr.bf16.mxu0 %v4828_v16  ;;  %v4892_v16 = vld [vmem:[%s6788_s1 + $0x488] ss:$16 sps:$4 sm:$0xff]  }
  0xf0   : >> { %3334 = vmatprep.subr.bf16.mxu1 %v4831_v17  ;;  %v4895_v17 = vld [vmem:[%s6788_s1 + $0x688] ss:$16 sps:$4 sm:$0xff]  }
  0xf2   : >> { %3262 = vmatpush2.bf16.msra.mxu0 %v4826_v20  ;;  %v5072_v20 = vld [vmem:[%s5336_s9 + $0x60] ss:$48 sps:$4 sm:$0xff]  }
  0xf3   : >> { %3335 = vmatpush2.bf16.msra.mxu1 %v4829_v21  ;;  %3263 = vmatprep.subr.bf16.mxu0 %v4834_v22  ;;  %v5073_v21 = vld [vmem:[%s5336_s9 + $0x68] ss:$48 sps:$4 sm:$0xff]   ;;  %v4900_v22 = vld [vmem:[%s6788_s1 + $0x46c] ss:$16 sps:$4 sm:$0xff]  }
  0xf4   : >> { %3336 = vmatprep.subr.bf16.mxu1 %v4837_v23 }
  0xf6   : >> { %3264 = vmatpush2.bf16.msra.mxu0 %v4832_v24  ;;  %v4903_v24 = vld [vmem:[%s6788_s1 + $0x66c] ss:$16 sps:$4 sm:$0xff]  }
  0xf7   : >> { %3337 = vmatpush2.bf16.msra.mxu1 %v4835_v25  ;;  %3265 = vmatprep.subr.bf16.mxu0 %v4840_v26 }
  0xf8   : >> { %3338 = vmatprep.subr.bf16.mxu1 %v4843_v27 }
  0xfa   : >> { %3266 = vmatpush2.bf16.msra.mxu0 %v4838_v28  ;;  %v5074_v28 = vld [vmem:[%s5336_s9 + $0xc4] ss:$48 sps:$4 sm:$0xff]  }
  0xfb   : >> { %3339 = vmatpush2.bf16.msra.mxu1 %v4841_v29  ;;  %3267 = vmatprep.subr.bf16.mxu0 %v4846_v30  ;;  %v5075_v29 = vld [vmem:[%s5336_s9 + $0xcc] ss:$48 sps:$4 sm:$0xff]   ;;  %v4898_v30 = vld [vmem:[%s6788_s1 + $0x468] ss:$16 sps:$4 sm:$0xff]  }
  0xfc   : >> { %3340 = vmatprep.subr.bf16.mxu1 %v4849_v31  ;;  %v4901_v31 = vld [vmem:[%s6788_s1 + $0x668] ss:$16 sps:$4 sm:$0xff]  }
  0xfe   : >> { %3268 = vmatpush2.bf16.msra.mxu0 %v4844_v32 }
  0xff   : >> { %3341 = vmatpush2.bf16.msra.mxu1 %v4847_v33  ;;  %3269 = vmatprep.subr.bf16.mxu0 %v4852_v34  ;;  %v4906_v34 = vld [vmem:[%s6788_s1 + $0x44c] ss:$16 sps:$4 sm:$0xff]  }
 0x100   : >> { %3342 = vmatprep.subr.bf16.mxu1 %v4855_v35 }
 0x102   : >> { %3270 = vmatpush2.bf16.msra.mxu0 %v4850_v36  ;;  %v4909_v36 = vld [vmem:[%s6788_s1 + $0x64c] ss:$16 sps:$4 sm:$0xff]  }
 0x103   : >> { %3343 = vmatpush2.bf16.msra.mxu1 %v4853_v37  ;;  %3271 = vmatprep.subr.bf16.mxu0 %v4858_v38 }
 0x104   : >> { %3344 = vmatprep.subr.bf16.mxu1 %v4861_v39 }
 0x106   : >> { %3272 = vmatpush2.bf16.msra.mxu0 %v4856_v40  ;;  %v4904_v40 = vld [vmem:[%s6788_s1 + $0x448] ss:$16 sps:$4 sm:$0xff]  }
 0x107   : >> { %3345 = vmatpush2.bf16.msra.mxu1 %v4859_v41  ;;  %3273 = vmatprep.subr.bf16.mxu0 %v4864_v42  ;;  %v4907_v41 = vld [vmem:[%s6788_s1 + $0x648] ss:$16 sps:$4 sm:$0xff]  }
 0x108   : >> { %3346 = vmatprep.subr.bf16.mxu1 %v4867_v43 }
 0x10a   : >> { %3274 = vmatpush2.bf16.msra.mxu0 %v4862_v44  ;;  %v5076_v44 = vld [vmem:[%s5336_s9 + $0xc0] ss:$48 sps:$4 sm:$0xff]  }
 0x10b   : >> { %3347 = vmatpush2.bf16.msra.mxu1 %v4865_v45  ;;  %3275 = vmatprep.subr.bf16.mxu0 %v4870_v46  ;;  %v5077_v45 = vld [vmem:[%s5336_s9 + $0xc8] ss:$48 sps:$4 sm:$0xff]   ;;  %v4912_v46 = vld [vmem:[%s6788_s1 + $0x42c] ss:$16 sps:$4 sm:$0xff]  }
 0x10c   : >> { %3348 = vmatprep.subr.bf16.mxu1 %v4873_v47 }
 0x10e   : >> { %3276 = vmatpush2.bf16.msra.mxu0 %v4868_v48  ;;  %v4915_v48 = vld [vmem:[%s6788_s1 + $0x62c] ss:$16 sps:$4 sm:$0xff]  }
 0x10f   : >> { %3349 = vmatpush2.bf16.msra.mxu1 %v4871_v49  ;;  %3391 = vmatprep.subr.bf16.mxu0 %v4876_v50 }
 0x110   : >> { %3464 = vmatprep.subr.bf16.mxu1 %v4879_v51 }
 0x111   : >> { %v2841_v56 = vpop.f32.mrf.mxu0  ;;  %3278 = vmatmul.mubr.bf16.vlgmr.msra.gmra.mxu0 %v5068_v58  ;;  %v4918_v58 = vld [vmem:[%s6788_s1 + $0x40c] ss:$16 sps:$4 sm:$0xff]  }
 0x112   : >> { %v2914_v57 = vpop.f32.mrf.mxu1  ;;  %3351 = vmatmul.mubr.bf16.vlgmr.msra.gmra.mxu1 %v5069_v59  ;;  %3392 = vmatpush1.bf16.msra.mxu0 %v4874_v52  ;;  %v5078_v52 = vld [vmem:[%s5336_s9 + $0x124] ss:$48 sps:$4 sm:$0xff]  }
 0x113   : >> { %v6047_v62 = vadd.f32 %v2914_v57, %v2841_v56  ;;  %3465 = vmatpush1.bf16.msra.mxu1 %v4877_v53  ;;  %v2843_v0 = vpop.f32.mrf.mxu0  ;;  %3393 = vmatprep.subr.bf16.mxu0 %v4882_v54  ;;  %v5079_v53 = vld [vmem:[%s5336_s9 + $0x12c] ss:$48 sps:$4 sm:$0xff]   ;;  %v4910_v54 = vld [vmem:[%s6788_s1 + $0x428] ss:$16 sps:$4 sm:$0xff]  }
 0x114   : >> { %v2916_v1 = vpop.f32.mrf.mxu1  ;;  %3466 = vmatprep.subr.bf16.mxu1 %v4885_v55  ;;  %3287 = vmatprep.mubr.bf16.mxu0 %v5070_v4  ;;  %v4913_v55 = vld [vmem:[%s6788_s1 + $0x628] ss:$16 sps:$4 sm:$0xff]  }
 0x115   : >> { %v6055_v3 = vadd.f32 %v2916_v1, %v2843_v0  ;;  %3360 = vmatprep.mubr.bf16.mxu1 %v5071_v5  ;;  %v2845_v6 = vpop.f32.mrf.mxu0  ;;  %v4916_v1 = vld [vmem:[%s6788_s1 + $0x408] ss:$16 sps:$4 sm:$0xff]  }
 0x116   : >> { %v2918_v7 = vpop.f32.mrf.mxu1  ;;  %3394 = vmatpush1.bf16.msra.mxu0 %v4880_v60  ;;  %v4921_v60 = vld [vmem:[%s6788_s1 + $0x60c] ss:$16 sps:$4 sm:$0xff]  }
 0x117   : >> { %v6065_v10 = vadd.f32 %v2918_v7, %v2845_v6  ;;  %3467 = vmatpush1.bf16.msra.mxu1 %v4883_v61  ;;  %v2847_v12 = vpop.f32.mrf.mxu0  ;;  %3395 = vmatprep.subr.bf16.mxu0 %v4888_v63  ;;  %v5080_v6 = vld [vmem:[%s5336_s9 + $0x120] ss:$48 sps:$4 sm:$0xff]   ;;  %v5081_v7 = vld [vmem:[%s5336_s9 + $0x128] ss:$48 sps:$4 sm:$0xff]  }
 0x118   : >> { %v2920_v13 = vpop.f32.mrf.mxu1  ;;  %3468 = vmatprep.subr.bf16.mxu1 %v4891_v2  ;;  %v4919_v2 = vld [vmem:[%s6788_s1 + $0x608] ss:$16 sps:$4 sm:$0xff]  }
 0x119   : >> { %v6073_v15 = vadd.f32 %v2920_v13, %v2847_v12  ;;  %v2851_v18 = vpop.f32.mrf.mxu0  ;;  %3288 = vmatmul.mubr.bf16.gmra.mxu0 %v5072_v20  ;;  %v4922_v20 = vld [vmem:[%s6788_s1 + $0x5e8] ss:$16 sps:$4 sm:$0xff]  }
 0x11a   : >> { %v2924_v19 = vpop.f32.mrf.mxu1  ;;  %3361 = vmatmul.mubr.bf16.gmra.mxu1 %v5073_v21  ;;  %3396 = vmatpush1.bf16.msra.mxu0 %v4886_v8  ;;  %v4924_v8 = vld [vmem:[%s6788_s1 + $0x5ec] ss:$16 sps:$4 sm:$0xff]   ;;  %v4925_v21 = vld [vmem:[%s6788_s1 + $0x7e8] ss:$16 sps:$4 sm:$0xff]  }
 0x11b   : >> { %3469 = vmatpush1.bf16.msra.mxu1 %v4889_v9  ;;  %v6086_v23 = vadd.f32 %v2924_v19, %v2851_v18  ;;  %3397 = vmatprep.subr.bf16.mxu0 %v4894_v11  ;;  %v2853_v25 = vpop.f32.mrf.mxu0  ;;  %v4927_v11 = vld [vmem:[%s6788_s1 + $0x7ec] ss:$16 sps:$4 sm:$0xff]  }
 0x11c   : >> { %3470 = vmatprep.subr.bf16.mxu1 %v4897_v14  ;;  %v2926_v26 = vpop.f32.mrf.mxu1  ;;  %3297 = vmatprep.mubr.bf16.mxu0 %v5074_v28 }
 0x11d   : >> { %v6091_v27 = vadd.f32 %v2926_v26, %v2853_v25  ;;  %3370 = vmatprep.mubr.bf16.mxu1 %v5075_v29  ;;  %v2855_v32 = vpop.f32.mrf.mxu0  ;;  %v4933_v25 = vld [vmem:[%s6788_s1 + $0x7cc] ss:$16 sps:$4 sm:$0xff]  }
 0x11e   : >> { %v2928_v33 = vpop.f32.mrf.mxu1  ;;  %3398 = vmatpush1.bf16.msra.mxu0 %v4892_v16  ;;  %v5082_v16 = vld [vmem:[%s5336_s9 + $0x14] ss:$48 sps:$4 sm:$0xff]  }
 0x11f   : >> { %3471 = vmatpush1.bf16.msra.mxu1 %v4895_v17  ;;  %v6104_v35 = vadd.f32 %v2928_v33, %v2855_v32  ;;  %3399 = vmatprep.subr.bf16.mxu0 %v4900_v22  ;;  %v2857_v37 = vpop.f32.mrf.mxu0  ;;  %v5083_v17 = vld [vmem:[%s5336_s9 + $0x1c] ss:$48 sps:$4 sm:$0xff]  }
 0x120   : >> { %3472 = vmatprep.subr.bf16.mxu1 %v4903_v24  ;;  %v2930_v38 = vpop.f32.mrf.mxu1  ;;  %v4930_v24 = vld [vmem:[%s6788_s1 + $0x5cc] ss:$16 sps:$4 sm:$0xff]  }
 0x121   : >> { %v6109_v39 = vadd.f32 %v2930_v38, %v2857_v37  ;;  %v2861_v42 = vpop.f32.mrf.mxu0  ;;  %3298 = vmatmul.mubr.bf16.gmra.mxu0 %v5076_v44  ;;  %v4936_v32 = vld [vmem:[%s6788_s1 + $0x5ac] ss:$16 sps:$4 sm:$0xff]   ;;  %v4946_v44 = vld [vmem:[%s6788_s1 + $0x568] ss:$16 sps:$4 sm:$0xff]  }
 0x122   : >> { %v2934_v43 = vpop.f32.mrf.mxu1  ;;  %3371 = vmatmul.mubr.bf16.gmra.mxu1 %v5077_v45  ;;  %3400 = vmatpush1.bf16.msra.mxu0 %v4898_v30  ;;  %v4928_v30 = vld [vmem:[%s6788_s1 + $0x5c8] ss:$16 sps:$4 sm:$0xff]   ;;  %v4939_v33 = vld [vmem:[%s6788_s1 + $0x7ac] ss:$16 sps:$4 sm:$0xff]  }
 0x123   : >> { %3473 = vmatpush1.bf16.msra.mxu1 %v4901_v31  ;;  %v6122_v47 = vadd.f32 %v2934_v43, %v2861_v42  ;;  %3401 = vmatprep.subr.bf16.mxu0 %v4906_v34  ;;  %v2863_v49 = vpop.f32.mrf.mxu0  ;;  %v4931_v31 = vld [vmem:[%s6788_s1 + $0x7c8] ss:$16 sps:$4 sm:$0xff]   ;;  %v4942_v37 = vld [vmem:[%s6788_s1 + $0x58c] ss:$16 sps:$4 sm:$0xff]  }
 0x124   : >> { %3474 = vmatprep.subr.bf16.mxu1 %v4909_v36  ;;  %v2936_v50 = vpop.f32.mrf.mxu1  ;;  %3307 = vmatprep.mubr.bf16.mxu0 %v5078_v52  ;;  %v4934_v34 = vld [vmem:[%s6788_s1 + $0x5a8] ss:$16 sps:$4 sm:$0xff]   ;;  %v4945_v38 = vld [vmem:[%s6788_s1 + $0x78c] ss:$16 sps:$4 sm:$0xff]  }
 0x125   : >> { %v6127_v51 = vadd.f32 %v2936_v50, %v2863_v49  ;;  %3380 = vmatprep.mubr.bf16.mxu1 %v5079_v53  ;;  %v2865_v56 = vpop.f32.mrf.mxu0  ;;  %v4937_v36 = vld [vmem:[%s6788_s1 + $0x7a8] ss:$16 sps:$4 sm:$0xff]   ;;  %v4948_v42 = vld [vmem:[%s6788_s1 + $0x56c] ss:$16 sps:$4 sm:$0xff]  }
 0x126   : >> { %v2938_v57 = vpop.f32.mrf.mxu1  ;;  %3402 = vmatpush1.bf16.msra.mxu0 %v4904_v40  ;;  %v4940_v40 = vld [vmem:[%s6788_s1 + $0x588] ss:$16 sps:$4 sm:$0xff]   ;;  %v4951_v43 = vld [vmem:[%s6788_s1 + $0x76c] ss:$16 sps:$4 sm:$0xff]  }
 0x127   : >> { %3475 = vmatpush1.bf16.msra.mxu1 %v4907_v41  ;;  %v6140_v59 = vadd.f32 %v2938_v57, %v2865_v56  ;;  %3403 = vmatprep.subr.bf16.mxu0 %v4912_v46  ;;  %v2867_v61 = vpop.f32.mrf.mxu0  ;;  %v4943_v41 = vld [vmem:[%s6788_s1 + $0x788] ss:$16 sps:$4 sm:$0xff]   ;;  %v4954_v46 = vld [vmem:[%s6788_s1 + $0x54c] ss:$16 sps:$4 sm:$0xff]  }
 0x128   : >> { %3476 = vmatprep.subr.bf16.mxu1 %v4915_v48  ;;  %v2940_v63 = vpop.f32.mrf.mxu1  ;;  %v4949_v45 = vld [vmem:[%s6788_s1 + $0x768] ss:$16 sps:$4 sm:$0xff]   ;;  %v4957_v48 = vld [vmem:[%s6788_s1 + $0x74c] ss:$16 sps:$4 sm:$0xff]  }
 0x129   : >> { %v6145_v0 = vadd.f32 %v2940_v63, %v2867_v61  ;;  %v2871_v4 = vpop.f32.mrf.mxu0  ;;  %3308 = vmatmul.mubr.bf16.gmra.mxu0 %v5080_v6  ;;  %v4952_v49 = vld [vmem:[%s6788_s1 + $0x548] ss:$16 sps:$4 sm:$0xff]   ;;  %v4960_v52 = vld [vmem:[%s6788_s1 + $0x52c] ss:$16 sps:$4 sm:$0xff]  }
 0x12a   : >> { %v2944_v5 = vpop.f32.mrf.mxu1  ;;  %3381 = vmatmul.mubr.bf16.gmra.mxu1 %v5081_v7  ;;  %3404 = vmatpush1.bf16.msra.mxu0 %v4910_v54  ;;  %v4955_v50 = vld [vmem:[%s6788_s1 + $0x748] ss:$16 sps:$4 sm:$0xff]   ;;  %v4963_v53 = vld [vmem:[%s6788_s1 + $0x72c] ss:$16 sps:$4 sm:$0xff]  }
 0x12b   : >> { %3477 = vmatpush1.bf16.msra.mxu1 %v4913_v55  ;;  %v6158_v9 = vadd.f32 %v2944_v5, %v2871_v4  ;;  %3405 = vmatprep.subr.bf16.mxu0 %v4918_v58  ;;  %v2873_v12 = vpop.f32.mrf.mxu0  ;;  %v4958_v54 = vld [vmem:[%s6788_s1 + $0x528] ss:$16 sps:$4 sm:$0xff]   ;;  %v4966_v56 = vld [vmem:[%s6788_s1 + $0x50c] ss:$16 sps:$4 sm:$0xff]  }
 0x12c   : >> { %3478 = vmatprep.subr.bf16.mxu1 %v4921_v60  ;;  %v2946_v13 = vpop.f32.mrf.mxu1  ;;  %3423 = vmatprep.mubr.bf16.mxu0 %v5082_v16  ;;  %v4961_v55 = vld [vmem:[%s6788_s1 + $0x728] ss:$16 sps:$4 sm:$0xff]   ;;  %v4969_v57 = vld [vmem:[%s6788_s1 + $0x70c] ss:$16 sps:$4 sm:$0xff]  }
 0x12d   : >> { %v6163_v14 = vadd.f32 %v2946_v13, %v2873_v12  ;;  %3496 = vmatprep.mubr.bf16.mxu1 %v5083_v17  ;;  %v2875_v18 = vpop.f32.mrf.mxu0  ;;  %v4964_v58 = vld [vmem:[%s6788_s1 + $0x508] ss:$16 sps:$4 sm:$0xff]   ;;  %v4972_v61 = vld [vmem:[%s6788_s1 + $0x8ec] ss:$16 sps:$4 sm:$0xff]  }
 0x12e   : >> { %v2948_v19 = vpop.f32.mrf.mxu1  ;;  %3406 = vmatpush1.bf16.msra.mxu0 %v4916_v1  ;;  %v4967_v60 = vld [vmem:[%s6788_s1 + $0x708] ss:$16 sps:$4 sm:$0xff]   ;;  %v4975_v63 = vld [vmem:[%s6788_s1 + $0xaec] ss:$16 sps:$4 sm:$0xff]  }
 0x12f   : >> { %3479 = vmatpush1.bf16.msra.mxu1 %v4919_v2  ;;  %v6173_v22 = vadd.f32 %v2948_v19, %v2875_v18  ;;  %3407 = vmatprep.subr.bf16.mxu0 %v4924_v8  ;;  %v2877_v26 = vpop.f32.mrf.mxu0  ;;  %v4970_v1 = vld [vmem:[%s6788_s1 + $0x8e8] ss:$16 sps:$4 sm:$0xff]   ;;  %v4978_v4 = vld [vmem:[%s6788_s1 + $0x8cc] ss:$16 sps:$4 sm:$0xff]   ;;  %v5084_v8 = vld [vmem:[%s5336_s9 + $0x10] ss:$48 sps:$4 sm:$0xff]  }
 0x130   : >> { %3480 = vmatprep.subr.bf16.mxu1 %v4927_v11  ;;  %v2950_v28 = vpop.f32.mrf.mxu1  ;;  %v4973_v2 = vld [vmem:[%s6788_s1 + $0xae8] ss:$16 sps:$4 sm:$0xff]   ;;  %v4981_v5 = vld [vmem:[%s6788_s1 + $0xacc] ss:$16 sps:$4 sm:$0xff]  }
 0x131   : >> { %v6181_v29 = vadd.f32 %v2950_v28, %v2877_v26  ;;  %v5085_v11 = vld [vmem:[%s5336_s9 + $0x18] ss:$48 sps:$4 sm:$0xff]   ;;  %v4984_v19 = vld [vmem:[%s6788_s1 + $0x8ac] ss:$16 sps:$4 sm:$0xff]  }
 0x132   : >> { %3408 = vmatpush2.bf16.msra.mxu0 %v4922_v20  ;;  %v4976_v13 = vld [vmem:[%s6788_s1 + $0x8c8] ss:$16 sps:$4 sm:$0xff]  }
 0x133   : >> { %3481 = vmatpush2.bf16.msra.mxu1 %v4925_v21  ;;  %3409 = vmatprep.subr.bf16.mxu0 %v4930_v24  ;;  %v4979_v16 = vld [vmem:[%s6788_s1 + $0xac8] ss:$16 sps:$4 sm:$0xff]   ;;  %v5086_v24 = vld [vmem:[%s5336_s9 + $0x74] ss:$48 sps:$4 sm:$0xff]  }
 0x134   : >> { %3482 = vmatprep.subr.bf16.mxu1 %v4933_v25  ;;  %v5087_v25 = vld [vmem:[%s5336_s9 + $0x7c] ss:$48 sps:$4 sm:$0xff]  }
 0x136   : >> { %3410 = vmatpush2.bf16.msra.mxu0 %v4928_v30 }
 0x137   : >> { %3483 = vmatpush2.bf16.msra.mxu1 %v4931_v31  ;;  %3411 = vmatprep.subr.bf16.mxu0 %v4936_v32  ;;  %v4982_v32 = vld [vmem:[%s6788_s1 + $0x8a8] ss:$16 sps:$4 sm:$0xff]  }
 0x138   : >> { %3484 = vmatprep.subr.bf16.mxu1 %v4939_v33 }
 0x13a   : >> { %3412 = vmatpush2.bf16.msra.mxu0 %v4934_v34 }
 0x13b   : >> { %3485 = vmatpush2.bf16.msra.mxu1 %v4937_v36  ;;  %3413 = vmatprep.subr.bf16.mxu0 %v4942_v37  ;;  %v4990_v36 = vld [vmem:[%s6788_s1 + $0x88c] ss:$16 sps:$4 sm:$0xff]  }
 0x13c   : >> { %3486 = vmatprep.subr.bf16.mxu1 %v4945_v38 }
 0x13e   : >> { %3414 = vmatpush2.bf16.msra.mxu0 %v4940_v40 }
 0x13f   : >> { %3487 = vmatpush2.bf16.msra.mxu1 %v4943_v41  ;;  %3415 = vmatprep.subr.bf16.mxu0 %v4948_v42  ;;  %v5088_v41 = vld [vmem:[%s5336_s9 + $0x70] ss:$48 sps:$4 sm:$0xff]  }
 0x140   : >> { %3488 = vmatprep.subr.bf16.mxu1 %v4951_v43  ;;  %v5089_v43 = vld [vmem:[%s5336_s9 + $0x78] ss:$48 sps:$4 sm:$0xff]  }
 0x142   : >> { %3416 = vmatpush2.bf16.msra.mxu0 %v4946_v44 }
 0x143   : >> { %3489 = vmatpush2.bf16.msra.mxu1 %v4949_v45  ;;  %3417 = vmatprep.subr.bf16.mxu0 %v4954_v46  ;;  %v4988_v46 = vld [vmem:[%s6788_s1 + $0x888] ss:$16 sps:$4 sm:$0xff]  }
 0x144   : >> { %3490 = vmatprep.subr.bf16.mxu1 %v4957_v48 }
 0x146   : >> { %3418 = vmatpush2.bf16.msra.mxu0 %v4952_v49 }
 0x147   : >> { %3491 = vmatpush2.bf16.msra.mxu1 %v4955_v50  ;;  %3419 = vmatprep.subr.bf16.mxu0 %v4960_v52  ;;  %v4996_v50 = vld [vmem:[%s6788_s1 + $0x86c] ss:$16 sps:$4 sm:$0xff]  }
 0x148   : >> { %3492 = vmatprep.subr.bf16.mxu1 %v4963_v53 }
 0x14a   : >> { %3420 = vmatpush2.bf16.msra.mxu0 %v4958_v54  ;;  %v5090_v54 = vld [vmem:[%s5336_s9 + $0xd4] ss:$48 sps:$4 sm:$0xff]  }
 0x14b   : >> { %3493 = vmatpush2.bf16.msra.mxu1 %v4961_v55  ;;  %3421 = vmatprep.subr.bf16.mxu0 %v4966_v56  ;;  %v5091_v55 = vld [vmem:[%s5336_s9 + $0xdc] ss:$48 sps:$4 sm:$0xff]  }
 0x14c   : >> { %3494 = vmatprep.subr.bf16.mxu1 %v4969_v57 }
 0x14e   : >> { %3422 = vmatpush2.bf16.msra.mxu0 %v4964_v58 }
 0x14f   : >> { %3495 = vmatpush2.bf16.msra.mxu1 %v4967_v60  ;;  %3537 = vmatprep.subr.bf16.mxu0 %v4972_v61  ;;  %v4997_v61 = vld [vmem:[%s6788_s1 + $0xa68] ss:$16 sps:$4 sm:$0xff]  }
 0x150   : >> { %3610 = vmatprep.subr.bf16.mxu1 %v4975_v63 }
 0x151   : >> { %v2987_v6 = vpop.f32.mrf.mxu0  ;;  %3424 = vmatmul.mubr.bf16.vlgmr.msra.gmra.mxu0 %v5084_v8 }
 0x152   : >> { %v3060_v7 = vpop.f32.mrf.mxu1  ;;  %3497 = vmatmul.mubr.bf16.vlgmr.msra.gmra.mxu1 %v5085_v11  ;;  %v2988_v12 = vadd.f32 %v2987_v6, %v6047_v62  ;;  %3538 = vmatpush1.bf16.msra.mxu0 %v4970_v1  ;;  %v4987_v62 = vld [vmem:[%s6788_s1 + $0xaac] ss:$16 sps:$4 sm:$0xff]   ;;  %v5093_v11 = vld [vmem:[%s5336_s9 + $0xd8] ss:$48 sps:$4 sm:$0xff]  }
 0x153   : >> { %3611 = vmatpush1.bf16.msra.mxu1 %v4973_v2  ;;  %v2989_v17 = vpop.f32.mrf.mxu0  ;;  %3539 = vmatprep.subr.bf16.mxu0 %v4978_v4  ;;  %v5005_v2 = vld [vmem:[%s6788_s1 + $0xa4c] ss:$16 sps:$4 sm:$0xff]  }
 0x154   : >> { %v3062_v18 = vpop.f32.mrf.mxu1  ;;  %3612 = vmatprep.subr.bf16.mxu1 %v4981_v5  ;;  %v6294_v20 = vadd.f32 %v3060_v7, %v2988_v12  ;;  %v2990_v21 = vadd.f32 %v2989_v17, %v6055_v3  ;;  %3433 = vmatprep.mubr.bf16.mxu0 %v5086_v24  ;;  %v4985_v3 = vld [vmem:[%s6788_s1 + $0xaa8] ss:$16 sps:$4 sm:$0xff]   ;;  %v5092_v7 = vld [vmem:[%s5336_s9 + $0xd0] ss:$48 sps:$4 sm:$0xff]   ;;  %v5094_v24 = vld [vmem:[%s5336_s9 + $0x134] ss:$48 sps:$4 sm:$0xff]  }
 0x155   : >> { %3506 = vmatprep.mubr.bf16.mxu1 %v5087_v25  ;;  %v2991_v26 = vpop.f32.mrf.mxu0  ;;  %v5095_v25 = vld [vmem:[%s5336_s9 + $0x13c] ss:$48 sps:$4 sm:$0xff]  }
 0x156   : >> { %v3064_v28 = vpop.f32.mrf.mxu1  ;;  %v6299_v30 = vadd.f32 %v3062_v18, %v2990_v21  ;;  %v2992_v31 = vadd.f32 %v2991_v26, %v6065_v10  ;;  %3540 = vmatpush1.bf16.msra.mxu0 %v4976_v13  ;;  %v4993_v10 = vld [vmem:[%s6788_s1 + $0xa8c] ss:$16 sps:$4 sm:$0xff]  }
 0x157   : >> { %3613 = vmatpush1.bf16.msra.mxu1 %v4979_v16  ;;  %v2993_v33 = vpop.f32.mrf.mxu0  ;;  %3541 = vmatprep.subr.bf16.mxu0 %v4984_v19  ;;  %v5003_v16 = vld [vmem:[%s6788_s1 + $0xa48] ss:$16 sps:$4 sm:$0xff]   ;;  %v5011_v19 = vld [vmem:[%s6788_s1 + $0xa2c] ss:$16 sps:$4 sm:$0xff]  }
 0x158   : >> { %v3066_v34 = vpop.f32.mrf.mxu1  ;;  %3614 = vmatprep.subr.bf16.mxu1 %v4987_v62  ;;  %v6314_v37 = vadd.f32 %v3064_v28, %v2992_v31  ;;  %v2994_v38 = vadd.f32 %v2993_v33, %v6073_v15  ;;  %v4991_v15 = vld [vmem:[%s6788_s1 + $0xa88] ss:$16 sps:$4 sm:$0xff]  }
 0x159   : >> { %v2997_v40 = vpop.f32.mrf.mxu0  ;;  %3434 = vmatmul.mubr.bf16.gmra.mxu0 %v5088_v41  ;;  %v5096_v41 = vld [vmem:[%s5336_s9 + $0x130] ss:$48 sps:$4 sm:$0xff]  }
 0x15a   : >> { %v3070_v42 = vpop.f32.mrf.mxu1  ;;  %3507 = vmatmul.mubr.bf16.gmra.mxu1 %v5089_v43  ;;  %v6319_v44 = vadd.f32 %v3066_v34, %v2994_v38  ;;  %v2998_v45 = vadd.f32 %v2997_v40, %v6086_v23  ;;  %3542 = vmatpush1.bf16.msra.mxu0 %v4982_v32  ;;  %v4999_v23 = vld [vmem:[%s6788_s1 + $0xa6c] ss:$16 sps:$4 sm:$0xff]   ;;  %v5097_v43 = vld [vmem:[%s5336_s9 + $0x138] ss:$48 sps:$4 sm:$0xff]  }
 0x15b   : >> { %3615 = vmatpush1.bf16.msra.mxu1 %v4985_v3  ;;  %v2999_v48 = vpop.f32.mrf.mxu0  ;;  %3543 = vmatprep.subr.bf16.mxu0 %v4990_v36  ;;  %v5009_v3 = vld [vmem:[%s6788_s1 + $0xa28] ss:$16 sps:$4 sm:$0xff]   ;;  %v5017_v36 = vld [vmem:[%s6788_s1 + $0xa0c] ss:$16 sps:$4 sm:$0xff]  }
 0x15c   : >> { %v3072_v49 = vpop.f32.mrf.mxu1  ;;  %3616 = vmatprep.subr.bf16.mxu1 %v4993_v10  ;;  %v3000_v52 = vadd.f32 %v2999_v48, %v6091_v27  ;;  %v6335_v53 = vadd.f32 %v3070_v42, %v2998_v45  ;;  %3443 = vmatprep.mubr.bf16.mxu0 %v5090_v54  ;;  %v4994_v27 = vld [vmem:[%s6788_s1 + $0x868] ss:$16 sps:$4 sm:$0xff]   ;;  %v5098_v54 = vld [vmem:[%s5336_s9 + $0x24] ss:$48 sps:$4 sm:$0xff]  }
 0x15d   : >> { %3516 = vmatprep.mubr.bf16.mxu1 %v5091_v55  ;;  %v3001_v56 = vpop.f32.mrf.mxu0  ;;  %v5099_v55 = vld [vmem:[%s5336_s9 + $0x2c] ss:$48 sps:$4 sm:$0xff]  }
 0x15e   : >> { %v3074_v57 = vpop.f32.mrf.mxu1  ;;  %v3002_v58 = vadd.f32 %v3001_v56, %v6104_v35  ;;  %v6340_v60 = vadd.f32 %v3072_v49, %v3000_v52  ;;  %3544 = vmatpush1.bf16.msra.mxu0 %v4988_v46  ;;  %v5002_v35 = vld [vmem:[%s6788_s1 + $0x84c] ss:$16 sps:$4 sm:$0xff]  }
 0x15f   : >> { %3617 = vmatpush1.bf16.msra.mxu1 %v4991_v15  ;;  %v3003_v63 = vpop.f32.mrf.mxu0  ;;  %3545 = vmatprep.subr.bf16.mxu0 %v4996_v50  ;;  %v5015_v15 = vld [vmem:[%s6788_s1 + $0xa08] ss:$16 sps:$4 sm:$0xff]   ;;  %v5023_v50 = vld [vmem:[%s6788_s1 + $0xbec] ss:$16 sps:$4 sm:$0xff]  }
 0x160   : >> { %v3076_v1 = vpop.f32.mrf.mxu1  ;;  %3618 = vmatprep.subr.bf16.mxu1 %v4999_v23  ;;  %v3004_v4 = vadd.f32 %v3003_v63, %v6109_v39  ;;  %v6355_v5 = vadd.f32 %v3074_v57, %v3002_v58  ;;  %v5000_v39 = vld [vmem:[%s6788_s1 + $0x848] ss:$16 sps:$4 sm:$0xff]  }
 0x161   : >> { %v3007_v6 = vpop.f32.mrf.mxu0  ;;  %3444 = vmatmul.mubr.bf16.gmra.mxu0 %v5092_v7  ;;  %v5024_v7 = vld [vmem:[%s6788_s1 + $0x9c8] ss:$16 sps:$4 sm:$0xff]  }
 0x162   : >> { %v3080_v8 = vpop.f32.mrf.mxu1  ;;  %3517 = vmatmul.mubr.bf16.gmra.mxu1 %v5093_v11  ;;  %v3008_v12 = vadd.f32 %v3007_v6, %v6122_v47  ;;  %v6360_v13 = vadd.f32 %v3076_v1, %v3004_v4  ;;  %3546 = vmatpush1.bf16.msra.mxu0 %v4994_v27  ;;  %v5008_v47 = vld [vmem:[%s6788_s1 + $0x82c] ss:$16 sps:$4 sm:$0xff]  }
 0x163   : >> { %3619 = vmatpush1.bf16.msra.mxu1 %v4997_v61  ;;  %v3009_v17 = vpop.f32.mrf.mxu0  ;;  %3547 = vmatprep.subr.bf16.mxu0 %v5002_v35  ;;  %v5018_v61 = vld [vmem:[%s6788_s1 + $0x9e8] ss:$16 sps:$4 sm:$0xff]   ;;  %v5029_v35 = vld [vmem:[%s6788_s1 + $0xbcc] ss:$16 sps:$4 sm:$0xff]  }
 0x164   : >> { %v3082_v18 = vpop.f32.mrf.mxu1  ;;  %3620 = vmatprep.subr.bf16.mxu1 %v5005_v2  ;;  %v3010_v62 = vadd.f32 %v3009_v17, %v6127_v51  ;;  %v6375_v21 = vadd.f32 %v3080_v8, %v3008_v12  ;;  %3453 = vmatprep.mubr.bf16.mxu0 %v5094_v24  ;;  %v5006_v51 = vld [vmem:[%s6788_s1 + $0x828] ss:$16 sps:$4 sm:$0xff]   ;;  %v5035_v11 = vld [vmem:[%s6788_s1 + $0xbac] ss:$16 sps:$4 sm:$0xff]  }
 0x165   : >> { %3526 = vmatprep.mubr.bf16.mxu1 %v5095_v25  ;;  %v3011_v26 = vpop.f32.mrf.mxu0  ;;  %v5027_v8 = vld [vmem:[%s6788_s1 + $0xbc8] ss:$16 sps:$4 sm:$0xff]   ;;  %v5041_v17 = vld [vmem:[%s6788_s1 + $0xb8c] ss:$16 sps:$4 sm:$0xff]  }
 0x166   : >> { %v3084_v28 = vpop.f32.mrf.mxu1  ;;  %v3012_v31 = vadd.f32 %v3011_v26, %v6140_v59  ;;  %v6380_v32 = vadd.f32 %v3082_v18, %v3010_v62  ;;  %3548 = vmatpush1.bf16.msra.mxu0 %v5000_v39  ;;  %v5014_v59 = vld [vmem:[%s6788_s1 + $0x80c] ss:$16 sps:$4 sm:$0xff]   ;;  %v5030_v12 = vld [vmem:[%s6788_s1 + $0x9a8] ss:$16 sps:$4 sm:$0xff]  }
 0x167   : >> { %3621 = vmatpush1.bf16.msra.mxu1 %v5003_v16  ;;  %v3013_v33 = vpop.f32.mrf.mxu0  ;;  %3549 = vmatprep.subr.bf16.mxu0 %v5008_v47  ;;  %v5033_v39 = vld [vmem:[%s6788_s1 + $0xba8] ss:$16 sps:$4 sm:$0xff]   ;;  %v5038_v16 = vld [vmem:[%s6788_s1 + $0x98c] ss:$16 sps:$4 sm:$0xff]  }
 0x168   : >> { %v3086_v34 = vpop.f32.mrf.mxu1  ;;  %3622 = vmatprep.subr.bf16.mxu1 %v5011_v19  ;;  %v3014_v10 = vadd.f32 %v3013_v33, %v6145_v0  ;;  %v6395_v38 = vadd.f32 %v3084_v28, %v3012_v31  ;;  %v5012_v0 = vld [vmem:[%s6788_s1 + $0x808] ss:$16 sps:$4 sm:$0xff]   ;;  %v5044_v19 = vld [vmem:[%s6788_s1 + $0x96c] ss:$16 sps:$4 sm:$0xff]  }
 0x169   : >> { %v3017_v40 = vpop.f32.mrf.mxu0  ;;  %3454 = vmatmul.mubr.bf16.gmra.mxu0 %v5096_v41  ;;  %v5036_v18 = vld [vmem:[%s6788_s1 + $0x988] ss:$16 sps:$4 sm:$0xff]   ;;  %v5047_v62 = vld [vmem:[%s6788_s1 + $0xb6c] ss:$16 sps:$4 sm:$0xff]  }
 0x16a   : >> { %v3090_v42 = vpop.f32.mrf.mxu1  ;;  %3527 = vmatmul.mubr.bf16.gmra.mxu1 %v5097_v43  ;;  %v3018_v45 = vadd.f32 %v3017_v40, %v6158_v9  ;;  %v6400_v46 = vadd.f32 %v3086_v34, %v3014_v10  ;;  %3550 = vmatpush1.bf16.msra.mxu0 %v5006_v51  ;;  %v5020_v9 = vld [vmem:[%s6788_s1 + $0x9ec] ss:$16 sps:$4 sm:$0xff]   ;;  %v5039_v47 = vld [vmem:[%s6788_s1 + $0xb88] ss:$16 sps:$4 sm:$0xff]  }
 0x16b   : >> { %3623 = vmatpush1.bf16.msra.mxu1 %v5009_v3  ;;  %v3019_v48 = vpop.f32.mrf.mxu0  ;;  %3551 = vmatprep.subr.bf16.mxu0 %v5014_v59  ;;  %v5042_v24 = vld [vmem:[%s6788_s1 + $0x968] ss:$16 sps:$4 sm:$0xff]   ;;  %v5050_v26 = vld [vmem:[%s6788_s1 + $0x94c] ss:$16 sps:$4 sm:$0xff]  }
 0x16c   : >> { %v3092_v49 = vpop.f32.mrf.mxu1  ;;  %3624 = vmatprep.subr.bf16.mxu1 %v5017_v36  ;;  %v3020_v23 = vadd.f32 %v3019_v48, %v6163_v14  ;;  %v6415_v52 = vadd.f32 %v3090_v42, %v3018_v45  ;;  %3569 = vmatprep.mubr.bf16.mxu0 %v5098_v54  ;;  %v5021_v14 = vld [vmem:[%s6788_s1 + $0xbe8] ss:$16 sps:$4 sm:$0xff]   ;;  %v5053_v28 = vld [vmem:[%s6788_s1 + $0xb4c] ss:$16 sps:$4 sm:$0xff]   ;;  %v5100_v45 = vld [vmem:[%s5336_s9 + $0x20] ss:$48 sps:$4 sm:$0xff]  }
 0x16d   : >> { %3642 = vmatprep.mubr.bf16.mxu1 %v5099_v55  ;;  %v3021_v56 = vpop.f32.mrf.mxu0  ;;  %v5045_v25 = vld [vmem:[%s6788_s1 + $0xb68] ss:$16 sps:$4 sm:$0xff]   ;;  %v5056_v3 = vld [vmem:[%s6788_s1 + $0x92c] ss:$16 sps:$4 sm:$0xff]   ;;  %v5102_v48 = vld [vmem:[%s5336_s9 + $0x84] ss:$48 sps:$4 sm:$0xff]  }
 0x16e   : >> { %v3094_v57 = vpop.f32.mrf.mxu1  ;;  %v3022_v58 = vadd.f32 %v3021_v56, %v6173_v22  ;;  %v6420_v27 = vadd.f32 %v3092_v49, %v3020_v23  ;;  %3552 = vmatpush1.bf16.msra.mxu0 %v5012_v0  ;;  %v5026_v22 = vld [vmem:[%s6788_s1 + $0x9cc] ss:$16 sps:$4 sm:$0xff]   ;;  %v5048_v31 = vld [vmem:[%s6788_s1 + $0x948] ss:$16 sps:$4 sm:$0xff]  }
 0x16f   : >> { %3625 = vmatpush1.bf16.msra.mxu1 %v5015_v15  ;;  %v3023_v63 = vpop.f32.mrf.mxu0  ;;  %3553 = vmatprep.subr.bf16.mxu0 %v5020_v9  ;;  %v5051_v51 = vld [vmem:[%s6788_s1 + $0xb48] ss:$16 sps:$4 sm:$0xff]   ;;  %v5059_v33 = vld [vmem:[%s6788_s1 + $0xb2c] ss:$16 sps:$4 sm:$0xff]  }
 0x170   : >> { %v3096_v1 = vpop.f32.mrf.mxu1  ;;  %3626 = vmatprep.subr.bf16.mxu1 %v5023_v50  ;;  %v3024_v2 = vadd.f32 %v3023_v63, %v6181_v29  ;;  %v6435_v4 = vadd.f32 %v3094_v57, %v3022_v58  ;;  %v5032_v29 = vld [vmem:[%s6788_s1 + $0x9ac] ss:$16 sps:$4 sm:$0xff]   ;;  %v5054_v34 = vld [vmem:[%s6788_s1 + $0x928] ss:$16 sps:$4 sm:$0xff]  }
 0x171   : >> { %v5057_v59 = vld [vmem:[%s6788_s1 + $0xb28] ss:$16 sps:$4 sm:$0xff]   ;;  %v5062_v36 = vld [vmem:[%s6788_s1 + $0x90c] ss:$16 sps:$4 sm:$0xff]  }
 0x172   : >> { %v6437_v6 = vadd.f32 %v3096_v1, %v3024_v2  ;;  %3554 = vmatpush2.bf16.msra.mxu0 %v5018_v61  ;;  %v5065_v10 = vld [vmem:[%s6788_s1 + $0xb0c] ss:$16 sps:$4 sm:$0xff]   ;;  %v5060_v40 = vld [vmem:[%s6788_s1 + $0x908] ss:$16 sps:$4 sm:$0xff]  }
 0x173   : >> { %3627 = vmatpush2.bf16.msra.mxu1 %v5021_v14  ;;  %3555 = vmatprep.subr.bf16.mxu0 %v5026_v22  ;;  %v5063_v41 = vld [vmem:[%s6788_s1 + $0xb08] ss:$16 sps:$4 sm:$0xff]   ;;  %v5103_v49 = vld [vmem:[%s5336_s9 + $0x8c] ss:$48 sps:$4 sm:$0xff]   ;;  %v5104_v22 = vld [vmem:[%s5336_s9 + $0x80] ss:$48 sps:$4 sm:$0xff]  }
 0x174   : >> { %3628 = vmatprep.subr.bf16.mxu1 %v5029_v35  ;;  %v5101_v0 = vld [vmem:[%s5336_s9 + $0x28] ss:$48 sps:$4 sm:$0xff]  }
 0x175   : >> { %v5105_v35 = vld [vmem:[%s5336_s9 + $0x88] ss:$48 sps:$4 sm:$0xff]  }
 0x176   : >> { %3556 = vmatpush2.bf16.msra.mxu0 %v5024_v7 }
 0x177   : >> { %3629 = vmatpush2.bf16.msra.mxu1 %v5027_v8  ;;  %3557 = vmatprep.subr.bf16.mxu0 %v5032_v29  ;;  %v5106_v8 = vld [vmem:[%s5336_s9 + $0xe4] ss:$48 sps:$4 sm:$0xff]  }
 0x178   : >> { %3630 = vmatprep.subr.bf16.mxu1 %v5035_v11 }
 0x17a   : >> { %3558 = vmatpush2.bf16.msra.mxu0 %v5030_v12 }
 0x17b   : >> { %3631 = vmatpush2.bf16.msra.mxu1 %v5033_v39  ;;  %3559 = vmatprep.subr.bf16.mxu0 %v5038_v16 }
 0x17c   : >> { %3632 = vmatprep.subr.bf16.mxu1 %v5041_v17 }
 0x17e   : >> { %3560 = vmatpush2.bf16.msra.mxu0 %v5036_v18 }
 0x17f   : >> { %3633 = vmatpush2.bf16.msra.mxu1 %v5039_v47  ;;  %3561 = vmatprep.subr.bf16.mxu0 %v5044_v19 }
 0x180   : >> { %3634 = vmatprep.subr.bf16.mxu1 %v5047_v62 }
 0x182   : >> { %3562 = vmatpush2.bf16.msra.mxu0 %v5042_v24 }
 0x183   : >> { %3635 = vmatpush2.bf16.msra.mxu1 %v5045_v25  ;;  %3563 = vmatprep.subr.bf16.mxu0 %v5050_v26  ;;  %v5108_v25 = vld [vmem:[%s5336_s9 + $0xe0] ss:$48 sps:$4 sm:$0xff]  }
 0x184   : >> { %3636 = vmatprep.subr.bf16.mxu1 %v5053_v28 }
 0x186   : >> { %3564 = vmatpush2.bf16.msra.mxu0 %v5048_v31 }
 0x187   : >> { %3637 = vmatpush2.bf16.msra.mxu1 %v5051_v51  ;;  %3565 = vmatprep.subr.bf16.mxu0 %v5056_v3  ;;  %v5111_v51 = vld [vmem:[%s5336_s9 + $0x14c] ss:$48 sps:$4 sm:$0xff]  }
 0x188   : >> { %3638 = vmatprep.subr.bf16.mxu1 %v5059_v33 }
 0x18a   : >> { %3566 = vmatpush2.bf16.msra.mxu0 %v5054_v34 }
 0x18b   : >> { %3639 = vmatpush2.bf16.msra.mxu1 %v5057_v59  ;;  %3567 = vmatprep.subr.bf16.mxu0 %v5062_v36 }
 0x18c   : >> { %3640 = vmatprep.subr.bf16.mxu1 %v5065_v10 }
 0x18e   : >> { %3568 = vmatpush2.bf16.msra.mxu0 %v5060_v40 }
 0x18f   : >> { %3641 = vmatpush2.bf16.msra.mxu1 %v5063_v41 }
 0x191   : >> { %v3133_v42 = vpop.f32.mrf.mxu0  ;;  %3570 = vmatmul.mubr.bf16.vlgmr.msra.gmra.mxu0 %v5100_v45 }
 0x192   : >> { %v3206_v43 = vpop.f32.mrf.mxu1  ;;  %3643 = vmatmul.mubr.bf16.vlgmr.msra.gmra.mxu1 %v5101_v0  ;;  %v3134_v15 = vadd.f32 %v3133_v42, %v6294_v20  ;;  %3579 = vmatprep.mubr.bf16.mxu0 %v5102_v48  ;;  %v5112_v0 = vld [vmem:[%s5336_s9 + $0x140] ss:$48 sps:$4 sm:$0xff]  }
 0x193   : >> { %3652 = vmatprep.mubr.bf16.mxu1 %v5103_v49  ;;  %v3135_v9 = vpop.f32.mrf.mxu0 }
 0x194   : >> { %v3208_v50 = vpop.f32.mrf.mxu1  ;;  %v6522_v23 = vadd.f32 %v3206_v43, %v3134_v15  ;;  %v3136_v54 = vadd.f32 %v3135_v9, %v6299_v30  ;;  %v5113_v15 = vld [vmem:[%s5336_s9 + $0x148] ss:$48 sps:$4 sm:$0xff]  }
 0x195   : >> { %v3137_v55 = vpop.f32.mrf.mxu0 }
 0x196   : >> { %v3210_v56 = vpop.f32.mrf.mxu1  ;;  %v6525_v57 = vadd.f32 %v3208_v50, %v3136_v54  ;;  %v3138_v20 = vadd.f32 %v3137_v55, %v6314_v37  ;;  %v5107_v37 = vld [vmem:[%s5336_s9 + $0xec] ss:$48 sps:$4 sm:$0xff]  }
 0x197   : >> { %v3139_v58 = vpop.f32.mrf.mxu0 }
 0x198   : >> { %v3212_v61 = vpop.f32.mrf.mxu1  ;;  %v6528_v14 = vadd.f32 %v3210_v56, %v3138_v20  ;;  %v3140_v63 = vadd.f32 %v3139_v58, %v6319_v44 }
 0x199   : >> { %v3143_v1 = vpop.f32.mrf.mxu0  ;;  %3580 = vmatmul.mubr.bf16.gmra.mxu0 %v5104_v22 }
 0x19a   : >> { %3653 = vmatmul.mubr.bf16.gmra.mxu1 %v5105_v35  ;;  %v3216_v30 = vpop.f32.mrf.mxu1  ;;  %v6533_v2 = vadd.f32 %v3212_v61, %v3140_v63  ;;  %v3144_v7 = vadd.f32 %v3143_v1, %v6335_v53  ;;  %3589 = vmatprep.mubr.bf16.mxu0 %v5106_v8 }
 0x19b   : >> { %3662 = vmatprep.mubr.bf16.mxu1 %v5107_v37  ;;  %v3145_v29 = vpop.f32.mrf.mxu0 }
 0x19c   : >> { %v3218_v11 = vpop.f32.mrf.mxu1  ;;  %v3146_v44 = vadd.f32 %v3145_v29, %v6340_v60  ;;  %v6539_v12 = vadd.f32 %v3216_v30, %v3144_v7  ;;  %v5109_v60 = vld [vmem:[%s5336_s9 + $0xe8] ss:$48 sps:$4 sm:$0xff]  }
 0x19d   : >> { %v3147_v39 = vpop.f32.mrf.mxu0 }
 0x19e   : >> { %v3220_v16 = vpop.f32.mrf.mxu1  ;;  %v3148_v17 = vadd.f32 %v3147_v39, %v6355_v5  ;;  %v6542_v18 = vadd.f32 %v3218_v11, %v3146_v44  ;;  %v5110_v5 = vld [vmem:[%s5336_s9 + $0x144] ss:$48 sps:$4 sm:$0xff]   ;;  %s3829_s9 = scalar_lea.vmem %s5192_s25, %s4384_s6 }
 0x19f   : >> { %v3149_v53 = vpop.f32.mrf.mxu0 }
 0x1a0   : >> { %6791 = vst [vmem:[#allocation2_spill] sm:$0xff] %v6542_v18  ;;  %v3222_v47 = vpop.f32.mrf.mxu1  ;;  %v3150_v19 = vadd.f32 %v3149_v53, %v6360_v13  ;;  %v6545_v62 = vadd.f32 %v3220_v16, %v3148_v17 }
 0x1a1   : >> { %v3153_v24 = vpop.f32.mrf.mxu0  ;;  %3590 = vmatmul.mubr.bf16.gmra.mxu0 %v5108_v25 }
 0x1a2   : >> { %6792 = vst [vmem:[#allocation3_spill] sm:$0xff] %v6545_v62  ;;  %3663 = vmatmul.mubr.bf16.gmra.mxu1 %v5109_v60  ;;  %v3226_v26 = vpop.f32.mrf.mxu1  ;;  %v3154_v28 = vadd.f32 %v3153_v24, %v6375_v21  ;;  %v6550_v31 = vadd.f32 %v3222_v47, %v3150_v19  ;;  %3599 = vmatprep.mubr.bf16.mxu0 %v5110_v5 }
 0x1a3   : >> { %3672 = vmatprep.mubr.bf16.mxu1 %v5111_v51  ;;  %v3155_v3 = vpop.f32.mrf.mxu0 }
 0x1a4   : >> { %6793 = vst [vmem:[#allocation4_spill] sm:$0xff] %v6550_v31  ;;  %v3228_v13 = vpop.f32.mrf.mxu1  ;;  %v3156_v33 = vadd.f32 %v3155_v3, %v6380_v32  ;;  %v6555_v34 = vadd.f32 %v3226_v26, %v3154_v28 }
 0x1a5   : >> { %v3157_v59 = vpop.f32.mrf.mxu0 }
 0x1a6   : >> { %6794 = vst [vmem:[#allocation5_spill] sm:$0xff] %v6555_v34  ;;  %v3230_v36 = vpop.f32.mrf.mxu1  ;;  %v3158_v10 = vadd.f32 %v3157_v59, %v6395_v38  ;;  %v6558_v40 = vadd.f32 %v3228_v13, %v3156_v33 }
 0x1a7   : >> { %v3159_v21 = vpop.f32.mrf.mxu0 }
 0x1a8   : >> { %6795 = vst [vmem:[#allocation6_spill] sm:$0xff] %v6558_v40  ;;  %v3232_v41 = vpop.f32.mrf.mxu1  ;;  %v3160_v42 = vadd.f32 %v3159_v21, %v6400_v46  ;;  %v6561_v43 = vadd.f32 %v3230_v36, %v3158_v10 }
 0x1a9   : >> { %v3163_v45 = vpop.f32.mrf.mxu0  ;;  %3600 = vmatmul.mubr.bf16.gmra.mxu0 %v5112_v0 }
 0x1aa   : >> { %6796 = vst [vmem:[#allocation7_spill] sm:$0xff] %v6561_v43  ;;  %3673 = vmatmul.mubr.bf16.gmra.mxu1 %v5113_v15  ;;  %v3236_v32 = vpop.f32.mrf.mxu1  ;;  %v3164_v48 = vadd.f32 %v3163_v45, %v6415_v52  ;;  %v6566_v49 = vadd.f32 %v3232_v41, %v3160_v42 }
 0x1ab   : >> { %v3165_v9 = vpop.f32.mrf.mxu0 }
 0x1ac   : >> { %6797 = vst [vmem:[#allocation8_spill] sm:$0xff] %v6566_v49  ;;  %v3238_v38 = vpop.f32.mrf.mxu1  ;;  %v3166_v50 = vadd.f32 %v3165_v9, %v6420_v27  ;;  %v6569_v54 = vadd.f32 %v3236_v32, %v3164_v48 }
 0x1ad   : >> { %v3167_v55 = vpop.f32.mrf.mxu0 }
 0x1ae   : >> { %6798 = vst [vmem:[#allocation9_spill] sm:$0xff] %v6569_v54  ;;  %v3240_v46 = vpop.f32.mrf.mxu1  ;;  %v3168_v56 = vadd.f32 %v3167_v55, %v6435_v4  ;;  %v6572_v20 = vadd.f32 %v3238_v38, %v3166_v50 }
 0x1af   : >> { %v3169_v58 = vpop.f32.mrf.mxu0 }
 0x1b0   : >> { %6799 = vst [vmem:[#allocation10_spill] sm:$0xff] %v6572_v20  ;;  %v3242_v61 = vpop.f32.mrf.mxu1  ;;  %v3170_v63 = vadd.f32 %v3169_v58, %v6437_v6  ;;  %v6575_v1 = vadd.f32 %v3240_v46, %v3168_v56 }
 0x1b2   : >> { %6800 = vst [vmem:[#allocation11_spill] sm:$0xff] %v6575_v1  ;;  %v6577_v52 = vadd.f32 %v3242_v61, %v3170_v63 }
 0x1b4   : >> { %6801 = vst [vmem:[#allocation12_spill] sm:$0xff] %v6577_v52 }
 0x1d1   : >> { %v3279_v22 = vpop.f32.mrf.mxu0 }
 0x1d2   : >> { %v3352_v35 = vpop.f32.mrf.mxu1 }
 0x1d3   : >> { %v3281_v30 = vpop.f32.mrf.mxu0 }
 0x1d4   : >> { %v3354_v27 = vpop.f32.mrf.mxu1 }
 0x1d5   : >> { %v3283_v7 = vpop.f32.mrf.mxu0  ;;  %v3355_v62 = vadd.f32 %v3354_v27, %v3281_v30 }
 0x1d6   : >> { %v3356_v8 = vpop.f32.mrf.mxu1 }
 0x1d7   : >> { %v6579_v37 = vpop.f32.mrf.mxu0 }
 0x1d8   : >> { %v6581_v29 = vpop.f32.mrf.mxu1 }
 0x1d9   : >> { %v6583_v4 = vpop.f32.mrf.mxu0 }
 0x1da   : >> { %v6585_v11 = vpop.f32.mrf.mxu1 }
 0x1db   : >> { %v6587_v44 = vpop.f32.mrf.mxu0 }
 0x1dc   : >> { %v6589_v6 = vpop.f32.mrf.mxu1 }
 0x1dd   : >> { %v6591_v39 = vpop.f32.mrf.mxu0 }
 0x1de   : >> { %v6593_v16 = vpop.f32.mrf.mxu1 }
 0x1df   : >> { %v6595_v17 = vpop.f32.mrf.mxu0 }
 0x1e0   : >> { %v6597_v53 = vpop.f32.mrf.mxu1 }
 0x1e1   : >> { %v6599_v47 = vpop.f32.mrf.mxu0 }
 0x1e2   : >> { %v6601_v19 = vpop.f32.mrf.mxu1 }
 0x1e3   : >> { %v6603_v24 = vpop.f32.mrf.mxu0 }
 0x1e4   : >> { %v6605_v25 = vpop.f32.mrf.mxu1 }
 0x1e5   : >> { %v6607_v60 = vpop.f32.mrf.mxu0 }
 0x1e6   : >> { %v6609_v26 = vpop.f32.mrf.mxu1 }
 0x1e7   : >> { %v6611_v28 = vpop.f32.mrf.mxu0 }
 0x1e8   : >> { %v6613_v5 = vpop.f32.mrf.mxu1 }
 0x1e9   : >> { %v6615_v51 = vpop.f32.mrf.mxu0 }
 0x1ea   : >> { %v6617_v3 = vpop.f32.mrf.mxu1 }
 0x1eb   : >> { %6802 = vst [vmem:[#allocation13_spill] sm:$0xff] %v6617_v3  ;;  %v6619_v13 = vpop.f32.mrf.mxu0 }
 0x1ec   : >> { %6803 = vst [vmem:[#allocation14_spill] sm:$0xff] %v6619_v13  ;;  %v6621_v33 = vpop.f32.mrf.mxu1 }
 0x1ed   : >> { %6804 = vst [vmem:[#allocation15_spill] sm:$0xff] %v6621_v33  ;;  %v6623_v59 = vpop.f32.mrf.mxu0  ;;  %v3353_v33 = vadd.f32 %v3352_v35, %v3279_v22 }
 0x1ee   : >> { %6805 = vst [vmem:[#allocation16_spill] sm:$0xff] %v6623_v59  ;;  %v6625_v36 = vpop.f32.mrf.mxu1 }
 0x1ef   : >> { %6806 = vst [vmem:[#allocation17_spill] sm:$0xff] %v6625_v36  ;;  %v6627_v10 = vpop.f32.mrf.mxu0 }
 0x1f0   : >> { %6807 = vst [vmem:[#allocation18_spill] sm:$0xff] %v6627_v10  ;;  %v6629_v21 = vpop.f32.mrf.mxu1 }
 0x1f1   : >> { %6808 = vst [vmem:[#allocation19_spill] sm:$0xff] %v6629_v21 }
 0x211   : >> { %v3425_v41 = vpop.f32.mrf.mxu0 }
 0x212   : >> { %v3498_v42 = vpop.f32.mrf.mxu1  ;;  %v3426_v18 = vadd.f32 %v3425_v41, %v3353_v33 }
 0x213   : >> { %v3427_v45 = vpop.f32.mrf.mxu0 }
 0x214   : >> { %v3500_v0 = vpop.f32.mrf.mxu1 }
 0x215   : >> { %v3429_v15 = vpop.f32.mrf.mxu0 }
 0x216   : >> { %v3502_v32 = vpop.f32.mrf.mxu1 }
 0x217   : >> { %v3431_v48 = vpop.f32.mrf.mxu0 }
 0x218   : >> { %v3504_v9 = vpop.f32.mrf.mxu1 }
 0x219   : >> { %v3435_v38 = vpop.f32.mrf.mxu0 }
 0x21a   : >> { %v3508_v50 = vpop.f32.mrf.mxu1 }
 0x21b   : >> { %v3437_v55 = vpop.f32.mrf.mxu0 }
 0x21c   : >> { %v6631_v46 = vpop.f32.mrf.mxu1 }
 0x21d   : >> { %v3439_v56 = vpop.f32.mrf.mxu0 }
 0x21e   : >> { %v6633_v58 = vpop.f32.mrf.mxu1 }
 0x21f   : >> { %v6635_v61 = vpop.f32.mrf.mxu0 }
 0x220   : >> { %v6637_v63 = vpop.f32.mrf.mxu1 }
 0x221   : >> { %v6639_v52 = vpop.f32.mrf.mxu0 }
 0x222   : >> { %v6641_v20 = vpop.f32.mrf.mxu1 }
 0x223   : >> { %v6643_v1 = vpop.f32.mrf.mxu0 }
 0x224   : >> { %v6645_v54 = vpop.f32.mrf.mxu1 }
 0x225   : >> { %6809 = vst [vmem:[#allocation20_spill] sm:$0xff] %v6645_v54  ;;  %v6647_v49 = vpop.f32.mrf.mxu0  ;;  %v3357_v54 = vadd.f32 %v3356_v8, %v3283_v7 }
 0x226   : >> { %v6649_v40 = vpop.f32.mrf.mxu1 }
 0x227   : >> { %6810 = vst [vmem:[#allocation21_spill] sm:$0xff] %v6649_v40  ;;  %v6651_v43 = vpop.f32.mrf.mxu0  ;;  %v3704_v40 = vlaneseq }
 0x228   : >> { %6811 = vst [vmem:[#allocation22_spill] sm:$0xff] %v6651_v43  ;;  %v6653_v34 = vpop.f32.mrf.mxu1  ;;  %v3428_v43 = vadd.f32 %v3427_v45, %v3355_v62  ;;  %v3365_v62 = vadd.f32 %v6589_v6, %v6587_v44  ;;  %v3367_v44 = vadd.f32 %v6593_v16, %v6591_v39 }
 0x229   : >> { %6812 = vst [vmem:[#allocation23_spill] sm:$0xff] %v6653_v34  ;;  %v6655_v21 = vpop.f32.mrf.mxu0  ;;  %v3705_v35 = vshrl.u32 %v3704_v40, 7 }
 0x22a   : >> { %6813 = vst [vmem:[#allocation24_spill] sm:$0xff] %v6655_v21  ;;  %v6657_v10 = vpop.f32.mrf.mxu1  ;;  %v3430_v21 = vadd.f32 %v3429_v15, %v3357_v54  ;;  %v3501_v30 = vadd.f32 %v3500_v0, %v3428_v43 }
 0x22b   : >> { %6814 = vst [vmem:[#allocation25_spill] sm:$0xff] %v6657_v10  ;;  %v6659_v36 = vpop.f32.mrf.mxu0  ;;  %v3359_v10 = vadd.f32 %v6581_v29, %v6579_v37 }
 0x22c   : >> { %6815 = vst [vmem:[#allocation26_spill] sm:$0xff] %v6659_v36  ;;  %v6661_v59 = vpop.f32.mrf.mxu1  ;;  %v3499_v36 = vadd.f32 %v3498_v42, %v3426_v18  ;;  %v3503_v41 = vadd.f32 %v3502_v32, %v3430_v21  ;;  %v3438_v18 = vadd.f32 %v3437_v55, %v3365_v62  ;;  %v6677_v42 = vsub.s32 0, %v3705_v35 }
 0x22d   : >> { %6816 = vst [vmem:[#allocation27_spill] sm:$0xff] %v6661_v59  ;;  %v6663_v13 = vpop.f32.mrf.mxu0  ;;  %v3432_v27 = vadd.f32 %v3431_v48, %v3359_v10  ;;  %v3369_v10 = vadd.f32 %v6597_v53, %v6595_v17  ;;  %v6698_v17 = vld [vmem:[%s6789_s2] sm:$0x3]  ;;  %v3375_v53 = vadd.f32 %v6605_v25, %v6603_v24 }
 0x22e   : >> { %v6665_v31 = vpop.f32.mrf.mxu1  ;;  %v3511_v32 = vadd.f32 %v6631_v46, %v3438_v18 }
 0x22f   : >> { %6817 = vst [vmem:[#allocation28_spill] sm:$0xff] %v6665_v31  ;;  %v6667_v3 = vpop.f32.mrf.mxu0  ;;  %v3363_v31 = vadd.f32 %v6585_v11, %v6583_v4  ;;  %v3505_v40 = vadd.f32 %v3504_v9, %v3432_v27  ;;  %v3702_v11 = vld [vmem:[%s6789_s2] sm:$0x3]  ;;  %v3442_v9 = vadd.f32 %v6635_v61, %v3369_v10  ;;  %v3377_v27 = vadd.f32 %v6609_v26, %v6607_v60 }
 0x230   : >> { %v6669_v34 = vpop.f32.mrf.mxu1  ;;  %v3707_v48 = vrot.slane %v3702_v11, %v6677_v42  ;;  %v3448_v24 = vadd.f32 %v6643_v1, %v3375_v53 }
 0x231   : >> { %6818 = vst [vmem:[#allocation29_spill] sm:$0xff] %v6669_v34  ;;  %v3436_v45 = vadd.f32 %v3435_v38, %v3363_v31  ;;  %v3515_v62 = vadd.f32 %v6637_v63, %v3442_v9  ;;  %v3450_v60 = vadd.f32 %v6647_v49, %v3377_v27  ;;  %v6820_v49 = vld [vmem:[#allocation20_spill] sm:$0xff]  ;;  %v6833_v27 = vld [vmem:[#allocation23_spill] sm:$0xff] }
 0x233   : >> { %v3509_v21 = vadd.f32 %v3508_v50, %v3436_v45 }
 0x251   : >> { %v3571_v59 = vpop.f32.mrf.mxu0 }
 0x252   : >> { %v3644_v22 = vpop.f32.mrf.mxu1  ;;  %v3572_v33 = vadd.f32 %v3571_v59, %v3499_v36  ;;  %v6685_v36 = vsub.s32 1, %v3705_v35 }
 0x253   : >> { %v3573_v7 = vpop.f32.mrf.mxu0 }
 0x254   : >> { %v3646_v8 = vpop.f32.mrf.mxu1  ;;  %v3645_v34 = vadd.f32 %v3644_v22, %v3572_v33  ;;  %v3574_v37 = vadd.f32 %v3573_v7, %v3501_v30  ;;  %v3711_v50 = vrot.slane %v3702_v11, %v6685_v36 }
 0x255   : >> { %v3575_v54 = vpop.f32.mrf.mxu0 }
 0x256   : >> { %v3648_v29 = vpop.f32.mrf.mxu1  ;;  %v3683_v4 = vmax.f32 %v6522_v23, %v3645_v34  ;;  %v3576_v43 = vadd.f32 %v3575_v54, %v3503_v41  ;;  %v3647_v6 = vadd.f32 %v3646_v8, %v3574_v37  ;;  %v3373_v23 = vadd.f32 %v6601_v19, %v6599_v47 }
 0x257   : >> { %v3577_v31 = vpop.f32.mrf.mxu0  ;;  %v3440_v34 = vadd.f32 %v3439_v56, %v3367_v44  ;;  %v3379_v41 = vadd.f32 %v6613_v5, %v6611_v28  ;;  %v6819_v28 = vld [vmem:[#allocation13_spill] sm:$0xff]  ;;  %v3521_v54 = vadd.f32 %v6820_v49, %v3448_v24 }
 0x258   : >> { %v3650_v59 = vpop.f32.mrf.mxu1  ;;  %v3649_v0 = vadd.f32 %v3648_v29, %v3576_v43  ;;  %v3578_v15 = vadd.f32 %v3577_v31, %v3505_v40  ;;  %v3446_v47 = vadd.f32 %v6639_v52, %v3373_v23  ;;  %v3684_v19 = vmax.f32 %v6525_v57, %v3647_v6  ;;  %v6821_v29 = vld [vmem:[#allocation22_spill] sm:$0xff] }
 0x259   : >> { %v3581_v39 = vpop.f32.mrf.mxu0  ;;  %v3513_v33 = vadd.f32 %v6633_v58, %v3440_v34  ;;  %v3739_v57 = vrot.slane %v6698_v17, %v6677_v42  ;;  %v3383_v5 = vadd.f32 %v6819_v28, %v6615_v51  ;;  %v3452_v40 = vadd.f32 %v6821_v29, %v3379_v41  ;;  %v6825_v51 = vld [vmem:[#allocation3_spill] sm:$0xff] }
 0x25a   : >> { %v3654_v16 = vpop.f32.mrf.mxu1  ;;  %v3685_v38 = vmax.f32 %v6528_v14, %v3649_v0  ;;  %v3651_v55 = vadd.f32 %v3650_v59, %v3578_v15  ;;  %v3582_v22 = vadd.f32 %v3581_v39, %v3509_v21  ;;  %v3519_v37 = vadd.f32 %v6641_v20, %v3446_v47  ;;  %v6822_v59 = vld [vmem:[#allocation21_spill] sm:$0xff]  ;;  %v6823_v21 = vld [vmem:[#allocation24_spill] sm:$0xff]  ;;  %v6824_v15 = vld [vmem:[#allocation2_spill] sm:$0xff] }
 0x25b   : >> { %v3583_v46 = vpop.f32.mrf.mxu0  ;;  %v3523_v10 = vadd.f32 %v6822_v59, %v3450_v60  ;;  %v3456_v0 = vadd.f32 %v6823_v21, %v3383_v5  ;;  %v6829_v47 = vld [vmem:[#allocation16_spill] sm:$0xff] }
 0x25c   : >> { %v3656_v56 = vpop.f32.mrf.mxu1  ;;  %v3700_v61 = vmax.f32 %v3683_v4, %v3685_v38  ;;  %v3686_v14 = vmax.f32 %v6533_v2, %v3651_v55  ;;  %v3655_v35 = vadd.f32 %v3654_v16, %v3582_v22  ;;  %v3584_v30 = vadd.f32 %v3583_v46, %v3511_v32  ;;  %v6826_v16 = vld [vmem:[#allocation4_spill] sm:$0xff]  ;;  %v6827_v22 = vld [vmem:[#allocation14_spill] sm:$0xff] }
 0x25d   : >> { %v3585_v52 = vpop.f32.mrf.mxu0  ;;  %v6831_v46 = vld [vmem:[#allocation18_spill] sm:$0xff] }
 0x25e   : >> { %v3658_v25 = vpop.f32.mrf.mxu1  ;;  %v3714_v7 = vadd.f32 %v3707_v48, %v3700_v61  ;;  %v3701_v8 = vmax.f32 %v3684_v19, %v3686_v14  ;;  %v3687_v2 = vmax.f32 %v6539_v12, %v3655_v35  ;;  %v3657_v26 = vadd.f32 %v3656_v56, %v3584_v30  ;;  %v6830_v19 = vld [vmem:[#allocation17_spill] sm:$0xff]  ;;  %v6832_v56 = vld [vmem:[#allocation19_spill] sm:$0xff] }
 0x25f   : >> { %v3586_v58 = vadd.f32 %v3585_v52, %v3513_v33  ;;  %v3587_v45 = vpop.f32.mrf.mxu0  ;;  %v3743_v12 = vrot.slane %v6698_v17, %v6685_v36  ;;  %v6828_v17 = vld [vmem:[#allocation15_spill] sm:$0xff]  ;;  %v3389_v61 = vadd.f32 %v6832_v56, %v6831_v46  ;;  %v3525_v33 = vadd.f32 %v6833_v27, %v3452_v40  ;;  %v6834_v52 = vld [vmem:[#allocation5_spill] sm:$0xff] }
 0x260   : >> { %v3660_v1 = vpop.f32.mrf.mxu1  ;;  %v3715_v18 = vadd.f32 %v3711_v50, %v3701_v8  ;;  %v3588_v63 = vadd.f32 %v3587_v45, %v3515_v62  ;;  %v3716_v11 = vmax.f32 %v3714_v7, 0.0  ;;  %v3688_v23 = vmax.f32 %v6824_v15, %v3657_v26  ;;  %v3767_v7 = vld [vmem:[%s6789_s2] sm:$0x3] }
 0x261   : >> { %v3659_v4 = vadd.f32 %v3658_v25, %v3586_v58  ;;  %v3591_v43 = vpop.f32.mrf.mxu0  ;;  %v3385_v53 = vadd.f32 %v6828_v17, %v6827_v22  ;;  %v3387_v50 = vadd.f32 %v6830_v19, %v6829_v47  ;;  %v6835_v8 = vld [vmem:[#allocation26_spill] sm:$0xff]  ;;  %v3462_v5 = vadd.f32 %v6667_v3, %v3389_v61  ;;  %v6843_v22 = vld [vmem:[#allocation9_spill] sm:$0xff] }
 0x262   : >> { %v3664_v20 = vpop.f32.mrf.mxu1  ;;  %v3717_v44 = vmax.f32 %v3715_v18, 0.0  ;;  %v3661_v6 = vadd.f32 %v3660_v1, %v3588_v63  ;;  %v3592_v31 = vadd.f32 %v3591_v43, %v3519_v37  ;;  %v6836_v1 = vld [vmem:[#allocation25_spill] sm:$0xff]  ;;  %v3776_v3 = vrot.slane %v3767_v7, %v6685_v36  ;;  %v3800_v47 = vld [vmem:[%s6789_s2] sm:$0x3] }
 0x263   : >> { %v3689_v34 = vmax.f32 %v6825_v51, %v3659_v4  ;;  %v3593_v32 = vpop.f32.mrf.mxu0  ;;  %v3458_v41 = vadd.f32 %v6835_v8, %v3385_v53  ;;  %v3529_v37 = vadd.f32 %v6836_v1, %v3456_v0 }
 0x264   : >> { %v3666_v48 = vpop.f32.mrf.mxu1  ;;  %v4377_v39 = vpack.c.bf16 %v3717_v44, %v3716_v11  ;;  %v3690_v9 = vmax.f32 %v6826_v16, %v3661_v6  ;;  %v3665_v38 = vadd.f32 %v3664_v20, %v3592_v31  ;;  %v3594_v55 = vadd.f32 %v3593_v32, %v3521_v54  ;;  %v6838_v11 = vld [vmem:[#allocation27_spill] sm:$0xff]  ;;  %v6840_v31 = vld [vmem:[#allocation6_spill] sm:$0xff]  ;;  %v6842_v32 = vld [vmem:[#allocation29_spill] sm:$0xff] }
 0x265   : >> { %v3732_v14 = vmax.f32 %v3687_v2, %v3689_v34  ;;  %v3595_v35 = vpop.f32.mrf.mxu0  ;;  %v3460_v2 = vadd.f32 %v6663_v13, %v3387_v50  ;;  %v3772_v54 = vrot.slane %v3767_v7, %v6677_v42  ;;  %v3531_v44 = vadd.f32 %v6838_v11, %v3458_v41  ;;  %v6845_v7 = vld [vmem:[#allocation10_spill] sm:$0xff] }
 0x266   : >> { %v3668_v30 = vpop.f32.mrf.mxu1  ;;  %3731 = vst [vmem:[%s3730_s16] sm:$0xff] %v4377_v39  ;;  %v3733_v24 = vmax.f32 %v3688_v23, %v3690_v9  ;;  %v3691_v25 = vmax.f32 %v6834_v52, %v3665_v38  ;;  %v3596_v62 = vadd.f32 %v3595_v35, %v3523_v10  ;;  %v3667_v26 = vadd.f32 %v3666_v48, %v3594_v55  ;;  %v6841_v23 = vld [vmem:[#allocation8_spill] sm:$0xff] }
 0x267   : >> { %v3746_v60 = vadd.f32 %v3739_v57, %v3732_v14  ;;  %v3597_v58 = vpop.f32.mrf.mxu0  ;;  %v6837_v57 = vld [vmem:[#allocation7_spill] sm:$0xff]  ;;  %v3535_v48 = vadd.f32 %v6842_v32, %v3462_v5  ;;  %v3805_v14 = vrot.slane %v3800_v47, %v6677_v42 }
 0x268   : >> { %v3670_v45 = vpop.f32.mrf.mxu1  ;;  %v3747_v18 = vadd.f32 %v3743_v12, %v3733_v24  ;;  %v3669_v63 = vadd.f32 %v3668_v30, %v3596_v62  ;;  %v3598_v28 = vadd.f32 %v3597_v58, %v3525_v33  ;;  %v6839_v12 = vld [vmem:[#allocation28_spill] sm:$0xff]  ;;  %v3692_v59 = vmax.f32 %v6840_v31, %v3667_v26  ;;  %v6844_v33 = vld [vmem:[#allocation11_spill] sm:$0xff] }
 0x269   : >> { %v3748_v49 = vmax.f32 %v3746_v60, 0.0  ;;  %v3601_v29 = vpop.f32.mrf.mxu0  ;;  %v3533_v6 = vadd.f32 %v6839_v12, %v3460_v2  ;;  %v6846_v2 = vld [vmem:[#allocation12_spill] sm:$0xff] }
 0x26a   : >> { %v3674_v40 = vpop.f32.mrf.mxu1  ;;  %v3749_v13 = vmax.f32 %v3747_v18, 0.0  ;;  %v3693_v4 = vmax.f32 %v6837_v57, %v3669_v63  ;;  %v3671_v43 = vadd.f32 %v3670_v45, %v3598_v28  ;;  %v3602_v20 = vadd.f32 %v3601_v29, %v3529_v37 }
 0x26b   : >> { %v3603_v10 = vpop.f32.mrf.mxu0 }
 0x26c   : >> { %v3676_v21 = vpop.f32.mrf.mxu1  ;;  %v4379_v0 = vpack.c.bf16 %v3749_v13, %v3748_v49  ;;  %v3765_v15 = vmax.f32 %v3691_v25, %v3693_v4  ;;  %v3694_v51 = vmax.f32 %v6841_v23, %v3671_v43  ;;  %v3675_v34 = vadd.f32 %v3674_v40, %v3602_v20 }
 0x26d   : >> { %v3604_v39 = vadd.f32 %v3603_v10, %v3531_v44  ;;  %v3605_v16 = vpop.f32.mrf.mxu0  ;;  %v3809_v25 = vrot.slane %v3800_v47, %v6685_v36 }
 0x26e   : >> { %v3678_v9 = vpop.f32.mrf.mxu1  ;;  %3764 = vst [vmem:[%s3763_s23] sm:$0xff] %v4379_v0  ;;  %v3779_v38 = vadd.f32 %v3772_v54, %v3765_v15  ;;  %v3766_v55 = vmax.f32 %v3692_v59, %v3694_v51  ;;  %v3695_v17 = vmax.f32 %v6843_v22, %v3675_v34  ;;  %v3606_v53 = vadd.f32 %v3605_v16, %v3533_v6 }
 0x26f   : >> { %v3607_v19 = vpop.f32.mrf.mxu0  ;;  %v3677_v46 = vadd.f32 %v3676_v21, %v3604_v39 }
 0x270   : >> { %v3780_v50 = vadd.f32 %v3776_v3, %v3766_v55  ;;  %v3679_v56 = vadd.f32 %v3678_v9, %v3606_v53  ;;  %v3608_v61 = vadd.f32 %v3607_v19, %v3535_v48  ;;  %v3680_v35 = vpop.f32.mrf.mxu1  ;;  %v3781_v30 = vmax.f32 %v3779_v38, 0.0 }
 0x271   : >> { %v3696_v8 = vmax.f32 %v6845_v7, %v3677_v46 }
 0x272   : >> { %v3782_v27 = vmax.f32 %v3780_v50, 0.0  ;;  %v3697_v24 = vmax.f32 %v6844_v33, %v3679_v56  ;;  %v3681_v52 = vadd.f32 %v3680_v35, %v3608_v61 }
 0x274   : >> { %v4381_v62 = vpack.c.bf16 %v3782_v27, %v3781_v30  ;;  %v3798_v41 = vmax.f32 %v3695_v17, %v3697_v24  ;;  %v3698_v60 = vmax.f32 %v6846_v2, %v3681_v52 }
 0x276   : >> { %3797 = vst [vmem:[%s3796_s4] sm:$0xff] %v4381_v62  ;;  %v3812_v42 = vadd.f32 %v3805_v14, %v3798_v41  ;;  %v3799_v26 = vmax.f32 %v3696_v8, %v3698_v60 }
 0x278   : >> { %v3813_v58 = vadd.f32 %v3809_v25, %v3799_v26  ;;  %v3814_v45 = vmax.f32 %v3812_v42, 0.0 }
 0x27a   : >> { %v3815_v1 = vmax.f32 %v3813_v58, 0.0  ;;  %207 = sbr.rel (!%p205_p6) target bundleno = 16 (0x10), region = 74 }
 0x27c   : >> { %v4383_v37 = vpack.c.bf16 %v3815_v1, %v3814_v45 }
 0x27e   : >> { %3830 = vst [vmem:[%s3829_s9] sm:$0xff] %v4383_v37 }
 0x27f PF: > { %s13_s14 = sadd.s32 1, %s5140_s14   ;;  %s6847_s12 = smov %s5136_s13 }
 0x280   : > { %p10_p7 = scmp.ge.s32.totalorder %s13_s14, 4   ;;  %s6848_s13 = smov %s6850_s15 }
 0x282   :  { %12 = sbr.rel (!%p10_p7) target bundleno = 2 (0x2), region = 85 }

// kernel: attributes_network_forward.15
= control target key start
LH: loop header
LB: loop body
LE: loop exit
PB: predicated region body
PF: predicated region fallthrough
CT: control target
= control target key end

     0   :  { %s5599_s12 = smov 0   ;;  %s6255_s0 = inlined_call_operand.vmem [shape: bf16[2,16384], index: 0, kind: input, shape index: {}]   ;;  %s6256_s1 = inlined_call_operand.vmem [shape: bf16[16384,256], index: 1, kind: input, shape index: {}]   ;;  %s6257_s2 = inlined_call_operand.vmem [shape: f32[1,256], index: 2, kind: input, shape index: {}]   ;;  %s6258_s3 = inlined_call_operand.vmem [shape: bf16[2,256], index: 3, kind: output, shape index: {}]  }
   0x1 LB: > { %s5605_s13 = sadd.s32 4294967295, %s5574_s12   ;;  %p4261_p0 = scmp.ge.s32.totalorder %s5574_s12, 1  ;;  %s5574_s12 = sphi %s5599_s12, %s13_s12  }
   0x2   : > { %p144_p1 = scmp.lt.s32.totalorder %s5574_s12, 5 }
   0x4   : > { %p145_p2 = pnand %p4261_p0, %p144_p1 }
   0x5   : > { %s4262_s14 = sshll.u32 (!%p145_p2), %s5605_s13, 5  ;;  %s4263_s15 = sshll.u32 (!%p145_p2), %s5605_s13, 9 }
   0x6   : > { %148 = sbr.rel (%p145_p2) target bundleno = 760 (0x2f8), region = 32  ;;  %p169_p3 = scmp.lt.s32.totalorder (!%p145_p2), %s4262_s14, 127 }
   0x7   : > { %p174_p4 = scmp.lt.s32.totalorder (!%p145_p2), %s4263_s15, 2047  ;;  %p4266_p5 = scmp.ne.s32.totalorder (!%p145_p2), %s5605_s13, 0 }
   0xb   : > { %s6260_s14 = smov (!%p169_p3, %s4262_s14), 127  ;;  %s6262_s15 = smov (!%p174_p4, %s4263_s15), 2047 }
   0xc   : > { %s5614_s18 = scalar_lea.vmem %s6255_s0, %s6260_s14  ;;  %s4784_s19 = sshll.u32 %s6262_s15, 3 }
   0xd   : > { %s5619_s22 = scalar_lea.vmem %s6256_s1, %s4784_s19  ;;  %183 = sbr.rel (%p4266_p5) target bundleno = 20 (0x14), region = 36 }
  0x12   : > { %v5576_v0 = vmov 0.0  }
  0x13   : > { %184 = vst [vmem:[#allocation2] sm:$0xf] %v5576_v0 }
  0x14 PF: > { %v4796_v1 = vld [vmem:[%s5619_s22 + $0x74] ss:$8 sps:$4 sm:$0xff]   ;;  %v4800_v3 = vld [vmem:[%s5619_s22 + $0x70] ss:$8 sps:$4 sm:$0xff]   ;;  %v4802_v5 = vld [vmem:[%s5619_s22 + $0x64] ss:$8 sps:$4 sm:$0xff]   ;;  %v710_v39 = vlaneseq }
  0x15   : > { %v4798_v2 = vld [vmem:[%s5619_s22 + $0x174] ss:$8 sps:$4 sm:$0xff]   ;;  %3494 = vmatprep.subr.bf16.mxu0 %v4796_v1  ;;  %v4801_v4 = vld [vmem:[%s5619_s22 + $0x170] ss:$8 sps:$4 sm:$0xff]   ;;  %v4804_v6 = vld [vmem:[%s5619_s22 + $0x164] ss:$8 sps:$4 sm:$0xff]  }
  0x16   : > { %3535 = vmatprep.subr.bf16.mxu1 %v4798_v2  ;;  %3495 = vmatpush1.bf16.msra.mxu0 %v4800_v3  ;;  %v4806_v7 = vld [vmem:[%s5619_s22 + $0x60] ss:$8 sps:$4 sm:$0xff]   ;;  %v4808_v9 = vld [vmem:[%s5619_s22 + $0x54] ss:$8 sps:$4 sm:$0xff]   ;;  %v4812_v11 = vld [vmem:[%s5619_s22 + $0x50] ss:$8 sps:$4 sm:$0xff]  }
  0x17   : > { %3536 = vmatpush1.bf16.msra.mxu1 %v4801_v4  ;;  %3496 = vmatprep.subr.bf16.mxu0 %v4802_v5  ;;  %v4807_v8 = vld [vmem:[%s5619_s22 + $0x160] ss:$8 sps:$4 sm:$0xff]   ;;  %v4810_v10 = vld [vmem:[%s5619_s22 + $0x154] ss:$8 sps:$4 sm:$0xff]   ;;  %v4813_v12 = vld [vmem:[%s5619_s22 + $0x150] ss:$8 sps:$4 sm:$0xff]  }
  0x18   : > { %3537 = vmatprep.subr.bf16.mxu1 %v4804_v6  ;;  %v4814_v13 = vld [vmem:[%s5619_s22 + $0x44] ss:$8 sps:$4 sm:$0xff]   ;;  %v4818_v15 = vld [vmem:[%s5619_s22 + $0x40] ss:$8 sps:$4 sm:$0xff]   ;;  %v4820_v17 = vld [vmem:[%s5619_s22 + $0x34] ss:$8 sps:$4 sm:$0xff]  }
  0x19   : > { %v4816_v14 = vld [vmem:[%s5619_s22 + $0x144] ss:$8 sps:$4 sm:$0xff]   ;;  %v4819_v16 = vld [vmem:[%s5619_s22 + $0x140] ss:$8 sps:$4 sm:$0xff]   ;;  %v4822_v18 = vld [vmem:[%s5619_s22 + $0x134] ss:$8 sps:$4 sm:$0xff]  }
  0x1a   : > { %3497 = vmatpush1.bf16.msra.mxu0 %v4806_v7  ;;  %v4824_v19 = vld [vmem:[%s5619_s22 + $0x30] ss:$8 sps:$4 sm:$0xff]   ;;  %v4826_v21 = vld [vmem:[%s5619_s22 + $0x24] ss:$8 sps:$4 sm:$0xff]   ;;  %v4830_v23 = vld [vmem:[%s5619_s22 + $0x20] ss:$8 sps:$4 sm:$0xff]  }
  0x1b   : > { %3538 = vmatpush1.bf16.msra.mxu1 %v4807_v8  ;;  %3498 = vmatprep.subr.bf16.mxu0 %v4808_v9  ;;  %v4825_v20 = vld [vmem:[%s5619_s22 + $0x130] ss:$8 sps:$4 sm:$0xff]   ;;  %v4828_v22 = vld [vmem:[%s5619_s22 + $0x124] ss:$8 sps:$4 sm:$0xff]   ;;  %v4831_v24 = vld [vmem:[%s5619_s22 + $0x120] ss:$8 sps:$4 sm:$0xff]  }
  0x1c   : > { %3539 = vmatprep.subr.bf16.mxu1 %v4810_v10  ;;  %v4832_v25 = vld [vmem:[%s5619_s22 + $0x14] ss:$8 sps:$4 sm:$0xff]   ;;  %v4836_v27 = vld [vmem:[%s5619_s22 + $0x10] ss:$8 sps:$4 sm:$0xff]   ;;  %v4838_v29 = vld [vmem:[%s5619_s22 + $0x4] ss:$8 sps:$4 sm:$0xff]  }
  0x1d   : > { %v4834_v26 = vld [vmem:[%s5619_s22 + $0x114] ss:$8 sps:$4 sm:$0xff]   ;;  %v4837_v28 = vld [vmem:[%s5619_s22 + $0x110] ss:$8 sps:$4 sm:$0xff]   ;;  %v4840_v30 = vld [vmem:[%s5619_s22 + $0x104] ss:$8 sps:$4 sm:$0xff]  }
  0x1e   : > { %3499 = vmatpush1.bf16.msra.mxu0 %v4812_v11  ;;  %v4842_v31 = vld [vmem:[%s5619_s22] ss:$8 sps:$4 sm:$0xff]   ;;  %v4844_v33 = vld [vmem:[%s5619_s22 + $0xf4] ss:$8 sps:$4 sm:$0xff]   ;;  %v4848_v35 = vld [vmem:[%s5619_s22 + $0xf0] ss:$8 sps:$4 sm:$0xff]  }
  0x1f   : > { %3540 = vmatpush1.bf16.msra.mxu1 %v4813_v12  ;;  %3500 = vmatprep.subr.bf16.mxu0 %v4814_v13  ;;  %v4843_v32 = vld [vmem:[%s5619_s22 + $0x100] ss:$8 sps:$4 sm:$0xff]   ;;  %v4846_v34 = vld [vmem:[%s5619_s22 + $0x1f4] ss:$8 sps:$4 sm:$0xff]   ;;  %v4849_v36 = vld [vmem:[%s5619_s22 + $0x1f0] ss:$8 sps:$4 sm:$0xff]  }
  0x20   : > { %3541 = vmatprep.subr.bf16.mxu1 %v4816_v14  ;;  %v5577_v37 = vmov 1966171168   ;;  %v4850_v40 = vld [vmem:[%s5619_s22 + $0xe4] ss:$8 sps:$4 sm:$0xff]   ;;  %v4854_v42 = vld [vmem:[%s5619_s22 + $0xe0] ss:$8 sps:$4 sm:$0xff]  }
  0x21   : > { %v708_v38 = vunpack.c.l.s4 %v5577_v37  ;;  %v4852_v41 = vld [vmem:[%s5619_s22 + $0x1e4] ss:$8 sps:$4 sm:$0xff]   ;;  %v5661_v44 = vshrl.u32 %v710_v39, 7  ;;  %v4855_v45 = vld [vmem:[%s5619_s22 + $0x1e0] ss:$8 sps:$4 sm:$0xff]   ;;  %p4779_p6 = scmp.ne.s32.totalorder %s5605_s13, 3 }
  0x22   : > { %3501 = vmatpush1.bf16.msra.mxu0 %v4818_v15  ;;  %v4856_v46 = vld [vmem:[%s5619_s22 + $0xd4] ss:$8 sps:$4 sm:$0xff]   ;;  %v4860_v48 = vld [vmem:[%s5619_s22 + $0xd0] ss:$8 sps:$4 sm:$0xff]   ;;  %v4862_v51 = vld [vmem:[%s5619_s22 + $0xc4] ss:$8 sps:$4 sm:$0xff]  }
  0x23   : > { %3542 = vmatpush1.bf16.msra.mxu1 %v4819_v16  ;;  %3502 = vmatprep.subr.bf16.mxu0 %v4820_v17  ;;  %v709_v43 = vunpack.c.0.s8 %v708_v38  ;;  %v4858_v47 = vld [vmem:[%s5619_s22 + $0x1d4] ss:$8 sps:$4 sm:$0xff]   ;;  %v4861_v49 = vld [vmem:[%s5619_s22 + $0x1d0] ss:$8 sps:$4 sm:$0xff]   ;;  %v4864_v52 = vld [vmem:[%s5619_s22 + $0x1c4] ss:$8 sps:$4 sm:$0xff]  }
  0x24   : > { %3543 = vmatprep.subr.bf16.mxu1 %v4822_v18  ;;  %v186_v53 = vld [vmem:[%s5614_s18] sm:$0xff]  ;;  %v4868_v57 = vld [vmem:[%s5619_s22 + $0xb4] ss:$8 sps:$4 sm:$0xff]   ;;  %v4872_v60 = vld [vmem:[%s5619_s22 + $0xb0] ss:$8 sps:$4 sm:$0xff]  }
  0x25   : > { %v5669_v50 = vsub.s32 %v709_v43, %v5661_v44  ;;  %v4866_v54 = vld [vmem:[%s5619_s22 + $0xc0] ss:$8 sps:$4 sm:$0xff]   ;;  %v4870_v58 = vld [vmem:[%s5619_s22 + $0x1b4] ss:$8 sps:$4 sm:$0xff]   ;;  %v4873_v62 = vld [vmem:[%s5619_s22 + $0x1b0] ss:$8 sps:$4 sm:$0xff]   ;;  %v706_v2 = vcombine.high %v186_v53, %v186_v53 }
  0x26   : > { %3503 = vmatpush1.bf16.msra.mxu0 %v4824_v19  ;;  %v4867_v56 = vld [vmem:[%s5619_s22 + $0x1c0] ss:$8 sps:$4 sm:$0xff]   ;;  %v4874_v63 = vld [vmem:[%s5619_s22 + $0xa4] ss:$8 sps:$4 sm:$0xff]   ;;  %v4880_v5 = vld [vmem:[%s5619_s22 + $0x94] ss:$8 sps:$4 sm:$0xff]  }
  0x27   : > { %3544 = vmatpush1.bf16.msra.mxu1 %v4825_v20  ;;  %3504 = vmatprep.subr.bf16.mxu0 %v4826_v21  ;;  %v713_v55 = vrot.slane %v186_v53, %v5669_v50  ;;  %v4876_v0 = vld [vmem:[%s5619_s22 + $0x1a4] ss:$8 sps:$4 sm:$0xff]   ;;  %v4878_v3 = vld [vmem:[%s5619_s22 + $0xa0] ss:$8 sps:$4 sm:$0xff]   ;;  %v4882_v6 = vld [vmem:[%s5619_s22 + $0x194] ss:$8 sps:$4 sm:$0xff]   ;;  %v5689_v7 = vrot.slane %v706_v2, %v5669_v50 }
  0x28   : > { %3545 = vmatprep.subr.bf16.mxu1 %v4828_v22  ;;  %v4879_v4 = vld [vmem:[%s5619_s22 + $0x1a0] ss:$8 sps:$4 sm:$0xff]   ;;  %v4884_v8 = vld [vmem:[%s5619_s22 + $0x90] ss:$8 sps:$4 sm:$0xff]   ;;  %v4886_v10 = vld [vmem:[%s5619_s22 + $0x84] ss:$8 sps:$4 sm:$0xff]  }
  0x29   : > { %v721_v59 = vcombine.high %v713_v55, %v713_v55  ;;  %v4885_v9 = vld [vmem:[%s5619_s22 + $0x190] ss:$8 sps:$4 sm:$0xff]   ;;  %v4888_v11 = vld [vmem:[%s5619_s22 + $0x184] ss:$8 sps:$4 sm:$0xff]   ;;  %v722_v12 = vcombine.high %v5689_v7, %v5689_v7  ;;  %v4890_v13 = vld [vmem:[%s5619_s22 + $0x80] ss:$8 sps:$4 sm:$0xff]   ;;  %v729_v14 = vrot.slane %v713_v55, %v5669_v50 }
  0x2a   : > { %3505 = vmatpush1.bf16.msra.mxu0 %v4830_v23  ;;  %v4891_v15 = vld [vmem:[%s5619_s22 + $0x180] ss:$8 sps:$4 sm:$0xff]   ;;  %v4895_v16 = vld [vmem:[%s5619_s22 + $0x274] ss:$8 sps:$4 sm:$0xff]   ;;  %v4893_v20 = vld [vmem:[%s5619_s22 + $0x270] ss:$8 sps:$4 sm:$0xff]  }
  0x2b   : > { %3546 = vmatpush1.bf16.msra.mxu1 %v4831_v24  ;;  %3506 = vmatprep.subr.bf16.mxu0 %v4832_v25  ;;  %v743_v61 = vrot.slane %v721_v59, %v5669_v50  ;;  %v4898_v17 = vld [vmem:[%s5619_s22 + $0x374] ss:$8 sps:$4 sm:$0xff]   ;;  %v750_v18 = vrot.slane %v722_v12, %v5669_v50  ;;  %v751_v19 = vcombine.high %v729_v14, %v729_v14  ;;  %v4896_v21 = vld [vmem:[%s5619_s22 + $0x370] ss:$8 sps:$4 sm:$0xff]   ;;  %v4901_v22 = vld [vmem:[%s5619_s22 + $0x264] ss:$8 sps:$4 sm:$0xff]  }
  0x2c   : > { %3547 = vmatprep.subr.bf16.mxu1 %v4834_v26  ;;  %v4904_v23 = vld [vmem:[%s5619_s22 + $0x364] ss:$8 sps:$4 sm:$0xff]   ;;  %v4899_v25 = vld [vmem:[%s5619_s22 + $0x260] ss:$8 sps:$4 sm:$0xff]   ;;  %v4917_v37 = vld [vmem:[%s5619_s22 + $0x230] ss:$8 sps:$4 sm:$0xff]  }
  0x2d   : > { %v753_v1 = vcombine.high %v743_v61, %v743_v61  ;;  %3526 = vmatprep.mubr.bf16.mxu0 %v743_v61  ;;  %v754_v24 = vcombine.high %v750_v18, %v750_v18  ;;  %v4902_v26 = vld [vmem:[%s5619_s22 + $0x360] ss:$8 sps:$4 sm:$0xff]   ;;  %v4920_v38 = vld [vmem:[%s5619_s22 + $0x330] ss:$8 sps:$4 sm:$0xff]   ;;  %v4925_v39 = vld [vmem:[%s5619_s22 + $0x224] ss:$8 sps:$4 sm:$0xff]  }
  0x2e   : > { %3507 = vmatpush1.bf16.msra.mxu0 %v4836_v27  ;;  %v4907_v27 = vld [vmem:[%s5619_s22 + $0x254] ss:$8 sps:$4 sm:$0xff]   ;;  %v4941_v55 = vld [vmem:[%s5619_s22 + $0x2f0] ss:$8 sps:$4 sm:$0xff]   ;;  %v4947_v59 = vld [vmem:[%s5619_s22 + $0x2e0] ss:$8 sps:$4 sm:$0xff]  }
  0x2f   : > { %3548 = vmatpush1.bf16.msra.mxu1 %v4837_v28  ;;  %3508 = vmatprep.subr.bf16.mxu0 %v4838_v29  ;;  %v4910_v28 = vld [vmem:[%s5619_s22 + $0x354] ss:$8 sps:$4 sm:$0xff]   ;;  %v4905_v29 = vld [vmem:[%s5619_s22 + $0x250] ss:$8 sps:$4 sm:$0xff]   ;;  %v4964_v2 = vld [vmem:[%s5619_s22 + $0x3c4] ss:$8 sps:$4 sm:$0xff]  }
  0x30   : > { %3549 = vmatprep.subr.bf16.mxu1 %v4840_v30  ;;  %3567 = vmatprep.mubr.bf16.mxu1 %v753_v1  ;;  %v4908_v30 = vld [vmem:[%s5619_s22 + $0x350] ss:$8 sps:$4 sm:$0xff]   ;;  %v4931_v43 = vld [vmem:[%s5619_s22 + $0x214] ss:$8 sps:$4 sm:$0xff]   ;;  %v4961_v1 = vld [vmem:[%s5619_s22 + $0x2c4] ss:$8 sps:$4 sm:$0xff]  }
  0x31   : > { %v4943_v53 = vld [vmem:[%s5619_s22 + $0x2f4] ss:$8 sps:$4 sm:$0xff]   ;;  %v4971_v12 = vld [vmem:[%s5619_s22 + $0x2a0] ss:$8 sps:$4 sm:$0xff]  }
  0x32   : > { %3509 = vmatpush1.bf16.msra.mxu0 %v4842_v31  ;;  %v4913_v31 = vld [vmem:[%s5619_s22 + $0x244] ss:$8 sps:$4 sm:$0xff]   ;;  %v4955_v61 = vld [vmem:[%s5619_s22 + $0x2d4] ss:$8 sps:$4 sm:$0xff]  }
  0x33   : > { %3550 = vmatpush1.bf16.msra.mxu1 %v4843_v32  ;;  %3510 = vmatprep.subr.bf16.mxu0 %v4844_v33  ;;  %v4916_v32 = vld [vmem:[%s5619_s22 + $0x344] ss:$8 sps:$4 sm:$0xff]   ;;  %v4911_v33 = vld [vmem:[%s5619_s22 + $0x240] ss:$8 sps:$4 sm:$0xff]  }
  0x34   : > { %3551 = vmatprep.subr.bf16.mxu1 %v4846_v34  ;;  %v4914_v34 = vld [vmem:[%s5619_s22 + $0x340] ss:$8 sps:$4 sm:$0xff]  }
  0x36   : > { %3511 = vmatpush2.bf16.msra.mxu0 %v4848_v35  ;;  %v4919_v35 = vld [vmem:[%s5619_s22 + $0x234] ss:$8 sps:$4 sm:$0xff]  }
  0x37   : > { %3552 = vmatpush2.bf16.msra.mxu1 %v4849_v36  ;;  %3512 = vmatprep.subr.bf16.mxu0 %v4850_v40  ;;  %v4922_v36 = vld [vmem:[%s5619_s22 + $0x334] ss:$8 sps:$4 sm:$0xff]   ;;  %v4928_v40 = vld [vmem:[%s5619_s22 + $0x324] ss:$8 sps:$4 sm:$0xff]  }
  0x38   : > { %3553 = vmatprep.subr.bf16.mxu1 %v4852_v41  ;;  %v4923_v41 = vld [vmem:[%s5619_s22 + $0x220] ss:$8 sps:$4 sm:$0xff]  }
  0x3a   : > { %3513 = vmatpush2.bf16.msra.mxu0 %v4854_v42  ;;  %v4926_v42 = vld [vmem:[%s5619_s22 + $0x320] ss:$8 sps:$4 sm:$0xff]  }
  0x3b   : > { %3554 = vmatpush2.bf16.msra.mxu1 %v4855_v45  ;;  %3514 = vmatprep.subr.bf16.mxu0 %v4856_v46  ;;  %v4934_v45 = vld [vmem:[%s5619_s22 + $0x314] ss:$8 sps:$4 sm:$0xff]   ;;  %v4929_v46 = vld [vmem:[%s5619_s22 + $0x210] ss:$8 sps:$4 sm:$0xff]  }
  0x3c   : > { %3555 = vmatprep.subr.bf16.mxu1 %v4858_v47  ;;  %v4932_v47 = vld [vmem:[%s5619_s22 + $0x310] ss:$8 sps:$4 sm:$0xff]  }
  0x3e   : > { %3515 = vmatpush2.bf16.msra.mxu0 %v4860_v48  ;;  %v4937_v48 = vld [vmem:[%s5619_s22 + $0x204] ss:$8 sps:$4 sm:$0xff]  }
  0x3f   : > { %3556 = vmatpush2.bf16.msra.mxu1 %v4861_v49  ;;  %3516 = vmatprep.subr.bf16.mxu0 %v4862_v51  ;;  %v4940_v49 = vld [vmem:[%s5619_s22 + $0x304] ss:$8 sps:$4 sm:$0xff]   ;;  %v4935_v51 = vld [vmem:[%s5619_s22 + $0x200] ss:$8 sps:$4 sm:$0xff]  }
  0x40   : > { %3557 = vmatprep.subr.bf16.mxu1 %v4864_v52  ;;  %v4938_v52 = vld [vmem:[%s5619_s22 + $0x300] ss:$8 sps:$4 sm:$0xff]  }
  0x42   : > { %3517 = vmatpush2.bf16.msra.mxu0 %v4866_v54  ;;  %v4946_v54 = vld [vmem:[%s5619_s22 + $0x3f4] ss:$8 sps:$4 sm:$0xff]  }
  0x43   : > { %3558 = vmatpush2.bf16.msra.mxu1 %v4867_v56  ;;  %3518 = vmatprep.subr.bf16.mxu0 %v4868_v57  ;;  %v4944_v56 = vld [vmem:[%s5619_s22 + $0x3f0] ss:$8 sps:$4 sm:$0xff]   ;;  %v4949_v57 = vld [vmem:[%s5619_s22 + $0x2e4] ss:$8 sps:$4 sm:$0xff]  }
  0x44   : > { %3559 = vmatprep.subr.bf16.mxu1 %v4870_v58  ;;  %v4952_v58 = vld [vmem:[%s5619_s22 + $0x3e4] ss:$8 sps:$4 sm:$0xff]  }
  0x46   : > { %3519 = vmatpush2.bf16.msra.mxu0 %v4872_v60  ;;  %v4950_v60 = vld [vmem:[%s5619_s22 + $0x3e0] ss:$8 sps:$4 sm:$0xff]  }
  0x47   : > { %3560 = vmatpush2.bf16.msra.mxu1 %v4873_v62  ;;  %3520 = vmatprep.subr.bf16.mxu0 %v4874_v63  ;;  %v4958_v62 = vld [vmem:[%s5619_s22 + $0x3d4] ss:$8 sps:$4 sm:$0xff]   ;;  %v4953_v63 = vld [vmem:[%s5619_s22 + $0x2d0] ss:$8 sps:$4 sm:$0xff]  }
  0x48   : > { %3561 = vmatprep.subr.bf16.mxu1 %v4876_v0  ;;  %v4956_v0 = vld [vmem:[%s5619_s22 + $0x3d0] ss:$8 sps:$4 sm:$0xff]  }
  0x4a   : > { %3521 = vmatpush2.bf16.msra.mxu0 %v4878_v3  ;;  %v4959_v3 = vld [vmem:[%s5619_s22 + $0x2c0] ss:$8 sps:$4 sm:$0xff]  }
  0x4b   : > { %3562 = vmatpush2.bf16.msra.mxu1 %v4879_v4  ;;  %3522 = vmatprep.subr.bf16.mxu0 %v4880_v5  ;;  %v4962_v4 = vld [vmem:[%s5619_s22 + $0x3c0] ss:$8 sps:$4 sm:$0xff]   ;;  %v4967_v5 = vld [vmem:[%s5619_s22 + $0x2b4] ss:$8 sps:$4 sm:$0xff]  }
  0x4c   : > { %3563 = vmatprep.subr.bf16.mxu1 %v4882_v6  ;;  %v4970_v6 = vld [vmem:[%s5619_s22 + $0x3b4] ss:$8 sps:$4 sm:$0xff]  }
  0x4e   : > { %3523 = vmatpush2.bf16.msra.mxu0 %v4884_v8  ;;  %v4965_v8 = vld [vmem:[%s5619_s22 + $0x2b0] ss:$8 sps:$4 sm:$0xff]  }
  0x4f   : > { %3564 = vmatpush2.bf16.msra.mxu1 %v4885_v9  ;;  %3524 = vmatprep.subr.bf16.mxu0 %v4886_v10  ;;  %v4968_v9 = vld [vmem:[%s5619_s22 + $0x3b0] ss:$8 sps:$4 sm:$0xff]   ;;  %v4973_v10 = vld [vmem:[%s5619_s22 + $0x2a4] ss:$8 sps:$4 sm:$0xff]  }
  0x50   : > { %3565 = vmatprep.subr.bf16.mxu1 %v4888_v11  ;;  %v4976_v11 = vld [vmem:[%s5619_s22 + $0x3a4] ss:$8 sps:$4 sm:$0xff]  }
  0x52   : > { %3525 = vmatpush2.bf16.msra.mxu0 %v4890_v13  ;;  %v4974_v13 = vld [vmem:[%s5619_s22 + $0x3a0] ss:$8 sps:$4 sm:$0xff]  }
  0x53   : > { %3566 = vmatpush2.bf16.msra.mxu1 %v4891_v15  ;;  %3576 = vmatprep.subr.bf16.mxu0 %v4895_v16  ;;  %v4982_v15 = vld [vmem:[%s5619_s22 + $0x394] ss:$8 sps:$4 sm:$0xff]   ;;  %v4977_v16 = vld [vmem:[%s5619_s22 + $0x290] ss:$8 sps:$4 sm:$0xff]  }
  0x54   : > { %3617 = vmatprep.subr.bf16.mxu1 %v4898_v17  ;;  %v4980_v17 = vld [vmem:[%s5619_s22 + $0x390] ss:$8 sps:$4 sm:$0xff]  }
  0x55   : > { %3527 = vmatmul.mubr.bf16.vlgmr.msra.gmra.mxu0 %v729_v14  ;;  %v4979_v14 = vld [vmem:[%s5619_s22 + $0x294] ss:$8 sps:$4 sm:$0xff]  }
  0x56   : > { %3568 = vmatmul.mubr.bf16.vlgmr.msra.gmra.mxu1 %v751_v19  ;;  %3577 = vmatpush1.bf16.msra.mxu0 %v4893_v20  ;;  %v4988_v19 = vld [vmem:[%s5619_s22 + $0x384] ss:$8 sps:$4 sm:$0xff]   ;;  %v4983_v20 = vld [vmem:[%s5619_s22 + $0x280] ss:$8 sps:$4 sm:$0xff]  }
  0x57   : > { %3618 = vmatpush1.bf16.msra.mxu1 %v4896_v21  ;;  %3578 = vmatprep.subr.bf16.mxu0 %v4901_v22  ;;  %v736_v21 = vrot.slane %v5689_v7, %v5669_v50  ;;  %v4986_v22 = vld [vmem:[%s5619_s22 + $0x380] ss:$8 sps:$4 sm:$0xff]   ;;  %v4997_v7 = vld [vmem:[%s5619_s22 + $0x464] ss:$8 sps:$4 sm:$0xff]  }
  0x58   : > { %3619 = vmatprep.subr.bf16.mxu1 %v4904_v23  ;;  %3608 = vmatprep.mubr.bf16.mxu0 %v750_v18  ;;  %v4985_v18 = vld [vmem:[%s5619_s22 + $0x284] ss:$8 sps:$4 sm:$0xff]   ;;  %v4991_v23 = vld [vmem:[%s5619_s22 + $0x474] ss:$8 sps:$4 sm:$0xff]  }
  0x59   : > { %3649 = vmatprep.mubr.bf16.mxu1 %v754_v24  ;;  %v4994_v24 = vld [vmem:[%s5619_s22 + $0x574] ss:$8 sps:$4 sm:$0xff]  }
  0x5a   : > { %3579 = vmatpush1.bf16.msra.mxu0 %v4899_v25  ;;  %v752_v25 = vcombine.high %v736_v21, %v736_v21 }
  0x5b   : > { %3620 = vmatpush1.bf16.msra.mxu1 %v4902_v26  ;;  %3580 = vmatprep.subr.bf16.mxu0 %v4907_v27  ;;  %v4989_v26 = vld [vmem:[%s5619_s22 + $0x470] ss:$8 sps:$4 sm:$0xff]  }
  0x5c   : > { %3621 = vmatprep.subr.bf16.mxu1 %v4910_v28  ;;  %v4992_v27 = vld [vmem:[%s5619_s22 + $0x570] ss:$8 sps:$4 sm:$0xff]   ;;  %v5772_v28 = vld [vmem:[%s5614_s18 + $0x8] sm:$0xff] }
  0x5e   : > { %3581 = vmatpush1.bf16.msra.mxu0 %v4905_v29  ;;  %v5000_v29 = vld [vmem:[%s5619_s22 + $0x564] ss:$8 sps:$4 sm:$0xff]  }
  0x5f   : > { %3622 = vmatpush1.bf16.msra.mxu1 %v4908_v30  ;;  %3582 = vmatprep.subr.bf16.mxu0 %v4913_v31  ;;  %v5778_v30 = vrot.slane %v5772_v28, %v5669_v50 }
  0x60   : > { %3623 = vmatprep.subr.bf16.mxu1 %v4916_v32  ;;  %v4995_v32 = vld [vmem:[%s5619_s22 + $0x460] ss:$8 sps:$4 sm:$0xff]  }
  0x61   : > { %v770_v31 = vcombine.high %v5778_v30, %v5778_v30 }
  0x62   : > { %3583 = vmatpush1.bf16.msra.mxu0 %v4911_v33  ;;  %v4998_v33 = vld [vmem:[%s5619_s22 + $0x560] ss:$8 sps:$4 sm:$0xff]  }
  0x63   : > { %3624 = vmatpush1.bf16.msra.mxu1 %v4914_v34  ;;  %3584 = vmatprep.subr.bf16.mxu0 %v4919_v35  ;;  %v5003_v34 = vld [vmem:[%s5619_s22 + $0x454] ss:$8 sps:$4 sm:$0xff]  }
  0x64   : > { %3625 = vmatprep.subr.bf16.mxu1 %v4922_v36  ;;  %v5006_v35 = vld [vmem:[%s5619_s22 + $0x554] ss:$8 sps:$4 sm:$0xff]   ;;  %v792_v36 = vrot.slane %v770_v31, %v5669_v50 }
  0x66   : > { %3585 = vmatpush1.bf16.msra.mxu0 %v4917_v37  ;;  %v802_v37 = vcombine.high %v792_v36, %v792_v36 }
  0x67   : > { %3626 = vmatpush1.bf16.msra.mxu1 %v4920_v38  ;;  %3586 = vmatprep.subr.bf16.mxu0 %v4925_v39  ;;  %v5001_v38 = vld [vmem:[%s5619_s22 + $0x450] ss:$8 sps:$4 sm:$0xff]  }
  0x68   : > { %3627 = vmatprep.subr.bf16.mxu1 %v4928_v40  ;;  %v5004_v39 = vld [vmem:[%s5619_s22 + $0x550] ss:$8 sps:$4 sm:$0xff]   ;;  %v5009_v40 = vld [vmem:[%s5619_s22 + $0x444] ss:$8 sps:$4 sm:$0xff]  }
  0x6a   : > { %3587 = vmatpush1.bf16.msra.mxu0 %v4923_v41  ;;  %v5012_v41 = vld [vmem:[%s5619_s22 + $0x544] ss:$8 sps:$4 sm:$0xff]  }
  0x6b   : > { %3628 = vmatpush1.bf16.msra.mxu1 %v4926_v42  ;;  %3588 = vmatprep.subr.bf16.mxu0 %v4931_v43  ;;  %v5007_v42 = vld [vmem:[%s5619_s22 + $0x440] ss:$8 sps:$4 sm:$0xff]  }
  0x6c   : > { %3629 = vmatprep.subr.bf16.mxu1 %v4934_v45  ;;  %v5010_v43 = vld [vmem:[%s5619_s22 + $0x540] ss:$8 sps:$4 sm:$0xff]   ;;  %v5015_v45 = vld [vmem:[%s5619_s22 + $0x434] ss:$8 sps:$4 sm:$0xff]  }
  0x6e   : > { %3589 = vmatpush1.bf16.msra.mxu0 %v4929_v46  ;;  %v5018_v46 = vld [vmem:[%s5619_s22 + $0x534] ss:$8 sps:$4 sm:$0xff]  }
  0x6f   : > { %3630 = vmatpush1.bf16.msra.mxu1 %v4932_v47  ;;  %3590 = vmatprep.subr.bf16.mxu0 %v4937_v48  ;;  %v5013_v47 = vld [vmem:[%s5619_s22 + $0x430] ss:$8 sps:$4 sm:$0xff]  }
  0x70   : > { %3631 = vmatprep.subr.bf16.mxu1 %v4940_v49  ;;  %v5016_v48 = vld [vmem:[%s5619_s22 + $0x530] ss:$8 sps:$4 sm:$0xff]   ;;  %v5021_v49 = vld [vmem:[%s5619_s22 + $0x424] ss:$8 sps:$4 sm:$0xff]  }
  0x72   : > { %3591 = vmatpush1.bf16.msra.mxu0 %v4935_v51  ;;  %v5024_v51 = vld [vmem:[%s5619_s22 + $0x524] ss:$8 sps:$4 sm:$0xff]  }
  0x73   : > { %3632 = vmatpush1.bf16.msra.mxu1 %v4938_v52  ;;  %3592 = vmatprep.subr.bf16.mxu0 %v4943_v53  ;;  %v5019_v52 = vld [vmem:[%s5619_s22 + $0x420] ss:$8 sps:$4 sm:$0xff]  }
  0x74   : > { %3633 = vmatprep.subr.bf16.mxu1 %v4946_v54  ;;  %v5022_v53 = vld [vmem:[%s5619_s22 + $0x520] ss:$8 sps:$4 sm:$0xff]   ;;  %v5027_v54 = vld [vmem:[%s5619_s22 + $0x414] ss:$8 sps:$4 sm:$0xff]  }
  0x76   : > { %3593 = vmatpush2.bf16.msra.mxu0 %v4941_v55  ;;  %v5030_v55 = vld [vmem:[%s5619_s22 + $0x514] ss:$8 sps:$4 sm:$0xff]  }
  0x77   : > { %3634 = vmatpush2.bf16.msra.mxu1 %v4944_v56  ;;  %3594 = vmatprep.subr.bf16.mxu0 %v4949_v57  ;;  %v5025_v56 = vld [vmem:[%s5619_s22 + $0x410] ss:$8 sps:$4 sm:$0xff]  }
  0x78   : > { %3635 = vmatprep.subr.bf16.mxu1 %v4952_v58  ;;  %v5028_v57 = vld [vmem:[%s5619_s22 + $0x510] ss:$8 sps:$4 sm:$0xff]   ;;  %v5033_v58 = vld [vmem:[%s5619_s22 + $0x404] ss:$8 sps:$4 sm:$0xff]  }
  0x7a   : > { %3595 = vmatpush2.bf16.msra.mxu0 %v4947_v59  ;;  %v5036_v59 = vld [vmem:[%s5619_s22 + $0x504] ss:$8 sps:$4 sm:$0xff]  }
  0x7b   : > { %3636 = vmatpush2.bf16.msra.mxu1 %v4950_v60  ;;  %3596 = vmatprep.subr.bf16.mxu0 %v4955_v61  ;;  %v5031_v60 = vld [vmem:[%s5619_s22 + $0x400] ss:$8 sps:$4 sm:$0xff]  }
  0x7c   : > { %3637 = vmatprep.subr.bf16.mxu1 %v4958_v62  ;;  %v5034_v61 = vld [vmem:[%s5619_s22 + $0x500] ss:$8 sps:$4 sm:$0xff]   ;;  %v5039_v62 = vld [vmem:[%s5619_s22 + $0x4f4] ss:$8 sps:$4 sm:$0xff]  }
  0x7e   : > { %3597 = vmatpush2.bf16.msra.mxu0 %v4953_v63  ;;  %v5042_v63 = vld [vmem:[%s5619_s22 + $0x5f4] ss:$8 sps:$4 sm:$0xff]  }
  0x7f   : > { %3638 = vmatpush2.bf16.msra.mxu1 %v4956_v0  ;;  %3598 = vmatprep.subr.bf16.mxu0 %v4961_v1  ;;  %v5037_v0 = vld [vmem:[%s5619_s22 + $0x4f0] ss:$8 sps:$4 sm:$0xff]  }
  0x80   : > { %3639 = vmatprep.subr.bf16.mxu1 %v4964_v2  ;;  %v5040_v1 = vld [vmem:[%s5619_s22 + $0x5f0] ss:$8 sps:$4 sm:$0xff]   ;;  %v5045_v2 = vld [vmem:[%s5619_s22 + $0x4e4] ss:$8 sps:$4 sm:$0xff]  }
  0x82   : > { %3599 = vmatpush2.bf16.msra.mxu0 %v4959_v3  ;;  %v5048_v3 = vld [vmem:[%s5619_s22 + $0x5e4] ss:$8 sps:$4 sm:$0xff]  }
  0x83   : > { %3640 = vmatpush2.bf16.msra.mxu1 %v4962_v4  ;;  %3600 = vmatprep.subr.bf16.mxu0 %v4967_v5  ;;  %v5043_v4 = vld [vmem:[%s5619_s22 + $0x4e0] ss:$8 sps:$4 sm:$0xff]  }
  0x84   : > { %3641 = vmatprep.subr.bf16.mxu1 %v4970_v6  ;;  %v5046_v5 = vld [vmem:[%s5619_s22 + $0x5e0] ss:$8 sps:$4 sm:$0xff]   ;;  %v5051_v6 = vld [vmem:[%s5619_s22 + $0x4d4] ss:$8 sps:$4 sm:$0xff]  }
  0x86   : > { %3601 = vmatpush2.bf16.msra.mxu0 %v4965_v8  ;;  %v5054_v8 = vld [vmem:[%s5619_s22 + $0x5d4] ss:$8 sps:$4 sm:$0xff]  }
  0x87   : > { %3642 = vmatpush2.bf16.msra.mxu1 %v4968_v9  ;;  %3602 = vmatprep.subr.bf16.mxu0 %v4973_v10  ;;  %v5049_v9 = vld [vmem:[%s5619_s22 + $0x4d0] ss:$8 sps:$4 sm:$0xff]  }
  0x88   : > { %3643 = vmatprep.subr.bf16.mxu1 %v4976_v11  ;;  %v5052_v10 = vld [vmem:[%s5619_s22 + $0x5d0] ss:$8 sps:$4 sm:$0xff]   ;;  %v5057_v11 = vld [vmem:[%s5619_s22 + $0x4c4] ss:$8 sps:$4 sm:$0xff]  }
  0x8a   : > { %3603 = vmatpush2.bf16.msra.mxu0 %v4971_v12  ;;  %v5060_v12 = vld [vmem:[%s5619_s22 + $0x5c4] ss:$8 sps:$4 sm:$0xff]  }
  0x8b   : > { %3644 = vmatpush2.bf16.msra.mxu1 %v4974_v13  ;;  %3604 = vmatprep.subr.bf16.mxu0 %v4979_v14  ;;  %v5055_v13 = vld [vmem:[%s5619_s22 + $0x4c0] ss:$8 sps:$4 sm:$0xff]  }
  0x8c   : > { %3645 = vmatprep.subr.bf16.mxu1 %v4982_v15  ;;  %v5058_v14 = vld [vmem:[%s5619_s22 + $0x5c0] ss:$8 sps:$4 sm:$0xff]   ;;  %v5063_v15 = vld [vmem:[%s5619_s22 + $0x4b4] ss:$8 sps:$4 sm:$0xff]  }
  0x8e   : > { %3605 = vmatpush2.bf16.msra.mxu0 %v4977_v16  ;;  %v5066_v16 = vld [vmem:[%s5619_s22 + $0x5b4] ss:$8 sps:$4 sm:$0xff]  }
  0x8f   : > { %3646 = vmatpush2.bf16.msra.mxu1 %v4980_v17  ;;  %3606 = vmatprep.subr.bf16.mxu0 %v4985_v18  ;;  %v5061_v17 = vld [vmem:[%s5619_s22 + $0x4b0] ss:$8 sps:$4 sm:$0xff]  }
  0x90   : > { %3647 = vmatprep.subr.bf16.mxu1 %v4988_v19  ;;  %v5064_v18 = vld [vmem:[%s5619_s22 + $0x5b0] ss:$8 sps:$4 sm:$0xff]   ;;  %v5069_v19 = vld [vmem:[%s5619_s22 + $0x4a4] ss:$8 sps:$4 sm:$0xff]  }
  0x92   : > { %3607 = vmatpush2.bf16.msra.mxu0 %v4983_v20  ;;  %v5072_v20 = vld [vmem:[%s5619_s22 + $0x5a4] ss:$8 sps:$4 sm:$0xff]  }
  0x93   : > { %3648 = vmatpush2.bf16.msra.mxu1 %v4986_v22  ;;  %3658 = vmatprep.subr.bf16.mxu0 %v4991_v23  ;;  %v5067_v22 = vld [vmem:[%s5619_s22 + $0x4a0] ss:$8 sps:$4 sm:$0xff]  }
  0x94   : > { %3699 = vmatprep.subr.bf16.mxu1 %v4994_v24  ;;  %v5070_v23 = vld [vmem:[%s5619_s22 + $0x5a0] ss:$8 sps:$4 sm:$0xff]   ;;  %v5075_v24 = vld [vmem:[%s5619_s22 + $0x494] ss:$8 sps:$4 sm:$0xff]  }
  0x95   : > { %3609 = vmatmul.mubr.bf16.vlgmr.msra.gmra.mxu0 %v736_v21  ;;  %v755_v21 = vcombine.high %v5772_v28, %v5772_v28  ;;  %v5076_v28 = vld [vmem:[%s5619_s22 + $0x590] ss:$8 sps:$4 sm:$0xff]  }
  0x96   : > { %3650 = vmatmul.mubr.bf16.vlgmr.msra.gmra.mxu1 %v752_v25  ;;  %3659 = vmatpush1.bf16.msra.mxu0 %v4989_v26  ;;  %v5078_v25 = vld [vmem:[%s5619_s22 + $0x594] ss:$8 sps:$4 sm:$0xff]  }
  0x97   : > { %3700 = vmatpush1.bf16.msra.mxu1 %v4992_v27  ;;  %3660 = vmatprep.subr.bf16.mxu0 %v4997_v7  ;;  %v5838_v26 = vrot.slane %v755_v21, %v5669_v50  ;;  %v5073_v27 = vld [vmem:[%s5619_s22 + $0x490] ss:$8 sps:$4 sm:$0xff]   ;;  %v5081_v7 = vld [vmem:[%s5619_s22 + $0x484] ss:$8 sps:$4 sm:$0xff]  }
  0x98   : > { %3701 = vmatprep.subr.bf16.mxu1 %v5000_v29  ;;  %3690 = vmatprep.mubr.bf16.mxu0 %v792_v36  ;;  %v5084_v29 = vld [vmem:[%s5619_s22 + $0x584] ss:$8 sps:$4 sm:$0xff]   ;;  %v5090_v36 = vld [vmem:[%s5619_s22 + $0x774] ss:$8 sps:$4 sm:$0xff]  }
  0x99   : > { %3731 = vmatprep.mubr.bf16.mxu1 %v802_v37  ;;  %v771_v31 = vcombine.high %v5838_v26, %v5838_v26  ;;  %v5156_v21 = vld [vmem:[%s5619_s22 + $0x7c4] ss:$8 sps:$4 sm:$0xff]  }
  0x9a   : > { %3661 = vmatpush1.bf16.msra.mxu0 %v4995_v32  ;;  %v778_v32 = vrot.slane %v5778_v30, %v5669_v50  ;;  %v5088_v30 = vld [vmem:[%s5619_s22 + $0x770] ss:$8 sps:$4 sm:$0xff]  }
  0x9b   : > { %3702 = vmatpush1.bf16.msra.mxu1 %v4998_v33  ;;  %3662 = vmatprep.subr.bf16.mxu0 %v5003_v34  ;;  %v5079_v33 = vld [vmem:[%s5619_s22 + $0x480] ss:$8 sps:$4 sm:$0xff]   ;;  %v799_v37 = vrot.slane %v771_v31, %v5669_v50 }
  0x9c   : > { %3703 = vmatprep.subr.bf16.mxu1 %v5006_v35  ;;  %v5082_v34 = vld [vmem:[%s5619_s22 + $0x580] ss:$8 sps:$4 sm:$0xff]   ;;  %v5087_v35 = vld [vmem:[%s5619_s22 + $0x674] ss:$8 sps:$4 sm:$0xff]  }
  0x9d   : > { %v5163_v31 = vld [vmem:[%s5619_s22 + $0x6a0] ss:$8 sps:$4 sm:$0xff]  }
  0x9e   : > { %3663 = vmatpush1.bf16.msra.mxu0 %v5001_v38  ;;  %v800_v38 = vcombine.high %v778_v32, %v778_v32 }
  0x9f   : > { %3704 = vmatpush1.bf16.msra.mxu1 %v5004_v39  ;;  %3664 = vmatprep.subr.bf16.mxu0 %v5009_v40  ;;  %v5085_v39 = vld [vmem:[%s5619_s22 + $0x670] ss:$8 sps:$4 sm:$0xff]   ;;  %v5093_v40 = vld [vmem:[%s5619_s22 + $0x664] ss:$8 sps:$4 sm:$0xff]  }
  0xa0   : > { %3705 = vmatprep.subr.bf16.mxu1 %v5012_v41  ;;  %v5096_v41 = vld [vmem:[%s5619_s22 + $0x764] ss:$8 sps:$4 sm:$0xff]  }
  0xa2   : > { %3665 = vmatpush1.bf16.msra.mxu0 %v5007_v42  ;;  %v803_v42 = vcombine.high %v799_v37, %v799_v37 }
  0xa3   : > { %3706 = vmatpush1.bf16.msra.mxu1 %v5010_v43  ;;  %3666 = vmatprep.subr.bf16.mxu0 %v5015_v45  ;;  %v5091_v43 = vld [vmem:[%s5619_s22 + $0x660] ss:$8 sps:$4 sm:$0xff]  }
  0xa4   : > { %3707 = vmatprep.subr.bf16.mxu1 %v5018_v46  ;;  %v5094_v45 = vld [vmem:[%s5619_s22 + $0x760] ss:$8 sps:$4 sm:$0xff]   ;;  %v5099_v46 = vld [vmem:[%s5619_s22 + $0x654] ss:$8 sps:$4 sm:$0xff]  }
  0xa6   : > { %3667 = vmatpush1.bf16.msra.mxu0 %v5013_v47  ;;  %v5102_v47 = vld [vmem:[%s5619_s22 + $0x754] ss:$8 sps:$4 sm:$0xff]  }
  0xa7   : > { %3708 = vmatpush1.bf16.msra.mxu1 %v5016_v48  ;;  %3668 = vmatprep.subr.bf16.mxu0 %v5021_v49  ;;  %v5097_v48 = vld [vmem:[%s5619_s22 + $0x650] ss:$8 sps:$4 sm:$0xff]  }
  0xa8   : > { %3709 = vmatprep.subr.bf16.mxu1 %v5024_v51  ;;  %v5100_v49 = vld [vmem:[%s5619_s22 + $0x750] ss:$8 sps:$4 sm:$0xff]   ;;  %v5105_v51 = vld [vmem:[%s5619_s22 + $0x644] ss:$8 sps:$4 sm:$0xff]  }
  0xaa   : > { %3669 = vmatpush1.bf16.msra.mxu0 %v5019_v52  ;;  %v5108_v52 = vld [vmem:[%s5619_s22 + $0x744] ss:$8 sps:$4 sm:$0xff]  }
  0xab   : > { %3710 = vmatpush1.bf16.msra.mxu1 %v5022_v53  ;;  %3670 = vmatprep.subr.bf16.mxu0 %v5027_v54  ;;  %v5103_v53 = vld [vmem:[%s5619_s22 + $0x640] ss:$8 sps:$4 sm:$0xff]  }
  0xac   : > { %3711 = vmatprep.subr.bf16.mxu1 %v5030_v55  ;;  %v5106_v54 = vld [vmem:[%s5619_s22 + $0x740] ss:$8 sps:$4 sm:$0xff]   ;;  %v5111_v55 = vld [vmem:[%s5619_s22 + $0x634] ss:$8 sps:$4 sm:$0xff]  }
  0xae   : > { %3671 = vmatpush1.bf16.msra.mxu0 %v5025_v56  ;;  %v5114_v56 = vld [vmem:[%s5619_s22 + $0x734] ss:$8 sps:$4 sm:$0xff]  }
  0xaf   : > { %3712 = vmatpush1.bf16.msra.mxu1 %v5028_v57  ;;  %3672 = vmatprep.subr.bf16.mxu0 %v5033_v58  ;;  %v5109_v57 = vld [vmem:[%s5619_s22 + $0x630] ss:$8 sps:$4 sm:$0xff]  }
  0xb0   : > { %3713 = vmatprep.subr.bf16.mxu1 %v5036_v59  ;;  %v5112_v58 = vld [vmem:[%s5619_s22 + $0x730] ss:$8 sps:$4 sm:$0xff]   ;;  %v5117_v59 = vld [vmem:[%s5619_s22 + $0x624] ss:$8 sps:$4 sm:$0xff]  }
  0xb2   : > { %3673 = vmatpush1.bf16.msra.mxu0 %v5031_v60  ;;  %v5120_v60 = vld [vmem:[%s5619_s22 + $0x724] ss:$8 sps:$4 sm:$0xff]  }
  0xb3   : > { %3714 = vmatpush1.bf16.msra.mxu1 %v5034_v61  ;;  %3674 = vmatprep.subr.bf16.mxu0 %v5039_v62  ;;  %v5115_v61 = vld [vmem:[%s5619_s22 + $0x620] ss:$8 sps:$4 sm:$0xff]  }
  0xb4   : > { %3715 = vmatprep.subr.bf16.mxu1 %v5042_v63  ;;  %v5118_v62 = vld [vmem:[%s5619_s22 + $0x720] ss:$8 sps:$4 sm:$0xff]   ;;  %v5123_v63 = vld [vmem:[%s5619_s22 + $0x614] ss:$8 sps:$4 sm:$0xff]  }
  0xb6   : > { %3675 = vmatpush2.bf16.msra.mxu0 %v5037_v0  ;;  %v5126_v0 = vld [vmem:[%s5619_s22 + $0x714] ss:$8 sps:$4 sm:$0xff]  }
  0xb7   : > { %3716 = vmatpush2.bf16.msra.mxu1 %v5040_v1  ;;  %3676 = vmatprep.subr.bf16.mxu0 %v5045_v2  ;;  %v5121_v1 = vld [vmem:[%s5619_s22 + $0x610] ss:$8 sps:$4 sm:$0xff]  }
  0xb8   : > { %3717 = vmatprep.subr.bf16.mxu1 %v5048_v3  ;;  %v5124_v2 = vld [vmem:[%s5619_s22 + $0x710] ss:$8 sps:$4 sm:$0xff]   ;;  %v5129_v3 = vld [vmem:[%s5619_s22 + $0x604] ss:$8 sps:$4 sm:$0xff]  }
  0xba   : > { %3677 = vmatpush2.bf16.msra.mxu0 %v5043_v4  ;;  %v5132_v4 = vld [vmem:[%s5619_s22 + $0x704] ss:$8 sps:$4 sm:$0xff]  }
  0xbb   : > { %3718 = vmatpush2.bf16.msra.mxu1 %v5046_v5  ;;  %3678 = vmatprep.subr.bf16.mxu0 %v5051_v6  ;;  %v5127_v5 = vld [vmem:[%s5619_s22 + $0x600] ss:$8 sps:$4 sm:$0xff]  }
  0xbc   : > { %3719 = vmatprep.subr.bf16.mxu1 %v5054_v8  ;;  %v5130_v6 = vld [vmem:[%s5619_s22 + $0x700] ss:$8 sps:$4 sm:$0xff]   ;;  %v5135_v8 = vld [vmem:[%s5619_s22 + $0x6f4] ss:$8 sps:$4 sm:$0xff]  }
  0xbe   : > { %3679 = vmatpush2.bf16.msra.mxu0 %v5049_v9  ;;  %v5138_v9 = vld [vmem:[%s5619_s22 + $0x7f4] ss:$8 sps:$4 sm:$0xff]  }
  0xbf   : > { %3720 = vmatpush2.bf16.msra.mxu1 %v5052_v10  ;;  %3680 = vmatprep.subr.bf16.mxu0 %v5057_v11  ;;  %v5133_v10 = vld [vmem:[%s5619_s22 + $0x6f0] ss:$8 sps:$4 sm:$0xff]  }
  0xc0   : > { %3721 = vmatprep.subr.bf16.mxu1 %v5060_v12  ;;  %v5136_v11 = vld [vmem:[%s5619_s22 + $0x7f0] ss:$8 sps:$4 sm:$0xff]   ;;  %v5141_v12 = vld [vmem:[%s5619_s22 + $0x6e4] ss:$8 sps:$4 sm:$0xff]  }
  0xc2   : > { %3681 = vmatpush2.bf16.msra.mxu0 %v5055_v13  ;;  %v5144_v13 = vld [vmem:[%s5619_s22 + $0x7e4] ss:$8 sps:$4 sm:$0xff]  }
  0xc3   : > { %3722 = vmatpush2.bf16.msra.mxu1 %v5058_v14  ;;  %3682 = vmatprep.subr.bf16.mxu0 %v5063_v15  ;;  %v5139_v14 = vld [vmem:[%s5619_s22 + $0x6e0] ss:$8 sps:$4 sm:$0xff]  }
  0xc4   : > { %3723 = vmatprep.subr.bf16.mxu1 %v5066_v16  ;;  %v5142_v15 = vld [vmem:[%s5619_s22 + $0x7e0] ss:$8 sps:$4 sm:$0xff]   ;;  %v5147_v16 = vld [vmem:[%s5619_s22 + $0x6d4] ss:$8 sps:$4 sm:$0xff]  }
  0xc6   : > { %3683 = vmatpush2.bf16.msra.mxu0 %v5061_v17  ;;  %v5150_v17 = vld [vmem:[%s5619_s22 + $0x7d4] ss:$8 sps:$4 sm:$0xff]  }
  0xc7   : > { %3724 = vmatpush2.bf16.msra.mxu1 %v5064_v18  ;;  %3684 = vmatprep.subr.bf16.mxu0 %v5069_v19  ;;  %v5145_v18 = vld [vmem:[%s5619_s22 + $0x6d0] ss:$8 sps:$4 sm:$0xff]  }
  0xc8   : > { %3725 = vmatprep.subr.bf16.mxu1 %v5072_v20  ;;  %v5148_v19 = vld [vmem:[%s5619_s22 + $0x7d0] ss:$8 sps:$4 sm:$0xff]   ;;  %v5153_v20 = vld [vmem:[%s5619_s22 + $0x6c4] ss:$8 sps:$4 sm:$0xff]  }
  0xca   : > { %3685 = vmatpush2.bf16.msra.mxu0 %v5067_v22  ;;  %v5151_v22 = vld [vmem:[%s5619_s22 + $0x6c0] ss:$8 sps:$4 sm:$0xff]  }
  0xcb   : > { %3726 = vmatpush2.bf16.msra.mxu1 %v5070_v23  ;;  %3686 = vmatprep.subr.bf16.mxu0 %v5075_v24  ;;  %v5154_v23 = vld [vmem:[%s5619_s22 + $0x7c0] ss:$8 sps:$4 sm:$0xff]   ;;  %v5159_v24 = vld [vmem:[%s5619_s22 + $0x6b4] ss:$8 sps:$4 sm:$0xff]  }
  0xcc   : > { %3727 = vmatprep.subr.bf16.mxu1 %v5078_v25  ;;  %v5162_v25 = vld [vmem:[%s5619_s22 + $0x7b4] ss:$8 sps:$4 sm:$0xff]  }
  0xce   : > { %3687 = vmatpush2.bf16.msra.mxu0 %v5073_v27  ;;  %v5157_v27 = vld [vmem:[%s5619_s22 + $0x6b0] ss:$8 sps:$4 sm:$0xff]  }
  0xcf   : > { %3728 = vmatpush2.bf16.msra.mxu1 %v5076_v28  ;;  %3688 = vmatprep.subr.bf16.mxu0 %v5081_v7  ;;  %v5160_v28 = vld [vmem:[%s5619_s22 + $0x7b0] ss:$8 sps:$4 sm:$0xff]   ;;  %v5165_v7 = vld [vmem:[%s5619_s22 + $0x6a4] ss:$8 sps:$4 sm:$0xff]  }
  0xd0   : > { %3729 = vmatprep.subr.bf16.mxu1 %v5084_v29  ;;  %v5168_v29 = vld [vmem:[%s5619_s22 + $0x7a4] ss:$8 sps:$4 sm:$0xff]  }
  0xd2   : > { %3689 = vmatpush2.bf16.msra.mxu0 %v5079_v33  ;;  %v5166_v33 = vld [vmem:[%s5619_s22 + $0x7a0] ss:$8 sps:$4 sm:$0xff]  }
  0xd3   : > { %3730 = vmatpush2.bf16.msra.mxu1 %v5082_v34  ;;  %3740 = vmatprep.subr.bf16.mxu0 %v5087_v35  ;;  %v5171_v34 = vld [vmem:[%s5619_s22 + $0x694] ss:$8 sps:$4 sm:$0xff]  }
  0xd4   : > { %3781 = vmatprep.subr.bf16.mxu1 %v5090_v36  ;;  %v5174_v35 = vld [vmem:[%s5619_s22 + $0x794] ss:$8 sps:$4 sm:$0xff]  }
  0xd5   : > { %3691 = vmatmul.mubr.bf16.vlgmr.msra.gmra.mxu0 %v778_v32  ;;  %v5907_v32 = vld [vmem:[%s5614_s18 + $0x10] sm:$0xff] }
  0xd6   : > { %3732 = vmatmul.mubr.bf16.vlgmr.msra.gmra.mxu1 %v800_v38  ;;  %3741 = vmatpush1.bf16.msra.mxu0 %v5085_v39  ;;  %v5914_v36 = vrot.slane %v5907_v32, %v5669_v50  ;;  %v5172_v38 = vld [vmem:[%s5619_s22 + $0x790] ss:$8 sps:$4 sm:$0xff]   ;;  %v5177_v39 = vld [vmem:[%s5619_s22 + $0x684] ss:$8 sps:$4 sm:$0xff]  }
  0xd7   : > { %3782 = vmatpush1.bf16.msra.mxu1 %v5088_v30  ;;  %3742 = vmatprep.subr.bf16.mxu0 %v5093_v40  ;;  %v5180_v30 = vld [vmem:[%s5619_s22 + $0x784] ss:$8 sps:$4 sm:$0xff]  }
  0xd8   : > { %3783 = vmatprep.subr.bf16.mxu1 %v5096_v41  ;;  %3772 = vmatprep.mubr.bf16.mxu0 %v799_v37  ;;  %v5169_v37 = vld [vmem:[%s5619_s22 + $0x690] ss:$8 sps:$4 sm:$0xff]   ;;  %v819_v40 = vcombine.high %v5914_v36, %v5914_v36  ;;  %v5175_v41 = vld [vmem:[%s5619_s22 + $0x680] ss:$8 sps:$4 sm:$0xff]  }
  0xd9   : > { %3813 = vmatprep.mubr.bf16.mxu1 %v803_v42  ;;  %v785_v42 = vrot.slane %v5838_v26, %v5669_v50  ;;  %v5193_v26 = vld [vmem:[%s5619_s22 + $0x964] ss:$8 sps:$4 sm:$0xff]  }
  0xda   : > { %3743 = vmatpush1.bf16.msra.mxu0 %v5091_v43  ;;  %v5178_v43 = vld [vmem:[%s5619_s22 + $0x780] ss:$8 sps:$4 sm:$0xff]  }
  0xdb   : > { %3784 = vmatpush1.bf16.msra.mxu1 %v5094_v45  ;;  %3744 = vmatprep.subr.bf16.mxu0 %v5099_v46  ;;  %v5184_v45 = vld [vmem:[%s5619_s22 + $0x874] ss:$8 sps:$4 sm:$0xff]  }
  0xdc   : > { %3785 = vmatprep.subr.bf16.mxu1 %v5102_v47  ;;  %v5187_v46 = vld [vmem:[%s5619_s22 + $0x974] ss:$8 sps:$4 sm:$0xff]   ;;  %v841_v47 = vrot.slane %v819_v40, %v5669_v50  ;;  %v5245_v40 = vld [vmem:[%s5619_s22 + $0x9d0] ss:$8 sps:$4 sm:$0xff]  }
  0xde   : > { %3745 = vmatpush1.bf16.msra.mxu0 %v5097_v48  ;;  %v801_v48 = vcombine.high %v785_v42, %v785_v42 }
  0xdf   : > { %3786 = vmatpush1.bf16.msra.mxu1 %v5100_v49  ;;  %3746 = vmatprep.subr.bf16.mxu0 %v5105_v51  ;;  %v5182_v49 = vld [vmem:[%s5619_s22 + $0x870] ss:$8 sps:$4 sm:$0xff]  }
  0xe0   : > { %3787 = vmatprep.subr.bf16.mxu1 %v5108_v52  ;;  %v5185_v51 = vld [vmem:[%s5619_s22 + $0x970] ss:$8 sps:$4 sm:$0xff]   ;;  %v5190_v52 = vld [vmem:[%s5619_s22 + $0x864] ss:$8 sps:$4 sm:$0xff]  }
  0xe2   : > { %3747 = vmatpush1.bf16.msra.mxu0 %v5103_v53  ;;  %v851_v53 = vcombine.high %v841_v47, %v841_v47 }
  0xe3   : > { %3788 = vmatpush1.bf16.msra.mxu1 %v5106_v54  ;;  %3748 = vmatprep.subr.bf16.mxu0 %v5111_v55 }
  0xe4   : > { %3789 = vmatprep.subr.bf16.mxu1 %v5114_v56  ;;  %v5188_v56 = vld [vmem:[%s5619_s22 + $0x860] ss:$8 sps:$4 sm:$0xff]  }
  0xe6   : > { %3749 = vmatpush1.bf16.msra.mxu0 %v5109_v57  ;;  %v5191_v57 = vld [vmem:[%s5619_s22 + $0x960] ss:$8 sps:$4 sm:$0xff]  }
  0xe7   : > { %3790 = vmatpush1.bf16.msra.mxu1 %v5112_v58  ;;  %3750 = vmatprep.subr.bf16.mxu0 %v5117_v59 }
  0xe8   : > { %3791 = vmatprep.subr.bf16.mxu1 %v5120_v60 }
  0xea   : > { %3751 = vmatpush1.bf16.msra.mxu0 %v5115_v61  ;;  %v5196_v61 = vld [vmem:[%s5619_s22 + $0x854] ss:$8 sps:$4 sm:$0xff]  }
  0xeb   : > { %3792 = vmatpush1.bf16.msra.mxu1 %v5118_v62  ;;  %3752 = vmatprep.subr.bf16.mxu0 %v5123_v63  ;;  %v5199_v62 = vld [vmem:[%s5619_s22 + $0x954] ss:$8 sps:$4 sm:$0xff]  }
  0xec   : > { %3793 = vmatprep.subr.bf16.mxu1 %v5126_v0  ;;  %v5194_v0 = vld [vmem:[%s5619_s22 + $0x850] ss:$8 sps:$4 sm:$0xff]  }
  0xee   : > { %3753 = vmatpush1.bf16.msra.mxu0 %v5121_v1  ;;  %v5197_v1 = vld [vmem:[%s5619_s22 + $0x950] ss:$8 sps:$4 sm:$0xff]  }
  0xef   : > { %3794 = vmatpush1.bf16.msra.mxu1 %v5124_v2  ;;  %3754 = vmatprep.subr.bf16.mxu0 %v5129_v3 }
  0xf0   : > { %3795 = vmatprep.subr.bf16.mxu1 %v5132_v4 }
  0xf2   : > { %3755 = vmatpush1.bf16.msra.mxu0 %v5127_v5 }
  0xf3   : > { %3796 = vmatpush1.bf16.msra.mxu1 %v5130_v6  ;;  %3756 = vmatprep.subr.bf16.mxu0 %v5135_v8  ;;  %v5202_v6 = vld [vmem:[%s5619_s22 + $0x844] ss:$8 sps:$4 sm:$0xff]  }
  0xf4   : > { %3797 = vmatprep.subr.bf16.mxu1 %v5138_v9  ;;  %v5205_v8 = vld [vmem:[%s5619_s22 + $0x944] ss:$8 sps:$4 sm:$0xff]   ;;  %v5200_v9 = vld [vmem:[%s5619_s22 + $0x840] ss:$8 sps:$4 sm:$0xff]  }
  0xf6   : > { %3757 = vmatpush2.bf16.msra.mxu0 %v5133_v10  ;;  %v5203_v10 = vld [vmem:[%s5619_s22 + $0x940] ss:$8 sps:$4 sm:$0xff]  }
  0xf7   : > { %3798 = vmatpush2.bf16.msra.mxu1 %v5136_v11  ;;  %3758 = vmatprep.subr.bf16.mxu0 %v5141_v12  ;;  %v5208_v11 = vld [vmem:[%s5619_s22 + $0x834] ss:$8 sps:$4 sm:$0xff]  }
  0xf8   : > { %3799 = vmatprep.subr.bf16.mxu1 %v5144_v13  ;;  %v5211_v12 = vld [vmem:[%s5619_s22 + $0x934] ss:$8 sps:$4 sm:$0xff]   ;;  %v5206_v13 = vld [vmem:[%s5619_s22 + $0x830] ss:$8 sps:$4 sm:$0xff]  }
  0xfa   : > { %3759 = vmatpush2.bf16.msra.mxu0 %v5139_v14  ;;  %v5209_v14 = vld [vmem:[%s5619_s22 + $0x930] ss:$8 sps:$4 sm:$0xff]  }
  0xfb   : > { %3800 = vmatpush2.bf16.msra.mxu1 %v5142_v15  ;;  %3760 = vmatprep.subr.bf16.mxu0 %v5147_v16  ;;  %v5214_v15 = vld [vmem:[%s5619_s22 + $0x824] ss:$8 sps:$4 sm:$0xff]  }
  0xfc   : > { %3801 = vmatprep.subr.bf16.mxu1 %v5150_v17  ;;  %v5217_v16 = vld [vmem:[%s5619_s22 + $0x924] ss:$8 sps:$4 sm:$0xff]   ;;  %v5212_v17 = vld [vmem:[%s5619_s22 + $0x820] ss:$8 sps:$4 sm:$0xff]  }
  0xfe   : > { %3761 = vmatpush2.bf16.msra.mxu0 %v5145_v18  ;;  %v5215_v18 = vld [vmem:[%s5619_s22 + $0x920] ss:$8 sps:$4 sm:$0xff]  }
  0xff   : > { %3802 = vmatpush2.bf16.msra.mxu1 %v5148_v19  ;;  %3762 = vmatprep.subr.bf16.mxu0 %v5153_v20  ;;  %v5220_v19 = vld [vmem:[%s5619_s22 + $0x814] ss:$8 sps:$4 sm:$0xff]  }
 0x100   : > { %3803 = vmatprep.subr.bf16.mxu1 %v5156_v21  ;;  %v5223_v20 = vld [vmem:[%s5619_s22 + $0x914] ss:$8 sps:$4 sm:$0xff]   ;;  %v5218_v21 = vld [vmem:[%s5619_s22 + $0x810] ss:$8 sps:$4 sm:$0xff]  }
 0x102   : > { %3763 = vmatpush2.bf16.msra.mxu0 %v5151_v22  ;;  %v5221_v22 = vld [vmem:[%s5619_s22 + $0x910] ss:$8 sps:$4 sm:$0xff]  }
 0x103   : > { %3804 = vmatpush2.bf16.msra.mxu1 %v5154_v23  ;;  %3764 = vmatprep.subr.bf16.mxu0 %v5159_v24  ;;  %v5226_v23 = vld [vmem:[%s5619_s22 + $0x804] ss:$8 sps:$4 sm:$0xff]  }
 0x104   : > { %3805 = vmatprep.subr.bf16.mxu1 %v5162_v25  ;;  %v5229_v24 = vld [vmem:[%s5619_s22 + $0x904] ss:$8 sps:$4 sm:$0xff]   ;;  %v5224_v25 = vld [vmem:[%s5619_s22 + $0x800] ss:$8 sps:$4 sm:$0xff]  }
 0x106   : > { %3765 = vmatpush2.bf16.msra.mxu0 %v5157_v27  ;;  %v5227_v27 = vld [vmem:[%s5619_s22 + $0x900] ss:$8 sps:$4 sm:$0xff]  }
 0x107   : > { %3806 = vmatpush2.bf16.msra.mxu1 %v5160_v28  ;;  %3766 = vmatprep.subr.bf16.mxu0 %v5165_v7  ;;  %v5232_v28 = vld [vmem:[%s5619_s22 + $0x8f4] ss:$8 sps:$4 sm:$0xff]  }
 0x108   : > { %3807 = vmatprep.subr.bf16.mxu1 %v5168_v29  ;;  %v5235_v7 = vld [vmem:[%s5619_s22 + $0x9f4] ss:$8 sps:$4 sm:$0xff]   ;;  %v5230_v29 = vld [vmem:[%s5619_s22 + $0x8f0] ss:$8 sps:$4 sm:$0xff]  }
 0x10a   : > { %3767 = vmatpush2.bf16.msra.mxu0 %v5163_v31  ;;  %v5233_v31 = vld [vmem:[%s5619_s22 + $0x9f0] ss:$8 sps:$4 sm:$0xff]  }
 0x10b   : > { %3808 = vmatpush2.bf16.msra.mxu1 %v5166_v33  ;;  %3768 = vmatprep.subr.bf16.mxu0 %v5171_v34  ;;  %v5238_v33 = vld [vmem:[%s5619_s22 + $0x8e4] ss:$8 sps:$4 sm:$0xff]  }
 0x10c   : > { %3809 = vmatprep.subr.bf16.mxu1 %v5174_v35  ;;  %v5241_v34 = vld [vmem:[%s5619_s22 + $0x9e4] ss:$8 sps:$4 sm:$0xff]   ;;  %v5236_v35 = vld [vmem:[%s5619_s22 + $0x8e0] ss:$8 sps:$4 sm:$0xff]  }
 0x10e   : > { %3769 = vmatpush2.bf16.msra.mxu0 %v5169_v37  ;;  %v5239_v37 = vld [vmem:[%s5619_s22 + $0x9e0] ss:$8 sps:$4 sm:$0xff]  }
 0x10f   : > { %3810 = vmatpush2.bf16.msra.mxu1 %v5172_v38  ;;  %3770 = vmatprep.subr.bf16.mxu0 %v5177_v39  ;;  %v5244_v38 = vld [vmem:[%s5619_s22 + $0x8d4] ss:$8 sps:$4 sm:$0xff]  }
 0x110   : > { %3811 = vmatprep.subr.bf16.mxu1 %v5180_v30  ;;  %v5247_v39 = vld [vmem:[%s5619_s22 + $0x9d4] ss:$8 sps:$4 sm:$0xff]   ;;  %v5242_v30 = vld [vmem:[%s5619_s22 + $0x8d0] ss:$8 sps:$4 sm:$0xff]  }
 0x112   : > { %3771 = vmatpush2.bf16.msra.mxu0 %v5175_v41  ;;  %v5250_v41 = vld [vmem:[%s5619_s22 + $0x8c4] ss:$8 sps:$4 sm:$0xff]  }
 0x113   : > { %3812 = vmatpush2.bf16.msra.mxu1 %v5178_v43  ;;  %3822 = vmatprep.subr.bf16.mxu0 %v5184_v45  ;;  %v5248_v43 = vld [vmem:[%s5619_s22 + $0x8c0] ss:$8 sps:$4 sm:$0xff]  }
 0x114   : > { %3863 = vmatprep.subr.bf16.mxu1 %v5187_v46  ;;  %v5251_v45 = vld [vmem:[%s5619_s22 + $0x9c0] ss:$8 sps:$4 sm:$0xff]   ;;  %v5256_v46 = vld [vmem:[%s5619_s22 + $0x8b4] ss:$8 sps:$4 sm:$0xff]  }
 0x115   : > { %v3528_v54 = vpop.f32.mrf.mxu0  ;;  %3773 = vmatmul.mubr.bf16.vlgmr.msra.gmra.mxu0 %v785_v42  ;;  %v5253_v42 = vld [vmem:[%s5619_s22 + $0x9c4] ss:$8 sps:$4 sm:$0xff]  }
 0x116   : > { %v3569_v55 = vpop.f32.mrf.mxu1  ;;  %3814 = vmatmul.mubr.bf16.vlgmr.msra.gmra.mxu1 %v801_v48  ;;  %3823 = vmatpush1.bf16.msra.mxu0 %v5182_v49  ;;  %v5254_v48 = vld [vmem:[%s5619_s22 + $0x8b0] ss:$8 sps:$4 sm:$0xff]  }
 0x117   : > { %v5935_v58 = vadd.f32 %v3569_v55, %v3528_v54  ;;  %3864 = vmatpush1.bf16.msra.mxu1 %v5185_v51  ;;  %v3530_v59 = vpop.f32.mrf.mxu0  ;;  %3824 = vmatprep.subr.bf16.mxu0 %v5190_v52  ;;  %v5257_v49 = vld [vmem:[%s5619_s22 + $0x9b0] ss:$8 sps:$4 sm:$0xff]   ;;  %v5262_v51 = vld [vmem:[%s5619_s22 + $0x8a4] ss:$8 sps:$4 sm:$0xff]   ;;  %v5263_v54 = vld [vmem:[%s5619_s22 + $0x9a0] ss:$8 sps:$4 sm:$0xff]  }
 0x118   : > { %v3571_v60 = vpop.f32.mrf.mxu1  ;;  %3865 = vmatprep.subr.bf16.mxu1 %v5193_v26  ;;  %3854 = vmatprep.mubr.bf16.mxu0 %v841_v47  ;;  %v5259_v47 = vld [vmem:[%s5619_s22 + $0x9b4] ss:$8 sps:$4 sm:$0xff]   ;;  %v5265_v52 = vld [vmem:[%s5619_s22 + $0x9a4] ss:$8 sps:$4 sm:$0xff]   ;;  %v804_v26 = vcombine.high %v5907_v32, %v5907_v32  ;;  %v5266_v32 = vld [vmem:[%s5619_s22 + $0x890] ss:$8 sps:$4 sm:$0xff]  }
 0x119   : > { %v5939_v63 = vadd.f32 %v3571_v60, %v3530_v59  ;;  %3895 = vmatprep.mubr.bf16.mxu1 %v851_v53  ;;  %v3532_v2 = vpop.f32.mrf.mxu0  ;;  %v5260_v53 = vld [vmem:[%s5619_s22 + $0x8a0] ss:$8 sps:$4 sm:$0xff]   ;;  %v5268_v55 = vld [vmem:[%s5619_s22 + $0x894] ss:$8 sps:$4 sm:$0xff]   ;;  %v5269_v59 = vld [vmem:[%s5619_s22 + $0x990] ss:$8 sps:$4 sm:$0xff]  }
 0x11a   : > { %v3573_v3 = vpop.f32.mrf.mxu1  ;;  %3825 = vmatpush1.bf16.msra.mxu0 %v5188_v56  ;;  %v5271_v56 = vld [vmem:[%s5619_s22 + $0x994] ss:$8 sps:$4 sm:$0xff]   ;;  %v5274_v60 = vld [vmem:[%s5619_s22 + $0x884] ss:$8 sps:$4 sm:$0xff]   ;;  %v5275_v2 = vld [vmem:[%s5619_s22 + $0x980] ss:$8 sps:$4 sm:$0xff]  }
 0x11b   : > { %3866 = vmatpush1.bf16.msra.mxu1 %v5191_v57  ;;  %v3533_v4 = vpop.f32.mrf.mxu0  ;;  %3826 = vmatprep.subr.bf16.mxu0 %v5196_v61  ;;  %v5992_v57 = vrot.slane %v804_v26, %v5669_v50  ;;  %v5277_v61 = vld [vmem:[%s5619_s22 + $0x984] ss:$8 sps:$4 sm:$0xff]   ;;  %v5280_v3 = vld [vmem:[%s5619_s22 + $0xa74] ss:$8 sps:$4 sm:$0xff]  }
 0x11c   : > { %v3574_v5 = vpop.f32.mrf.mxu1  ;;  %3867 = vmatprep.subr.bf16.mxu1 %v5199_v62  ;;  %v5283_v4 = vld [vmem:[%s5619_s22 + $0xb74] ss:$8 sps:$4 sm:$0xff]  }
 0x11d   : > { %v820_v62 = vcombine.high %v5992_v57, %v5992_v57  ;;  %v5278_v5 = vld [vmem:[%s5619_s22 + $0xa70] ss:$8 sps:$4 sm:$0xff]   ;;  %v5331_v26 = vld [vmem:[%s5619_s22 + $0xbf4] ss:$8 sps:$4 sm:$0xff]  }
 0x11e   : > { %3827 = vmatpush1.bf16.msra.mxu0 %v5194_v0  ;;  %v827_v0 = vrot.slane %v5914_v36, %v5669_v50  ;;  %v5286_v36 = vld [vmem:[%s5619_s22 + $0xa64] ss:$8 sps:$4 sm:$0xff]  }
 0x11f   : > { %3868 = vmatpush1.bf16.msra.mxu1 %v5197_v1  ;;  %3828 = vmatprep.subr.bf16.mxu0 %v5202_v6  ;;  %v5272_v1 = vld [vmem:[%s5619_s22 + $0x880] ss:$8 sps:$4 sm:$0xff]   ;;  %v5281_v6 = vld [vmem:[%s5619_s22 + $0xb70] ss:$8 sps:$4 sm:$0xff]  }
 0x120   : > { %3869 = vmatprep.subr.bf16.mxu1 %v5205_v8  ;;  %v848_v8 = vrot.slane %v820_v62, %v5669_v50  ;;  %v5338_v62 = vld [vmem:[%s5619_s22 + $0xad0] ss:$8 sps:$4 sm:$0xff]  }
 0x122   : > { %3829 = vmatpush1.bf16.msra.mxu0 %v5200_v9  ;;  %v849_v9 = vcombine.high %v827_v0, %v827_v0 }
 0x123   : > { %3870 = vmatpush1.bf16.msra.mxu1 %v5203_v10  ;;  %3830 = vmatprep.subr.bf16.mxu0 %v5208_v11  ;;  %v5289_v10 = vld [vmem:[%s5619_s22 + $0xb64] ss:$8 sps:$4 sm:$0xff]   ;;  %v852_v11 = vcombine.high %v848_v8, %v848_v8 }
 0x124   : > { %3871 = vmatprep.subr.bf16.mxu1 %v5211_v12 }
 0x126   : > { %3831 = vmatpush1.bf16.msra.mxu0 %v5206_v13 }
 0x127   : > { %3872 = vmatpush1.bf16.msra.mxu1 %v5209_v14  ;;  %3832 = vmatprep.subr.bf16.mxu0 %v5214_v15  ;;  %v5284_v15 = vld [vmem:[%s5619_s22 + $0xa60] ss:$8 sps:$4 sm:$0xff]  }
 0x128   : > { %3873 = vmatprep.subr.bf16.mxu1 %v5217_v16  ;;  %v5287_v16 = vld [vmem:[%s5619_s22 + $0xb60] ss:$8 sps:$4 sm:$0xff]  }
 0x12a   : > { %3833 = vmatpush1.bf16.msra.mxu0 %v5212_v17 }
 0x12b   : > { %3874 = vmatpush1.bf16.msra.mxu1 %v5215_v18  ;;  %3834 = vmatprep.subr.bf16.mxu0 %v5220_v19  ;;  %v5292_v19 = vld [vmem:[%s5619_s22 + $0xa54] ss:$8 sps:$4 sm:$0xff]  }
 0x12c   : > { %3875 = vmatprep.subr.bf16.mxu1 %v5223_v20  ;;  %v5295_v20 = vld [vmem:[%s5619_s22 + $0xb54] ss:$8 sps:$4 sm:$0xff]  }
 0x12e   : > { %3835 = vmatpush1.bf16.msra.mxu0 %v5218_v21 }
 0x12f   : > { %3876 = vmatpush1.bf16.msra.mxu1 %v5221_v22  ;;  %3836 = vmatprep.subr.bf16.mxu0 %v5226_v23 }
 0x130   : > { %3877 = vmatprep.subr.bf16.mxu1 %v5229_v24 }
 0x132   : > { %3837 = vmatpush1.bf16.msra.mxu0 %v5224_v25  ;;  %v5290_v25 = vld [vmem:[%s5619_s22 + $0xa50] ss:$8 sps:$4 sm:$0xff]  }
 0x133   : > { %3878 = vmatpush1.bf16.msra.mxu1 %v5227_v27  ;;  %3838 = vmatprep.subr.bf16.mxu0 %v5232_v28  ;;  %v5293_v27 = vld [vmem:[%s5619_s22 + $0xb50] ss:$8 sps:$4 sm:$0xff]  }
 0x134   : > { %3879 = vmatprep.subr.bf16.mxu1 %v5235_v7 }
 0x136   : > { %3839 = vmatpush2.bf16.msra.mxu0 %v5230_v29  ;;  %v5301_v29 = vld [vmem:[%s5619_s22 + $0xb44] ss:$8 sps:$4 sm:$0xff]  }
 0x137   : > { %3880 = vmatpush2.bf16.msra.mxu1 %v5233_v31  ;;  %3840 = vmatprep.subr.bf16.mxu0 %v5238_v33  ;;  %v5296_v31 = vld [vmem:[%s5619_s22 + $0xa40] ss:$8 sps:$4 sm:$0xff]  }
 0x138   : > { %3881 = vmatprep.subr.bf16.mxu1 %v5241_v34  ;;  %v5299_v33 = vld [vmem:[%s5619_s22 + $0xb40] ss:$8 sps:$4 sm:$0xff]   ;;  %v5304_v34 = vld [vmem:[%s5619_s22 + $0xa34] ss:$8 sps:$4 sm:$0xff]  }
 0x13a   : > { %3841 = vmatpush2.bf16.msra.mxu0 %v5236_v35  ;;  %v5307_v35 = vld [vmem:[%s5619_s22 + $0xb34] ss:$8 sps:$4 sm:$0xff]  }
 0x13b   : > { %3882 = vmatpush2.bf16.msra.mxu1 %v5239_v37  ;;  %3842 = vmatprep.subr.bf16.mxu0 %v5244_v38  ;;  %v5302_v37 = vld [vmem:[%s5619_s22 + $0xa30] ss:$8 sps:$4 sm:$0xff]  }
 0x13c   : > { %3883 = vmatprep.subr.bf16.mxu1 %v5247_v39  ;;  %v5305_v38 = vld [vmem:[%s5619_s22 + $0xb30] ss:$8 sps:$4 sm:$0xff]   ;;  %v5310_v39 = vld [vmem:[%s5619_s22 + $0xa24] ss:$8 sps:$4 sm:$0xff]  }
 0x13e   : > { %3843 = vmatpush2.bf16.msra.mxu0 %v5242_v30  ;;  %v5313_v30 = vld [vmem:[%s5619_s22 + $0xb24] ss:$8 sps:$4 sm:$0xff]  }
 0x13f   : > { %3884 = vmatpush2.bf16.msra.mxu1 %v5245_v40  ;;  %3844 = vmatprep.subr.bf16.mxu0 %v5250_v41  ;;  %v5308_v40 = vld [vmem:[%s5619_s22 + $0xa20] ss:$8 sps:$4 sm:$0xff]  }
 0x140   : > { %3885 = vmatprep.subr.bf16.mxu1 %v5253_v42  ;;  %v5311_v41 = vld [vmem:[%s5619_s22 + $0xb20] ss:$8 sps:$4 sm:$0xff]   ;;  %v5316_v42 = vld [vmem:[%s5619_s22 + $0xa14] ss:$8 sps:$4 sm:$0xff]  }
 0x142   : > { %3845 = vmatpush2.bf16.msra.mxu0 %v5248_v43  ;;  %v5319_v43 = vld [vmem:[%s5619_s22 + $0xb14] ss:$8 sps:$4 sm:$0xff]  }
 0x143   : > { %3886 = vmatpush2.bf16.msra.mxu1 %v5251_v45  ;;  %3846 = vmatprep.subr.bf16.mxu0 %v5256_v46  ;;  %v5314_v45 = vld [vmem:[%s5619_s22 + $0xa10] ss:$8 sps:$4 sm:$0xff]  }
 0x144   : > { %3887 = vmatprep.subr.bf16.mxu1 %v5259_v47  ;;  %v5317_v46 = vld [vmem:[%s5619_s22 + $0xb10] ss:$8 sps:$4 sm:$0xff]   ;;  %v5322_v47 = vld [vmem:[%s5619_s22 + $0xa04] ss:$8 sps:$4 sm:$0xff]  }
 0x146   : > { %3847 = vmatpush2.bf16.msra.mxu0 %v5254_v48  ;;  %v5325_v48 = vld [vmem:[%s5619_s22 + $0xb04] ss:$8 sps:$4 sm:$0xff]  }
 0x147   : > { %3888 = vmatpush2.bf16.msra.mxu1 %v5257_v49  ;;  %3848 = vmatprep.subr.bf16.mxu0 %v5262_v51  ;;  %v5320_v49 = vld [vmem:[%s5619_s22 + $0xa00] ss:$8 sps:$4 sm:$0xff]  }
 0x148   : > { %3889 = vmatprep.subr.bf16.mxu1 %v5265_v52  ;;  %v5323_v51 = vld [vmem:[%s5619_s22 + $0xb00] ss:$8 sps:$4 sm:$0xff]   ;;  %v5328_v52 = vld [vmem:[%s5619_s22 + $0xaf4] ss:$8 sps:$4 sm:$0xff]  }
 0x14a   : > { %3849 = vmatpush2.bf16.msra.mxu0 %v5260_v53  ;;  %v5326_v53 = vld [vmem:[%s5619_s22 + $0xaf0] ss:$8 sps:$4 sm:$0xff]  }
 0x14b   : > { %3890 = vmatpush2.bf16.msra.mxu1 %v5263_v54  ;;  %3850 = vmatprep.subr.bf16.mxu0 %v5268_v55  ;;  %v5329_v54 = vld [vmem:[%s5619_s22 + $0xbf0] ss:$8 sps:$4 sm:$0xff]   ;;  %v5334_v55 = vld [vmem:[%s5619_s22 + $0xae4] ss:$8 sps:$4 sm:$0xff]  }
 0x14c   : > { %3891 = vmatprep.subr.bf16.mxu1 %v5271_v56  ;;  %v5337_v56 = vld [vmem:[%s5619_s22 + $0xbe4] ss:$8 sps:$4 sm:$0xff]  }
 0x14e   : > { %3851 = vmatpush2.bf16.msra.mxu0 %v5266_v32  ;;  %v5332_v32 = vld [vmem:[%s5619_s22 + $0xae0] ss:$8 sps:$4 sm:$0xff]  }
 0x14f   : > { %3892 = vmatpush2.bf16.msra.mxu1 %v5269_v59  ;;  %3852 = vmatprep.subr.bf16.mxu0 %v5274_v60  ;;  %v5335_v59 = vld [vmem:[%s5619_s22 + $0xbe0] ss:$8 sps:$4 sm:$0xff]   ;;  %v5340_v60 = vld [vmem:[%s5619_s22 + $0xad4] ss:$8 sps:$4 sm:$0xff]  }
 0x150   : > { %3893 = vmatprep.subr.bf16.mxu1 %v5277_v61  ;;  %v5343_v61 = vld [vmem:[%s5619_s22 + $0xbd4] ss:$8 sps:$4 sm:$0xff]  }
 0x152   : > { %3853 = vmatpush2.bf16.msra.mxu0 %v5272_v1  ;;  %v5346_v1 = vld [vmem:[%s5619_s22 + $0xac4] ss:$8 sps:$4 sm:$0xff]  }
 0x153   : > { %3894 = vmatpush2.bf16.msra.mxu1 %v5275_v2  ;;  %3904 = vmatprep.subr.bf16.mxu0 %v5280_v3  ;;  %v5349_v2 = vld [vmem:[%s5619_s22 + $0xbc4] ss:$8 sps:$4 sm:$0xff]   ;;  %v5344_v3 = vld [vmem:[%s5619_s22 + $0xac0] ss:$8 sps:$4 sm:$0xff]  }
 0x154   : > { %3945 = vmatprep.subr.bf16.mxu1 %v5283_v4  ;;  %v5347_v4 = vld [vmem:[%s5619_s22 + $0xbc0] ss:$8 sps:$4 sm:$0xff]  }
 0x155   : > { %v3610_v12 = vpop.f32.mrf.mxu0  ;;  %3855 = vmatmul.mubr.bf16.vlgmr.msra.gmra.mxu0 %v827_v0  ;;  %v5341_v0 = vld [vmem:[%s5619_s22 + $0xbd0] ss:$8 sps:$4 sm:$0xff]  }
 0x156   : > { %v3651_v13 = vpop.f32.mrf.mxu1  ;;  %3896 = vmatmul.mubr.bf16.vlgmr.msra.gmra.mxu1 %v849_v9  ;;  %v3611_v14 = vadd.f32 %v3610_v12, %v5935_v58  ;;  %3905 = vmatpush1.bf16.msra.mxu0 %v5278_v5  ;;  %v5352_v5 = vld [vmem:[%s5619_s22 + $0xab4] ss:$8 sps:$4 sm:$0xff]   ;;  %v5353_v9 = vld [vmem:[%s5619_s22 + $0xbb0] ss:$8 sps:$4 sm:$0xff]   ;;  %v5356_v12 = vld [vmem:[%s5619_s22 + $0xaa0] ss:$8 sps:$4 sm:$0xff]  }
 0x157   : > { %3946 = vmatpush1.bf16.msra.mxu1 %v5281_v6  ;;  %v3612_v17 = vpop.f32.mrf.mxu0  ;;  %3906 = vmatprep.subr.bf16.mxu0 %v5286_v36  ;;  %v5355_v6 = vld [vmem:[%s5619_s22 + $0xbb4] ss:$8 sps:$4 sm:$0xff]   ;;  %v5358_v36 = vld [vmem:[%s5619_s22 + $0xaa4] ss:$8 sps:$4 sm:$0xff]  }
 0x158   : > { %v3653_v18 = vpop.f32.mrf.mxu1  ;;  %3947 = vmatprep.subr.bf16.mxu1 %v5289_v10  ;;  %v6016_v21 = vadd.f32 %v3651_v13, %v3611_v14  ;;  %v3613_v22 = vadd.f32 %v3612_v17, %v5939_v63  ;;  %3936 = vmatprep.mubr.bf16.mxu0 %v848_v8  ;;  %v5298_v63 = vld [vmem:[%s5619_s22 + $0xa44] ss:$8 sps:$4 sm:$0xff]   ;;  %v5350_v8 = vld [vmem:[%s5619_s22 + $0xab0] ss:$8 sps:$4 sm:$0xff]   ;;  %v5359_v13 = vld [vmem:[%s5619_s22 + $0xba0] ss:$8 sps:$4 sm:$0xff]  }
 0x159   : > { %3977 = vmatprep.mubr.bf16.mxu1 %v852_v11  ;;  %v3614_v58 = vpop.f32.mrf.mxu0  ;;  %v5361_v10 = vld [vmem:[%s5619_s22 + $0xba4] ss:$8 sps:$4 sm:$0xff]   ;;  %v6066_v11 = vld [vmem:[%s5614_s18 + $0x18] sm:$0xff] }
 0x15a   : > { %v3655_v23 = vpop.f32.mrf.mxu1  ;;  %v6019_v24 = vadd.f32 %v3653_v18, %v3613_v22  ;;  %3907 = vmatpush1.bf16.msra.mxu0 %v5284_v15  ;;  %v5364_v14 = vld [vmem:[%s5619_s22 + $0xa94] ss:$8 sps:$4 sm:$0xff]   ;;  %v5362_v17 = vld [vmem:[%s5619_s22 + $0xa90] ss:$8 sps:$4 sm:$0xff]   ;;  %v834_v58 = vrot.slane %v5992_v57, %v5669_v50  ;;  %v5383_v57 = vld [vmem:[%s5619_s22 + $0xc64] ss:$8 sps:$4 sm:$0xff]  }
 0x15b   : > { %3948 = vmatpush1.bf16.msra.mxu1 %v5287_v16  ;;  %v3615_v28 = vpop.f32.mrf.mxu0  ;;  %3908 = vmatprep.subr.bf16.mxu0 %v5292_v19  ;;  %v5367_v15 = vld [vmem:[%s5619_s22 + $0xb94] ss:$8 sps:$4 sm:$0xff]   ;;  %v6074_v16 = vrot.slane %v6066_v11, %v5669_v50  ;;  %v5365_v18 = vld [vmem:[%s5619_s22 + $0xb90] ss:$8 sps:$4 sm:$0xff]   ;;  %v5370_v19 = vld [vmem:[%s5619_s22 + $0xa84] ss:$8 sps:$4 sm:$0xff]  }
 0x15c   : > { %v3656_v7 = vpop.f32.mrf.mxu1  ;;  %3949 = vmatprep.subr.bf16.mxu1 %v5295_v20  ;;  %v5373_v20 = vld [vmem:[%s5619_s22 + $0xb84] ss:$8 sps:$4 sm:$0xff]   ;;  %v5368_v23 = vld [vmem:[%s5619_s22 + $0xa80] ss:$8 sps:$4 sm:$0xff]   ;;  %v5380_v28 = vld [vmem:[%s5619_s22 + $0xd74] ss:$8 sps:$4 sm:$0xff]  }
 0x15d   : > { %v868_v22 = vcombine.high %v6074_v16, %v6074_v16 }
 0x15e   : > { %3909 = vmatpush1.bf16.msra.mxu0 %v5290_v25  ;;  %v5371_v25 = vld [vmem:[%s5619_s22 + $0xb80] ss:$8 sps:$4 sm:$0xff]  }
 0x15f   : > { %3950 = vmatpush1.bf16.msra.mxu1 %v5293_v27  ;;  %3910 = vmatprep.subr.bf16.mxu0 %v5298_v63  ;;  %v5377_v27 = vld [vmem:[%s5619_s22 + $0xc74] ss:$8 sps:$4 sm:$0xff]   ;;  %v890_v7 = vrot.slane %v868_v22, %v5669_v50  ;;  %v850_v63 = vcombine.high %v834_v58, %v834_v58 }
 0x160   : > { %3951 = vmatprep.subr.bf16.mxu1 %v5301_v29  ;;  %v5375_v29 = vld [vmem:[%s5619_s22 + $0xc70] ss:$8 sps:$4 sm:$0xff]   ;;  %v5440_v22 = vld [vmem:[%s5619_s22 + $0xdd4] ss:$8 sps:$4 sm:$0xff]  }
 0x162   : > { %3911 = vmatpush1.bf16.msra.mxu0 %v5296_v31  ;;  %v5378_v31 = vld [vmem:[%s5619_s22 + $0xd70] ss:$8 sps:$4 sm:$0xff]  }
 0x163   : > { %3952 = vmatpush1.bf16.msra.mxu1 %v5299_v33  ;;  %3912 = vmatprep.subr.bf16.mxu0 %v5304_v34  ;;  %v5386_v33 = vld [vmem:[%s5619_s22 + $0xd64] ss:$8 sps:$4 sm:$0xff]   ;;  %v900_v34 = vcombine.high %v890_v7, %v890_v7 }
 0x164   : > { %3953 = vmatprep.subr.bf16.mxu1 %v5307_v35 }
 0x166   : > { %3913 = vmatpush1.bf16.msra.mxu0 %v5302_v37 }
 0x167   : > { %3954 = vmatpush1.bf16.msra.mxu1 %v5305_v38  ;;  %3914 = vmatprep.subr.bf16.mxu0 %v5310_v39  ;;  %v5381_v39 = vld [vmem:[%s5619_s22 + $0xc60] ss:$8 sps:$4 sm:$0xff]  }
 0x168   : > { %3955 = vmatprep.subr.bf16.mxu1 %v5313_v30  ;;  %v5384_v30 = vld [vmem:[%s5619_s22 + $0xd60] ss:$8 sps:$4 sm:$0xff]  }
 0x16a   : > { %3915 = vmatpush1.bf16.msra.mxu0 %v5308_v40 }
 0x16b   : > { %3956 = vmatpush1.bf16.msra.mxu1 %v5311_v41  ;;  %3916 = vmatprep.subr.bf16.mxu0 %v5316_v42  ;;  %v5389_v42 = vld [vmem:[%s5619_s22 + $0xc54] ss:$8 sps:$4 sm:$0xff]  }
 0x16c   : > { %3957 = vmatprep.subr.bf16.mxu1 %v5319_v43  ;;  %v5392_v43 = vld [vmem:[%s5619_s22 + $0xd54] ss:$8 sps:$4 sm:$0xff]  }
 0x16e   : > { %3917 = vmatpush1.bf16.msra.mxu0 %v5314_v45 }
 0x16f   : > { %3958 = vmatpush1.bf16.msra.mxu1 %v5317_v46  ;;  %3918 = vmatprep.subr.bf16.mxu0 %v5322_v47 }
 0x170   : > { %3959 = vmatprep.subr.bf16.mxu1 %v5325_v48 }
 0x172   : > { %3919 = vmatpush1.bf16.msra.mxu0 %v5320_v49  ;;  %v5387_v49 = vld [vmem:[%s5619_s22 + $0xc50] ss:$8 sps:$4 sm:$0xff]  }
 0x173   : > { %3960 = vmatpush1.bf16.msra.mxu1 %v5323_v51  ;;  %3920 = vmatprep.subr.bf16.mxu0 %v5328_v52  ;;  %v5390_v51 = vld [vmem:[%s5619_s22 + $0xd50] ss:$8 sps:$4 sm:$0xff]  }
 0x174   : > { %3961 = vmatprep.subr.bf16.mxu1 %v5331_v26 }
 0x176   : > { %3921 = vmatpush2.bf16.msra.mxu0 %v5326_v53  ;;  %v5398_v53 = vld [vmem:[%s5619_s22 + $0xd44] ss:$8 sps:$4 sm:$0xff]  }
 0x177   : > { %3962 = vmatpush2.bf16.msra.mxu1 %v5329_v54  ;;  %3922 = vmatprep.subr.bf16.mxu0 %v5334_v55  ;;  %v5393_v54 = vld [vmem:[%s5619_s22 + $0xc40] ss:$8 sps:$4 sm:$0xff]  }
 0x178   : > { %3963 = vmatprep.subr.bf16.mxu1 %v5337_v56  ;;  %v5396_v55 = vld [vmem:[%s5619_s22 + $0xd40] ss:$8 sps:$4 sm:$0xff]   ;;  %v5401_v56 = vld [vmem:[%s5619_s22 + $0xc34] ss:$8 sps:$4 sm:$0xff]  }
 0x17a   : > { %3923 = vmatpush2.bf16.msra.mxu0 %v5332_v32  ;;  %v5404_v32 = vld [vmem:[%s5619_s22 + $0xd34] ss:$8 sps:$4 sm:$0xff]  }
 0x17b   : > { %3964 = vmatpush2.bf16.msra.mxu1 %v5335_v59  ;;  %3924 = vmatprep.subr.bf16.mxu0 %v5340_v60  ;;  %v5399_v59 = vld [vmem:[%s5619_s22 + $0xc30] ss:$8 sps:$4 sm:$0xff]  }
 0x17c   : > { %3965 = vmatprep.subr.bf16.mxu1 %v5343_v61  ;;  %v5402_v60 = vld [vmem:[%s5619_s22 + $0xd30] ss:$8 sps:$4 sm:$0xff]   ;;  %v5407_v61 = vld [vmem:[%s5619_s22 + $0xc24] ss:$8 sps:$4 sm:$0xff]  }
 0x17e   : > { %3925 = vmatpush2.bf16.msra.mxu0 %v5338_v62  ;;  %v5410_v62 = vld [vmem:[%s5619_s22 + $0xd24] ss:$8 sps:$4 sm:$0xff]  }
 0x17f   : > { %3966 = vmatpush2.bf16.msra.mxu1 %v5341_v0  ;;  %3926 = vmatprep.subr.bf16.mxu0 %v5346_v1  ;;  %v5405_v0 = vld [vmem:[%s5619_s22 + $0xc20] ss:$8 sps:$4 sm:$0xff]  }
 0x180   : > { %3967 = vmatprep.subr.bf16.mxu1 %v5349_v2  ;;  %v5408_v1 = vld [vmem:[%s5619_s22 + $0xd20] ss:$8 sps:$4 sm:$0xff]   ;;  %v5413_v2 = vld [vmem:[%s5619_s22 + $0xc14] ss:$8 sps:$4 sm:$0xff]  }
 0x182   : > { %3927 = vmatpush2.bf16.msra.mxu0 %v5344_v3  ;;  %v5416_v3 = vld [vmem:[%s5619_s22 + $0xd14] ss:$8 sps:$4 sm:$0xff]  }
 0x183   : > { %3968 = vmatpush2.bf16.msra.mxu1 %v5347_v4  ;;  %3928 = vmatprep.subr.bf16.mxu0 %v5352_v5  ;;  %v5411_v4 = vld [vmem:[%s5619_s22 + $0xc10] ss:$8 sps:$4 sm:$0xff]  }
 0x184   : > { %3969 = vmatprep.subr.bf16.mxu1 %v5355_v6  ;;  %v5414_v5 = vld [vmem:[%s5619_s22 + $0xd10] ss:$8 sps:$4 sm:$0xff]   ;;  %v5419_v6 = vld [vmem:[%s5619_s22 + $0xc04] ss:$8 sps:$4 sm:$0xff]  }
 0x186   : > { %3929 = vmatpush2.bf16.msra.mxu0 %v5350_v8  ;;  %v5422_v8 = vld [vmem:[%s5619_s22 + $0xd04] ss:$8 sps:$4 sm:$0xff]  }
 0x187   : > { %3970 = vmatpush2.bf16.msra.mxu1 %v5353_v9  ;;  %3930 = vmatprep.subr.bf16.mxu0 %v5358_v36  ;;  %v5417_v9 = vld [vmem:[%s5619_s22 + $0xc00] ss:$8 sps:$4 sm:$0xff]  }
 0x188   : > { %3971 = vmatprep.subr.bf16.mxu1 %v5361_v10  ;;  %v5420_v36 = vld [vmem:[%s5619_s22 + $0xd00] ss:$8 sps:$4 sm:$0xff]   ;;  %v5425_v10 = vld [vmem:[%s5619_s22 + $0xcf4] ss:$8 sps:$4 sm:$0xff]  }
 0x18a   : > { %3931 = vmatpush2.bf16.msra.mxu0 %v5356_v12  ;;  %v5428_v12 = vld [vmem:[%s5619_s22 + $0xdf4] ss:$8 sps:$4 sm:$0xff]  }
 0x18b   : > { %3972 = vmatpush2.bf16.msra.mxu1 %v5359_v13  ;;  %3932 = vmatprep.subr.bf16.mxu0 %v5364_v14  ;;  %v5423_v13 = vld [vmem:[%s5619_s22 + $0xcf0] ss:$8 sps:$4 sm:$0xff]  }
 0x18c   : > { %3973 = vmatprep.subr.bf16.mxu1 %v5367_v15  ;;  %v5426_v14 = vld [vmem:[%s5619_s22 + $0xdf0] ss:$8 sps:$4 sm:$0xff]   ;;  %v5431_v15 = vld [vmem:[%s5619_s22 + $0xce4] ss:$8 sps:$4 sm:$0xff]  }
 0x18e   : > { %3933 = vmatpush2.bf16.msra.mxu0 %v5362_v17  ;;  %v5434_v17 = vld [vmem:[%s5619_s22 + $0xde4] ss:$8 sps:$4 sm:$0xff]  }
 0x18f   : > { %3974 = vmatpush2.bf16.msra.mxu1 %v5365_v18  ;;  %3934 = vmatprep.subr.bf16.mxu0 %v5370_v19  ;;  %v5429_v18 = vld [vmem:[%s5619_s22 + $0xce0] ss:$8 sps:$4 sm:$0xff]  }
 0x190   : > { %3975 = vmatprep.subr.bf16.mxu1 %v5373_v20  ;;  %v5432_v19 = vld [vmem:[%s5619_s22 + $0xde0] ss:$8 sps:$4 sm:$0xff]   ;;  %v5437_v20 = vld [vmem:[%s5619_s22 + $0xcd4] ss:$8 sps:$4 sm:$0xff]  }
 0x192   : > { %3935 = vmatpush2.bf16.msra.mxu0 %v5368_v23  ;;  %v5438_v23 = vld [vmem:[%s5619_s22 + $0xdd0] ss:$8 sps:$4 sm:$0xff]  }
 0x193   : > { %3976 = vmatpush2.bf16.msra.mxu1 %v5371_v25  ;;  %3986 = vmatprep.subr.bf16.mxu0 %v5377_v27  ;;  %v5443_v25 = vld [vmem:[%s5619_s22 + $0xcc4] ss:$8 sps:$4 sm:$0xff]  }
 0x194   : > { %4027 = vmatprep.subr.bf16.mxu1 %v5380_v28  ;;  %v5446_v27 = vld [vmem:[%s5619_s22 + $0xdc4] ss:$8 sps:$4 sm:$0xff]   ;;  %v5441_v28 = vld [vmem:[%s5619_s22 + $0xcc0] ss:$8 sps:$4 sm:$0xff]  }
 0x195   : > { %v3692_v35 = vpop.f32.mrf.mxu0  ;;  %3937 = vmatmul.mubr.bf16.vlgmr.msra.gmra.mxu0 %v834_v58  ;;  %v5435_v58 = vld [vmem:[%s5619_s22 + $0xcd0] ss:$8 sps:$4 sm:$0xff]  }
 0x196   : > { %v3733_v37 = vpop.f32.mrf.mxu1  ;;  %3978 = vmatmul.mubr.bf16.vlgmr.msra.gmra.mxu1 %v850_v63  ;;  %v3693_v38 = vadd.f32 %v3692_v35, %v6016_v21  ;;  %3987 = vmatpush1.bf16.msra.mxu0 %v5375_v29  ;;  %v5449_v63 = vld [vmem:[%s5619_s22 + $0xcb4] ss:$8 sps:$4 sm:$0xff]   ;;  %v853_v35 = vcombine.high %v6066_v11, %v6066_v11  ;;  %v5459_v11 = vld [vmem:[%s5619_s22 + $0xc90] ss:$8 sps:$4 sm:$0xff]  }
 0x197   : > { %4028 = vmatpush1.bf16.msra.mxu1 %v5378_v31  ;;  %v3694_v40 = vpop.f32.mrf.mxu0  ;;  %3988 = vmatprep.subr.bf16.mxu0 %v5383_v57  ;;  %v5452_v29 = vld [vmem:[%s5619_s22 + $0xdb4] ss:$8 sps:$4 sm:$0xff]   ;;  %v5447_v31 = vld [vmem:[%s5619_s22 + $0xcb0] ss:$8 sps:$4 sm:$0xff]  }
 0x198   : > { %v3735_v41 = vpop.f32.mrf.mxu1  ;;  %4029 = vmatprep.subr.bf16.mxu1 %v5386_v33  ;;  %v6098_v45 = vadd.f32 %v3733_v37, %v3693_v38  ;;  %v3695_v46 = vadd.f32 %v3694_v40, %v6019_v24  ;;  %4018 = vmatprep.mubr.bf16.mxu0 %v890_v7  ;;  %v5395_v24 = vld [vmem:[%s5619_s22 + $0xc44] ss:$8 sps:$4 sm:$0xff]   ;;  %v5444_v7 = vld [vmem:[%s5619_s22 + $0xdc0] ss:$8 sps:$4 sm:$0xff]   ;;  %v5450_v57 = vld [vmem:[%s5619_s22 + $0xdb0] ss:$8 sps:$4 sm:$0xff]   ;;  %v6154_v40 = vrot.slane %v853_v35, %v5669_v50 }
 0x199   : > { %4059 = vmatprep.mubr.bf16.mxu1 %v900_v34  ;;  %v3696_v21 = vpop.f32.mrf.mxu0  ;;  %v5455_v33 = vld [vmem:[%s5619_s22 + $0xca4] ss:$8 sps:$4 sm:$0xff]   ;;  %v5453_v37 = vld [vmem:[%s5619_s22 + $0xca0] ss:$8 sps:$4 sm:$0xff]   ;;  %v5524_v35 = vld [vmem:[%s5619_s22 + $0xff4] ss:$8 sps:$4 sm:$0xff]  }
 0x19a   : > { %v3737_v47 = vpop.f32.mrf.mxu1  ;;  %v6101_v48 = vadd.f32 %v3735_v41, %v3695_v46  ;;  %3989 = vmatpush1.bf16.msra.mxu0 %v5381_v39  ;;  %v5458_v34 = vld [vmem:[%s5619_s22 + $0xda4] ss:$8 sps:$4 sm:$0xff]   ;;  %v5456_v38 = vld [vmem:[%s5619_s22 + $0xda0] ss:$8 sps:$4 sm:$0xff]   ;;  %v5461_v39 = vld [vmem:[%s5619_s22 + $0xc94] ss:$8 sps:$4 sm:$0xff]   ;;  %v869_v46 = vcombine.high %v6154_v40, %v6154_v40  ;;  %v876_v21 = vrot.slane %v6074_v16, %v5669_v50 }
 0x19b   : > { %4030 = vmatpush1.bf16.msra.mxu1 %v5384_v30  ;;  %v3697_v52 = vpop.f32.mrf.mxu0  ;;  %3990 = vmatprep.subr.bf16.mxu0 %v5389_v42  ;;  %v5464_v30 = vld [vmem:[%s5619_s22 + $0xd94] ss:$8 sps:$4 sm:$0xff]   ;;  %v5462_v41 = vld [vmem:[%s5619_s22 + $0xd90] ss:$8 sps:$4 sm:$0xff]   ;;  %v5467_v42 = vld [vmem:[%s5619_s22 + $0xc84] ss:$8 sps:$4 sm:$0xff]  }
 0x19c   : > { %v3738_v26 = vpop.f32.mrf.mxu1  ;;  %4031 = vmatprep.subr.bf16.mxu1 %v5392_v43  ;;  %v5470_v43 = vld [vmem:[%s5619_s22 + $0xd84] ss:$8 sps:$4 sm:$0xff]   ;;  %v5465_v47 = vld [vmem:[%s5619_s22 + $0xc80] ss:$8 sps:$4 sm:$0xff]   ;;  %v5476_v52 = vld [vmem:[%s5619_s22 + $0xf74] ss:$8 sps:$4 sm:$0xff]  }
 0x19d   : > { %v897_v26 = vrot.slane %v869_v46, %v5669_v50  ;;  %v5479_v16 = vld [vmem:[%s5619_s22 + $0xe64] ss:$8 sps:$4 sm:$0xff]   ;;  %v5531_v46 = vld [vmem:[%s5619_s22 + $0xed0] ss:$8 sps:$4 sm:$0xff]  }
 0x19e   : > { %3991 = vmatpush1.bf16.msra.mxu0 %v5387_v49  ;;  %v5468_v49 = vld [vmem:[%s5619_s22 + $0xd80] ss:$8 sps:$4 sm:$0xff]  }
 0x19f   : > { %4032 = vmatpush1.bf16.msra.mxu1 %v5390_v51  ;;  %3992 = vmatprep.subr.bf16.mxu0 %v5395_v24  ;;  %v5473_v51 = vld [vmem:[%s5619_s22 + $0xe74] ss:$8 sps:$4 sm:$0xff]   ;;  %v898_v24 = vcombine.high %v876_v21, %v876_v21 }
 0x1a0   : > { %4033 = vmatprep.subr.bf16.mxu1 %v5398_v53  ;;  %v5471_v53 = vld [vmem:[%s5619_s22 + $0xe70] ss:$8 sps:$4 sm:$0xff]  }
 0x1a2   : > { %3993 = vmatpush1.bf16.msra.mxu0 %v5393_v54  ;;  %v5474_v54 = vld [vmem:[%s5619_s22 + $0xf70] ss:$8 sps:$4 sm:$0xff]  }
 0x1a3   : > { %4034 = vmatpush1.bf16.msra.mxu1 %v5396_v55  ;;  %3994 = vmatprep.subr.bf16.mxu0 %v5401_v56  ;;  %v5482_v55 = vld [vmem:[%s5619_s22 + $0xf64] ss:$8 sps:$4 sm:$0xff]   ;;  %v901_v56 = vcombine.high %v897_v26, %v897_v26 }
 0x1a4   : > { %4035 = vmatprep.subr.bf16.mxu1 %v5404_v32 }
 0x1a6   : > { %3995 = vmatpush1.bf16.msra.mxu0 %v5399_v59 }
 0x1a7   : > { %4036 = vmatpush1.bf16.msra.mxu1 %v5402_v60  ;;  %3996 = vmatprep.subr.bf16.mxu0 %v5407_v61  ;;  %v5477_v61 = vld [vmem:[%s5619_s22 + $0xe60] ss:$8 sps:$4 sm:$0xff]  }
 0x1a8   : > { %4037 = vmatprep.subr.bf16.mxu1 %v5410_v62  ;;  %v5480_v62 = vld [vmem:[%s5619_s22 + $0xf60] ss:$8 sps:$4 sm:$0xff]  }
 0x1aa   : > { %3997 = vmatpush1.bf16.msra.mxu0 %v5405_v0 }
 0x1ab   : > { %4038 = vmatpush1.bf16.msra.mxu1 %v5408_v1  ;;  %3998 = vmatprep.subr.bf16.mxu0 %v5413_v2  ;;  %v5485_v2 = vld [vmem:[%s5619_s22 + $0xe54] ss:$8 sps:$4 sm:$0xff]  }
 0x1ac   : > { %4039 = vmatprep.subr.bf16.mxu1 %v5416_v3  ;;  %v5488_v3 = vld [vmem:[%s5619_s22 + $0xf54] ss:$8 sps:$4 sm:$0xff]  }
 0x1ae   : > { %3999 = vmatpush1.bf16.msra.mxu0 %v5411_v4 }
 0x1af   : > { %4040 = vmatpush1.bf16.msra.mxu1 %v5414_v5  ;;  %4000 = vmatprep.subr.bf16.mxu0 %v5419_v6 }
 0x1b0   : > { %4041 = vmatprep.subr.bf16.mxu1 %v5422_v8 }
 0x1b2   : > { %4001 = vmatpush1.bf16.msra.mxu0 %v5417_v9  ;;  %v5483_v9 = vld [vmem:[%s5619_s22 + $0xe50] ss:$8 sps:$4 sm:$0xff]  }
 0x1b3   : > { %4042 = vmatpush1.bf16.msra.mxu1 %v5420_v36  ;;  %4002 = vmatprep.subr.bf16.mxu0 %v5425_v10  ;;  %v5486_v36 = vld [vmem:[%s5619_s22 + $0xf50] ss:$8 sps:$4 sm:$0xff]  }
 0x1b4   : > { %4043 = vmatprep.subr.bf16.mxu1 %v5428_v12 }
 0x1b6   : > { %4003 = vmatpush2.bf16.msra.mxu0 %v5423_v13  ;;  %v5494_v13 = vld [vmem:[%s5619_s22 + $0xf44] ss:$8 sps:$4 sm:$0xff]  }
 0x1b7   : > { %4044 = vmatpush2.bf16.msra.mxu1 %v5426_v14  ;;  %4004 = vmatprep.subr.bf16.mxu0 %v5431_v15  ;;  %v5489_v14 = vld [vmem:[%s5619_s22 + $0xe40] ss:$8 sps:$4 sm:$0xff]  }
 0x1b8   : > { %4045 = vmatprep.subr.bf16.mxu1 %v5434_v17  ;;  %v5492_v15 = vld [vmem:[%s5619_s22 + $0xf40] ss:$8 sps:$4 sm:$0xff]   ;;  %v5497_v17 = vld [vmem:[%s5619_s22 + $0xe34] ss:$8 sps:$4 sm:$0xff]  }
 0x1ba   : > { %4005 = vmatpush2.bf16.msra.mxu0 %v5429_v18  ;;  %v5500_v18 = vld [vmem:[%s5619_s22 + $0xf34] ss:$8 sps:$4 sm:$0xff]  }
 0x1bb   : > { %4046 = vmatpush2.bf16.msra.mxu1 %v5432_v19  ;;  %4006 = vmatprep.subr.bf16.mxu0 %v5437_v20  ;;  %v5495_v19 = vld [vmem:[%s5619_s22 + $0xe30] ss:$8 sps:$4 sm:$0xff]  }
 0x1bc   : > { %4047 = vmatprep.subr.bf16.mxu1 %v5440_v22  ;;  %v5498_v20 = vld [vmem:[%s5619_s22 + $0xf30] ss:$8 sps:$4 sm:$0xff]   ;;  %v5503_v22 = vld [vmem:[%s5619_s22 + $0xe24] ss:$8 sps:$4 sm:$0xff]  }
 0x1be   : > { %4007 = vmatpush2.bf16.msra.mxu0 %v5435_v58  ;;  %v5506_v58 = vld [vmem:[%s5619_s22 + $0xf24] ss:$8 sps:$4 sm:$0xff]  }
 0x1bf   : > { %4048 = vmatpush2.bf16.msra.mxu1 %v5438_v23  ;;  %4008 = vmatprep.subr.bf16.mxu0 %v5443_v25  ;;  %v5501_v23 = vld [vmem:[%s5619_s22 + $0xe20] ss:$8 sps:$4 sm:$0xff]  }
 0x1c0   : > { %4049 = vmatprep.subr.bf16.mxu1 %v5446_v27  ;;  %v5504_v25 = vld [vmem:[%s5619_s22 + $0xf20] ss:$8 sps:$4 sm:$0xff]   ;;  %v5509_v27 = vld [vmem:[%s5619_s22 + $0xe14] ss:$8 sps:$4 sm:$0xff]  }
 0x1c2   : > { %4009 = vmatpush2.bf16.msra.mxu0 %v5441_v28  ;;  %v5512_v28 = vld [vmem:[%s5619_s22 + $0xf14] ss:$8 sps:$4 sm:$0xff]  }
 0x1c3   : > { %4050 = vmatpush2.bf16.msra.mxu1 %v5444_v7  ;;  %4010 = vmatprep.subr.bf16.mxu0 %v5449_v63  ;;  %v5507_v7 = vld [vmem:[%s5619_s22 + $0xe10] ss:$8 sps:$4 sm:$0xff]  }
 0x1c4   : > { %4051 = vmatprep.subr.bf16.mxu1 %v5452_v29  ;;  %v5510_v63 = vld [vmem:[%s5619_s22 + $0xf10] ss:$8 sps:$4 sm:$0xff]   ;;  %v5515_v29 = vld [vmem:[%s5619_s22 + $0xe04] ss:$8 sps:$4 sm:$0xff]  }
 0x1c6   : > { %4011 = vmatpush2.bf16.msra.mxu0 %v5447_v31  ;;  %v5518_v31 = vld [vmem:[%s5619_s22 + $0xf04] ss:$8 sps:$4 sm:$0xff]  }
 0x1c7   : > { %4052 = vmatpush2.bf16.msra.mxu1 %v5450_v57  ;;  %4012 = vmatprep.subr.bf16.mxu0 %v5455_v33  ;;  %v5513_v57 = vld [vmem:[%s5619_s22 + $0xe00] ss:$8 sps:$4 sm:$0xff]  }
 0x1c8   : > { %4053 = vmatprep.subr.bf16.mxu1 %v5458_v34  ;;  %v5516_v33 = vld [vmem:[%s5619_s22 + $0xf00] ss:$8 sps:$4 sm:$0xff]   ;;  %v5521_v34 = vld [vmem:[%s5619_s22 + $0xef4] ss:$8 sps:$4 sm:$0xff]  }
 0x1ca   : > { %4013 = vmatpush2.bf16.msra.mxu0 %v5453_v37  ;;  %v5519_v37 = vld [vmem:[%s5619_s22 + $0xef0] ss:$8 sps:$4 sm:$0xff]  }
 0x1cb   : > { %4054 = vmatpush2.bf16.msra.mxu1 %v5456_v38  ;;  %4014 = vmatprep.subr.bf16.mxu0 %v5461_v39  ;;  %v5522_v38 = vld [vmem:[%s5619_s22 + $0xff0] ss:$8 sps:$4 sm:$0xff]   ;;  %v5527_v39 = vld [vmem:[%s5619_s22 + $0xee4] ss:$8 sps:$4 sm:$0xff]  }
 0x1cc   : > { %4055 = vmatprep.subr.bf16.mxu1 %v5464_v30  ;;  %v5530_v30 = vld [vmem:[%s5619_s22 + $0xfe4] ss:$8 sps:$4 sm:$0xff]  }
 0x1ce   : > { %4015 = vmatpush2.bf16.msra.mxu0 %v5459_v11  ;;  %v5525_v11 = vld [vmem:[%s5619_s22 + $0xee0] ss:$8 sps:$4 sm:$0xff]  }
 0x1cf   : > { %4056 = vmatpush2.bf16.msra.mxu1 %v5462_v41  ;;  %4016 = vmatprep.subr.bf16.mxu0 %v5467_v42  ;;  %v5528_v41 = vld [vmem:[%s5619_s22 + $0xfe0] ss:$8 sps:$4 sm:$0xff]   ;;  %v5533_v42 = vld [vmem:[%s5619_s22 + $0xed4] ss:$8 sps:$4 sm:$0xff]  }
 0x1d0   : > { %4057 = vmatprep.subr.bf16.mxu1 %v5470_v43  ;;  %v5536_v43 = vld [vmem:[%s5619_s22 + $0xfd4] ss:$8 sps:$4 sm:$0xff]  }
 0x1d2   : > { %4017 = vmatpush2.bf16.msra.mxu0 %v5465_v47  ;;  %v5539_v47 = vld [vmem:[%s5619_s22 + $0xec4] ss:$8 sps:$4 sm:$0xff]  }
 0x1d3   : > { %4058 = vmatpush2.bf16.msra.mxu1 %v5468_v49  ;;  %4068 = vmatprep.subr.bf16.mxu0 %v5473_v51  ;;  %v5542_v49 = vld [vmem:[%s5619_s22 + $0xfc4] ss:$8 sps:$4 sm:$0xff]   ;;  %v5537_v51 = vld [vmem:[%s5619_s22 + $0xec0] ss:$8 sps:$4 sm:$0xff]  }
 0x1d4   : > { %4109 = vmatprep.subr.bf16.mxu1 %v5476_v52  ;;  %v5540_v52 = vld [vmem:[%s5619_s22 + $0xfc0] ss:$8 sps:$4 sm:$0xff]  }
 0x1d5   : > { %v3774_v32 = vpop.f32.mrf.mxu0  ;;  %4019 = vmatmul.mubr.bf16.vlgmr.msra.gmra.mxu0 %v876_v21  ;;  %v5534_v21 = vld [vmem:[%s5619_s22 + $0xfd0] ss:$8 sps:$4 sm:$0xff]  }
 0x1d6   : > { %v3815_v59 = vpop.f32.mrf.mxu1  ;;  %4060 = vmatmul.mubr.bf16.vlgmr.msra.gmra.mxu1 %v898_v24  ;;  %v3775_v60 = vadd.f32 %v3774_v32, %v6098_v45  ;;  %4069 = vmatpush1.bf16.msra.mxu0 %v5471_v53  ;;  %v5548_v24 = vld [vmem:[%s5619_s22 + $0xfb4] ss:$8 sps:$4 sm:$0xff]   ;;  %v5543_v53 = vld [vmem:[%s5619_s22 + $0xeb0] ss:$8 sps:$4 sm:$0xff]   ;;  %v5552_v32 = vld [vmem:[%s5619_s22 + $0xfa0] ss:$8 sps:$4 sm:$0xff]  }
 0x1d7   : > { %4110 = vmatpush1.bf16.msra.mxu1 %v5474_v54  ;;  %v3776_v0 = vpop.f32.mrf.mxu0  ;;  %4070 = vmatprep.subr.bf16.mxu0 %v5479_v16  ;;  %v5546_v54 = vld [vmem:[%s5619_s22 + $0xfb0] ss:$8 sps:$4 sm:$0xff]   ;;  %v5551_v16 = vld [vmem:[%s5619_s22 + $0xea4] ss:$8 sps:$4 sm:$0xff]  }
 0x1d8   : > { %v3817_v1 = vpop.f32.mrf.mxu1  ;;  %4111 = vmatprep.subr.bf16.mxu1 %v5482_v55  ;;  %v6178_v4 = vadd.f32 %v3815_v59, %v3775_v60  ;;  %v3777_v5 = vadd.f32 %v3776_v0, %v6101_v48  ;;  %4100 = vmatprep.mubr.bf16.mxu0 %v897_v26  ;;  %v5491_v48 = vld [vmem:[%s5619_s22 + $0xe44] ss:$8 sps:$4 sm:$0xff]   ;;  %v5545_v26 = vld [vmem:[%s5619_s22 + $0xeb4] ss:$8 sps:$4 sm:$0xff]  }
 0x1d9   : > { %4141 = vmatprep.mubr.bf16.mxu1 %v901_v56  ;;  %v3778_v45 = vpop.f32.mrf.mxu0  ;;  %v5554_v55 = vld [vmem:[%s5619_s22 + $0xfa4] ss:$8 sps:$4 sm:$0xff]   ;;  %v5549_v56 = vld [vmem:[%s5619_s22 + $0xea0] ss:$8 sps:$4 sm:$0xff]   ;;  %v5557_v59 = vld [vmem:[%s5619_s22 + $0xe94] ss:$8 sps:$4 sm:$0xff]  }
 0x1da   : > { %v3819_v6 = vpop.f32.mrf.mxu1  ;;  %v6181_v8 = vadd.f32 %v3817_v1, %v3777_v5  ;;  %4071 = vmatpush1.bf16.msra.mxu0 %v5477_v61  ;;  %v5560_v60 = vld [vmem:[%s5619_s22 + $0xf94] ss:$8 sps:$4 sm:$0xff]   ;;  %v5555_v61 = vld [vmem:[%s5619_s22 + $0xe90] ss:$8 sps:$4 sm:$0xff]   ;;  %v5563_v0 = vld [vmem:[%s5619_s22 + $0xe84] ss:$8 sps:$4 sm:$0xff]  }
 0x1db   : > { %4112 = vmatpush1.bf16.msra.mxu1 %v5480_v62  ;;  %v3779_v10 = vpop.f32.mrf.mxu0  ;;  %4072 = vmatprep.subr.bf16.mxu0 %v5485_v2  ;;  %v5558_v62 = vld [vmem:[%s5619_s22 + $0xf90] ss:$8 sps:$4 sm:$0xff]   ;;  %v5566_v1 = vld [vmem:[%s5619_s22 + $0xf84] ss:$8 sps:$4 sm:$0xff]   ;;  %v883_v2 = vrot.slane %v6154_v40, %v5669_v50  ;;  %v5564_v5 = vld [vmem:[%s5619_s22 + $0xf80] ss:$8 sps:$4 sm:$0xff]  }
 0x1dc   : > { %v3820_v12 = vpop.f32.mrf.mxu1  ;;  %4113 = vmatprep.subr.bf16.mxu1 %v5488_v3  ;;  %v5561_v3 = vld [vmem:[%s5619_s22 + $0xe80] ss:$8 sps:$4 sm:$0xff]  }
 0x1dd   : > { %v899_v45 = vcombine.high %v883_v2, %v883_v2 }
 0x1de   : > { %4073 = vmatpush1.bf16.msra.mxu0 %v5483_v9 }
 0x1df   : > { %4114 = vmatpush1.bf16.msra.mxu1 %v5486_v36  ;;  %4074 = vmatprep.subr.bf16.mxu0 %v5491_v48 }
 0x1e0   : > { %4115 = vmatprep.subr.bf16.mxu1 %v5494_v13 }
 0x1e2   : > { %4075 = vmatpush1.bf16.msra.mxu0 %v5489_v14 }
 0x1e3   : > { %4116 = vmatpush1.bf16.msra.mxu1 %v5492_v15  ;;  %4076 = vmatprep.subr.bf16.mxu0 %v5497_v17 }
 0x1e4   : > { %4117 = vmatprep.subr.bf16.mxu1 %v5500_v18 }
 0x1e6   : > { %4077 = vmatpush1.bf16.msra.mxu0 %v5495_v19 }
 0x1e7   : > { %4118 = vmatpush1.bf16.msra.mxu1 %v5498_v20  ;;  %4078 = vmatprep.subr.bf16.mxu0 %v5503_v22 }
 0x1e8   : > { %4119 = vmatprep.subr.bf16.mxu1 %v5506_v58 }
 0x1ea   : > { %4079 = vmatpush1.bf16.msra.mxu0 %v5501_v23 }
 0x1eb   : > { %4120 = vmatpush1.bf16.msra.mxu1 %v5504_v25  ;;  %4080 = vmatprep.subr.bf16.mxu0 %v5509_v27 }
 0x1ec   : > { %4121 = vmatprep.subr.bf16.mxu1 %v5512_v28 }
 0x1ee   : > { %4081 = vmatpush1.bf16.msra.mxu0 %v5507_v7 }
 0x1ef   : > { %4122 = vmatpush1.bf16.msra.mxu1 %v5510_v63  ;;  %4082 = vmatprep.subr.bf16.mxu0 %v5515_v29 }
 0x1f0   : > { %4123 = vmatprep.subr.bf16.mxu1 %v5518_v31 }
 0x1f2   : > { %4083 = vmatpush1.bf16.msra.mxu0 %v5513_v57 }
 0x1f3   : > { %4124 = vmatpush1.bf16.msra.mxu1 %v5516_v33  ;;  %4084 = vmatprep.subr.bf16.mxu0 %v5521_v34 }
 0x1f4   : > { %4125 = vmatprep.subr.bf16.mxu1 %v5524_v35 }
 0x1f6   : > { %4085 = vmatpush2.bf16.msra.mxu0 %v5519_v37 }
 0x1f7   : > { %4126 = vmatpush2.bf16.msra.mxu1 %v5522_v38  ;;  %4086 = vmatprep.subr.bf16.mxu0 %v5527_v39 }
 0x1f8   : > { %4127 = vmatprep.subr.bf16.mxu1 %v5530_v30 }
 0x1fa   : > { %4087 = vmatpush2.bf16.msra.mxu0 %v5525_v11 }
 0x1fb   : > { %4128 = vmatpush2.bf16.msra.mxu1 %v5528_v41  ;;  %4088 = vmatprep.subr.bf16.mxu0 %v5533_v42  ;;  %v5578_v41 = vmov 1983009808  }
 0x1fc   : > { %4129 = vmatprep.subr.bf16.mxu1 %v5536_v43  ;;  %v4154_v42 = vunpack.c.l.s4 %v5578_v41 }
 0x1fe   : > { %4089 = vmatpush2.bf16.msra.mxu0 %v5531_v46 }
 0x1ff   : > { %4130 = vmatpush2.bf16.msra.mxu1 %v5534_v21  ;;  %4090 = vmatprep.subr.bf16.mxu0 %v5539_v47 }
 0x200   : > { %4131 = vmatprep.subr.bf16.mxu1 %v5542_v49  ;;  %v4155_v49 = vunpack.c.0.s8 %v4154_v42 }
 0x202   : > { %4091 = vmatpush2.bf16.msra.mxu0 %v5537_v51 }
 0x203   : > { %4132 = vmatpush2.bf16.msra.mxu1 %v5540_v52  ;;  %4092 = vmatprep.subr.bf16.mxu0 %v5545_v26 }
 0x204   : > { %4133 = vmatprep.subr.bf16.mxu1 %v5548_v24 }
 0x206   : > { %4093 = vmatpush2.bf16.msra.mxu0 %v5543_v53 }
 0x207   : > { %4134 = vmatpush2.bf16.msra.mxu1 %v5546_v54  ;;  %4094 = vmatprep.subr.bf16.mxu0 %v5551_v16 }
 0x208   : > { %4135 = vmatprep.subr.bf16.mxu1 %v5554_v55  ;;  %v4158_v55 = vsub.s32 %v4155_v49, %v5661_v44 }
 0x20a   : > { %4095 = vmatpush2.bf16.msra.mxu0 %v5549_v56 }
 0x20b   : > { %4136 = vmatpush2.bf16.msra.mxu1 %v5552_v32  ;;  %4096 = vmatprep.subr.bf16.mxu0 %v5557_v59 }
 0x20c   : > { %4137 = vmatprep.subr.bf16.mxu1 %v5560_v60  ;;  %v185_v60 = vld [vmem:[#allocation2] sm:$0xf] }
 0x20e   : > { %4097 = vmatpush2.bf16.msra.mxu0 %v5555_v61 }
 0x20f   : > { %4138 = vmatpush2.bf16.msra.mxu1 %v5558_v62  ;;  %4098 = vmatprep.subr.bf16.mxu0 %v5563_v0 }
 0x210   : > { %4139 = vmatprep.subr.bf16.mxu1 %v5566_v1 }
 0x212   : > { %4099 = vmatpush2.bf16.msra.mxu0 %v5561_v3 }
 0x213   : > { %4140 = vmatpush2.bf16.msra.mxu1 %v5564_v5 }
 0x215   : > { %v3856_v6 = vpop.f32.mrf.mxu0  ;;  %4101 = vmatmul.mubr.bf16.vlgmr.msra.gmra.mxu0 %v883_v2 }
 0x216   : > { %v3897_v9 = vpop.f32.mrf.mxu1  ;;  %4142 = vmatmul.mubr.bf16.vlgmr.msra.gmra.mxu1 %v899_v45  ;;  %v3857_v36 = vadd.f32 %v3856_v6, %v6178_v4 }
 0x217   : > { %v3858_v10 = vpop.f32.mrf.mxu0 }
 0x218   : > { %v3899_v12 = vpop.f32.mrf.mxu1  ;;  %v3898_v48 = vadd.f32 %v3897_v9, %v3857_v36  ;;  %v3859_v40 = vadd.f32 %v3858_v10, %v6181_v8 }
 0x219   : > { %v3860_v13 = vpop.f32.mrf.mxu0 }
 0x21a   : > { %v3901_v14 = vpop.f32.mrf.mxu1  ;;  %v3900_v15 = vadd.f32 %v3899_v12, %v3859_v40 }
 0x21b   : > { %v3861_v17 = vpop.f32.mrf.mxu0 }
 0x21c   : > { %v3902_v18 = vpop.f32.mrf.mxu1 }
 0x255   : > { %v3938_v19 = vpop.f32.mrf.mxu0 }
 0x256   : > { %v3979_v20 = vpop.f32.mrf.mxu1  ;;  %v3939_v22 = vadd.f32 %v3938_v19, %v3898_v48 }
 0x257   : > { %v3940_v58 = vpop.f32.mrf.mxu0 }
 0x258   : > { %v3981_v23 = vpop.f32.mrf.mxu1  ;;  %v3980_v25 = vadd.f32 %v3979_v20, %v3939_v22  ;;  %v3941_v27 = vadd.f32 %v3940_v58, %v3900_v15 }
 0x259   : > { %v3942_v28 = vpop.f32.mrf.mxu0 }
 0x25a   : > { %v3983_v7 = vpop.f32.mrf.mxu1  ;;  %v3982_v4 = vadd.f32 %v3981_v23, %v3941_v27 }
 0x25b   : > { %v3943_v63 = vpop.f32.mrf.mxu0 }
 0x25c   : > { %v3984_v29 = vpop.f32.mrf.mxu1 }
 0x295   : > { %v4020_v31 = vpop.f32.mrf.mxu0 }
 0x296   : > { %v4061_v57 = vpop.f32.mrf.mxu1  ;;  %v4021_v8 = vadd.f32 %v4020_v31, %v3980_v25 }
 0x297   : > { %v4022_v33 = vpop.f32.mrf.mxu0 }
 0x298   : > { %v4063_v34 = vpop.f32.mrf.mxu1  ;;  %v4062_v35 = vadd.f32 %v4061_v57, %v4021_v8  ;;  %v4023_v11 = vadd.f32 %v4022_v33, %v3982_v4 }
 0x299   : > { %v4024_v37 = vpop.f32.mrf.mxu0 }
 0x29a   : > { %v4065_v38 = vpop.f32.mrf.mxu1  ;;  %v4064_v21 = vadd.f32 %v4063_v34, %v4023_v11 }
 0x29b   : > { %v4025_v39 = vpop.f32.mrf.mxu0 }
 0x29c   : > { %v4066_v30 = vpop.f32.mrf.mxu1 }
 0x2d5   : > { %v4102_v43 = vpop.f32.mrf.mxu0 }
 0x2d6   : > { %v4143_v46 = vpop.f32.mrf.mxu1  ;;  %v4103_v47 = vadd.f32 %v4102_v43, %v4062_v35 }
 0x2d7   : > { %v4104_v51 = vpop.f32.mrf.mxu0 }
 0x2d8   : > { %v4145_v52 = vpop.f32.mrf.mxu1  ;;  %v4105_v26 = vadd.f32 %v4104_v51, %v4064_v21  ;;  %v4144_v54 = vadd.f32 %v4143_v46, %v4103_v47 }
 0x2d9   : > { %v4106_v24 = vpop.f32.mrf.mxu0 }
 0x2da   : > { %v4147_v53 = vpop.f32.mrf.mxu1  ;;  %v4146_v16 = vadd.f32 %v4145_v52, %v4105_v26 }
 0x2db   : > { %v4107_v56 = vpop.f32.mrf.mxu0 }
 0x2dc   : > { %v4148_v32 = vpop.f32.mrf.mxu1  ;;  %v4152_v59 = vcombine.low %v4144_v54, %v4146_v16 }
 0x2de   : > { %v4159_v61 = vrot.slane %v4152_v59, %v4158_v55  ;;  %4166 = sbr.rel (%p4779_p6) target bundleno = 760 (0x2f8), region = 40 }
 0x2e0   : > { %v4161_v62 = vadd.f32 %v4159_v61, %v185_v60 }
 0x2e2   : > { %4162 = vst [vmem:[#allocation2] sm:$0xf] %v4161_v62 }
 0x2e3   : > { %v4168_v0 = vld [vmem:[%s6257_s2] sm:$0x3]  ;;  %v4172_v1 = vsub.s32 0, %v5661_v44  ;;  %v4176_v2 = vsub.s32 1, %v5661_v44 }
 0x2e5   : > { %v4173_v3 = vrot.slane %v4168_v0, %v4172_v1  ;;  %v4177_v5 = vrot.slane %v4168_v0, %v4176_v2 }
 0x2e7   : > { %v4178_v45 = vcombine.low %v4173_v3, %v4177_v5 }
 0x2e9   : > { %v4167_v6 = vld [vmem:[#allocation2] sm:$0xf]  ;;  %v4185_v9 = vrot.slane %v4178_v45, %v4158_v55 }
 0x2eb   : > { %v4187_v36 = vadd.f32 %v4185_v9, %v4167_v6 }
 0x2ed   : > { %v4188_v10 = vmax.f32 %v4187_v36, 0.0 }
 0x2ef   : > { %v4196_v12 = vrot.slane %v4188_v10, %v4158_v55 }
 0x2f1   : > { %v4197_v48 = vcombine.high %v4196_v12, %v4196_v12 }
 0x2f3   : > { %v4780_v40 = vpack.c.bf16 %v4197_v48, %v4196_v12 }
 0x2f5   : > { %v4211_v13 = vrot.slane %v4780_v40, %v5669_v50 }
 0x2f7   : > { %4781 = vst.sshfl [vmem:[%s6258_s3] sm:$0x5 pattern:$0x73625140] %v4211_v13 }
 0x2f8 PF: > { %s13_s12 = sadd.s32 1, %s5574_s12  }
 0x2f9   : > { %p10_p7 = scmp.ge.s32.totalorder %s13_s12, 6  }
 0x2fb   :  { %12 = sbr.rel (!%p10_p7) target bundleno = 1 (0x1), region = 69 }

// kernel: attributes_network_forward.16
= control target key start
LH: loop header
LB: loop body
LE: loop exit
PB: predicated region body
PF: predicated region fallthrough
CT: control target
= control target key end

     0   :  { %v297_v6 = vmov 1966171168   ;;  %v67_v8 = vlaneseq  ;;  %vm19_vm0 = vcmask 517120   ;;  %v298_v26 = vmov 0.0   ;;  %s376_s1 = inlined_call_operand.vmem [shape: bf16[256,64], index: 1, kind: input, shape index: {}]   ;;  %s377_s0 = inlined_call_operand.vmem [shape: bf16[2,256], index: 0, kind: input, shape index: {}]   ;;  %s378_s2 = inlined_call_operand.vmem [shape: f32[1,64], index: 2, kind: input, shape index: {}]   ;;  %s379_s3 = inlined_call_operand.vmem [shape: bf16[2,64], index: 3, kind: output, shape index: {}]  }
   0x1   :  { %v281_v0 = vld [vmem:[%s376_s1 + $0x78] sm:$0xff]   ;;  %v283_v2 = vld [vmem:[%s376_s1 + $0x70] sm:$0xff]   ;;  %v285_v4 = vld [vmem:[%s376_s1 + $0x68] sm:$0xff]   ;;  %v65_v7 = vunpack.c.l.s4 %v297_v6  ;;  %20 = vst.msk [vmem:[#allocation2] sm:$0x3] %vm19_vm0, %v298_v26  ;;  %vm233_vm1 = vcmask 516096  }
   0x2   :  { %v282_v1 = vld [vmem:[%s376_s1 + $0x38] sm:$0xff]   ;;  %257 = vmatprep.subr.bf16.mxu0 %v281_v0  ;;  %v284_v3 = vld [vmem:[%s376_s1 + $0x30] sm:$0xff]   ;;  %v286_v5 = vld [vmem:[%s376_s1 + $0x28] sm:$0xff]   ;;  %v68_v12 = vshrl.u32 %v67_v8, 7 }
   0x3   :  { %258 = vmatpush3.bf16.msra.mxu0 %v282_v1  ;;  %v287_v9 = vld [vmem:[%s376_s1 + $0x60] sm:$0xff]   ;;  %v66_v11 = vunpack.c.0.s8 %v65_v7  ;;  %v289_v13 = vld [vmem:[%s376_s1 + $0x58] sm:$0xff]   ;;  %v291_v16 = vld [vmem:[%s376_s1 + $0x50] sm:$0xff]  }
   0x4   :  { %259 = vmatprep.subr.bf16.mxu0 %v283_v2  ;;  %v288_v10 = vld [vmem:[%s376_s1 + $0x20] sm:$0xff]   ;;  %v290_v14 = vld [vmem:[%s376_s1 + $0x18] sm:$0xff]   ;;  %v292_v19 = vld [vmem:[%s376_s1 + $0x10] sm:$0xff]  }
   0x5   :  { %v69_v15 = vsub.s32 %v66_v11, %v68_v12  ;;  %v239_v17 = vld.sshfl [vmem:[%s377_s0] sm:$0x11 pattern:$0x75316420]  ;;  %v293_v21 = vld [vmem:[%s376_s1 + $0x48] sm:$0xff]  }
   0x6   :  { %v63_v18 = vcombine.high %v239_v17, %v239_v17  ;;  %v294_v22 = vld [vmem:[%s376_s1 + $0x8] sm:$0xff]   ;;  %v295_v23 = vld [vmem:[%s376_s1 + $0x40] sm:$0xff]  }
   0x7   :  { %260 = vmatpush3.bf16.msra.mxu0 %v284_v3  ;;  %v296_v24 = vld [vmem:[%s376_s1] sm:$0xff]   ;;  %v70_v25 = vrot.slane %v239_v17, %v69_v15 }
   0x8   :  { %261 = vmatprep.subr.bf16.mxu0 %v285_v4  ;;  %v77_v20 = vrot.slane %v63_v18, %v69_v15  ;;  %v21_v28 = vld [vmem:[#allocation2] sm:$0x3] }
   0x9   :  { %v256_v34 = vld [vmem:[%s378_s2] ss:$0 sm:$0xff] }
   0xa   :  { %208 = vmatprep.mubr.bf16.mxu0 %v77_v20 }
   0xb   :  { %262 = vmatpush3.bf16.msra.mxu0 %v286_v5 }
   0xc   :  { %263 = vmatprep.subr.bf16.mxu0 %v287_v9 }
   0xf   :  { %264 = vmatpush3.bf16.msra.mxu0 %v288_v10 }
  0x10   :  { %265 = vmatprep.subr.bf16.mxu0 %v289_v13 }
  0x13   :  { %266 = vmatpush3.bf16.msra.mxu0 %v290_v14 }
  0x14   :  { %267 = vmatprep.subr.bf16.mxu0 %v291_v16 }
  0x17   :  { %268 = vmatpush3.bf16.msra.mxu0 %v292_v19 }
  0x18   :  { %269 = vmatprep.subr.bf16.mxu0 %v293_v21 }
  0x1b   :  { %270 = vmatpush3.bf16.msra.mxu0 %v294_v22 }
  0x1c   :  { %271 = vmatprep.subr.bf16.mxu0 %v295_v23 }
  0x1f   :  { %272 = vmatpush3.bf16.msra.mxu0 %v296_v24 }
  0x22   :  { %209 = vmatmul.mubr.bf16.vlgmr.msra.gmra.mxu0 %v70_v25 }
  0xe2   :  { %v273_v27 = vpop.f32.mrf.mxu0 }
  0xe4   :  { %v274_v29 = vpop.f32.mrf.mxu0 }
  0xe5   :  { %v275_v30 = vadd.f32 %v274_v29, %v273_v27 }
  0xe6   :  { %v276_v31 = vpop.f32.mrf.mxu0 }
  0xe7   :  { %v216_v32 = vadd.f32 %v275_v30, %v21_v28 }
  0xe8   :  { %v277_v33 = vpop.f32.mrf.mxu0 }
  0xe9   :  { %218 = vst.msk [vmem:[#allocation2] sm:$0x3] %vm19_vm0, %v216_v32 }
  0xf0   :  { %v222_v35 = vld [vmem:[#allocation2] sm:$0x3] }
  0xf1   :  { %v230_v36 = vadd.f32 %v256_v34, %v222_v35 }
  0xf3   :  { %v231_v37 = vmax.f32 %v230_v36, 0.0 }
  0xf5   :  { %v232_v38 = vpack.c.bf16 %v231_v37, %v231_v37 }
  0xf7   :  { %234 = vst.msk [vmem:[%s379_s3] sm:$0x1] %vm233_vm1, %v232_v38 }

// kernel: attributes_network_forward.17
= control target key start
LH: loop header
LB: loop body
LE: loop exit
PB: predicated region body
PF: predicated region fallthrough
CT: control target
= control target key end

     0   :  { %v193_v1 = vmov 0.0   ;;  %vm194_vm0 = vmmov 0   ;;  %vm20_vm1 = vcmask 320512   ;;  %s240_s0 = inlined_call_operand.vmem [shape: bf16[2,64], index: 0, kind: input, shape index: {}]   ;;  %s241_s1 = inlined_call_operand.vmem [shape: bf16[64,40], index: 1, kind: input, shape index: {}]   ;;  %s242_s2 = inlined_call_operand.vmem [shape: f32[1,40], index: 2, kind: input, shape index: {}]   ;;  %s243_s3 = inlined_call_operand.hbm [shape: f32[2,40], index: 3, kind: output, shape index: {}]  }
   0x1   :  { %v163_v0 = vld [vmem:[%s241_s1 + $0x18] sm:$0xff]   ;;  %148 = vmatprep.subr.bf16.mxu0 %v193_v1  ;;  %v164_v2 = vld [vmem:[%s241_s1 + $0x10] sm:$0xff]   ;;  %156 = vmatprep.mubr.msk.bf16.mxu0 %vm194_vm0, %v193_v1  ;;  %21 = vst.msk [vmem:[#allocation2] sm:$0x3] %vm20_vm1, %v193_v1 }
   0x2   :  { %149 = vmatpush3.bf16.msra.mxu0 %v163_v0 }
   0x3   :  { %150 = vmatprep.subr.bf16.mxu0 %v193_v1 }
   0x4   :  { %8 = vsyncpa [#allocation4], 0  ;;  %v165_v3 = vld [vmem:[%s241_s1 + $0x8] sm:$0xff]   ;;  %v166_v4 = vld [vmem:[%s241_s1] sm:$0xff]   ;;  %vm56_vm2 = vcmask 523264  }
   0x5   :  { %v23_v5 = vld [vmem:[%s240_s0] sm:$0x1]  ;;  %s195_s0 = smov [#allocation3]  }
   0x6   :  { %151 = vmatpush3.bf16.msra.mxu0 %v164_v2  ;;  %v141_v12 = vld [vmem:[%s242_s2] ss:$0 sm:$0xff]  ;;  %s128_s1 = sshll.u32 %s195_s0, 4  ;;  %s129_s1 = int_to_ptr.vmem [resolvable:$true] %s128_s1 }
   0x7   :  { %152 = vmatprep.subr.bf16.mxu0 %v193_v1  ;;  %s171_s24 = scalar_lea.vmem %s129_s1, 32  ;;  %p176_p1 = scmp.lt.s32.totalorder %s129_s1, %s129_s1 }
   0x8   :  { %v22_v6 = vld [vmem:[#allocation2] sm:$0x3]  ;;  %p172_p0 = scmp.ne.s32.totalorder %s129_s1, %s171_s24  ;;  %p177_p2 = scmp.lt.s32.totalorder %s171_s24, %s171_s24 }
   0xa   :  { %153 = vmatpush3.bf16.msra.mxu0 %v165_v3  ;;  %p178_p3 = por %p177_p2, %p176_p1 }
   0xb   :  { %154 = vmatprep.subr.bf16.mxu0 %v193_v1 }
   0xc   :  { %p179_p4 = pnand %p178_p3, %p172_p0 }
   0xe   :  { %155 = vmatpush3.bf16.msra.mxu0 %v166_v4 }
  0x11   :  { %157 = vmatmul.mubr.msk.bf16.vlgmr.msra.gmra.mxu0 %vm56_vm2, %v23_v5 }
  0xd1   :  { %v94_v7 = vpop.f32.mrf.mxu0 }
  0xd2   :  { %v100_v8 = vadd.f32 %v94_v7, %v22_v6 }
  0xd3   :  { %v158_v9 = vpop.f32.mrf.mxu0 }
  0xd4   :  { %102 = vst.msk [vmem:[#allocation2] sm:$0x3] %vm20_vm1, %v100_v8 }
  0xd5   :  { %v97_v10 = vpop.f32.mrf.mxu0 }
  0xd7   :  { %v159_v11 = vpop.f32.mrf.mxu0 }
  0xdb   :  { %v106_v13 = vld [vmem:[#allocation2] sm:$0x3] }
  0xdc   :  { %v114_v14 = vadd.f32 %v141_v12, %v106_v13 }
  0xde   :  { %v142_v15 = vmul.f32 -1.442695, %v114_v14 }
  0xe0   :  { %167 = vpow2.f32 %v142_v15 }
  0xed   :  { %v168_v16 = vpop.eup %167 }
  0xee   :  { %v118_v17 = vadd.f32 1.0, %v168_v16 }
  0xf0   :  { %169 = vrcp.f32 %v118_v17 }
  0xfd   :  { %v170_v18 = vpop.eup %169 }
  0xfe   :  { %121 = vst.msk [vmem:[#allocation3] sm:$0x3] %vm20_vm1, %v170_v18 }
  0xff   :  { %182 = shalt.err (!%p179_p4)
}
 0x100   :  { %131 = dma.vmem_to_hbm [thread:$0]  %s129_s1, 32, %s243_s3, [#allocation4]  }
 0x101   :  { %191 = dma.done.wait [#allocation4], 32  }
 0x102   :  { %192 = vsyncadd [#allocation4], 4294967264 }
 0x103   :  { %135 = vsyncpa [#allocation4], 1 }

</bundles_post_ra>
